<compile_context>
chip_gen: v7x
topology: tpu7x:2x2x1
jax: 0.10.0
libtpu: 0.0.40
codegen_flags: <defaults>
</compile_context>

<pallas_src>
import functools

import jax
import jax.numpy as jnp
from jax import lax
from jax.experimental import pallas as pl
from jax.experimental.pallas import tpu as pltpu


def _srm_fused_kernel(xcol_ref, w1_ref, scale_ref, shift_ref, w2_ref, b2_ref,
                      o_ref, o1bf_ref, *, H, W, C1, C2, row_block):
    f32 = jnp.float32
    Wp = W + 2                       # padded image width
    EXT = H * Wp                     # extended rows (W valid + 2 junk cols per row)
    LEAD = (-(Wp + 1)) % 16          # so the interior bf16 store starts on a sublane tile
    head = LEAD + Wp + 1             # scratch row where interior pixel (0, 0) lands
    ROWS = o1bf_ref.shape[0]

    # ---- conv1 (single K=9*Cin im2col matmul) + folded BN + ReLU -------------
    acc1 = jnp.dot(xcol_ref[0], w1_ref[...], preferred_element_type=f32)   # (EXT, C1)
    out1 = jnp.maximum(acc1 * scale_ref[...] + shift_ref[...], 0.0)        # f32
    # Zero the two junk columns of each extended row: written contiguously into
    # the padded scratch they become conv2's zero padding.
    col = lax.broadcasted_iota(jnp.int32, (EXT, 1), 0) % Wp
    out1 = jnp.where(col < W, out1, 0.0)

    # ---- padded bf16 out1, entirely in VMEM -----------------------------------
    # Halo zero-fills are unconditional (tiny): the scratch is per-core and a
    # "parallel" batch axis may hand some cores only non-zero program_ids.
    o1bf_ref[0:head, :] = jnp.zeros((head, C1), jnp.bfloat16)               # top halo
    o1bf_ref[head + EXT:ROWS, :] = jnp.zeros((ROWS - head - EXT, C1), jnp.bfloat16)
    o1bf_ref[head:head + EXT, :] = out1.astype(jnp.bfloat16)   # cast once, aligned store

    # ---- conv2 + gate + ReLU, row-blocked --------------------------------------
    n_blk = H // row_block
    RB = row_block * Wp              # extended rows per block
    for blk in range(n_blk):
        y0 = blk * row_block
        base = LEAD + y0 * Wp
        # One fused (RB, C2=2*C1) bf16 dot per tap, single f32 accumulation chain.
        acc = jnp.dot(o1bf_ref[base:base + RB, :], w2_ref[0],
                      preferred_element_type=f32)
        for k in range(1, 9):
            off = base + (k // 3) * Wp + (k % 3)    # all taps are contiguous slices
            acc = acc + jnp.dot(o1bf_ref[off:off + RB, :], w2_ref[k],
                                preferred_element_type=f32)
        out2 = acc + b2_ref[...]                    # (RB, C2)
        gate_w = out2[:, 0:C1]                      # lane-aligned split at 256
        gate_b = out2[:, C1:C2]
        center = out1[y0 * Wp:y0 * Wp + RB, :]      # full-precision f32 out1
        # One aligned extended-layout slab store; compaction happens in XLA.
        o_ref[0, y0 * Wp:y0 * Wp + RB, :] = jnp.maximum(gate_w * center + gate_b, 0.0)


def srm_forward(x, w1, b1, bn_gamma, bn_beta, bn_mean, bn_var, w2, b2, eps=1e-5):
    N, H, W, Cin = x.shape
    C1 = w1.shape[-1]
    C2 = w2.shape[-1]
    assert C2 == 2 * C1, "SRM gate split requires conv2 out = 2 * conv1 out"
    Wp = W + 2
    EXT = H * Wp
    LEAD = (-(Wp + 1)) % 16
    ROWS = -(-(LEAD + (H + 2) * Wp + 2) // 16) * 16        # covers the deepest tap read

    # row_block = largest divisor of H whose (RB, C2) f32 accumulator stays
    # around <= 2 MiB (whole image in one block at small H) -> fewest dots.
    max_rows = max(1, (2 * 1024 * 1024) // (Wp * C2 * 4))
    row_block = max(d for d in range(1, min(H, max_rows) + 1) if H % d == 0)
    RB = row_block * Wp

    # Fold eval-mode BN + conv1 bias into one affine: y = conv * scale + shift.
    bn_scale = bn_gamma / jnp.sqrt(bn_var + eps)
    bn_shift = bn_beta - bn_mean * bn_scale + b1 * bn_scale

    # conv1 im2col over the extended (H, W+2) grid.  Built in XLA because x is
    # the smallest tensor (Cin << C1); the large activation (out1) never leaves
    # VMEM inside the fused kernel.
    xpad = jnp.pad(x, ((0, 0), (1, 1), (1, 1), (0, 0)))
    xflat = xpad.reshape(N, (H + 2) * Wp, Cin)
    xflat = jnp.pad(xflat, ((0, 0), (0, 2), (0, 0)))       # tail rows for the largest taps
    cols = [lax.slice_in_dim(xflat, ky * Wp + kx, ky * Wp + kx + EXT, axis=1)
            for ky in range(3) for kx in range(3)]
    x_im2col = jnp.concatenate(cols, axis=-1).astype(jnp.bfloat16)   # (N, EXT, 9*Cin)

    w1r = w1.reshape(9 * Cin, C1).astype(jnp.bfloat16)
    w2r = w2.reshape(9, C1, C2).astype(jnp.bfloat16)

    # VMEM budget: double-buffered ins/outs + scratch + live accumulators.
    est = (2 * (EXT * 9 * Cin * 2 + 9 * Cin * C1 * 2 + 9 * C1 * C2 * 2
                + 2 * C1 * 4 + C2 * 4)                     # inputs (x2 buffers)
           + 2 * EXT * C1 * 4                              # output (x2 buffers)
           + ROWS * C1 * 2                                 # bf16 out1 scratch
           + EXT * C1 * 4 + 2 * RB * C2 * 4)               # live f32 out1 + accumulators
    vmem_limit = int(min(64 * 1024 * 1024, max(32 * 1024 * 1024, 2 * est)))

    kernel = functools.partial(_srm_fused_kernel, H=H, W=W, C1=C1, C2=C2,
                               row_block=row_block)
    out_ext = pl.pallas_call(
        kernel,
        out_shape=jax.ShapeDtypeStruct((N, EXT, C1), jnp.float32),
        grid_spec=pltpu.PrefetchScalarGridSpec(
            num_scalar_prefetch=0,
            grid=(N,),
            in_specs=[
                pl.BlockSpec((1, EXT, 9 * Cin), lambda n: (n, 0, 0)),
                pl.BlockSpec((9 * Cin, C1), lambda n: (0, 0)),
                pl.BlockSpec((1, C1), lambda n: (0, 0)),
                pl.BlockSpec((1, C1), lambda n: (0, 0)),
                pl.BlockSpec((9, C1, C2), lambda n: (0, 0, 0)),
                pl.BlockSpec((1, C2), lambda n: (0, 0)),
            ],
            out_specs=pl.BlockSpec((1, EXT, C1), lambda n: (n, 0, 0)),
            scratch_shapes=[pltpu.VMEM((ROWS, C1), jnp.bfloat16)],
        ),
        compiler_params=pltpu.CompilerParams(
            dimension_semantics=("parallel",),
            vmem_limit_bytes=vmem_limit),
    )(x_im2col, w1r, bn_scale.reshape(1, C1), bn_shift.reshape(1, C1),
      w2r, b2.reshape(1, C2))

    # Compact the extended layout (W+2 columns per row, 2 junk) to (N, H, W, C1).
    return out_ext.reshape(N, H, Wp, C1)[:, :, :W, :]


def _reference(x, w1, b1, bn_gamma, bn_beta, bn_mean, bn_var, w2, b2, eps=1e-5):
    # Same bf16-operand / f32-accumulate precision as the kernel (standard TPU
    # mixed precision); gate uses the full-precision f32 out1, like the kernel.
    dn = ('NHWC', 'HWIO', 'NHWC')
    bf = jnp.bfloat16
    C1 = w1.shape[-1]
    c1 = lax.conv_general_dilated(x.astype(bf), w1.astype(bf), (1, 1), 'SAME',
                                  dimension_numbers=dn,
                                  preferred_element_type=jnp.float32) + b1
    out1 = jax.nn.relu((c1 - bn_mean) / jnp.sqrt(bn_var + eps) * bn_gamma + bn_beta)
    c2 = lax.conv_general_dilated(out1.astype(bf), w2.astype(bf), (1, 1), 'SAME',
                                  dimension_numbers=dn,
                                  preferred_element_type=jnp.float32) + b2
    wg, bg = c2[..., :C1], c2[..., C1:]
    return jax.nn.relu(wg * out1 + bg)


if __name__ == "__main__":
    key = jax.random.PRNGKey(0)
    N, H, W, Cin = 2, 16, 16, 4
    C1, C2 = 256, 512
    k1, k2, kx = jax.random.split(key, 3)

    # kaiming_normal_(mode='fan_in', nonlinearity='relu'): std = sqrt(2 / fan_in)
    fan1 = Cin * 3 * 3
    w1 = jax.random.normal(k1, (3, 3, Cin, C1), jnp.float32) * jnp.sqrt(2.0 / fan1)
    b1 = jnp.zeros((C1,), jnp.float32)
    fan2 = C1 * 3 * 3
    w2 = jax.random.normal(k2, (3, 3, C1, C2), jnp.float32) * jnp.sqrt(2.0 / fan2)
    b2 = jnp.zeros((C2,), jnp.float32)

    # BatchNorm2d(256) init: weight=1, bias=0, running_mean=0, running_var=1
    bn_gamma = jnp.ones((C1,), jnp.float32)
    bn_beta = jnp.zeros((C1,), jnp.float32)
    bn_mean = jnp.zeros((C1,), jnp.float32)
    bn_var = jnp.ones((C1,), jnp.float32)

    x = jax.random.normal(kx, (N, H, W, Cin), jnp.float32)

    srm = jax.jit(srm_forward)
    out = jax.block_until_ready(srm(x, w1, b1, bn_gamma, bn_beta, bn_mean,
                                    bn_var, w2, b2))
    ref = jax.block_until_ready(_reference(x, w1, b1, bn_gamma, bn_beta,
                                           bn_mean, bn_var, w2, b2))

    assert out.shape == (N, H, W, C1), out.shape
    max_diff = float(jnp.max(jnp.abs(out - ref)))
    assert jnp.allclose(out, ref, atol=5e-3, rtol=5e-3), \
        f"max abs diff = {max_diff}"

    print("KERNEL_OK")
</pallas_src>

<mosaic_0001>
module attributes {stable_mosaic.version = 11 : i64} {
  func.func @_srm_fused_kernel(%arg0: i32, %arg1: memref<1x288x36xbf16, #tpu.memory_space<vmem>>, %arg2: memref<36x256xbf16, #tpu.memory_space<vmem>>, %arg3: memref<1x256xf32, #tpu.memory_space<vmem>>, %arg4: memref<1x256xf32, #tpu.memory_space<vmem>>, %arg5: memref<9x256x512xbf16, #tpu.memory_space<vmem>>, %arg6: memref<1x512xf32, #tpu.memory_space<vmem>>, %arg7: memref<1x288x256xf32, #tpu.memory_space<vmem>>, %arg8: memref<352x256xbf16, #tpu.memory_space<vmem>>) attributes {dimension_semantics = [#tpu.dimension_semantics<parallel>], iteration_bounds = array<i64: 2>, scalar_prefetch = 0 : i64, scratch_operands = 1 : i64, tpu.core_type = #tpu.core_type<tc>, window_params = [{transform_indices = @transform_0, window_bounds = array<i64: 1, 288, 36>}, {pipeline_mode = #tpu.pipeline_mode<synchronous>, transform_indices = @transform_1, window_bounds = array<i64: 36, 256>}, {pipeline_mode = #tpu.pipeline_mode<synchronous>, transform_indices = @transform_2, window_bounds = array<i64: 1, 256>}, {pipeline_mode = #tpu.pipeline_mode<synchronous>, transform_indices = @transform_3, window_bounds = array<i64: 1, 256>}, {pipeline_mode = #tpu.pipeline_mode<synchronous>, transform_indices = @transform_4, window_bounds = array<i64: 9, 256, 512>}, {pipeline_mode = #tpu.pipeline_mode<synchronous>, transform_indices = @transform_5, window_bounds = array<i64: 1, 512>}, {transform_indices = @transform_6, window_bounds = array<i64: 1, 288, 256>}]} {
    %c0 = arith.constant 0 : index
    %c0_0 = arith.constant 0 : index
    %c0_1 = arith.constant 0 : index
    %0 = vector.load %arg1[%c0, %c0_0, %c0_1] : memref<1x288x36xbf16, #tpu.memory_space<vmem>>, vector<1x288x36xbf16>
    %1 = vector.shape_cast %0 : vector<1x288x36xbf16> to vector<288x36xbf16>
    %c0_2 = arith.constant 0 : index
    %c0_3 = arith.constant 0 : index
    %2 = vector.load %arg2[%c0_2, %c0_3] : memref<36x256xbf16, #tpu.memory_space<vmem>>, vector<36x256xbf16>
    %cst = arith.constant dense<0.000000e+00> : vector<288x256xf32>
    %3 = tpu.matmul %1, %2, %cst {dimension_numbers = #tpu.dot_dimension_numbers<[1], [0], [0], [1], [0, 0, 1, 1], [], []>} : vector<288x36xbf16>, vector<36x256xbf16>, vector<288x256xf32> -> vector<288x256xf32>
    %c0_4 = arith.constant 0 : index
    %c0_5 = arith.constant 0 : index
    %4 = vector.load %arg3[%c0_4, %c0_5] : memref<1x256xf32, #tpu.memory_space<vmem>>, vector<1x256xf32>
    %5 = vector.broadcast %4 : vector<1x256xf32> to vector<288x256xf32>
    %6 = arith.mulf %3, %5 : vector<288x256xf32>
    %c0_6 = arith.constant 0 : index
    %c0_7 = arith.constant 0 : index
    %7 = vector.load %arg4[%c0_6, %c0_7] : memref<1x256xf32, #tpu.memory_space<vmem>>, vector<1x256xf32>
    %8 = vector.broadcast %7 : vector<1x256xf32> to vector<288x256xf32>
    %9 = arith.addf %6, %8 : vector<288x256xf32>
    %cst_8 = arith.constant 0.000000e+00 : f32
    %10 = vector.broadcast %cst_8 : f32 to vector<288x256xf32>
    %11 = arith.maximumf %9, %10 : vector<288x256xf32>
    %12 = tpu.iota {dimensions = array<i32: 0>} : vector<288x1xi32>
    %c18_i32 = arith.constant 18 : i32
    %c0_i32 = arith.constant 0 : i32
    %13 = arith.cmpi eq, %c18_i32, %c0_i32 : i32
    %c1_i32 = arith.constant 1 : i32
    %14 = arith.select %13, %c1_i32, %c18_i32 : i32
    %15 = vector.broadcast %14 : i32 to vector<288x1xi32>
    %16 = arith.remsi %12, %15 : vector<288x1xi32>
    %c0_i32_9 = arith.constant 0 : i32
    %17 = vector.broadcast %c0_i32_9 : i32 to vector<288x1xi32>
    %18 = arith.cmpi ne, %16, %17 : vector<288x1xi32>
    %c0_i32_10 = arith.constant 0 : i32
    %19 = vector.broadcast %c0_i32_10 : i32 to vector<288x1xi32>
    %20 = arith.cmpi slt, %16, %19 : vector<288x1xi32>
    %c0_i32_11 = arith.constant 0 : i32
    %21 = arith.cmpi slt, %14, %c0_i32_11 : i32
    %22 = vector.broadcast %21 : i1 to vector<288x1xi1>
    %23 = vector.broadcast %22 : vector<288x1xi1> to vector<288x1xi1>
    %24 = arith.xori %20, %23 : vector<288x1xi1>
    %25 = arith.andi %24, %18 : vector<288x1xi1>
    %26 = vector.broadcast %14 : i32 to vector<288x1xi32>
    %27 = arith.addi %16, %26 : vector<288x1xi32>
    %28 = arith.select %25, %27, %16 : vector<288x1xi1>, vector<288x1xi32>
    %c16_i32 = arith.constant 16 : i32
    %29 = vector.broadcast %c16_i32 : i32 to vector<288x1xi32>
    %30 = arith.cmpi slt, %28, %29 : vector<288x1xi32>
    %cst_12 = arith.constant 0.000000e+00 : f32
    %31 = vector.shape_cast %30 : vector<288x1xi1> to vector<288x1xi1>
    %32 = vector.broadcast %31 : vector<288x1xi1> to vector<288x256xi1>
    %33 = vector.broadcast %cst_12 : f32 to vector<288x256xf32>
    %34 = arith.select %32, %11, %33 : vector<288x256xi1>, vector<288x256xf32>
    %cst_13 = arith.constant 0.000000e+00 : bf16
    %35 = vector.broadcast %cst_13 : bf16 to vector<32x256xbf16>
    %c0_14 = arith.constant 0 : index
    %c0_15 = arith.constant 0 : index
    %36 = vector.load %arg8[%c0_14, %c0_15] : memref<352x256xbf16, #tpu.memory_space<vmem>>, vector<32x256xbf16>
    tpu.vector_store %arg8[%c0_14, %c0_15], %35 {strides = array<i32>} : memref<352x256xbf16, #tpu.memory_space<vmem>>, vector<32x256xbf16>,
    %cst_16 = arith.constant 0.000000e+00 : bf16
    %37 = vector.broadcast %cst_16 : bf16 to vector<32x256xbf16>
    %c320 = arith.constant 320 : index
    %c0_17 = arith.constant 0 : index
    %38 = vector.load %arg8[%c320, %c0_17] : memref<352x256xbf16, #tpu.memory_space<vmem>>, vector<32x256xbf16>
    tpu.vector_store %arg8[%c320, %c0_17], %37 {strides = array<i32>} : memref<352x256xbf16, #tpu.memory_space<vmem>>, vector<32x256xbf16>,
    %39 = arith.truncf %34 : vector<288x256xf32> to vector<288x256xbf16>
    %c32 = arith.constant 32 : index
    %c0_18 = arith.constant 0 : index
    %40 = vector.load %arg8[%c32, %c0_18] : memref<352x256xbf16, #tpu.memory_space<vmem>>, vector<288x256xbf16>
    tpu.vector_store %arg8[%c32, %c0_18], %39 {strides = array<i32>} : memref<352x256xbf16, #tpu.memory_space<vmem>>, vector<288x256xbf16>,
    %c13 = arith.constant 13 : index
    %c0_19 = arith.constant 0 : index
    %41 = vector.load %arg8[%c13, %c0_19] : memref<352x256xbf16, #tpu.memory_space<vmem>>, vector<288x256xbf16>
    %c0_20 = arith.constant 0 : index
    %c0_21 = arith.constant 0 : index
    %c0_22 = arith.constant 0 : index
    %42 = vector.load %arg5[%c0_20, %c0_21, %c0_22] : memref<9x256x512xbf16, #tpu.memory_space<vmem>>, vector<1x256x512xbf16>
    %43 = vector.shape_cast %42 : vector<1x256x512xbf16> to vector<256x512xbf16>
    %cst_23 = arith.constant dense<0.000000e+00> : vector<288x512xf32>
    %44 = tpu.matmul %41, %43, %cst_23 {dimension_numbers = #tpu.dot_dimension_numbers<[1], [0], [0], [1], [0, 0, 1, 1], [], []>} : vector<288x256xbf16>, vector<256x512xbf16>, vector<288x512xf32> -> vector<288x512xf32>
    %c14 = arith.constant 14 : index
    %c0_24 = arith.constant 0 : index
    %45 = vector.load %arg8[%c14, %c0_24] : memref<352x256xbf16, #tpu.memory_space<vmem>>, vector<288x256xbf16>
    %c1 = arith.constant 1 : index
    %c0_25 = arith.constant 0 : index
    %c0_26 = arith.constant 0 : index
    %46 = vector.load %arg5[%c1, %c0_25, %c0_26] : memref<9x256x512xbf16, #tpu.memory_space<vmem>>, vector<1x256x512xbf16>
    %47 = vector.shape_cast %46 : vector<1x256x512xbf16> to vector<256x512xbf16>
    %cst_27 = arith.constant dense<0.000000e+00> : vector<288x512xf32>
    %48 = tpu.matmul %45, %47, %cst_27 {dimension_numbers = #tpu.dot_dimension_numbers<[1], [0], [0], [1], [0, 0, 1, 1], [], []>} : vector<288x256xbf16>, vector<256x512xbf16>, vector<288x512xf32> -> vector<288x512xf32>
    %49 = arith.addf %44, %48 : vector<288x512xf32>
    %c15 = arith.constant 15 : index
    %c0_28 = arith.constant 0 : index
    %50 = vector.load %arg8[%c15, %c0_28] : memref<352x256xbf16, #tpu.memory_space<vmem>>, vector<288x256xbf16>
    %c2 = arith.constant 2 : index
    %c0_29 = arith.constant 0 : index
    %c0_30 = arith.constant 0 : index
    %51 = vector.load %arg5[%c2, %c0_29, %c0_30] : memref<9x256x512xbf16, #tpu.memory_space<vmem>>, vector<1x256x512xbf16>
    %52 = vector.shape_cast %51 : vector<1x256x512xbf16> to vector<256x512xbf16>
    %cst_31 = arith.constant dense<0.000000e+00> : vector<288x512xf32>
    %53 = tpu.matmul %50, %52, %cst_31 {dimension_numbers = #tpu.dot_dimension_numbers<[1], [0], [0], [1], [0, 0, 1, 1], [], []>} : vector<288x256xbf16>, vector<256x512xbf16>, vector<288x512xf32> -> vector<288x512xf32>
    %54 = arith.addf %49, %53 : vector<288x512xf32>
    %c31 = arith.constant 31 : index
    %c0_32 = arith.constant 0 : index
    %55 = vector.load %arg8[%c31, %c0_32] : memref<352x256xbf16, #tpu.memory_space<vmem>>, vector<288x256xbf16>
    %c3 = arith.constant 3 : index
    %c0_33 = arith.constant 0 : index
    %c0_34 = arith.constant 0 : index
    %56 = vector.load %arg5[%c3, %c0_33, %c0_34] : memref<9x256x512xbf16, #tpu.memory_space<vmem>>, vector<1x256x512xbf16>
    %57 = vector.shape_cast %56 : vector<1x256x512xbf16> to vector<256x512xbf16>
    %cst_35 = arith.constant dense<0.000000e+00> : vector<288x512xf32>
    %58 = tpu.matmul %55, %57, %cst_35 {dimension_numbers = #tpu.dot_dimension_numbers<[1], [0], [0], [1], [0, 0, 1, 1], [], []>} : vector<288x256xbf16>, vector<256x512xbf16>, vector<288x512xf32> -> vector<288x512xf32>
    %59 = arith.addf %54, %58 : vector<288x512xf32>
    %c32_36 = arith.constant 32 : index
    %c0_37 = arith.constant 0 : index
    %60 = vector.load %arg8[%c32_36, %c0_37] : memref<352x256xbf16, #tpu.memory_space<vmem>>, vector<288x256xbf16>
    %c4 = arith.constant 4 : index
    %c0_38 = arith.constant 0 : index
    %c0_39 = arith.constant 0 : index
    %61 = vector.load %arg5[%c4, %c0_38, %c0_39] : memref<9x256x512xbf16, #tpu.memory_space<vmem>>, vector<1x256x512xbf16>
    %62 = vector.shape_cast %61 : vector<1x256x512xbf16> to vector<256x512xbf16>
    %cst_40 = arith.constant dense<0.000000e+00> : vector<288x512xf32>
    %63 = tpu.matmul %60, %62, %cst_40 {dimension_numbers = #tpu.dot_dimension_numbers<[1], [0], [0], [1], [0, 0, 1, 1], [], []>} : vector<288x256xbf16>, vector<256x512xbf16>, vector<288x512xf32> -> vector<288x512xf32>
    %64 = arith.addf %59, %63 : vector<288x512xf32>
    %c33 = arith.constant 33 : index
    %c0_41 = arith.constant 0 : index
    %65 = vector.load %arg8[%c33, %c0_41] : memref<352x256xbf16, #tpu.memory_space<vmem>>, vector<288x256xbf16>
    %c5 = arith.constant 5 : index
    %c0_42 = arith.constant 0 : index
    %c0_43 = arith.constant 0 : index
    %66 = vector.load %arg5[%c5, %c0_42, %c0_43] : memref<9x256x512xbf16, #tpu.memory_space<vmem>>, vector<1x256x512xbf16>
    %67 = vector.shape_cast %66 : vector<1x256x512xbf16> to vector<256x512xbf16>
    %cst_44 = arith.constant dense<0.000000e+00> : vector<288x512xf32>
    %68 = tpu.matmul %65, %67, %cst_44 {dimension_numbers = #tpu.dot_dimension_numbers<[1], [0], [0], [1], [0, 0, 1, 1], [], []>} : vector<288x256xbf16>, vector<256x512xbf16>, vector<288x512xf32> -> vector<288x512xf32>
    %69 = arith.addf %64, %68 : vector<288x512xf32>
    %c49 = arith.constant 49 : index
    %c0_45 = arith.constant 0 : index
    %70 = vector.load %arg8[%c49, %c0_45] : memref<352x256xbf16, #tpu.memory_space<vmem>>, vector<288x256xbf16>
    %c6 = arith.constant 6 : index
    %c0_46 = arith.constant 0 : index
    %c0_47 = arith.constant 0 : index
    %71 = vector.load %arg5[%c6, %c0_46, %c0_47] : memref<9x256x512xbf16, #tpu.memory_space<vmem>>, vector<1x256x512xbf16>
    %72 = vector.shape_cast %71 : vector<1x256x512xbf16> to vector<256x512xbf16>
    %cst_48 = arith.constant dense<0.000000e+00> : vector<288x512xf32>
    %73 = tpu.matmul %70, %72, %cst_48 {dimension_numbers = #tpu.dot_dimension_numbers<[1], [0], [0], [1], [0, 0, 1, 1], [], []>} : vector<288x256xbf16>, vector<256x512xbf16>, vector<288x512xf32> -> vector<288x512xf32>
    %74 = arith.addf %69, %73 : vector<288x512xf32>
    %c50 = arith.constant 50 : index
    %c0_49 = arith.constant 0 : index
    %75 = vector.load %arg8[%c50, %c0_49] : memref<352x256xbf16, #tpu.memory_space<vmem>>, vector<288x256xbf16>
    %c7 = arith.constant 7 : index
    %c0_50 = arith.constant 0 : index
    %c0_51 = arith.constant 0 : index
    %76 = vector.load %arg5[%c7, %c0_50, %c0_51] : memref<9x256x512xbf16, #tpu.memory_space<vmem>>, vector<1x256x512xbf16>
    %77 = vector.shape_cast %76 : vector<1x256x512xbf16> to vector<256x512xbf16>
    %cst_52 = arith.constant dense<0.000000e+00> : vector<288x512xf32>
    %78 = tpu.matmul %75, %77, %cst_52 {dimension_numbers = #tpu.dot_dimension_numbers<[1], [0], [0], [1], [0, 0, 1, 1], [], []>} : vector<288x256xbf16>, vector<256x512xbf16>, vector<288x512xf32> -> vector<288x512xf32>
    %79 = arith.addf %74, %78 : vector<288x512xf32>
    %c51 = arith.constant 51 : index
    %c0_53 = arith.constant 0 : index
    %80 = vector.load %arg8[%c51, %c0_53] : memref<352x256xbf16, #tpu.memory_space<vmem>>, vector<288x256xbf16>
    %c8 = arith.constant 8 : index
    %c0_54 = arith.constant 0 : index
    %c0_55 = arith.constant 0 : index
    %81 = vector.load %arg5[%c8, %c0_54, %c0_55] : memref<9x256x512xbf16, #tpu.memory_space<vmem>>, vector<1x256x512xbf16>
    %82 = vector.shape_cast %81 : vector<1x256x512xbf16> to vector<256x512xbf16>
    %cst_56 = arith.constant dense<0.000000e+00> : vector<288x512xf32>
    %83 = tpu.matmul %80, %82, %cst_56 {dimension_numbers = #tpu.dot_dimension_numbers<[1], [0], [0], [1], [0, 0, 1, 1], [], []>} : vector<288x256xbf16>, vector<256x512xbf16>, vector<288x512xf32> -> vector<288x512xf32>
    %84 = arith.addf %79, %83 : vector<288x512xf32>
    %c0_57 = arith.constant 0 : index
    %c0_58 = arith.constant 0 : index
    %85 = vector.load %arg6[%c0_57, %c0_58] : memref<1x512xf32, #tpu.memory_space<vmem>>, vector<1x512xf32>
    %86 = vector.broadcast %85 : vector<1x512xf32> to vector<288x512xf32>
    %87 = arith.addf %84, %86 : vector<288x512xf32>
    %88 = vector.extract_strided_slice %87 {offsets = [0, 0], sizes = [288, 256], strides = [1, 1]} : vector<288x512xf32> to vector<288x256xf32>
    %89 = vector.extract_strided_slice %87 {offsets = [0, 256], sizes = [288, 256], strides = [1, 1]} : vector<288x512xf32> to vector<288x256xf32>
    %90 = arith.mulf %88, %34 : vector<288x256xf32>
    %91 = arith.addf %90, %89 : vector<288x256xf32>
    %cst_59 = arith.constant 0.000000e+00 : f32
    %92 = vector.broadcast %cst_59 : f32 to vector<288x256xf32>
    %93 = arith.maximumf %91, %92 : vector<288x256xf32>
    %c0_60 = arith.constant 0 : index
    %c0_61 = arith.constant 0 : index
    %c0_62 = arith.constant 0 : index
    %94 = vector.load %arg7[%c0_60, %c0_61, %c0_62] : memref<1x288x256xf32, #tpu.memory_space<vmem>>, vector<1x288x256xf32>
    %95 = vector.shape_cast %94 : vector<1x288x256xf32> to vector<288x256xf32>
    %96 = vector.shape_cast %93 : vector<288x256xf32> to vector<1x288x256xf32>
    tpu.vector_store %arg7[%c0_60, %c0_61, %c0_62], %96 {strides = array<i32>} : memref<1x288x256xf32, #tpu.memory_space<vmem>>, vector<1x288x256xf32>,
    return
  }
  func.func @transform_0(%arg0: i32) -> (i32, i32, i32) {
    %c0_i32 = arith.constant 0 : i32
    %c0_i32_0 = arith.constant 0 : i32
    %c0_i32_1 = arith.constant 0 : i32
    return %arg0, %c0_i32, %c0_i32_0 : i32, i32, i32
  }
  func.func @transform_1(%arg0: i32) -> (i32, i32) {
    %c0_i32 = arith.constant 0 : i32
    %c0_i32_0 = arith.constant 0 : i32
    %c0_i32_1 = arith.constant 0 : i32
    return %c0_i32, %c0_i32_0 : i32, i32
  }
  func.func @transform_2(%arg0: i32) -> (i32, i32) {
    %c0_i32 = arith.constant 0 : i32
    %c0_i32_0 = arith.constant 0 : i32
    %c0_i32_1 = arith.constant 0 : i32
    return %c0_i32, %c0_i32_0 : i32, i32
  }
  func.func @transform_3(%arg0: i32) -> (i32, i32) {
    %c0_i32 = arith.constant 0 : i32
    %c0_i32_0 = arith.constant 0 : i32
    %c0_i32_1 = arith.constant 0 : i32
    return %c0_i32, %c0_i32_0 : i32, i32
  }
  func.func @transform_4(%arg0: i32) -> (i32, i32, i32) {
    %c0_i32 = arith.constant 0 : i32
    %c0_i32_0 = arith.constant 0 : i32
    %c0_i32_1 = arith.constant 0 : i32
    %c0_i32_2 = arith.constant 0 : i32
    return %c0_i32, %c0_i32_0, %c0_i32_1 : i32, i32, i32
  }
  func.func @transform_5(%arg0: i32) -> (i32, i32) {
    %c0_i32 = arith.constant 0 : i32
    %c0_i32_0 = arith.constant 0 : i32
    %c0_i32_1 = arith.constant 0 : i32
    return %c0_i32, %c0_i32_0 : i32, i32
  }
  func.func @transform_6(%arg0: i32) -> (i32, i32, i32) {
    %c0_i32 = arith.constant 0 : i32
    %c0_i32_0 = arith.constant 0 : i32
    %c0_i32_1 = arith.constant 0 : i32
    return %arg0, %c0_i32, %c0_i32_0 : i32, i32, i32
  }
}

</mosaic_0001>

<bundles_post_ra>
// kernel: srm_forward.1
= control target key start
LH: loop header
LB: loop body
LE: loop exit
PB: predicated region body
PF: predicated region fallthrough
CT: control target
= control target key end

     0   :  { %s16156_s21 = smov 0   ;;  %s22568_s0 = inlined_call_operand.vmem [shape: bf16[2,288,36], index: 0, kind: input, shape index: {}]   ;;  %s22569_s1 = inlined_call_operand.vmem [shape: bf16[36,256], index: 1, kind: input, shape index: {}]   ;;  %s22570_s2 = inlined_call_operand.vmem [shape: f32[1,256], index: 2, kind: input, shape index: {}]   ;;  %s22571_s3 = inlined_call_operand.vmem [shape: f32[1,256], index: 3, kind: input, shape index: {}]   ;;  %s22572_s4 = inlined_call_operand.vmem [shape: bf16[9,256,512], index: 4, kind: input, shape index: {}]   ;;  %s22573_s5 = inlined_call_operand.vmem [shape: f32[1,512], index: 5, kind: input, shape index: {}]   ;;  %s22574_s6 = inlined_call_operand.vmem [shape: f32[2,288,256], index: 6, kind: output, shape index: {}]  }
   0x1 LB: > { %s12814_s22 = sadd.s32 4294967295, %s16118_s21   ;;  %p12818_p0 = scmp.ge.s32.totalorder %s16118_s21, 1  ;;  %s16118_s21 = sphi %s16156_s21, %s16_s21  }
   0x2   : > { %p212_p1 = scmp.lt.s32.totalorder %s16118_s21, 3 }
   0x4   : > { %p213_p2 = pnand %p12818_p0, %p212_p1 }
   0x6   : > { %216 = sbr.rel (%p213_p2) target bundleno = 1798 (0x706), region = 44 }
   0xd   : > { %v15195_v0 = vld [vmem:[%s22569_s1 + $0x4] ss:$8 sps:$4 sm:$0xff]   ;;  %v15197_v1 = vld [vmem:[%s22569_s1] ss:$8 sps:$4 sm:$0xff]   ;;  %v16120_v2 = vmov 0   ;;  %p242_p3 = scmp.lt.s32.totalorder %s12814_s22, 1 }
   0xe   : > { %503 = vmatprep.mubr.bf16.mxu0 %v16120_v2  ;;  %1717 = vst [vmem:[#allocation2] sm:$0xff] %v16120_v2  ;;  %1718 = vst [vmem:[#allocation2 + $0x8] sm:$0xff] %v16120_v2  ;;  %593 = vmatprep.mubr.bf16.mxu1 %v16120_v2  ;;  %v15198_v3 = vld [vmem:[%s22569_s1 + $0x14] ss:$8 sps:$4 sm:$0xff]   ;;  %v293_v4 = vld [vmem:[%s22569_s1 + $0x20] sm:$0x33] }
   0xf   : > { %1719 = vst [vmem:[#allocation2 + $0x10] sm:$0xff] %v16120_v2  ;;  %1720 = vst [vmem:[#allocation2 + $0x18] sm:$0xff] %v16120_v2  ;;  %471 = vmatprep.subr.bf16.mxu0 %v15195_v0  ;;  %13954 = vmatprep.subr.bf16.mxu1 %v15195_v0  ;;  %v15200_v5 = vld [vmem:[%s22569_s1 + $0x10] ss:$8 sps:$4 sm:$0xff]   ;;  %v12843_v6 = vcombine.low %v293_v4, %v293_v4  ;;  %s24050_s22 = smov (!%p242_p3, %s12814_s22), 1  ;;  %v12844_v7 = vcombine.high %v293_v4, %v293_v4  ;;  %vm464_vm0 = vcmask 1041408  }
  0x10   : > { %1721 = vst [vmem:[#allocation2 + $0x140] sm:$0xff] %v16120_v2  ;;  %1722 = vst [vmem:[#allocation2 + $0x148] sm:$0xff] %v16120_v2  ;;  %472 = vmatpush1.bf16.msra.mxu0 %v15197_v1  ;;  %13957 = vmatpush1.bf16.msra.mxu1 %v15197_v1  ;;  %s15112_s9 = smul.u32 144, %s24050_s22  ;;  %v15223_v9 = vld [vmem:[%s22572_s4 + $0x204] ss:$16 sps:$4 sm:$0xff]   ;;  %vm409_vm1 = vcmask 293888  }
  0x11   : > { %1723 = vst [vmem:[#allocation2 + $0x150] sm:$0xff] %v16120_v2  ;;  %1724 = vst [vmem:[#allocation2 + $0x158] sm:$0xff] %v16120_v2  ;;  %473 = vmatprep.subr.bf16.mxu0 %v15198_v3  ;;  %13955 = vmatprep.subr.bf16.mxu1 %v15198_v3  ;;  %v466_v8 = vsel %vm464_vm0, %v12843_v6, 0  ;;  %v15226_v10 = vld [vmem:[%s22572_s4 + $0x20c] ss:$16 sps:$4 sm:$0xff]   ;;  %vm22585_vm2 = vcmask 1040384  }
  0x12   : > { %s16195_s12 = scalar_lea.vmem %s22568_s0, %s15112_s9  ;;  %v15224_v12 = vld [vmem:[%s22572_s4 + $0x208] ss:$16 sps:$4 sm:$0xff]   ;;  %v15221_v13 = vld [vmem:[%s22572_s4 + $0x200] ss:$16 sps:$4 sm:$0xff]   ;;  %v15229_v14 = vld [vmem:[%s22572_s4 + $0x224] ss:$16 sps:$4 sm:$0xff]  }
  0x13   : > { %v15203_v11 = vld [vmem:[%s16195_s12] sm:$0xff]   ;;  %v15211_v15 = vld [vmem:[%s16195_s12 + $0x48] sm:$0xff]   ;;  %v15213_v18 = vld [vmem:[%s16195_s12 + $0x50] sm:$0xff]   ;;  %s15113_s9 = smul.u32 576, %s24050_s22 }
  0x14   : > { %474 = vmatpush1.bf16.msra.mxu0 %v15200_v5  ;;  %13958 = vmatpush1.bf16.msra.mxu1 %v15200_v5  ;;  %v15204_v16 = vld [vmem:[%s16195_s12 + $0x8] sm:$0xff]   ;;  %v15227_v17 = vld [vmem:[%s22572_s4 + $0x220] ss:$16 sps:$4 sm:$0xff]   ;;  %v15235_v23 = vld [vmem:[%s22572_s4 + $0x244] ss:$16 sps:$4 sm:$0xff]  }
  0x15   : > { %12845 = vmatprep.subr.msk.bf16.mxu0 %vm464_vm0, %v12844_v7  ;;  %13956 = vmatprep.subr.msk.bf16.mxu1 %vm464_vm0, %v12844_v7  ;;  %v15205_v19 = vld [vmem:[%s16195_s12 + $0x10] sm:$0xff]   ;;  %v15230_v20 = vld [vmem:[%s22572_s4 + $0x228] ss:$16 sps:$4 sm:$0xff]   ;;  %v15232_v21 = vld [vmem:[%s22572_s4 + $0x22c] ss:$16 sps:$4 sm:$0xff]   ;;  %s22285_s11 = scalar_lea.vmem %s22574_s6, %s15113_s9 }
  0x16   : > { %v15233_v22 = vld [vmem:[%s22572_s4 + $0x240] ss:$16 sps:$4 sm:$0xff]   ;;  %v15236_v24 = vld [vmem:[%s22572_s4 + $0x248] ss:$16 sps:$4 sm:$0xff]   ;;  %v15238_v25 = vld [vmem:[%s22572_s4 + $0x24c] ss:$16 sps:$4 sm:$0xff]  }
  0x17   : > { %v15214_v26 = vld [vmem:[%s16195_s12 + $0x58] sm:$0xff]   ;;  %v15241_v27 = vld [vmem:[%s22572_s4 + $0x264] ss:$16 sps:$4 sm:$0xff]   ;;  %v15239_v28 = vld [vmem:[%s22572_s4 + $0x260] ss:$16 sps:$4 sm:$0xff]  }
  0x18   : > { %476 = vmatpush1.bf16.msra.mxu0 %v466_v8  ;;  %13959 = vmatpush1.bf16.msra.mxu1 %v466_v8  ;;  %v15244_v29 = vld [vmem:[%s22572_s4 + $0x26c] ss:$16 sps:$4 sm:$0xff]   ;;  %v15242_v30 = vld [vmem:[%s22572_s4 + $0x268] ss:$16 sps:$4 sm:$0xff]   ;;  %v15247_v31 = vld [vmem:[%s22572_s4 + $0x284] ss:$16 sps:$4 sm:$0xff]  }
  0x19   : > { %2435 = vmatprep.subr.bf16.mxu1 %v15223_v9  ;;  %2648 = vmatprep.subr.bf16.mxu0 %v15226_v10  ;;  %v15206_v32 = vld [vmem:[%s16195_s12 + $0x18] sm:$0xff]   ;;  %v15245_v34 = vld [vmem:[%s22572_s4 + $0x280] ss:$16 sps:$4 sm:$0xff]   ;;  %v15253_v35 = vld [vmem:[%s22572_s4 + $0x2a4] ss:$16 sps:$4 sm:$0xff]  }
  0x1a   : > { %v15250_v33 = vld [vmem:[%s22572_s4 + $0x28c] ss:$16 sps:$4 sm:$0xff]   ;;  %v15248_v36 = vld [vmem:[%s22572_s4 + $0x288] ss:$16 sps:$4 sm:$0xff]   ;;  %v15215_v37 = vld [vmem:[%s16195_s12 + $0x60] sm:$0xff]  }
  0x1b   : > { %12846 = vmatmul.mubr.msk.bf16.vlgmr.msra.gmra.mrb[0].mxu0 %vm409_vm1, %v15203_v11  ;;  %12855 = vmatmul.mubr.msk.bf16.vlgmr.msra.gmra.mrb[0].mxu1 %vm409_vm1, %v15211_v15  ;;  %v15256_v38 = vld [vmem:[%s22572_s4 + $0x2ac] ss:$16 sps:$4 sm:$0xff]   ;;  %v15251_v39 = vld [vmem:[%s22572_s4 + $0x2a0] ss:$16 sps:$4 sm:$0xff]   ;;  %v15259_v40 = vld [vmem:[%s22572_s4 + $0x2c4] ss:$16 sps:$4 sm:$0xff]  }
  0x1c   : > { %513 = vmatprep.mubr.bf16.mxu0 %v16120_v2  ;;  %2649 = vmatpush1.bf16.msra.mxu0 %v15224_v12  ;;  %v15254_v41 = vld [vmem:[%s22572_s4 + $0x2a8] ss:$16 sps:$4 sm:$0xff]   ;;  %v15207_v42 = vld [vmem:[%s16195_s12 + $0x20] sm:$0xff]   ;;  %v15262_v43 = vld [vmem:[%s22572_s4 + $0x2cc] ss:$16 sps:$4 sm:$0xff]  }
  0x1d   : > { %603 = vmatprep.mubr.bf16.mxu1 %v16120_v2  ;;  %2436 = vmatpush1.bf16.msra.mxu1 %v15221_v13  ;;  %v15257_v44 = vld [vmem:[%s22572_s4 + $0x2c0] ss:$16 sps:$4 sm:$0xff]   ;;  %v15265_v45 = vld [vmem:[%s22572_s4 + $0x2e4] ss:$16 sps:$4 sm:$0xff]   ;;  %v15260_v46 = vld [vmem:[%s22572_s4 + $0x2c8] ss:$16 sps:$4 sm:$0xff]  }
  0x1e   : > { %2437 = vmatprep.subr.bf16.mxu1 %v15229_v14  ;;  %2650 = vmatprep.subr.bf16.mxu0 %v15232_v21  ;;  %v15216_v47 = vld [vmem:[%s16195_s12 + $0x68] sm:$0xff]   ;;  %v15263_v49 = vld [vmem:[%s22572_s4 + $0x2e0] ss:$16 sps:$4 sm:$0xff]   ;;  %v15271_v50 = vld [vmem:[%s22572_s4 + $0x304] ss:$16 sps:$4 sm:$0xff]  }
  0x1f   : > { %v15268_v48 = vld [vmem:[%s22572_s4 + $0x2ec] ss:$16 sps:$4 sm:$0xff]   ;;  %v15266_v51 = vld [vmem:[%s22572_s4 + $0x2e8] ss:$16 sps:$4 sm:$0xff]   ;;  %v15269_v54 = vld [vmem:[%s22572_s4 + $0x300] ss:$16 sps:$4 sm:$0xff]  }
  0x20   : > { %2651 = vmatpush1.bf16.msra.mxu0 %v15230_v20  ;;  %v15208_v52 = vld [vmem:[%s16195_s12 + $0x28] sm:$0xff]   ;;  %v15217_v56 = vld [vmem:[%s16195_s12 + $0x70] sm:$0xff]   ;;  %v15218_v4 = vld [vmem:[%s16195_s12 + $0x78] sm:$0xff]  }
  0x21   : > { %2438 = vmatpush1.bf16.msra.mxu1 %v15227_v17  ;;  %2652 = vmatprep.subr.bf16.mxu0 %v15238_v25  ;;  %v15274_v53 = vld [vmem:[%s22572_s4 + $0x30c] ss:$16 sps:$4 sm:$0xff]   ;;  %v15272_v55 = vld [vmem:[%s22572_s4 + $0x308] ss:$16 sps:$4 sm:$0xff]   ;;  %v15277_v57 = vld [vmem:[%s22572_s4 + $0x324] ss:$16 sps:$4 sm:$0xff]  }
  0x22   : > { %2439 = vmatprep.subr.bf16.mxu1 %v15235_v23  ;;  %v15275_v58 = vld [vmem:[%s22572_s4 + $0x320] ss:$16 sps:$4 sm:$0xff]   ;;  %v15280_v59 = vld [vmem:[%s22572_s4 + $0x32c] ss:$16 sps:$4 sm:$0xff]   ;;  %v15283_v60 = vld [vmem:[%s22572_s4 + $0x344] ss:$16 sps:$4 sm:$0xff]  }
  0x23   : > { %12847 = vmatmul.mubr.msk.bf16.gmra.mrb[4].mxu0 %vm409_vm1, %v15204_v16  ;;  %12856 = vmatmul.mubr.msk.bf16.gmra.mrb[4].mxu1 %vm409_vm1, %v15213_v18  ;;  %v15278_v61 = vld [vmem:[%s22572_s4 + $0x328] ss:$16 sps:$4 sm:$0xff]   ;;  %v15209_v62 = vld [vmem:[%s16195_s12 + $0x30] sm:$0xff]   ;;  %v15286_v63 = vld [vmem:[%s22572_s4 + $0x34c] ss:$16 sps:$4 sm:$0xff]  }
  0x24   : > { %523 = vmatprep.mubr.bf16.mxu0 %v16120_v2  ;;  %613 = vmatprep.mubr.bf16.mxu1 %v16120_v2  ;;  %v15281_v0 = vld [vmem:[%s22572_s4 + $0x340] ss:$16 sps:$4 sm:$0xff]   ;;  %v15289_v1 = vld [vmem:[%s22572_s4 + $0x364] ss:$16 sps:$4 sm:$0xff]   ;;  %v15284_v3 = vld [vmem:[%s22572_s4 + $0x348] ss:$16 sps:$4 sm:$0xff]  }
  0x25   : > { %2440 = vmatpush1.bf16.msra.mxu1 %v15233_v22  ;;  %2653 = vmatpush1.bf16.msra.mxu0 %v15236_v24  ;;  %v15292_v5 = vld [vmem:[%s22572_s4 + $0x36c] ss:$16 sps:$4 sm:$0xff]   ;;  %v15287_v6 = vld [vmem:[%s22572_s4 + $0x360] ss:$16 sps:$4 sm:$0xff]   ;;  %v15295_v7 = vld [vmem:[%s22572_s4 + $0x384] ss:$16 sps:$4 sm:$0xff]  }
  0x26   : > { %2441 = vmatprep.subr.bf16.mxu1 %v15241_v27  ;;  %2654 = vmatprep.subr.bf16.mxu0 %v15244_v29  ;;  %v15290_v8 = vld [vmem:[%s22572_s4 + $0x368] ss:$16 sps:$4 sm:$0xff]   ;;  %v15293_v10 = vld [vmem:[%s22572_s4 + $0x380] ss:$16 sps:$4 sm:$0xff]   ;;  %v15298_v14 = vld [vmem:[%s22572_s4 + $0x38c] ss:$16 sps:$4 sm:$0xff]  }
  0x27   : > { %v15210_v9 = vld [vmem:[%s16195_s12 + $0x38] sm:$0xff]   ;;  %v15219_v11 = vld [vmem:[%s16195_s12 + $0x80] sm:$0xff]   ;;  %v15220_v13 = vld [vmem:[%s16195_s12 + $0x88] sm:$0xff]   ;;  %v16442_v29 = vrot.slane %v16120_v2, 7 }
  0x28   : > { %v15212_v12 = vld [vmem:[%s16195_s12 + $0x40] sm:$0xff]   ;;  %v15296_v15 = vld [vmem:[%s22572_s4 + $0x388] ss:$16 sps:$4 sm:$0xff]   ;;  %v15304_v17 = vld [vmem:[%s22572_s4 + $0x3ac] ss:$16 sps:$4 sm:$0xff]  }
  0x29   : > { %2442 = vmatpush1.bf16.msra.mxu1 %v15239_v28  ;;  %2655 = vmatpush1.bf16.msra.mxu0 %v15242_v30  ;;  %v15301_v16 = vld [vmem:[%s22572_s4 + $0x3a4] ss:$16 sps:$4 sm:$0xff]   ;;  %v15299_v18 = vld [vmem:[%s22572_s4 + $0x3a0] ss:$16 sps:$4 sm:$0xff]   ;;  %v15308_v22 = vld [vmem:[%s22572_s4 + $0x3c8] ss:$16 sps:$4 sm:$0xff]  }
  0x2a   : > { %2443 = vmatprep.subr.bf16.mxu1 %v15247_v31  ;;  %2656 = vmatprep.subr.bf16.mxu0 %v15250_v33  ;;  %v15307_v20 = vld [vmem:[%s22572_s4 + $0x3c4] ss:$16 sps:$4 sm:$0xff]   ;;  %v15305_v21 = vld [vmem:[%s22572_s4 + $0x3c0] ss:$16 sps:$4 sm:$0xff]   ;;  %v15310_v23 = vld [vmem:[%s22572_s4 + $0x3cc] ss:$16 sps:$4 sm:$0xff]  }
  0x2b   : > { %12848 = vmatmul.mubr.msk.bf16.gmra.mrb[8].mxu0 %vm409_vm1, %v15205_v19  ;;  %12857 = vmatmul.mubr.msk.bf16.gmra.mrb[8].mxu1 %vm409_vm1, %v15214_v26  ;;  %v15302_v19 = vld [vmem:[%s22572_s4 + $0x3a8] ss:$16 sps:$4 sm:$0xff]   ;;  %v15313_v24 = vld [vmem:[%s22572_s4 + $0x3e4] ss:$16 sps:$4 sm:$0xff]   ;;  %v15311_v25 = vld [vmem:[%s22572_s4 + $0x3e0] ss:$16 sps:$4 sm:$0xff]  }
  0x2c   : > { %533 = vmatprep.mubr.bf16.mxu0 %v16120_v2  ;;  %623 = vmatprep.mubr.bf16.mxu1 %v16120_v2  ;;  %v15314_v26 = vld [vmem:[%s22572_s4 + $0x3e8] ss:$16 sps:$4 sm:$0xff]   ;;  %v15316_v27 = vld [vmem:[%s22572_s4 + $0x3ec] ss:$16 sps:$4 sm:$0xff]   ;;  %22949 = vst [vmem:[#allocation3_spill] sm:$0xff] %v16442_v29 }
  0x2d   : > { %2444 = vmatpush1.bf16.msra.mxu1 %v15245_v34  ;;  %2657 = vmatpush1.bf16.msra.mxu0 %v15248_v36  ;;  %v1900_v28 = vld [vmem:[#allocation2 + $0x8] sm:$0x80]  ;;  %v1899_v31 = vld [vmem:[#allocation2] sm:$0x80]  ;;  %v15320_v36 = vld [vmem:[%s22572_s4 + $0x8] ss:$16 sps:$4 sm:$0xff]  }
  0x2e   : > { %2445 = vmatprep.subr.bf16.mxu1 %v15253_v35  ;;  %2658 = vmatprep.subr.bf16.mxu0 %v15256_v38  ;;  %v2008_v30 = vrot.slane %v1900_v28, 7  ;;  %v15319_v35 = vld [vmem:[%s22572_s4 + $0x4] ss:$16 sps:$4 sm:$0xff]   ;;  %v15323_v38 = vld [vmem:[%s22572_s4 + $0x20] ss:$16 sps:$4 sm:$0xff]  }
  0x30   : > { %v2010_v33 = vsel %vm22585_vm2, %v2008_v30, %v16442_v29 }
  0x31   : > { %2446 = vmatpush1.bf16.msra.mxu1 %v15251_v39  ;;  %2659 = vmatpush1.bf16.msra.mxu0 %v15254_v41  ;;  %v15325_v39 = vld [vmem:[%s22572_s4 + $0x24] ss:$16 sps:$4 sm:$0xff]   ;;  %v15326_v41 = vld [vmem:[%s22572_s4 + $0x28] ss:$16 sps:$4 sm:$0xff]  }
  0x32   : > { %2447 = vmatprep.subr.bf16.mxu1 %v15259_v40  ;;  %2660 = vmatprep.subr.bf16.mxu0 %v15262_v43  ;;  %v686_v40 = vlaneseq }
  0x33   : > { %12849 = vmatmul.mubr.msk.bf16.gmra.mrb[12].mxu0 %vm409_vm1, %v15206_v32  ;;  %12858 = vmatmul.mubr.msk.bf16.gmra.mrb[12].mxu1 %vm409_vm1, %v15215_v37  ;;  %v2005_v32 = vrot.slane %v1899_v31, 7  ;;  %v15322_v37 = vld [vmem:[%s22572_s4 + $0xc] ss:$16 sps:$4 sm:$0xff]  }
  0x34   : > { %543 = vmatprep.mubr.bf16.mxu0 %v16120_v2  ;;  %633 = vmatprep.mubr.bf16.mxu1 %v16120_v2  ;;  %v16472_v43 = vshrl.u32 %v686_v40, 7  ;;  %v15346_v40 = vld [vmem:[%s22572_s4 + $0x8c] ss:$16 sps:$4 sm:$0xff]  }
  0x35   : > { %2448 = vmatpush1.bf16.msra.mxu1 %v15257_v44  ;;  %2661 = vmatpush1.bf16.msra.mxu0 %v15260_v46  ;;  %v2007_v34 = vsel %vm22585_vm2, %v2005_v32, %v16442_v29 }
  0x36   : > { %2449 = vmatprep.subr.bf16.mxu1 %v15265_v45  ;;  %2662 = vmatprep.subr.bf16.mxu0 %v15268_v48  ;;  %22950 = vst [vmem:[#allocation4_spill] sm:$0xff] %v16472_v43  ;;  %v16475_v44 = vmul.u32.u64.low 3817748708, %v16472_v43  ;;  %v16476_v45 = vmul.u32.u64.high 3817748708, %v16472_v43, %v16475_v44  ;;  %v16479_v46 = vadd.s32 8, %v16472_v43  ;;  %v16485_v48 = vadd.s32 24, %v16472_v43 }
  0x37   : > { %v16578_v28 = vadd.s32 88, %v16472_v43  ;;  %v16866_v29 = vadd.s32 200, %v16472_v43 }
  0x39   : > { %2450 = vmatpush1.bf16.msra.mxu1 %v15263_v49  ;;  %2663 = vmatpush1.bf16.msra.mxu0 %v15266_v51  ;;  %v15329_v49 = vld [vmem:[%s22572_s4 + $0x40] ss:$16 sps:$4 sm:$0xff]   ;;  %v16494_v51 = vadd.s32 32, %v16472_v43 }
  0x3a   : > { %2451 = vmatprep.subr.bf16.mxu1 %v15271_v50  ;;  %2664 = vmatprep.subr.bf16.mxu0 %v15274_v53  ;;  %v15331_v50 = vld [vmem:[%s22572_s4 + $0x44] ss:$16 sps:$4 sm:$0xff]   ;;  %v15334_v53 = vld [vmem:[%s22572_s4 + $0x4c] ss:$16 sps:$4 sm:$0xff]  }
  0x3b   : > { %12850 = vmatmul.mubr.msk.bf16.gmra.mrb[16].mxu0 %vm409_vm1, %v15207_v42  ;;  %12859 = vmatmul.mubr.msk.bf16.gmra.mrb[16].mxu1 %vm409_vm1, %v15216_v47  ;;  %v15328_v42 = vld [vmem:[%s22572_s4 + $0x2c] ss:$16 sps:$4 sm:$0xff]   ;;  %v16482_v47 = vadd.s32 16, %v16472_v43 }
  0x3c   : > { %553 = vmatprep.mubr.bf16.mxu0 %v16120_v2  ;;  %643 = vmatprep.mubr.bf16.mxu1 %v16120_v2 }
  0x3d   : > { %2452 = vmatpush1.bf16.msra.mxu1 %v15269_v54  ;;  %2665 = vmatpush1.bf16.msra.mxu0 %v15272_v55  ;;  %v16503_v54 = vmul.u32.u64.low 3817748708, %v16479_v46  ;;  %v16504_v55 = vmul.u32.u64.high 3817748708, %v16479_v46, %v16503_v54 }
  0x3e   : > { %2453 = vmatprep.subr.bf16.mxu1 %v15277_v57  ;;  %2666 = vmatprep.subr.bf16.mxu0 %v15280_v59  ;;  %v16615_v54 = vsub.s32 1, %v16472_v43 }
  0x40   : > { %22953 = vst [vmem:[#allocation7_spill] sm:$0xff] %v16615_v54 }
  0x41   : > { %2454 = vmatpush1.bf16.msra.mxu1 %v15275_v58  ;;  %2667 = vmatpush1.bf16.msra.mxu0 %v15278_v61  ;;  %v16510_v57 = vmul.u32.u64.low 3817748708, %v16482_v47  ;;  %v16511_v58 = vmul.u32.u64.high 3817748708, %v16482_v47, %v16510_v57  ;;  %v16518_v61 = vadd.s32 48, %v16472_v43 }
  0x42   : > { %2455 = vmatprep.subr.bf16.mxu1 %v15283_v60  ;;  %2668 = vmatprep.subr.bf16.mxu0 %v15286_v63  ;;  %v16514_v59 = vmul.u32.u64.low 3817748708, %v16485_v48  ;;  %v16515_v60 = vmul.u32.u64.high 3817748708, %v16485_v48, %v16514_v59 }
  0x43   : > { %12851 = vmatmul.mubr.msk.bf16.gmra.mrb[20].mxu0 %vm409_vm1, %v15208_v52  ;;  %12860 = vmatmul.mubr.msk.bf16.gmra.mrb[20].mxu1 %vm409_vm1, %v15217_v56  ;;  %v15332_v52 = vld [vmem:[%s22572_s4 + $0x48] ss:$16 sps:$4 sm:$0xff]   ;;  %v16507_v56 = vadd.s32 40, %v16472_v43 }
  0x44   : > { %563 = vmatprep.mubr.bf16.mxu0 %v16120_v2  ;;  %653 = vmatprep.mubr.bf16.mxu1 %v16120_v2 }
  0x45   : > { %2456 = vmatpush1.bf16.msra.mxu1 %v15281_v0  ;;  %2669 = vmatpush1.bf16.msra.mxu0 %v15284_v3  ;;  %v16524_v63 = vmul.u32.u64.low 3817748708, %v16494_v51  ;;  %v16525_v0 = vmul.u32.u64.high 3817748708, %v16494_v51, %v16524_v63 }
  0x46   : > { %2457 = vmatprep.subr.bf16.mxu1 %v15289_v1  ;;  %2670 = vmatprep.subr.bf16.mxu0 %v15292_v5  ;;  %v16528_v1 = vmul.u32.u64.low 3817748708, %v16507_v56  ;;  %v16529_v3 = vmul.u32.u64.high 3817748708, %v16507_v56, %v16528_v1  ;;  %v967_v5 = vshrl.u32 %v16476_v45, 4  ;;  %v16622_v63 = vadd.s32 112, %v16472_v43 }
  0x47   : > { %v16605_v44 = vmul.u32.u64.low 3817748708, %v16578_v28  ;;  %v16606_v45 = vmul.u32.u64.high 3817748708, %v16578_v28, %v16605_v44 }
  0x48   : > { %v1022_v30 = vshrl.u32 %v16529_v3, 4 }
  0x49   : > { %2458 = vmatpush1.bf16.msra.mxu1 %v15287_v6  ;;  %2671 = vmatpush1.bf16.msra.mxu0 %v15290_v8  ;;  %v16536_v6 = vadd.s32 72, %v16472_v43 }
  0x4a   : > { %2459 = vmatprep.subr.bf16.mxu1 %v15295_v7  ;;  %2672 = vmatprep.subr.bf16.mxu0 %v15298_v14  ;;  %v16539_v7 = vadd.s32 80, %v16472_v43  ;;  %v15338_v14 = vld [vmem:[%s22572_s4 + $0x68] ss:$16 sps:$4 sm:$0xff]  }
  0x4b   : > { %12852 = vmatmul.mubr.msk.bf16.gmra.mrb[24].mxu0 %vm409_vm1, %v15209_v62  ;;  %12861 = vmatmul.mubr.msk.bf16.gmra.mrb[24].mxu1 %vm409_vm1, %v15218_v4  ;;  %v16521_v62 = vadd.s32 56, %v16472_v43  ;;  %v16532_v4 = vadd.s32 64, %v16472_v43 }
  0x4c   : > { %573 = vmatprep.mubr.bf16.mxu0 %v16120_v2  ;;  %663 = vmatprep.mubr.bf16.mxu1 %v16120_v2 }
  0x4d   : > { %2460 = vmatpush1.bf16.msra.mxu1 %v15293_v10  ;;  %2673 = vmatpush1.bf16.msra.mxu0 %v15296_v15  ;;  %v978_v15 = vshrl.u32 %v16504_v55, 4 }
  0x4e   : > { %2461 = vmatprep.subr.bf16.mxu1 %v15301_v16  ;;  %2674 = vmatprep.subr.bf16.mxu0 %v15304_v17  ;;  %v16560_v16 = vmul.u32.u64.low 3817748708, %v16532_v4  ;;  %v16561_v17 = vmul.u32.u64.high 3817748708, %v16532_v4, %v16560_v16 }
  0x4f   : > { %v15350_v16 = vld [vmem:[%s22572_s4 + $0xa8] ss:$16 sps:$4 sm:$0xff]  }
  0x51   : > { %2462 = vmatpush1.bf16.msra.mxu1 %v15299_v18  ;;  %2675 = vmatpush1.bf16.msra.mxu0 %v15302_v19  ;;  %v15340_v18 = vld [vmem:[%s22572_s4 + $0x6c] ss:$16 sps:$4 sm:$0xff]  }
  0x52   : > { %2463 = vmatprep.subr.bf16.mxu1 %v15307_v20  ;;  %2676 = vmatprep.subr.bf16.mxu0 %v15310_v23  ;;  %v16567_v19 = vmul.u32.u64.low 3817748708, %v16536_v6  ;;  %v16568_v20 = vmul.u32.u64.high 3817748708, %v16536_v6, %v16567_v19  ;;  %v968_v23 = vmul.u32 18, %v967_v5 }
  0x53   : > { %12853 = vmatmul.mubr.msk.bf16.gmra.mrb[28].mxu0 %vm409_vm1, %v15210_v9  ;;  %12862 = vmatmul.mubr.msk.bf16.gmra.mrb[28].mxu1 %vm409_vm1, %v15219_v11  ;;  %v16542_v8 = vmul.u32.u64.low 3817748708, %v16518_v61  ;;  %v16543_v9 = vmul.u32.u64.high 3817748708, %v16518_v61, %v16542_v8  ;;  %v16546_v10 = vmul.u32.u64.low 3817748708, %v16521_v62  ;;  %v16547_v11 = vmul.u32.u64.high 3817748708, %v16521_v62, %v16546_v10 }
  0x54   : > { %583 = vmatprep.mubr.bf16.mxu0 %v16120_v2  ;;  %673 = vmatprep.mubr.bf16.mxu1 %v16120_v2  ;;  %v15317_v2 = vld [vmem:[%s22572_s4] ss:$16 sps:$4 sm:$0xff]  }
  0x55   : > { %2464 = vmatpush1.bf16.msra.mxu1 %v15305_v21  ;;  %2677 = vmatpush1.bf16.msra.mxu0 %v15308_v22  ;;  %v16571_v21 = vmul.u32.u64.low 3817748708, %v16539_v7  ;;  %v16572_v22 = vmul.u32.u64.high 3817748708, %v16539_v7, %v16571_v21  ;;  %v1033_v31 = vshrl.u32 %v16543_v9, 4  ;;  %v1044_v32 = vshrl.u32 %v16547_v11, 4 }
  0x56   : > { %2465 = vmatprep.subr.bf16.mxu1 %v15313_v24  ;;  %2678 = vmatprep.subr.bf16.mxu0 %v15316_v27  ;;  %v989_v24 = vshrl.u32 %v16511_v58, 4  ;;  %v1011_v27 = vshrl.u32 %v16525_v0, 4  ;;  %v16638_v11 = vadd.s32 120, %v16472_v43 }
  0x57   : > { %v1034_v55 = vmul.u32 18, %v1033_v31  ;;  %v1045_v57 = vmul.u32 18, %v1044_v32 }
  0x59   : > { %2466 = vmatpush1.bf16.msra.mxu1 %v15311_v25  ;;  %2679 = vmatpush1.bf16.msra.mxu0 %v15314_v26  ;;  %v1000_v25 = vshrl.u32 %v16515_v60, 4  ;;  %v979_v26 = vmul.u32 18, %v978_v15  ;;  %v15349_v15 = vld [vmem:[%s22572_s4 + $0xa4] ss:$16 sps:$4 sm:$0xff]  }
  0x5a   : > { %3558 = vmatprep.subr.bf16.mxu1 %v15319_v35  ;;  %3771 = vmatprep.subr.bf16.mxu0 %v15322_v37  ;;  %v15344_v35 = vld [vmem:[%s22572_s4 + $0x88] ss:$16 sps:$4 sm:$0xff]  }
  0x5b   : > { %12854 = vmatmul.mubr.msk.bf16.gmra.mrb[32].mxu0 %vm409_vm1, %v15212_v12  ;;  %12863 = vmatmul.mubr.msk.bf16.gmra.mrb[32].mxu1 %vm409_vm1, %v15220_v13  ;;  %v15335_v12 = vld [vmem:[%s22572_s4 + $0x60] ss:$16 sps:$4 sm:$0xff]   ;;  %v15337_v13 = vld [vmem:[%s22572_s4 + $0x64] ss:$16 sps:$4 sm:$0xff]   ;;  %v1001_v37 = vmul.u32 18, %v1000_v25  ;;  %v16628_v1 = vsub.s32 %v16479_v46, %v979_v26 }
  0x5c   : > { %2467 = vmatprep.mubr.bf16.mxu1 %v2010_v33  ;;  %2680 = vmatprep.mubr.bf16.mxu0 %v2010_v33  ;;  %v16584_v33 = vsub.s32 %v16472_v43, %v968_v23 }
  0x5d   : > { %22954 = vst [vmem:[#allocation8_spill] sm:$0xff] %v16628_v1  ;;  %vm1358_vm5 = vcmp.ne.s32.totalorder %v16628_v1, 0  ;;  %vm1394_vm6 = vcmp.lt.s32.totalorder %v16628_v1, 0 }
  0x5e   : > { %22951 = vst [vmem:[#allocation5_spill] sm:$0xff] %v16584_v33  ;;  %v16625_v0 = vadd.s32 18, %v16584_v33  ;;  %vm1357_vm3 = vcmp.ne.s32.totalorder %v16584_v33, 0  ;;  %vm1393_vm4 = vcmp.lt.s32.totalorder %v16584_v33, 0  ;;  %vm16809_vm12 = vmand %vm1394_vm6, %vm1358_vm5  ;;  %v23030_v33 = vmov 0 }
  0x5f   : > { %vm16789_vm9 = vmand %vm1393_vm4, %vm1357_vm3 }
  0x63   : > { %2468 = vmatmul.mubr.bf16.vlgmr.msra.gmra.mrb[36].mxu1 %v2007_v34  ;;  %2681 = vmatmul.mubr.bf16.vlgmr.msra.gmra.mrb[36].mxu0 %v2007_v34  ;;  %v15341_v34 = vld [vmem:[%s22572_s4 + $0x80] ss:$16 sps:$4 sm:$0xff]  }
  0x64   : > { %3559 = vmatpush1.bf16.msra.mxu1 %v15317_v2  ;;  %3772 = vmatpush1.bf16.msra.mxu0 %v15320_v36  ;;  %v15343_v2 = vld [vmem:[%s22572_s4 + $0x84] ss:$16 sps:$4 sm:$0xff]   ;;  %v990_v36 = vmul.u32 18, %v989_v24 }
  0x65   : > { %3560 = vmatprep.subr.bf16.mxu1 %v15325_v39  ;;  %3773 = vmatprep.subr.bf16.mxu0 %v15328_v42  ;;  %v16597_v39 = vadd.s32 96, %v16472_v43  ;;  %v1077_v42 = vshrl.u32 %v16572_v22, 4  ;;  %v16694_v21 = vmul.u32.u64.low 3817748708, %v16638_v11  ;;  %v16695_v22 = vmul.u32.u64.high 3817748708, %v16638_v11, %v16694_v21 }
  0x66   : > { %v16631_v8 = vsub.s32 %v16482_v47, %v990_v36  ;;  %v15347_v47 = vld [vmem:[%s22572_s4 + $0xa0] ss:$16 sps:$4 sm:$0xff]   ;;  %v16732_v36 = vadd.s32 152, %v16472_v43  ;;  %v15364_v21 = vld [vmem:[%s22572_s4 + $0xec] ss:$16 sps:$4 sm:$0xff]  }
  0x67   : > { %v16618_v59 = vmul.u32.u64.low 3817748708, %v16597_v39  ;;  %v16619_v60 = vmul.u32.u64.high 3817748708, %v16597_v39, %v16618_v59  ;;  %v1078_v5 = vmul.u32 18, %v1077_v42 }
  0x68   : > { %3561 = vmatpush1.bf16.msra.mxu1 %v15323_v38  ;;  %3774 = vmatpush1.bf16.msra.mxu0 %v15326_v41  ;;  %v1055_v38 = vshrl.u32 %v16561_v17, 4  ;;  %v1066_v41 = vshrl.u32 %v16568_v20, 4  ;;  %22955 = vst [vmem:[#allocation9_spill] sm:$0xff] %v16631_v8  ;;  %v15352_v17 = vld [vmem:[%s22572_s4 + $0xac] ss:$16 sps:$4 sm:$0xff]   ;;  %vm1359_vm7 = vcmp.ne.s32.totalorder %v16631_v8, 0 }
  0x69   : > { %3562 = vmatprep.subr.bf16.mxu1 %v15331_v50  ;;  %3775 = vmatprep.subr.bf16.mxu0 %v15334_v53  ;;  %v1012_v50 = vmul.u32 18, %v1011_v27  ;;  %v16612_v53 = vadd.s32 104, %v16472_v43  ;;  %vm1395_vm8 = vcmp.lt.s32.totalorder %v16631_v8, 0  ;;  %v16688_v19 = vadd.s32 18, %v16631_v8 }
  0x6a   : > { %v1056_v58 = vmul.u32 18, %v1055_v38  ;;  %v1067_v3 = vmul.u32 18, %v1066_v41  ;;  %v16691_v20 = vsub.s32 %v16539_v7, %v1078_v5  ;;  %v1099_v27 = vshrl.u32 %v16619_v60, 4  ;;  %v15353_v38 = vld [vmem:[%s22572_s4 + $0xc0] ss:$16 sps:$4 sm:$0xff]   ;;  %vm16826_vm13 = vmand %vm1395_vm8, %vm1359_vm7 }
  0x6b   : > { %v16634_v9 = vmul.u32.u64.low 3817748708, %v16612_v53  ;;  %v16635_v10 = vmul.u32.u64.high 3817748708, %v16612_v53, %v16634_v9  ;;  %22964 = vst [vmem:[#allocation18_spill] sm:$0xff] %v16688_v19  ;;  %v15356_v41 = vld [vmem:[%s22572_s4 + $0xc8] ss:$16 sps:$4 sm:$0xff]   ;;  %v16767_v60 = vadd.s32 160, %v16472_v43 }
  0x6c   : > { %3563 = vmatpush1.bf16.msra.mxu1 %v15329_v49  ;;  %3776 = vmatpush1.bf16.msra.mxu0 %v15332_v52  ;;  %v16609_v49 = vsub.s32 0, %v16472_v43  ;;  %v1023_v52 = vmul.u32 18, %v1022_v30  ;;  %22965 = vst [vmem:[#allocation19_spill] sm:$0xff] %v16691_v20  ;;  %v16717_v30 = vadd.s32 144, %v16472_v43  ;;  %v16746_v42 = vmul.u32 18, %v1099_v27 }
  0x6d   : > { %3564 = vmatprep.subr.bf16.mxu1 %v15337_v13  ;;  %3777 = vmatprep.subr.bf16.mxu0 %v15340_v18  ;;  %v16644_v13 = vsub.s32 %v16494_v51, %v1012_v50  ;;  %v16664_v51 = vsub.s32 %v16532_v4, %v1056_v58  ;;  %v16682_v4 = vsub.s32 %v16536_v6, %v1067_v3  ;;  %v1088_v18 = vshrl.u32 %v16606_v45, 4  ;;  %v15361_v5 = vld [vmem:[%s22572_s4 + $0xe4] ss:$16 sps:$4 sm:$0xff]  }
  0x6e   : > { %22952 = vst [vmem:[#allocation6_spill] sm:$0xff] %v16609_v49  ;;  %v16647_v46 = vsub.s32 %v16507_v56, %v1023_v52  ;;  %v16750_v45 = vmul.u32.u64.low 3817748708, %v16717_v30  ;;  %v16751_v50 = vmul.u32.u64.high 3817748708, %v16717_v30, %v16750_v45  ;;  %v15358_v52 = vld [vmem:[%s22572_s4 + $0xcc] ss:$16 sps:$4 sm:$0xff]   ;;  %v16770_v3 = vadd.s32 168, %v16472_v43 }
  0x6f   : > { %22957 = vst [vmem:[#allocation11_spill] sm:$0xff] %v16644_v13  ;;  %22961 = vst [vmem:[#allocation15_spill] sm:$0xff] %v16664_v51  ;;  %v16701_v23 = vadd.s32 18, %v16644_v13  ;;  %v16713_v26 = vadd.s32 18, %v16664_v51  ;;  %v16720_v31 = vadd.s32 18, %v16682_v4  ;;  %v16722_v32 = vmul.u32 18, %v1088_v18 }
  0x70   : > { %3565 = vmatpush1.bf16.msra.mxu1 %v15335_v12  ;;  %3778 = vmatpush1.bf16.msra.mxu0 %v15338_v14  ;;  %v16641_v12 = vsub.s32 %v16485_v48, %v1001_v37  ;;  %22958 = vst [vmem:[#allocation12_spill] sm:$0xff] %v16647_v46  ;;  %v16650_v14 = vsub.s32 %v16518_v61, %v1034_v55  ;;  %v16667_v56 = vmul.u32.u64.low 3817748708, %v16622_v63  ;;  %v16668_v61 = vmul.u32.u64.high 3817748708, %v16622_v63, %v16667_v56  ;;  %22963 = vst [vmem:[#allocation17_spill] sm:$0xff] %v16682_v4  ;;  %v684_v55 = vld [vmem:[%s22570_s2] sm:$0x3] }
  0x71   : > { %3566 = vmatprep.subr.bf16.mxu1 %v15343_v2  ;;  %3779 = vmatprep.subr.bf16.mxu0 %v15346_v40  ;;  %v16661_v48 = vsub.s32 %v16521_v62, %v1045_v57  ;;  %v16679_v62 = vadd.s32 18, %v16628_v1  ;;  %22967 = vst [vmem:[#allocation21_spill] sm:$0xff] %v16701_v23  ;;  %v16704_v24 = vadd.s32 18, %v16647_v46  ;;  %22970 = vst [vmem:[#allocation24_spill] sm:$0xff] %v16713_v26  ;;  %v16728_v2 = vadd.s32 18, %v16691_v20 }
  0x72   : > { %22956 = vst [vmem:[#allocation10_spill] sm:$0xff] %v16641_v12  ;;  %22959 = vst [vmem:[#allocation13_spill] sm:$0xff] %v16650_v14  ;;  %v16698_v6 = vadd.s32 18, %v16641_v12  ;;  %v16707_v25 = vadd.s32 18, %v16650_v14  ;;  %v16735_v37 = vadd.s32 136, %v16472_v43  ;;  %v1121_v44 = vshrl.u32 %v16668_v61, 4 }
  0x73   : > { %22960 = vst [vmem:[#allocation14_spill] sm:$0xff] %v16661_v48  ;;  %22962 = vst [vmem:[#allocation16_spill] sm:$0xff] %v16679_v62  ;;  %v16710_v7 = vadd.s32 18, %v16661_v48  ;;  %v15355_v40 = vld [vmem:[%s22572_s4 + $0xc4] ss:$16 sps:$4 sm:$0xff]   ;;  %v22973_v61 = vmov 0 }
  0x74   : > { %3567 = vmatpush1.bf16.msra.mxu1 %v15341_v34  ;;  %3780 = vmatpush1.bf16.msra.mxu0 %v15344_v35  ;;  %22966 = vst [vmem:[#allocation20_spill] sm:$0xff] %v16698_v6  ;;  %22968 = vst [vmem:[#allocation22_spill] sm:$0xff] %v16704_v24  ;;  %v16725_v34 = vadd.s32 128, %v16472_v43  ;;  %v1110_v35 = vshrl.u32 %v16635_v10, 4  ;;  %v768_v57 = vld [vmem:[%s22571_s3] sm:$0x3] }
  0x75   : > { %3568 = vmatprep.subr.bf16.mxu1 %v15349_v15  ;;  %3781 = vmatprep.subr.bf16.mxu0 %v15352_v17  ;;  %22969 = vst [vmem:[#allocation23_spill] sm:$0xff] %v16710_v7  ;;  %22971 = vst [vmem:[#allocation25_spill] sm:$0xff] %v16720_v31  ;;  %v1132_v10 = vshrl.u32 %v16695_v22, 4  ;;  %v15359_v56 = vld [vmem:[%s22572_s4 + $0xe0] ss:$16 sps:$4 sm:$0xff]   ;;  %v22974_v61 = vsel %vm16789_vm9, 4294967295, %v22973_v61 }
  0x76   : > { %22972 = vst [vmem:[#allocation26_spill] sm:$0xff] %v16728_v2  ;;  %v16763_v58 = vmul.u32.u64.low 3817748708, %v16725_v34  ;;  %v16764_v59 = vmul.u32.u64.high 3817748708, %v16725_v34, %v16763_v58  ;;  %v16775_v9 = vmul.u32 18, %v1110_v35  ;;  %vm1360_vm10 = vcmp.ne.s32.totalorder %v16641_v12, 0 }
  0x77   : > { %vm1396_vm11 = vcmp.lt.s32.totalorder %v16641_v12, 0  ;;  %v15362_v18 = vld [vmem:[%s22572_s4 + $0xe8] ss:$16 sps:$4 sm:$0xff]   ;;  %v22975_v22 = vmov 0  ;;  %v1122_v27 = vmul.u32 18, %v1121_v44  ;;  %v16814_v35 = vadd.s32 176, %v16472_v43 }
  0x78   : > { %3569 = vmatpush1.bf16.msra.mxu1 %v15347_v47  ;;  %3782 = vmatpush1.bf16.msra.mxu0 %v15350_v16  ;;  %v16779_v47 = vmul.u32.u64.low 3817748708, %v16732_v36  ;;  %v16780_v15 = vmul.u32.u64.high 3817748708, %v16732_v36, %v16779_v47  ;;  %v16796_v16 = vmul.u32.u64.low 3817748708, %v16735_v37  ;;  %v16797_v17 = vmul.u32.u64.high 3817748708, %v16735_v37, %v16796_v16  ;;  %vm16949_vm7 = vmand %vm1396_vm11, %vm1360_vm10 }
  0x79   : > { %3570 = vmatprep.subr.bf16.mxu1 %v15355_v40  ;;  %3783 = vmatprep.subr.bf16.mxu0 %v15358_v52  ;;  %v22976_v22 = vsel %vm16809_vm12, 4294967295, %v22975_v22  ;;  %v15367_v40 = vld [vmem:[%s22572_s4 + $0x104] ss:$16 sps:$4 sm:$0xff]   ;;  %v16831_v44 = vmul.u32.u64.low 3817748708, %v16767_v60  ;;  %v16832_v45 = vmul.u32.u64.high 3817748708, %v16767_v60, %v16831_v44  ;;  %v16842_v47 = vrot.slane %v768_v57, %v16609_v49 }
  0x7a   : > { %22977 = vst [vmem:[#allocation27_spill] sm:$0xff] %v22976_v22  ;;  %v16835_v52 = vmul.u32.u64.low 3817748708, %v16770_v3  ;;  %v16836_v58 = vmul.u32.u64.high 3817748708, %v16770_v3, %v16835_v52  ;;  %v16845_v16 = vrot.slane %v684_v55, %v16615_v54  ;;  %vm1361_vm14 = vcmp.ne.s32.totalorder %v16644_v13, 0 }
  0x7b   : > { %22982 = vst [vmem:[#allocation30_spill] sm:$0xff] %v16842_v47  ;;  %vm1397_vm15 = vcmp.lt.s32.totalorder %v16644_v13, 0  ;;  %v16850_v44 = vadd.s32 192, %v16472_v43  ;;  %v15370_v52 = vld [vmem:[%s22572_s4 + $0x10c] ss:$16 sps:$4 sm:$0xff]   ;;  %vm1362_vm0 = vcmp.ne.s32.totalorder %v16647_v46, 0 }
  0x7c   : > { %3571 = vmatpush1.bf16.msra.mxu1 %v15353_v38  ;;  %3784 = vmatpush1.bf16.msra.mxu0 %v15356_v41  ;;  %v16817_v38 = vadd.s32 184, %v16472_v43  ;;  %v22978_v41 = vmov 0  ;;  %22983 = vst [vmem:[#allocation31_spill] sm:$0xff] %v16845_v16  ;;  %v15368_v47 = vld [vmem:[%s22572_s4 + $0x108] ss:$16 sps:$4 sm:$0xff]   ;;  %vm1398_vm1 = vcmp.lt.s32.totalorder %v16647_v46, 0  ;;  %vm16981_vm11 = vmand %vm1397_vm15, %vm1361_vm14 }
  0x7d   : > { %3572 = vmatprep.subr.bf16.mxu1 %v15361_v5  ;;  %v22979_v41 = vsel %vm16826_vm13, 4294967295, %v22978_v41  ;;  %3785 = vmatprep.subr.bf16.mxu0 %v15364_v21  ;;  %v16839_v5 = vrot.slane %v684_v55, %v16609_v49  ;;  %v15365_v21 = vld [vmem:[%s22572_s4 + $0x100] ss:$16 sps:$4 sm:$0xff]   ;;  %v16863_v49 = vrot.slane %v768_v57, %v16615_v54  ;;  %v1165_v55 = vshrl.u32 %v16751_v50, 4  ;;  %v15374_v16 = vld [vmem:[%s22572_s4 + $0x128] ss:$16 sps:$4 sm:$0xff]   ;;  %vm17048_vm6 = vmand %vm1398_vm1, %vm1362_vm0 }
  0x7e   : > { %22980 = vst [vmem:[#allocation28_spill] sm:$0xff] %v22979_v41  ;;  %v16877_v57 = vmul.u32.u64.low 3817748708, %v16814_v35  ;;  %v16878_v54 = vmul.u32.u64.high 3817748708, %v16814_v35, %v16877_v57  ;;  %vm1363_vm3 = vcmp.ne.s32.totalorder %v16650_v14, 0  ;;  %vm1399_vm4 = vcmp.lt.s32.totalorder %v16650_v14, 0 }
  0x7f   : > { %22981 = vst [vmem:[#allocation29_spill] sm:$0xff] %v16839_v5  ;;  %22984 = vst [vmem:[#allocation32_spill] sm:$0xff] %v16863_v49  ;;  %v16886_v49 = vadd.s32 208, %v16472_v43  ;;  %v16893_v50 = vmul.u32.u64.low 3817748708, %v16850_v44  ;;  %v16894_v5 = vmul.u32.u64.high 3817748708, %v16850_v44, %v16893_v50  ;;  %v16933_v8 = vadd.s32 232, %v16472_v43 }
  0x80   : > { %3573 = vmatpush1.bf16.msra.mxu1 %v15359_v56  ;;  %v1133_v56 = vmul.u32 18, %v1132_v10  ;;  %3786 = vmatpush1.bf16.msra.mxu0 %v15362_v18  ;;  %v1143_v10 = vshrl.u32 %v16764_v59, 4  ;;  %v16903_v59 = vsub.s32 %v16578_v28, %v16722_v32  ;;  %v16913_v50 = vadd.s32 224, %v16472_v43  ;;  %v15382_v13 = vld [vmem:[%s22572_s4 + $0x14c] ss:$16 sps:$4 sm:$0xff]   ;;  %vm17065_vm0 = vmand %vm1399_vm4, %vm1363_vm3 }
  0x81   : > { %3574 = vmatprep.subr.bf16.mxu1 %v15367_v40  ;;  %3787 = vmatprep.subr.bf16.mxu0 %v15370_v52  ;;  %v16882_v18 = vmul.u32.u64.low 3817748708, %v16817_v38  ;;  %v16883_v40 = vmul.u32.u64.high 3817748708, %v16817_v38, %v16882_v18  ;;  %v16897_v52 = vadd.s32 216, %v16472_v43  ;;  %v16919_v28 = vsub.s32 %v16597_v39, %v16746_v42 }
  0x82   : > { %22985 = vst [vmem:[#allocation33_spill] sm:$0xff] %v16903_v59  ;;  %v16906_v57 = vmul.u32.u64.low 3817748708, %v16866_v29  ;;  %v16907_v18 = vmul.u32.u64.high 3817748708, %v16866_v29, %v16906_v57  ;;  %v16923_v32 = vsub.s32 %v16612_v53, %v16775_v9  ;;  %vm1364_vm5 = vcmp.ne.s32.totalorder %v16661_v48, 0 }
  0x83   : > { %22986 = vst [vmem:[#allocation34_spill] sm:$0xff] %v16919_v28  ;;  %v15373_v57 = vld [vmem:[%s22572_s4 + $0x124] ss:$16 sps:$4 sm:$0xff]   ;;  %v16938_v39 = vsub.s32 %v16622_v63, %v1122_v27  ;;  %v1166_v53 = vmul.u32 18, %v1165_v55  ;;  %v1154_v42 = vshrl.u32 %v16797_v17, 4  ;;  %v1187_v9 = vshrl.u32 %v16832_v45, 4 }
  0x84   : > { %3575 = vmatpush1.bf16.msra.mxu1 %v15365_v21  ;;  %3788 = vmatpush1.bf16.msra.mxu0 %v15368_v47  ;;  %v15371_v21 = vld [vmem:[%s22572_s4 + $0x120] ss:$16 sps:$4 sm:$0xff]   ;;  %22987 = vst [vmem:[#allocation35_spill] sm:$0xff] %v16923_v32  ;;  %v1176_v47 = vshrl.u32 %v16780_v15, 4  ;;  %v15376_v15 = vld [vmem:[%s22572_s4 + $0x12c] ss:$16 sps:$4 sm:$0xff]   ;;  %v16966_v55 = vsub.s32 %v16638_v11, %v1133_v56 }
  0x85   : > { %v22988_v19 = vmov 0  ;;  %v16956_v63 = vmul.u32.u64.low 3817748708, %v16886_v49  ;;  %v16957_v17 = vmul.u32.u64.high 3817748708, %v16886_v49, %v16956_v63  ;;  %3576 = vmatprep.subr.bf16.mxu1 %v15373_v57  ;;  %v1144_v41 = vmul.u32 18, %v1143_v10  ;;  %3789 = vmatprep.subr.bf16.mxu0 %v15376_v15 }
  0x86   : > { %v22989_v19 = vsel %vm16949_vm7, 4294967295, %v22988_v19  ;;  %v16960_v27 = vmul.u32.u64.low 3817748708, %v16897_v52  ;;  %v16961_v45 = vmul.u32.u64.high 3817748708, %v16897_v52, %v16960_v27  ;;  %22991 = vst [vmem:[#allocation37_spill] sm:$0xff] %v16966_v55  ;;  %v1177_v63 = vmul.u32 18, %v1176_v47 }
  0x87   : > { %22990 = vst [vmem:[#allocation36_spill] sm:$0xff] %v22989_v19  ;;  %v16969_v1 = vmul.u32.u64.low 3817748708, %v16913_v50  ;;  %v16970_v62 = vmul.u32.u64.high 3817748708, %v16913_v50, %v16969_v1  ;;  %v1198_v22 = vshrl.u32 %v16836_v58, 4  ;;  %v22992_v11 = vmov 0 }
  0x88   : > { %3577 = vmatpush1.bf16.msra.mxu1 %v15371_v21  ;;  %3790 = vmatpush1.bf16.msra.mxu0 %v15374_v16  ;;  %v16974_v57 = vmul.u32.u64.low 3817748708, %v16933_v8  ;;  %v16975_v27 = vmul.u32.u64.high 3817748708, %v16933_v8, %v16974_v57  ;;  %v22993_v11 = vsel %vm16981_vm11, 4294967295, %v22992_v11  ;;  %v16988_v1 = vadd.s32 18, %v16903_v59 }
  0x89   : > { %22994 = vst [vmem:[#allocation38_spill] sm:$0xff] %v22993_v11  ;;  %v16991_v58 = vadd.s32 18, %v16919_v28  ;;  %v1155_v16 = vmul.u32 18, %v1154_v42  ;;  %v1209_v56 = vshrl.u32 %v16878_v54, 4  ;;  %v1188_v21 = vmul.u32 18, %v1187_v9  ;;  %3791 = vmatprep.subr.bf16.mxu0 %v15382_v13 }
  0x8a   : > { %22995 = vst [vmem:[#allocation39_spill] sm:$0xff] %v16988_v1  ;;  %v1220_v47 = vshrl.u32 %v16883_v40, 4  ;;  %v1231_v15 = vshrl.u32 %v16894_v5, 4  ;;  %v17005_v54 = vadd.s32 18, %v16923_v32  ;;  %v17008_v42 = vsub.s32 %v16717_v30, %v1166_v53  ;;  %v15377_v30 = vld [vmem:[%s22572_s4 + $0x140] ss:$16 sps:$4 sm:$0xff]  }
  0x8b   : > { %22996 = vst [vmem:[#allocation40_spill] sm:$0xff] %v16991_v58  ;;  %v17011_v57 = vsub.s32 %v16725_v34, %v1144_v41  ;;  %v1242_v10 = vshrl.u32 %v16907_v18, 4  ;;  %v17015_v9 = vadd.s32 18, %v16938_v39  ;;  %v17018_v5 = vadd.s32 18, %v16966_v55  ;;  %v15380_v53 = vld [vmem:[%s22572_s4 + $0x148] ss:$16 sps:$4 sm:$0xff]  }
  0x8c   : > { %22997 = vst [vmem:[#allocation41_spill] sm:$0xff] %v17005_v54  ;;  %v17021_v40 = vsub.s32 %v16732_v36, %v1177_v63  ;;  %v1199_v12 = vmul.u32 18, %v1198_v22  ;;  %v17033_v41 = vsub.s32 %v16735_v37, %v1155_v16  ;;  %v1210_v18 = vmul.u32 18, %v1209_v56  ;;  %v15379_v36 = vld [vmem:[%s22572_s4 + $0x144] ss:$16 sps:$4 sm:$0xff]   ;;  %3792 = vmatpush1.bf16.msra.mxu0 %v15380_v53 }
  0x8d   : > { %22998 = vst [vmem:[#allocation42_spill] sm:$0xff] %v17011_v57  ;;  %v17039_v22 = vadd.s32 240, %v16472_v43  ;;  %v23000_v63 = vmov 0  ;;  %v17055_v37 = vsub.s32 %v16767_v60, %v1188_v21  ;;  %v1221_v16 = vmul.u32 18, %v1220_v47  ;;  %3578 = vmatprep.subr.bf16.mxu1 %v15379_v36 }
  0x8e   : > { %22999 = vst [vmem:[#allocation43_spill] sm:$0xff] %v17033_v41  ;;  %v23001_v63 = vsel %vm17048_vm6, 4294967295, %v23000_v63  ;;  %v1232_v56 = vmul.u32 18, %v1231_v15  ;;  %v1253_v34 = vshrl.u32 %v16957_v17, 4  ;;  %v23003_v23 = vmov 0  ;;  %3579 = vmatpush1.bf16.msra.mxu1 %v15377_v30 }
  0x8f   : > { %23002 = vst [vmem:[#allocation44_spill] sm:$0xff] %v23001_v63  ;;  %v23004_v23 = vsel %vm17065_vm0, 4294967295, %v23003_v23  ;;  %v1243_v60 = vmul.u32 18, %v1242_v10  ;;  %v1264_v17 = vshrl.u32 %v16961_v45, 4  ;;  %v1275_v21 = vshrl.u32 %v16970_v62, 4 }
  0x90   : > { %v17078_v47 = vadd.s32 248, %v16472_v43  ;;  %vm23005_vm3 = vcmp.lt.s32.totalorder %v16661_v48, 0  ;;  %v23006_v15 = vmov 0  ;;  %v1286_v45 = vshrl.u32 %v16975_v27, 4 }
  0x91   : > { %vm17084_vm4 = vmand %vm23005_vm3, %vm1364_vm5  ;;  %v17092_v62 = vmul.u32.u64.low 3817748708, %v17039_v22  ;;  %v17093_v10 = vmul.u32.u64.high 3817748708, %v17039_v22, %v17092_v62  ;;  %v17096_v36 = vadd.s32 256, %v16472_v43  ;;  %vm23008_vm5 = vcmp.ne.s32.totalorder %v16664_v51, 0 }
  0x92   : > { %v23007_v15 = vsel %vm17084_vm4, 4294967295, %v23006_v15  ;;  %vm23009_vm3 = vcmp.lt.s32.totalorder %v16664_v51, 0  ;;  %v23010_v27 = vmov 0  ;;  %v17117_v62 = vadd.s32 264, %v16472_v43 }
  0x93   : > { %vm17106_vm8 = vmand %vm23009_vm3, %vm23008_vm5  ;;  %v17113_v13 = vmul.u32.u64.low 3817748708, %v17078_v47  ;;  %v17114_v30 = vmul.u32.u64.high 3817748708, %v17078_v47, %v17113_v13  ;;  %vm23013_vm10 = vcmp.ne.s32.totalorder %v16682_v4, 0  ;;  %vm23014_vm15 = vcmp.lt.s32.totalorder %v16682_v4, 0 }
  0x94   : > { %v23011_v27 = vsel %vm17106_vm8, 4294967295, %v23010_v27  ;;  %vm17123_vm5 = vmand %vm23014_vm15, %vm23013_vm10  ;;  %v23015_v11 = vmov 0  ;;  %v17128_v46 = vsub.s32 %v16770_v3, %v1199_v12  ;;  %v1254_v24 = vmul.u32 18, %v1253_v34 }
  0x95   : > { %23012 = vst [vmem:[#allocation45_spill] sm:$0xff] %v23011_v27  ;;  %v23016_v11 = vsel %vm17123_vm5, 4294967295, %v23015_v11  ;;  %v17131_v63 = vmul.u32.u64.low 3817748708, %v17096_v36  ;;  %v17132_v6 = vmul.u32.u64.high 3817748708, %v17096_v36, %v17131_v63  ;;  %v17136_v53 = vsub.s32 %v16814_v35, %v1210_v18  ;;  %v15383_v18 = vld [vmem:[%s22572_s4 + $0x160] ss:$16 sps:$4 sm:$0xff]  }
  0x96   : > { %23017 = vst [vmem:[#allocation46_spill] sm:$0xff] %v23016_v11  ;;  %v1265_v13 = vmul.u32 18, %v1264_v17  ;;  %v1276_v19 = vmul.u32 18, %v1275_v21  ;;  %vm23018_vm10 = vcmp.ne.s32.totalorder %v16691_v20, 0  ;;  %vm23019_vm15 = vcmp.lt.s32.totalorder %v16691_v20, 0 }
  0x97   : > { %vm17146_vm14 = vmand %vm23019_vm15, %vm23018_vm10  ;;  %v23020_v12 = vmov 0  ;;  %v17151_v3 = vsub.s32 %v16817_v38, %v1221_v16  ;;  %v1287_v35 = vmul.u32 18, %v1286_v45  ;;  %v1297_v34 = vshrl.u32 %v17093_v10, 4  ;;  %v15385_v63 = vld [vmem:[%s22572_s4 + $0x164] ss:$16 sps:$4 sm:$0xff]  }
  0x98   : > { %v23021_v12 = vsel %vm17146_vm14, 4294967295, %v23020_v12  ;;  %vm23023_vm3 = vcmp.ne.s32.totalorder %v16903_v59, 0  ;;  %vm23024_vm10 = vcmp.lt.s32.totalorder %v16903_v59, 0  ;;  %v23025_v17 = vmov 0  ;;  %v15386_v10 = vld [vmem:[%s22572_s4 + $0x168] ss:$16 sps:$4 sm:$0xff]   ;;  %3580 = vmatprep.subr.bf16.mxu1 %v15385_v63 }
  0x99   : > { %23022 = vst [vmem:[#allocation47_spill] sm:$0xff] %v23021_v12  ;;  %vm17164_vm15 = vmand %vm23024_vm10, %vm23023_vm3  ;;  %v17169_v38 = vsub.s32 %v16850_v44, %v1232_v56  ;;  %v1308_v16 = vshrl.u32 %v17114_v30, 4  ;;  %v17173_v21 = vmul.u32.u64.low 3817748708, %v17117_v62  ;;  %v17174_v45 = vmul.u32.u64.high 3817748708, %v17117_v62, %v17173_v21  ;;  %v15388_v56 = vld [vmem:[%s22572_s4 + $0x16c] ss:$16 sps:$4 sm:$0xff]   ;;  %3581 = vmatpush1.bf16.msra.mxu1 %v15383_v18 }
  0x9a   : > { %v23026_v17 = vsel %vm17164_vm15, 4294967295, %v23025_v17  ;;  %vm23028_vm2 = vcmp.ne.s32.totalorder %v16919_v28, 0  ;;  %vm23029_vm3 = vcmp.lt.s32.totalorder %v16919_v28, 0  ;;  %v17191_v44 = vsub.s32 %v16866_v29, %v1243_v60  ;;  %3793 = vmatprep.subr.bf16.mxu0 %v15388_v56  ;;  %v15391_v56 = vld [vmem:[%s22572_s4 + $0x184] ss:$16 sps:$4 sm:$0xff]  }
  0x9b   : > { %23027 = vst [vmem:[#allocation48_spill] sm:$0xff] %v23026_v17  ;;  %vm17183_vm10 = vmand %vm23029_vm3, %vm23028_vm2  ;;  %v17198_v30 = vsub.s32 %v16886_v49, %v1254_v24  ;;  %v17201_v21 = vsub.s32 %v16897_v52, %v1265_v13  ;;  %v1298_v14 = vmul.u32 18, %v1297_v34  ;;  %vm23035_vm2 = vcmp.ne.s32.totalorder %v16923_v32, 0  ;;  %3794 = vmatpush1.bf16.msra.mxu0 %v15386_v10  ;;  %3582 = vmatprep.subr.bf16.mxu1 %v15391_v56 }
  0x9c   : > { %v23031_v33 = vsel %vm17183_vm10, 4294967295, %v23030_v33  ;;  %vm23036_vm3 = vcmp.lt.s32.totalorder %v16923_v32, 0  ;;  %v23037_v29 = vmov 0  ;;  %v17215_v49 = vsub.s32 %v16913_v50, %v1276_v19  ;;  %v15394_v19 = vld [vmem:[%s22572_s4 + $0x18c] ss:$16 sps:$4 sm:$0xff]  }
  0x9d   : > { %23032 = vst [vmem:[#allocation49_spill] sm:$0xff] %v23031_v33  ;;  %23033 = vst [vmem:[#allocation50_spill] sm:$0xff] %v17198_v30  ;;  %vm23040_vm7 = vcmp.ne.s32.totalorder %v16938_v39, 0  ;;  %vm23041_vm13 = vcmp.lt.s32.totalorder %v16938_v39, 0  ;;  %v23042_v24 = vmov 0  ;;  %v17228_v52 = vsub.s32 %v16933_v8, %v1287_v35  ;;  %3795 = vmatprep.subr.bf16.mxu0 %v15394_v19 }
  0x9e   : > { %23034 = vst [vmem:[#allocation51_spill] sm:$0xff] %v17201_v21  ;;  %vm17207_vm6 = vmand %vm23036_vm3, %vm23035_vm2  ;;  %v1309_v60 = vmul.u32 18, %v1308_v16  ;;  %vm23046_vm1 = vcmp.ne.s32.totalorder %v16966_v55, 0  ;;  %v23048_v50 = vmov 0  ;;  %vm23050_vm3 = vcmp.ne.s32.totalorder %v17008_v42, 0 }
  0x9f   : > { %v23038_v29 = vsel %vm17207_vm6, 4294967295, %v23037_v29  ;;  %23039 = vst [vmem:[#allocation52_spill] sm:$0xff] %v17215_v49  ;;  %vm17221_vm12 = vmand %vm23041_vm13, %vm23040_vm7  ;;  %vm23047_vm13 = vcmp.lt.s32.totalorder %v16966_v55, 0  ;;  %vm23051_vm2 = vcmp.lt.s32.totalorder %v17008_v42, 0  ;;  %v23052_v8 = vmov 0 }
  0xa0   : > { %v23043_v24 = vsel %vm17221_vm12, 4294967295, %v23042_v24  ;;  %23045 = vst [vmem:[#allocation54_spill] sm:$0xff] %v17228_v52  ;;  %vm17238_vm7 = vmand %vm23047_vm13, %vm23046_vm1  ;;  %vm23054_vm0 = vcmp.ne.s32.totalorder %v17011_v57, 0  ;;  %vm23055_vm4 = vcmp.lt.s32.totalorder %v17011_v57, 0  ;;  %v23056_v13 = vmov 0 }
  0xa1   : > { %23044 = vst [vmem:[#allocation53_spill] sm:$0xff] %v23043_v24  ;;  %v23049_v50 = vsel %vm17238_vm7, 4294967295, %v23048_v50  ;;  %vm17246_vm11 = vmand %vm23051_vm2, %vm23050_vm3  ;;  %v1319_v35 = vshrl.u32 %v17132_v6, 4  ;;  %vm23059_vm7 = vcmp.ne.s32.totalorder %v17021_v40, 0  ;;  %vm23060_vm2 = vcmp.lt.s32.totalorder %v17021_v40, 0 }
  0xa2   : > { %v23053_v8 = vsel %vm17246_vm11, 4294967295, %v23052_v8  ;;  %vm17254_vm9 = vmand %vm23055_vm4, %vm23054_vm0  ;;  %v17273_v18 = vsub.s32 %v17039_v22, %v1298_v14  ;;  %vm23064_vm13 = vcmp.ne.s32.totalorder %v17033_v41, 0  ;;  %v23066_v63 = vmov 0  ;;  %v15389_v22 = vld [vmem:[%s22572_s4 + $0x180] ss:$16 sps:$4 sm:$0xff]  }
  0xa3   : > { %v23057_v13 = vsel %vm17254_vm9, 4294967295, %v23056_v13  ;;  %vm17265_vm3 = vmand %vm23060_vm2, %vm23059_vm7  ;;  %vm23065_vm7 = vcmp.lt.s32.totalorder %v17033_v41, 0  ;;  %v1330_v14 = vshrl.u32 %v17174_v45, 4  ;;  %v17308_v45 = vsub.s32 %v17078_v47, %v1309_v60  ;;  %v15392_v16 = vld [vmem:[%s22572_s4 + $0x188] ss:$16 sps:$4 sm:$0xff]   ;;  %3583 = vmatpush1.bf16.msra.mxu1 %v15389_v22 }
  0xa4   : > { %23058 = vst [vmem:[#allocation55_spill] sm:$0xff] %v23057_v13  ;;  %23063 = vst [vmem:[#allocation56_spill] sm:$0xff] %v17273_v18  ;;  %v23076_v47 = vmov 0  ;;  %vm23078_vm4 = vcmp.ne.s32.totalorder %v17136_v53, 0  ;;  %vm23079_vm1 = vcmp.lt.s32.totalorder %v17136_v53, 0  ;;  %v23080_v60 = vmov 0  ;;  %3796 = vmatpush1.bf16.msra.mxu0 %v15392_v16 }
  0xa5   : > { %vm17283_vm2 = vmand %vm23065_vm7, %vm23064_vm13  ;;  %vm23069_vm13 = vcmp.ne.s32.totalorder %v17055_v37, 0  ;;  %vm23070_vm7 = vcmp.lt.s32.totalorder %v17055_v37, 0  ;;  %23073 = vst [vmem:[#allocation58_spill] sm:$0xff] %v17308_v45  ;;  %v1320_v6 = vmul.u32 18, %v1319_v35  ;;  %v17345_v59 = vadd.s32 18, %v17008_v42  ;;  %v23163_v13 = vld [vmem:[#allocation31_spill] sm:$0xff] }
  0xa6   : > { %v23067_v63 = vsel %vm17283_vm2, 4294967295, %v23066_v63  ;;  %vm17301_vm11 = vmand %vm23070_vm7, %vm23069_vm13  ;;  %vm23074_vm13 = vcmp.ne.s32.totalorder %v17128_v46, 0  ;;  %vm23075_vm7 = vcmp.lt.s32.totalorder %v17128_v46, 0  ;;  %v17348_v1 = vadd.s32 18, %v17011_v57  ;;  %v15397_v24 = vld [vmem:[%s22572_s4 + $0x1a4] ss:$16 sps:$4 sm:$0xff]  }
  0xa7   : > { %23068 = vst [vmem:[#allocation57_spill] sm:$0xff] %v23067_v63  ;;  %vm17328_vm0 = vmand %vm23075_vm7, %vm23074_vm13  ;;  %vm23083_vm13 = vcmp.ne.s32.totalorder %v17151_v3, 0  ;;  %v23085_v17 = vmov 0  ;;  %vm23087_vm7 = vcmp.ne.s32.totalorder %v17169_v38, 0  ;;  %vm23088_vm14 = vcmp.lt.s32.totalorder %v17169_v38, 0  ;;  %3584 = vmatprep.subr.bf16.mxu1 %v15397_v24  ;;  %v23168_v63 = vld [vmem:[#allocation18_spill] sm:$0xff] }
  0xa8   : > { %v23077_v47 = vsel %vm17328_vm0, 4294967295, %v23076_v47  ;;  %vm17336_vm5 = vmand %vm23079_vm1, %vm23078_vm4  ;;  %23082 = vst [vmem:[#allocation59_spill] sm:$0xff] %v17348_v1  ;;  %vm23084_vm1 = vcmp.lt.s32.totalorder %v17151_v3, 0  ;;  %v23089_v35 = vmov 0  ;;  %v17369_v20 = vadd.s32 18, %v17021_v40 }
  0xa9   : > { %v23081_v60 = vsel %vm17336_vm5, 4294967295, %v23080_v60  ;;  %vm17354_vm4 = vmand %vm23084_vm1, %vm23083_vm13  ;;  %v17372_v2 = vadd.s32 18, %v17033_v41  ;;  %vm23092_vm13 = vcmp.ne.s32.totalorder %v17191_v44, 0  ;;  %vm23093_vm1 = vcmp.lt.s32.totalorder %v17191_v44, 0 }
  0xaa   : > { %v23086_v17 = vsel %vm17354_vm4, 4294967295, %v23085_v17  ;;  %vm17362_vm15 = vmand %vm23088_vm14, %vm23087_vm7  ;;  %vm23096_vm14 = vcmp.ne.s32.totalorder %v17198_v30, 0  ;;  %vm23097_vm7 = vcmp.lt.s32.totalorder %v17198_v30, 0  ;;  %vm23100_vm8 = vcmp.ne.s32.totalorder %v17201_v21, 0 }
  0xab   : > { %v23090_v35 = vsel %vm17362_vm15, 4294967295, %v23089_v35  ;;  %23091 = vst [vmem:[#allocation60_spill] sm:$0xff] %v17372_v2  ;;  %vm17378_vm4 = vmand %vm23093_vm1, %vm23092_vm13  ;;  %vm23101_vm15 = vcmp.lt.s32.totalorder %v17201_v21, 0  ;;  %v23102_v4 = vmov 0  ;;  %v1331_v31 = vmul.u32 18, %v1330_v14 }
  0xac   : > { %vm17386_vm5 = vmand %vm23097_vm7, %vm23096_vm14  ;;  %v17399_v11 = vadd.s32 272, %v16472_v43  ;;  %v17406_v26 = vadd.s32 18, %v17055_v37  ;;  %vm23106_vm13 = vcmp.ne.s32.totalorder %v17215_v49, 0  ;;  %v23108_v27 = vmov 0 }
  0xad   : > { %vm17394_vm0 = vmand %vm23101_vm15, %vm23100_vm8  ;;  %vm23107_vm8 = vcmp.lt.s32.totalorder %v17215_v49, 0  ;;  %vm23111_vm1 = vcmp.ne.s32.totalorder %v17228_v52, 0  ;;  %vm23112_vm14 = vcmp.lt.s32.totalorder %v17228_v52, 0  ;;  %v23113_v19 = vmov 0 }
  0xae   : > { %v23103_v4 = vsel %vm17394_vm0, 4294967295, %v23102_v4  ;;  %23105 = vst [vmem:[#allocation62_spill] sm:$0xff] %v17399_v11  ;;  %vm17412_vm15 = vmand %vm23107_vm8, %vm23106_vm13  ;;  %vm1388_vm10 = vcmp.ne.s32.totalorder %v17308_v45, 0  ;;  %vm1424_vm0 = vcmp.lt.s32.totalorder %v17308_v45, 0  ;;  %v17427_v14 = vadd.s32 18, %v17128_v46 }
  0xaf   : > { %23104 = vst [vmem:[#allocation61_spill] sm:$0xff] %v23103_v4  ;;  %v23109_v27 = vsel %vm17412_vm15, 4294967295, %v23108_v27  ;;  %vm17420_vm7 = vmand %vm23112_vm14, %vm23111_vm1  ;;  %v17430_v22 = vadd.s32 18, %v17136_v53  ;;  %v17433_v51 = vadd.s32 18, %v17151_v3  ;;  %vm23116_vm13 = vcmp.ne.s32.totalorder %v17273_v18, 0 }
  0xb0   : > { %23110 = vst [vmem:[#allocation63_spill] sm:$0xff] %v23109_v27  ;;  %v23114_v19 = vsel %vm17420_vm7, 4294967295, %v23113_v19  ;;  %vm23117_vm8 = vcmp.lt.s32.totalorder %v17273_v18, 0  ;;  %v17444_v58 = vsub.s32 %v17096_v36, %v1320_v6  ;;  %v17451_v33 = vadd.s32 18, %v17169_v38  ;;  %vm17463_vm14 = vmand %vm1424_vm0, %vm1388_vm10  ;;  %v15400_v36 = vld [vmem:[%s22572_s4 + $0x1ac] ss:$16 sps:$4 sm:$0xff]  }
  0xb1   : > { %23115 = vst [vmem:[#allocation64_spill] sm:$0xff] %v23114_v19  ;;  %vm17439_vm1 = vmand %vm23117_vm8, %vm23116_vm13  ;;  %v17454_v48 = vadd.s32 18, %v17191_v44  ;;  %v17457_v7 = vadd.s32 280, %v16472_v43  ;;  %v23122_v6 = vmov 0  ;;  %v17468_v16 = vsub.s32 %v17117_v62, %v1331_v31  ;;  %v15395_v43 = vld [vmem:[%s22572_s4 + $0x1a0] ss:$16 sps:$4 sm:$0xff]   ;;  %3797 = vmatprep.subr.bf16.mxu0 %v15400_v36 }
  0xb2   : > { %23120 = vst [vmem:[#allocation65_spill] sm:$0xff] %v17444_v58  ;;  %v23123_v6 = vsel %vm17463_vm14, 4294967295, %v23122_v6  ;;  %v17471_v32 = vmul.u32.u64.low 3817748708, %v17399_v11  ;;  %v17472_v54 = vmul.u32.u64.high 3817748708, %v17399_v11, %v17471_v32  ;;  %vm23127_vm0 = vnez %v23053_v8  ;;  %v15398_v11 = vld [vmem:[%s22572_s4 + $0x1a8] ss:$16 sps:$4 sm:$0xff]   ;;  %3585 = vmatpush1.bf16.msra.mxu1 %v15395_v43 }
  0xb3   : > { %23121 = vst [vmem:[#allocation66_spill] sm:$0xff] %v17457_v7  ;;  %23124 = vst [vmem:[#allocation67_spill] sm:$0xff] %v23123_v6  ;;  %v1519_v31 = vsel %vm23127_vm0, %v17345_v59, %v17008_v42  ;;  %v17493_v62 = vadd.s32 18, %v17198_v30  ;;  %vm23128_vm13 = vnez %v22974_v61  ;;  %v23129_v59 = vld [vmem:[#allocation5_spill] sm:$0xff]  ;;  %v1520_v32 = vsel %vm17265_vm3, %v17369_v20, %v17021_v40  ;;  %v23134_v20 = vld [vmem:[#allocation27_spill] sm:$0xff]  ;;  %3798 = vmatpush1.bf16.msra.mxu0 %v15398_v11 }
  0xb4   : > { %23125 = vst [vmem:[#allocation68_spill] sm:$0xff] %v17468_v16  ;;  %v23130_v42 = vsel %vm23128_vm13, %v16625_v0, %v23129_v59  ;;  %v17515_v57 = vadd.s32 18, %v17201_v21  ;;  %v17518_v1 = vadd.s32 18, %v17215_v49  ;;  %vm23135_vm3 = vnez %v23134_v20  ;;  %v23136_v40 = vld [vmem:[#allocation16_spill] sm:$0xff]  ;;  %v23156_v11 = vld [vmem:[#allocation29_spill] sm:$0xff] }
  0xb5   : > { %vm17506_vm8 = vcmp.lt.s32.totalorder %v23130_v42, 16  ;;  %v17527_v61 = vmul.u32.u64.low 3817748708, %v17457_v7  ;;  %v17528_v34 = vmul.u32.u64.high 3817748708, %v17457_v7, %v17527_v61  ;;  %v23137_v59 = vld [vmem:[#allocation8_spill] sm:$0xff]  ;;  %v17544_v41 = vadd.s32 18, %v17228_v52 }
  0xb6   : > { %23133 = vst [vmem:[#allocation5_spill] sm:$0xff] %v17515_v57  ;;  %v23138_v42 = vsel %vm23135_vm3, %v23136_v40, %v23137_v59  ;;  %vm23142_vm3 = vnez %v23077_v47  ;;  %v17557_v61 = vadd.s32 18, %v17273_v18  ;;  %v17560_v20 = vadd.s32 18, %v17308_v45  ;;  %v15401_v57 = vld [vmem:[%s22572_s4 + $0x1c0] ss:$16 sps:$4 sm:$0xff]   ;;  %v23166_v49 = vld [vmem:[#allocation28_spill] sm:$0xff] }
  0xb7   : > { %vm17535_vm0 = vcmp.lt.s32.totalorder %v23138_v42, 16  ;;  %23141 = vst [vmem:[#allocation27_spill] sm:$0xff] %v17544_v41  ;;  %vm17562_vm13 = vcmp.lt.s32.totalorder %v1519_v31, 16  ;;  %vm23150_vm12 = vcmp.ne.s32.totalorder %v17444_v58, 0  ;;  %vm23151_vm6 = vcmp.lt.s32.totalorder %v17444_v58, 0  ;;  %v23169_v18 = vld [vmem:[#allocation9_spill] sm:$0xff] }
  0xb8   : > { %23144 = vst [vmem:[#allocation16_spill] sm:$0xff] %v17557_v61  ;;  %23145 = vst [vmem:[#allocation8_spill] sm:$0xff] %v17560_v20  ;;  %v23152_v36 = vmov 0  ;;  %v17583_v31 = vadd.s32 18, %v17444_v58  ;;  %v17586_v43 = vadd.s32 18, %v17468_v16  ;;  %vm23159_vm10 = vcmp.lt.s32.totalorder %v17468_v16, 0 }
  0xb9   : > { %vm17578_vm9 = vmand %vm23151_vm6, %vm23150_vm12  ;;  %vm23157_vm12 = vnez %v23103_v4  ;;  %vm23158_vm6 = vcmp.ne.s32.totalorder %v17468_v16, 0  ;;  %v1341_v21 = vshrl.u32 %v17472_v54, 4  ;;  %v23164_v4 = vld [vmem:[#allocation30_spill] sm:$0xff]  ;;  %vm17652_vm14 = vcmp.lt.s32.totalorder %v1520_v32, 16  ;;  %v23177_v58 = vld [vmem:[#allocation20_spill] sm:$0xff] }
  0xba   : > { %v23153_v36 = vsel %vm17578_vm9, 4294967295, %v23152_v36  ;;  %23155 = vst [vmem:[#allocation70_spill] sm:$0xff] %v17583_v31  ;;  %vm17605_vm2 = vmand %vm23159_vm10, %vm23158_vm6  ;;  %v15404_v52 = vld [vmem:[%s22572_s4 + $0x1c8] ss:$16 sps:$4 sm:$0xff]   ;;  %vm23167_vm10 = vnez %v23166_v49  ;;  %v23216_v45 = vsel %vm23142_vm3, %v17427_v14, %v17128_v46  ;;  %v23220_v47 = vld [vmem:[#allocation13_spill] sm:$0xff] }
  0xbb   : > { %23154 = vst [vmem:[#allocation69_spill] sm:$0xff] %v23153_v36  ;;  %v23170_v61 = vsel %vm23167_vm10, %v23168_v63, %v23169_v18  ;;  %v23178_v31 = vld [vmem:[#allocation10_spill] sm:$0xff] }
  0xbc   : > { %vm17648_vm6 = vcmp.lt.s32.totalorder %v23170_v61, 16  ;;  %v23187_v61 = vld [vmem:[#allocation38_spill] sm:$0xff] }
  0xee   : > { %v505_v40 = vpop.f32.mrb[0].mxu0  ;;  %v595_v54 = vpop.f32.mrb[0].mxu1 }
  0xef   : > { %v696_v0 = vmul.f32 %v23156_v11, %v505_v40  ;;  %v507_v7 = vpop.f32.mrb[1].mxu0  ;;  %v23160_v40 = vmov 0  ;;  %v732_v63 = vmul.f32 %v23156_v11, %v595_v54  ;;  %v597_v32 = vpop.f32.mrb[1].mxu1  ;;  %v17678_v54 = vmul.u32 18, %v1341_v21 }
  0xf0   : > { %v23161_v40 = vsel %vm17605_vm2, 4294967295, %v23160_v40  ;;  %v697_v42 = vmul.f32 %v23163_v13, %v507_v7  ;;  %v509_v55 = vpop.f32.mrb[2].mxu0  ;;  %v15403_v7 = vld [vmem:[%s22572_s4 + $0x1c4] ss:$16 sps:$4 sm:$0xff]  }
  0xf1   : > { %23162 = vst [vmem:[#allocation29_spill] sm:$0xff] %v23161_v40  ;;  %v780_v30 = vadd.f32 %v23164_v4, %v696_v0  ;;  %v698_v27 = vmul.f32 %v23156_v11, %v509_v55  ;;  %v511_v2 = vpop.f32.mrb[3].mxu0  ;;  %v15406_v0 = vld [vmem:[%s22572_s4 + $0x1cc] ss:$16 sps:$4 sm:$0xff]   ;;  %3586 = vmatprep.subr.bf16.mxu1 %v15403_v7 }
  0xf2   : > { %v23165_v55 = vld [vmem:[#allocation32_spill] sm:$0xff]  ;;  %v699_v19 = vmul.f32 %v23163_v13, %v511_v2  ;;  %3587 = vmatpush1.bf16.msra.mxu1 %v15401_v57  ;;  %3799 = vmatprep.subr.bf16.mxu0 %v15406_v0 }
  0xf3   : > { %v781_v41 = vadd.f32 %v23165_v55, %v697_v42  ;;  %v852_v49 = vmax.f32 %v780_v30, 0.0  ;;  %v782_v18 = vadd.f32 %v23164_v4, %v698_v27  ;;  %v23175_v42 = vld [vmem:[#allocation36_spill] sm:$0xff]  ;;  %v733_v27 = vmul.f32 %v23163_v13, %v597_v32  ;;  %v599_v30 = vpop.f32.mrb[2].mxu1  ;;  %3800 = vmatpush1.bf16.msra.mxu0 %v15404_v52 }
  0xf4   : > { %v783_v36 = vadd.f32 %v23165_v55, %v699_v19  ;;  %vm23176_vm10 = vnez %v23175_v42  ;;  %v816_v19 = vadd.f32 %v23164_v4, %v732_v63  ;;  %v734_v0 = vmul.f32 %v23156_v11, %v599_v30 }
  0xf5   : > { %v853_v20 = vmax.f32 %v781_v41, 0.0  ;;  %v23179_v40 = vsel %vm23176_vm10, %v23177_v58, %v23178_v31  ;;  %v17682_v57 = vsel %vm17506_vm8, %v852_v49, 0.0  ;;  %v854_v41 = vmax.f32 %v782_v18, 0.0  ;;  %v601_v58 = vpop.f32.mrb[3].mxu1 }
  0xf6   : > { %vm17673_vm2 = vcmp.lt.s32.totalorder %v23179_v40, 16  ;;  %23182 = vst [vmem:[#allocation31_spill] sm:$0xff] %v17682_v57  ;;  %v855_v40 = vmax.f32 %v783_v36, 0.0  ;;  %v515_v42 = vpop.f32.mrb[4].mxu0  ;;  %v817_v21 = vadd.f32 %v23165_v55, %v733_v27  ;;  %v735_v52 = vmul.f32 %v23163_v13, %v601_v58 }
  0xf7   : > { %v17688_v31 = vsel %vm17506_vm8, %v853_v20, 0.0  ;;  %v17694_v49 = vsel %vm17535_vm0, %v854_v41, 0.0  ;;  %v700_v18 = vmul.f32 %v23156_v11, %v515_v42  ;;  %v517_v63 = vpop.f32.mrb[5].mxu0  ;;  %v888_v32 = vmax.f32 %v816_v19, 0.0  ;;  %v15407_v41 = vld [vmem:[%s22572_s4 + $0x1e0] ss:$16 sps:$4 sm:$0xff]  }
  0xf8   : > { %23183 = vst [vmem:[#allocation30_spill] sm:$0xff] %v17688_v31  ;;  %23184 = vst [vmem:[#allocation32_spill] sm:$0xff] %v17694_v49  ;;  %v818_v30 = vadd.f32 %v23164_v4, %v734_v0  ;;  %v17700_v8 = vpack.c.bf16 %v17694_v49, %v17682_v57  ;;  %v17704_v36 = vsel %vm17535_vm0, %v855_v40, 0.0  ;;  %v701_v20 = vmul.f32 %v23163_v13, %v517_v63  ;;  %v519_v27 = vpop.f32.mrb[6].mxu0  ;;  %v15409_v40 = vld [vmem:[%s22572_s4 + $0x1e4] ss:$16 sps:$4 sm:$0xff]  }
  0xf9   : > { %23185 = vst [vmem:[#allocation28_spill] sm:$0xff] %v17704_v36  ;;  %v889_v58 = vmax.f32 %v817_v21, 0.0  ;;  %v17712_v19 = vpack.c.bf16 %v17704_v36, %v17688_v31  ;;  %v784_v0 = vadd.f32 %v23164_v4, %v700_v18  ;;  %v702_v42 = vmul.f32 %v23156_v11, %v519_v27  ;;  %v521_v2 = vpop.f32.mrb[7].mxu0  ;;  %v23189_v18 = vld [vmem:[#allocation21_spill] sm:$0xff]  ;;  %v23190_v36 = vld [vmem:[#allocation11_spill] sm:$0xff]  ;;  %v605_v57 = vpop.f32.mrb[4].mxu1  ;;  %3588 = vmatprep.subr.bf16.mxu1 %v15409_v40 }
  0xfa   : > { %v17718_v24 = vsel %vm17562_vm13, %v888_v32, 0.0  ;;  %1761 = vst [vmem:[#allocation2 + $0x20] sm:$0xff] %v17700_v8  ;;  %v785_v21 = vadd.f32 %v23165_v55, %v701_v20  ;;  %v703_v63 = vmul.f32 %v23163_v13, %v521_v2  ;;  %vm23188_vm8 = vnez %v23187_v61  ;;  %v607_v59 = vpop.f32.mrb[5].mxu1  ;;  %v23201_v32 = vld [vmem:[#allocation12_spill] sm:$0xff]  ;;  %3589 = vmatpush1.bf16.msra.mxu1 %v15407_v41 }
  0xfb   : > { %23186 = vst [vmem:[#allocation18_spill] sm:$0xff] %v17718_v24  ;;  %v23191_v27 = vsel %vm23188_vm8, %v23189_v18, %v23190_v36  ;;  %v17738_v31 = vsel %vm17562_vm13, %v889_v58, 0.0  ;;  %1762 = vst [vmem:[#allocation2 + $0x28] sm:$0xff] %v17712_v19  ;;  %v856_v20 = vmax.f32 %v784_v0, 0.0  ;;  %v786_v2 = vadd.f32 %v23164_v4, %v702_v42  ;;  %v23198_v0 = vld [vmem:[#allocation44_spill] sm:$0xff]  ;;  %v23200_v42 = vld [vmem:[#allocation22_spill] sm:$0xff] }
  0xfc   : > { %vm17731_vm0 = vcmp.lt.s32.totalorder %v23191_v27, 16  ;;  %23194 = vst [vmem:[#allocation9_spill] sm:$0xff] %v17738_v31  ;;  %v890_v16 = vmax.f32 %v818_v30, 0.0  ;;  %v23195_v36 = vsel %vm17301_vm11, %v17406_v26, %v17055_v37  ;;  %v857_v58 = vmax.f32 %v785_v21, 0.0  ;;  %v23206_v37 = vld [vmem:[#allocation3_spill] sm:$0xff]  ;;  %v17767_v40 = vpop.f32.mrb[6].mxu1 }
  0xfd   : > { %vm17748_vm10 = vcmp.lt.s32.totalorder %v23195_v36, 16  ;;  %v787_v27 = vadd.f32 %v23165_v55, %v703_v63  ;;  %vm23199_vm13 = vnez %v23198_v0  ;;  %v23205_v26 = vrot.slane %v17700_v8, 7 }
  0xfe   : > { %v23202_v61 = vsel %vm23199_vm13, %v23200_v42, %v23201_v32  ;;  %vm23207_vm11 = vcmask 1040384   ;;  %v819_v36 = vadd.f32 %v23165_v55, %v735_v52  ;;  %v17771_v21 = vsel %vm17648_vm6, %v856_v20, 0.0  ;;  %v17781_v42 = vpop.f32.mrb[7].mxu1 }
  0xff   : > { %vm17758_vm8 = vcmp.lt.s32.totalorder %v23202_v61, 16  ;;  %v2012_v10 = vsel %vm23207_vm11, %v23206_v37, %v23205_v26  ;;  %23208 = vst [vmem:[#allocation36_spill] sm:$0xff] %v17771_v21  ;;  %v858_v63 = vmax.f32 %v786_v2, 0.0  ;;  %v23209_v32 = vrot.slane %v17712_v19, 7  ;;  %vm23210_vm13 = vmmov %vm23207_vm11  ;;  %v525_v26 = vpop.f32.mrb[8].mxu0 }
 0x100   : > { %v17779_v0 = vsel %vm17652_vm14, %v890_v16, 0.0  ;;  %v17785_v52 = vsel %vm17648_vm6, %v857_v58, 0.0  ;;  %v859_v41 = vmax.f32 %v787_v27, 0.0  ;;  %v891_v2 = vmax.f32 %v819_v36, 0.0  ;;  %v15410_v27 = vld [vmem:[%s22572_s4 + $0x1e8] ss:$16 sps:$4 sm:$0xff]  }
 0x101   : > { %v2014_v61 = vsel %vm23210_vm13, %v23206_v37, %v23209_v32  ;;  %23211 = vst [vmem:[#allocation20_spill] sm:$0xff] %v17779_v0  ;;  %23212 = vst [vmem:[#allocation10_spill] sm:$0xff] %v17785_v52  ;;  %v1743_v20 = vpack.c.bf16 %v17779_v0, %v17718_v24  ;;  %v17791_v37 = vsel %vm17673_vm2, %v858_v63, 0.0  ;;  %v704_v16 = vmul.f32 %v23156_v11, %v525_v26  ;;  %v527_v32 = vpop.f32.mrb[9].mxu0  ;;  %v15412_v36 = vld [vmem:[%s22572_s4 + $0x1ec] ss:$16 sps:$4 sm:$0xff]  }
 0x102   : > { %2477 = vmatprep.mubr.bf16.mxu1 %v2014_v61  ;;  %2690 = vmatprep.mubr.bf16.mxu0 %v2014_v61  ;;  %23213 = vst [vmem:[#allocation38_spill] sm:$0xff] %v17791_v37  ;;  %v736_v6 = vmul.f32 %v23156_v11, %v605_v57  ;;  %v737_v58 = vmul.f32 %v23163_v13, %v607_v59  ;;  %v17808_v61 = vsel %vm17673_vm2, %v859_v41, 0.0  ;;  %v17813_v59 = vsel %vm17652_vm14, %v891_v2, 0.0 }
 0x103   : > { %2478 = vmatmul.mubr.bf16.gmra.mrb[40].mxu1 %v2012_v10  ;;  %2691 = vmatmul.mubr.bf16.gmra.mrb[40].mxu0 %v2012_v10  ;;  %v17804_v63 = vpack.c.bf16 %v17791_v37, %v17771_v21  ;;  %23214 = vst [vmem:[#allocation21_spill] sm:$0xff] %v17808_v61  ;;  %v705_v57 = vmul.f32 %v23163_v13, %v527_v32  ;;  %v529_v10 = vpop.f32.mrb[10].mxu0  ;;  %1779 = vst [vmem:[#allocation2 + $0xb0] sm:$0xff] %v1743_v20  ;;  %vm17830_vm2 = vcmp.lt.s32.totalorder %v23216_v45, 16  ;;  %v15415_v20 = vld [vmem:[%s22572_s4 + $0x404] ss:$16 sps:$4 sm:$0xff]  }
 0x104   : > { %23215 = vst [vmem:[#allocation11_spill] sm:$0xff] %v17813_v59  ;;  %v17817_v26 = vpack.c.bf16 %v17808_v61, %v17785_v52  ;;  %v788_v0 = vadd.f32 %v23164_v4, %v704_v16  ;;  %v706_v24 = vmul.f32 %v23156_v11, %v529_v10  ;;  %v531_v37 = vpop.f32.mrb[11].mxu0  ;;  %v17823_v7 = vpack.c.bf16 %v17813_v59, %v17738_v31  ;;  %v17851_v10 = vpop.f32.mrb[8].mxu1 }
 0x105   : > { %3801 = vmatprep.subr.bf16.mxu0 %v15412_v36  ;;  %1763 = vst [vmem:[#allocation2 + $0x30] sm:$0xff] %v17804_v63  ;;  %v789_v2 = vadd.f32 %v23165_v55, %v705_v57  ;;  %v707_v16 = vmul.f32 %v23163_v13, %v531_v37  ;;  %vm23219_vm14 = vnez %v23004_v23  ;;  %v820_v36 = vadd.f32 %v23164_v4, %v736_v6  ;;  %v17858_v45 = vpop.f32.mrb[9].mxu1 }
 0x106   : > { %v23221_v46 = vsel %vm23219_vm14, %v16707_v25, %v23220_v47  ;;  %3802 = vmatpush1.bf16.msra.mxu0 %v15410_v27  ;;  %1764 = vst [vmem:[#allocation2 + $0x38] sm:$0xff] %v17817_v26  ;;  %v860_v57 = vmax.f32 %v788_v0, 0.0  ;;  %v790_v37 = vadd.f32 %v23164_v4, %v706_v24  ;;  %1780 = vst [vmem:[#allocation2 + $0xb8] sm:$0xff] %v17823_v7  ;;  %4534 = vmatprep.subr.bf16.mxu1 %v15415_v20  ;;  %v23225_v27 = vld [vmem:[#allocation23_spill] sm:$0xff]  ;;  %v17875_v20 = vpop.f32.mrb[10].mxu1 }
 0x107   : > { %vm17845_vm3 = vcmp.lt.s32.totalorder %v23221_v46, 16  ;;  %v821_v25 = vadd.f32 %v23165_v55, %v737_v58  ;;  %v861_v47 = vmax.f32 %v789_v2, 0.0  ;;  %v791_v6 = vadd.f32 %v23165_v55, %v707_v16  ;;  %v23226_v46 = vld [vmem:[#allocation14_spill] sm:$0xff]  ;;  %vm23235_vm14 = vmmov %vm23210_vm13  ;;  %v17886_v31 = vpop.f32.mrb[11].mxu1 }
 0x108   : > { %vm23224_vm6 = vnez %v23007_v15  ;;  %v23230_v24 = vrot.slane %v17804_v63, 7  ;;  %v23231_v23 = vrot.slane %v17700_v8, 7  ;;  %v892_v59 = vmax.f32 %v820_v36, 0.0 }
 0x109   : > { %v23227_v32 = vsel %vm23224_vm6, %v23225_v27, %v23226_v46  ;;  %v17879_v2 = vsel %vm17731_vm0, %v860_v57, 0.0  ;;  %v862_v15 = vmax.f32 %v790_v37, 0.0  ;;  %v23233_v16 = vrot.slane %v17817_v26, 7 }
 0x10a   : > { %vm17866_vm11 = vcmp.lt.s32.totalorder %v23227_v32, 16  ;;  %v2016_v58 = vsel %vm23210_vm13, %v23231_v23, %v23230_v24  ;;  %23232 = vst [vmem:[#allocation44_spill] sm:$0xff] %v17879_v2  ;;  %v23234_v32 = vrot.slane %v17712_v19, 7  ;;  %v893_v46 = vmax.f32 %v821_v25, 0.0  ;;  %v535_v23 = vpop.f32.mrb[12].mxu0 }
 0x10b   : > { %v17890_v8 = vsel %vm17731_vm0, %v861_v47, 0.0  ;;  %v863_v36 = vmax.f32 %v791_v6, 0.0  ;;  %v17894_v57 = vsel %vm17748_vm10, %v892_v59, 0.0  ;;  %v738_v19 = vmul.f32 %v23156_v11, %v17767_v40  ;;  %v537_v49 = vpop.f32.mrb[13].mxu0 }
 0x10c   : > { %v2018_v27 = vsel %vm23235_vm14, %v23234_v32, %v23233_v16  ;;  %23236 = vst [vmem:[#allocation22_spill] sm:$0xff] %v17890_v8  ;;  %23237 = vst [vmem:[#allocation12_spill] sm:$0xff] %v17894_v57  ;;  %v17900_v37 = vsel %vm17758_vm8, %v862_v15, 0.0  ;;  %v708_v25 = vmul.f32 %v23156_v11, %v535_v23  ;;  %v17905_v47 = vsel %vm17748_vm10, %v893_v46, 0.0  ;;  %v539_v15 = vpop.f32.mrb[14].mxu0 }
 0x10d   : > { %2487 = vmatprep.mubr.bf16.mxu1 %v2018_v27  ;;  %2700 = vmatprep.mubr.bf16.mxu0 %v2018_v27  ;;  %23238 = vst [vmem:[#allocation3_spill] sm:$0xff] %v17900_v37  ;;  %23239 = vst [vmem:[#allocation13_spill] sm:$0xff] %v17905_v47  ;;  %v739_v59 = vmul.f32 %v23163_v13, %v17781_v42  ;;  %v17911_v6 = vpack.c.bf16 %v17900_v37, %v17879_v2  ;;  %v17915_v40 = vsel %vm17758_vm8, %v863_v36, 0.0  ;;  %v541_v32 = vpop.f32.mrb[15].mxu0  ;;  %v15418_v36 = vld [vmem:[%s22572_s4 + $0x40c] ss:$16 sps:$4 sm:$0xff]  }
 0x10e   : > { %2488 = vmatmul.mubr.bf16.gmra.mrb[44].mxu1 %v2016_v58  ;;  %2701 = vmatmul.mubr.bf16.gmra.mrb[44].mxu0 %v2016_v58  ;;  %23240 = vst [vmem:[#allocation23_spill] sm:$0xff] %v17915_v40  ;;  %v709_v24 = vmul.f32 %v23163_v13, %v537_v49  ;;  %v822_v58 = vadd.f32 %v23164_v4, %v738_v19  ;;  %vm23241_vm0 = vnez %v23081_v60  ;;  %v23247_v60 = vld [vmem:[#allocation24_spill] sm:$0xff]  ;;  %v23248_v49 = vld [vmem:[#allocation15_spill] sm:$0xff] }
 0x10f   : > { %v17921_v18 = vpack.c.bf16 %v17915_v40, %v17890_v8  ;;  %v792_v16 = vadd.f32 %v23164_v4, %v708_v25  ;;  %v710_v42 = vmul.f32 %v23156_v11, %v539_v15  ;;  %v823_v27 = vadd.f32 %v23165_v55, %v739_v59  ;;  %1765 = vst [vmem:[#allocation2 + $0x40] sm:$0xff] %v17911_v6  ;;  %v23245_v25 = vld [vmem:[#allocation45_spill] sm:$0xff] }
 0x110   : > { %v23242_v30 = vsel %vm23241_vm0, %v17430_v22, %v17136_v53  ;;  %v793_v23 = vadd.f32 %v23165_v55, %v709_v24  ;;  %v711_v19 = vmul.f32 %v23163_v13, %v541_v32  ;;  %vm23246_vm8 = vnez %v23245_v25  ;;  %4747 = vmatprep.subr.bf16.mxu0 %v15418_v36  ;;  %v23254_v22 = vld [vmem:[#allocation25_spill] sm:$0xff] }
 0x111   : > { %vm17931_vm10 = vcmp.lt.s32.totalorder %v23242_v30, 16  ;;  %v23249_v59 = vsel %vm23246_vm8, %v23247_v60, %v23248_v49  ;;  %v894_v15 = vmax.f32 %v822_v58, 0.0  ;;  %v17951_v30 = vpop.f32.mrb[12].mxu1  ;;  %1766 = vst [vmem:[#allocation2 + $0x48] sm:$0xff] %v17921_v18  ;;  %v864_v40 = vmax.f32 %v792_v16, 0.0  ;;  %v23255_v58 = vld [vmem:[#allocation17_spill] sm:$0xff] }
 0x112   : > { %vm17946_vm6 = vcmp.lt.s32.totalorder %v23249_v59, 16  ;;  %v794_v24 = vadd.f32 %v23164_v4, %v710_v42  ;;  %v22689_v32 = vrot.slane %v17921_v18, 7  ;;  %v895_v25 = vmax.f32 %v823_v27, 0.0  ;;  %v17956_v37 = vpop.f32.mrb[13].mxu1  ;;  %v23252_v59 = vld [vmem:[#allocation46_spill] sm:$0xff] }
 0x113   : > { %v865_v60 = vmax.f32 %v793_v23, 0.0  ;;  %v795_v49 = vadd.f32 %v23165_v55, %v711_v19  ;;  %vm23253_vm13 = vnez %v23252_v59  ;;  %v23259_v16 = vrot.slane %v17911_v6, 7  ;;  %v17977_v23 = vpop.f32.mrb[14].mxu1 }
 0x114   : > { %v23256_v8 = vsel %vm23253_vm13, %v23254_v22, %v23255_v58  ;;  %v23260_v42 = vrot.slane %v17804_v63, 7  ;;  %vm23261_vm0 = vcmask 1040384   ;;  %v17975_v36 = vsel %vm17830_vm2, %v894_v15, 0.0  ;;  %v17992_v58 = vpop.f32.mrb[15].mxu1 }
 0x115   : > { %vm17964_vm14 = vcmp.lt.s32.totalorder %v23256_v8, 16  ;;  %23262 = vst [vmem:[#allocation14_spill] sm:$0xff] %v17975_v36  ;;  %v17981_v19 = vsel %vm17845_vm3, %v864_v40, 0.0  ;;  %v866_v8 = vmax.f32 %v794_v24, 0.0  ;;  %v23264_v22 = vrot.slane %v17817_v26, 7  ;;  %vm23265_vm8 = vmmov %vm23261_vm0  ;;  %v545_v40 = vpop.f32.mrb[16].mxu0 }
 0x116   : > { %v2020_v27 = vsel %vm23261_vm0, %v23260_v42, %v23259_v16  ;;  %23263 = vst [vmem:[#allocation45_spill] sm:$0xff] %v17981_v19  ;;  %v17990_v63 = vpack.c.bf16 %v17975_v36, %v17894_v57  ;;  %v17996_v15 = vsel %vm17845_vm3, %v865_v60, 0.0  ;;  %v867_v16 = vmax.f32 %v795_v49, 0.0  ;;  %v547_v14 = vpop.f32.mrb[17].mxu0  ;;  %v23277_v36 = vld [vmem:[#allocation19_spill] sm:$0xff] }
 0x117   : > { %v2022_v59 = vsel %vm23265_vm8, %v23264_v22, %v22689_v32  ;;  %23266 = vst [vmem:[#allocation24_spill] sm:$0xff] %v17996_v15  ;;  %v18000_v24 = vsel %vm17830_vm2, %v895_v25, 0.0  ;;  %v740_v26 = vmul.f32 %v23156_v11, %v17851_v10  ;;  %v18006_v42 = vsel %vm17866_vm11, %v866_v8, 0.0 }
 0x118   : > { %2497 = vmatprep.mubr.bf16.mxu1 %v2022_v59  ;;  %2710 = vmatprep.mubr.bf16.mxu0 %v2022_v59  ;;  %23267 = vst [vmem:[#allocation15_spill] sm:$0xff] %v18000_v24  ;;  %23268 = vst [vmem:[#allocation46_spill] sm:$0xff] %v18006_v42  ;;  %v712_v22 = vmul.f32 %v23156_v11, %v545_v40  ;;  %v18012_v60 = vpack.c.bf16 %v18000_v24, %v17905_v47  ;;  %v18022_v25 = vsel %vm17866_vm11, %v867_v16, 0.0  ;;  %v23276_v24 = vld [vmem:[#allocation26_spill] sm:$0xff] }
 0x119   : > { %2498 = vmatmul.mubr.bf16.gmra.mrb[48].mxu1 %v2020_v27  ;;  %2711 = vmatmul.mubr.bf16.gmra.mrb[48].mxu0 %v2020_v27  ;;  %1781 = vst [vmem:[#allocation2 + $0xc0] sm:$0xff] %v17990_v63  ;;  %v741_v41 = vmul.f32 %v23163_v13, %v17858_v45  ;;  %v18018_v10 = vpack.c.bf16 %v18006_v42, %v17981_v19  ;;  %23269 = vst [vmem:[#allocation25_spill] sm:$0xff] %v18022_v25  ;;  %v549_v27 = vpop.f32.mrb[18].mxu0  ;;  %vm23270_vm2 = vnez %v23086_v17  ;;  %v23394_v19 = vld [vmem:[#allocation54_spill] sm:$0xff] }
 0x11a   : > { %v713_v49 = vmul.f32 %v23163_v13, %v547_v14  ;;  %v824_v8 = vadd.f32 %v23164_v4, %v740_v26  ;;  %v18028_v59 = vpack.c.bf16 %v18022_v25, %v17996_v15  ;;  %v796_v40 = vadd.f32 %v23164_v4, %v712_v22  ;;  %v551_v32 = vpop.f32.mrb[19].mxu0  ;;  %1782 = vst [vmem:[#allocation2 + $0xc8] sm:$0xff] %v18012_v60  ;;  %v23283_v25 = vld [vmem:[#allocation39_spill] sm:$0xff] }
 0x11b   : > { %v714_v45 = vmul.f32 %v23156_v11, %v549_v27  ;;  %v825_v0 = vadd.f32 %v23165_v55, %v741_v41  ;;  %v23271_v16 = vsel %vm23270_vm2, %v17433_v51, %v17151_v3  ;;  %1767 = vst [vmem:[#allocation2 + $0x50] sm:$0xff] %v18018_v10  ;;  %v715_v14 = vmul.f32 %v23163_v13, %v551_v32  ;;  %v23274_v27 = vld [vmem:[#allocation47_spill] sm:$0xff] }
 0x11c   : > { %vm18039_vm3 = vcmp.lt.s32.totalorder %v23271_v16, 16  ;;  %v797_v22 = vadd.f32 %v23165_v55, %v713_v49  ;;  %vm23275_vm11 = vnez %v23274_v27  ;;  %v2023_v51 = vrot.slane %v18018_v10, 7  ;;  %v18056_v16 = vpop.f32.mrb[16].mxu1  ;;  %1768 = vst [vmem:[#allocation2 + $0x58] sm:$0xff] %v18028_v59  ;;  %v23284_v10 = vld [vmem:[#allocation33_spill] sm:$0xff] }
 0x11d   : > { %v23278_v41 = vsel %vm23275_vm11, %v23276_v24, %v23277_v36  ;;  %v896_v3 = vmax.f32 %v824_v8, 0.0  ;;  %v868_v47 = vmax.f32 %v796_v40, 0.0  ;;  %v798_v49 = vadd.f32 %v23164_v4, %v714_v45  ;;  %v18061_v57 = vpop.f32.mrb[17].mxu1 }
 0x11e   : > { %vm18051_vm13 = vcmp.lt.s32.totalorder %v23278_v41, 16  ;;  %v2025_v32 = vrot.slane %v18028_v59, 7  ;;  %v897_v27 = vmax.f32 %v825_v0, 0.0  ;;  %v869_v36 = vmax.f32 %v797_v22, 0.0  ;;  %v23281_v41 = vld [vmem:[#allocation48_spill] sm:$0xff]  ;;  %v18080_v0 = vpop.f32.mrb[18].mxu1 }
 0x11f   : > { %v799_v24 = vadd.f32 %v23165_v55, %v715_v14  ;;  %vm23282_vm0 = vnez %v23281_v41  ;;  %v23288_v40 = vrot.slane %v17911_v6, 7  ;;  %vm23289_vm2 = vcmask 1040384  }
 0x120   : > { %v23285_v8 = vsel %vm23282_vm0, %v23283_v25, %v23284_v10  ;;  %v18078_v59 = vsel %vm17931_vm10, %v896_v3, 0.0  ;;  %v18084_v22 = vsel %vm17946_vm6, %v868_v47, 0.0  ;;  %v870_v14 = vmax.f32 %v798_v49, 0.0  ;;  %vm23293_vm11 = vmmov %vm23289_vm2  ;;  %v18093_v10 = vpop.f32.mrb[19].mxu1 }
 0x121   : > { %vm18069_vm8 = vcmp.lt.s32.totalorder %v23285_v8, 16  ;;  %v2024_v45 = vsel %vm23289_vm2, %v23288_v40, %v2023_v51  ;;  %23290 = vst [vmem:[#allocation17_spill] sm:$0xff] %v18078_v59  ;;  %23291 = vst [vmem:[#allocation47_spill] sm:$0xff] %v18084_v22  ;;  %v23292_v25 = vrot.slane %v17921_v18, 7  ;;  %v18091_v6 = vsel %vm17931_vm10, %v897_v27, 0.0  ;;  %v555_v40 = vpop.f32.mrb[20].mxu0 }
 0x122   : > { %23294 = vst [vmem:[#allocation26_spill] sm:$0xff] %v18091_v6  ;;  %v18097_v3 = vsel %vm17946_vm6, %v869_v36, 0.0  ;;  %v871_v8 = vmax.f32 %v799_v24, 0.0  ;;  %v742_v47 = vmul.f32 %v23156_v11, %v17875_v20  ;;  %v743_v18 = vmul.f32 %v23163_v13, %v17886_v31  ;;  %v557_v27 = vpop.f32.mrb[21].mxu0 }
 0x123   : > { %v2026_v41 = vsel %vm23293_vm11, %v23292_v25, %v2025_v32  ;;  %23295 = vst [vmem:[#allocation19_spill] sm:$0xff] %v18097_v3  ;;  %v18105_v46 = vsel %vm17964_vm14, %v870_v14, 0.0  ;;  %v716_v49 = vmul.f32 %v23156_v11, %v555_v40  ;;  %v744_v53 = vmul.f32 %v23156_v11, %v17951_v30  ;;  %v559_v14 = vpop.f32.mrb[22].mxu0 }
 0x124   : > { %2507 = vmatprep.mubr.bf16.mxu1 %v2026_v41  ;;  %2720 = vmatprep.mubr.bf16.mxu0 %v2026_v41  ;;  %23296 = vst [vmem:[#allocation48_spill] sm:$0xff] %v18105_v46  ;;  %v745_v36 = vmul.f32 %v23163_v13, %v17956_v37  ;;  %v18114_v20 = vpack.c.bf16 %v18105_v46, %v18084_v22  ;;  %v18118_v31 = vsel %vm17964_vm14, %v871_v8, 0.0  ;;  %vm23298_vm10 = vnez %v23090_v35  ;;  %v561_v8 = vpop.f32.mrb[23].mxu0 }
 0x125   : > { %2508 = vmatmul.mubr.bf16.gmra.mrb[52].mxu1 %v2024_v45  ;;  %2721 = vmatmul.mubr.bf16.gmra.mrb[52].mxu0 %v2024_v45  ;;  %23297 = vst [vmem:[#allocation39_spill] sm:$0xff] %v18118_v31  ;;  %v717_v24 = vmul.f32 %v23163_v13, %v557_v27  ;;  %v826_v25 = vadd.f32 %v23164_v4, %v742_v47  ;;  %v18142_v27 = vpop.f32.mrb[20].mxu1  ;;  %vm23309_vm2 = vnez %v23038_v29 }
 0x126   : > { %v23299_v30 = vsel %vm23298_vm10, %v17451_v33, %v17169_v38  ;;  %v18133_v45 = vpack.c.bf16 %v18118_v31, %v18097_v3  ;;  %v800_v2 = vadd.f32 %v23164_v4, %v716_v49  ;;  %v718_v41 = vmul.f32 %v23156_v11, %v559_v14  ;;  %1769 = vst [vmem:[#allocation2 + $0x60] sm:$0xff] %v18114_v20  ;;  %v23302_v14 = vld [vmem:[#allocation49_spill] sm:$0xff]  ;;  %v23304_v31 = vld [vmem:[#allocation40_spill] sm:$0xff] }
 0x127   : > { %vm18127_vm6 = vcmp.lt.s32.totalorder %v23299_v30, 16  ;;  %v827_v40 = vadd.f32 %v23165_v55, %v743_v18  ;;  %v801_v35 = vadd.f32 %v23165_v55, %v717_v24  ;;  %v719_v33 = vmul.f32 %v23163_v13, %v561_v8  ;;  %v23305_v18 = vld [vmem:[#allocation34_spill] sm:$0xff] }
 0x128   : > { %v898_v47 = vmax.f32 %v826_v25, 0.0  ;;  %1770 = vst [vmem:[#allocation2 + $0x68] sm:$0xff] %v18133_v45  ;;  %v872_v30 = vmax.f32 %v800_v2, 0.0  ;;  %v802_v49 = vadd.f32 %v23164_v4, %v718_v41  ;;  %vm23303_vm14 = vnez %v23302_v14  ;;  %v18156_v25 = vpop.f32.mrb[21].mxu1  ;;  %v23310_v2 = vld [vmem:[#allocation41_spill] sm:$0xff]  ;;  %v23311_v41 = vld [vmem:[#allocation35_spill] sm:$0xff] }
 0x129   : > { %v23306_v46 = vsel %vm23303_vm14, %v23304_v31, %v23305_v18  ;;  %v2029_v24 = vrot.slane %v18133_v45, 7  ;;  %v899_v8 = vmax.f32 %v827_v40, 0.0  ;;  %v873_v38 = vmax.f32 %v801_v35, 0.0  ;;  %v18175_v40 = vpop.f32.mrb[22].mxu1 }
 0x12a   : > { %vm18151_vm0 = vcmp.lt.s32.totalorder %v23306_v46, 16  ;;  %v803_v22 = vadd.f32 %v23165_v55, %v719_v33  ;;  %v23312_v14 = vsel %vm23309_vm2, %v23310_v2, %v23311_v41  ;;  %v23315_v46 = vrot.slane %v18114_v20, 7  ;;  %v18186_v2 = vpop.f32.mrb[23].mxu1  ;;  %v565_v41 = vpop.f32.mrb[24].mxu0 }
 0x12b   : > { %vm18164_vm11 = vcmp.lt.s32.totalorder %v23312_v14, 16  ;;  %vm23316_vm10 = vcmask 1040384   ;;  %v18173_v45 = vsel %vm18039_vm3, %v898_v47, 0.0  ;;  %v18179_v29 = vsel %vm18051_vm13, %v872_v30, 0.0 }
 0x12c   : > { %v2028_v31 = vsel %vm23316_vm10, %v2023_v51, %v23315_v46  ;;  %23317 = vst [vmem:[#allocation33_spill] sm:$0xff] %v18173_v45  ;;  %23318 = vst [vmem:[#allocation49_spill] sm:$0xff] %v18179_v29  ;;  %v874_v35 = vmax.f32 %v802_v49, 0.0  ;;  %v18184_v18 = vpack.c.bf16 %v18173_v45, %v18078_v59  ;;  %v18190_v51 = vsel %vm18051_vm13, %v873_v38, 0.0  ;;  %v567_v46 = vpop.f32.mrb[25].mxu0 }
 0x12d   : > { %vm23319_vm14 = vmmov %vm23316_vm10  ;;  %23320 = vst [vmem:[#allocation40_spill] sm:$0xff] %v18190_v51  ;;  %v875_v47 = vmax.f32 %v803_v22, 0.0  ;;  %v18194_v30 = vsel %vm18039_vm3, %v899_v8, 0.0  ;;  %v720_v14 = vmul.f32 %v23156_v11, %v565_v41  ;;  %v829_v26 = vadd.f32 %v23165_v55, %v745_v36  ;;  %v569_v36 = vpop.f32.mrb[26].mxu0 }
 0x12e   : > { %v2030_v33 = vsel %vm23319_vm14, %v2025_v32, %v2029_v24  ;;  %23321 = vst [vmem:[#allocation34_spill] sm:$0xff] %v18194_v30  ;;  %v828_v32 = vadd.f32 %v23164_v4, %v744_v53  ;;  %v18199_v49 = vsel %vm18069_vm8, %v874_v35, 0.0  ;;  %1783 = vst [vmem:[#allocation2 + $0xd0] sm:$0xff] %v18184_v18  ;;  %v18205_v17 = vpack.c.bf16 %v18194_v30, %v18091_v6 }
 0x12f   : > { %2517 = vmatprep.mubr.bf16.mxu1 %v2030_v33  ;;  %2730 = vmatprep.mubr.bf16.mxu0 %v2030_v33  ;;  %23322 = vst [vmem:[#allocation41_spill] sm:$0xff] %v18199_v49  ;;  %v23323_v22 = vsel %vm17378_vm4, %v17454_v48, %v17191_v44  ;;  %v18219_v38 = vpack.c.bf16 %v18199_v49, %v18179_v29  ;;  %v18223_v8 = vsel %vm18069_vm8, %v875_v47, 0.0  ;;  %v571_v33 = vpop.f32.mrb[27].mxu0  ;;  %v901_v41 = vmax.f32 %v829_v26, 0.0  ;;  %v23328_v26 = vld [vmem:[#allocation53_spill] sm:$0xff]  ;;  %vm23342_vm14 = vmmov %vm23316_vm10 }
 0x130   : > { %2518 = vmatmul.mubr.bf16.gmra.mrb[56].mxu1 %v2028_v31  ;;  %2731 = vmatmul.mubr.bf16.gmra.mrb[56].mxu0 %v2028_v31  ;;  %vm18213_vm3 = vcmp.lt.s32.totalorder %v23323_v22, 16  ;;  %23326 = vst [vmem:[#allocation35_spill] sm:$0xff] %v18223_v8  ;;  %v721_v31 = vmul.f32 %v23163_v13, %v567_v46  ;;  %v900_v35 = vmax.f32 %v828_v32, 0.0  ;;  %v18228_v12 = vpack.c.bf16 %v18223_v8, %v18190_v51  ;;  %v18237_v46 = vpop.f32.mrb[24].mxu1 }
 0x131   : > { %v804_v48 = vadd.f32 %v23164_v4, %v720_v14  ;;  %v722_v44 = vmul.f32 %v23156_v11, %v569_v36  ;;  %1784 = vst [vmem:[#allocation2 + $0xd8] sm:$0xff] %v18205_v17  ;;  %1771 = vst [vmem:[#allocation2 + $0x70] sm:$0xff] %v18219_v38  ;;  %v723_v47 = vmul.f32 %v23163_v13, %v571_v33  ;;  %v23327_v22 = vshrl.u32 %v17528_v34, 4 }
 0x132   : > { %v805_v42 = vadd.f32 %v23165_v55, %v721_v31  ;;  %1772 = vst [vmem:[#allocation2 + $0x78] sm:$0xff] %v18228_v12  ;;  %vm23329_vm4 = vnez %v23328_v26  ;;  %v2033_v32 = vrot.slane %v18228_v12, 7  ;;  %v18257_v34 = vsel %vm18127_vm6, %v900_v35, 0.0  ;;  %v23335_v26 = vld [vmem:[#allocation37_spill] sm:$0xff] }
 0x133   : > { %v18241_v30 = vmul.u32 18, %v23327_v22  ;;  %v876_v14 = vmax.f32 %v804_v48, 0.0  ;;  %v806_v36 = vadd.f32 %v23164_v4, %v722_v44  ;;  %v23330_v31 = vsel %vm23329_vm4, %v17015_v9, %v16938_v39  ;;  %23333 = vst [vmem:[#allocation53_spill] sm:$0xff] %v18257_v34  ;;  %v18259_v22 = vpop.f32.mrb[25].mxu1 }
 0x134   : > { %vm18250_vm13 = vcmp.lt.s32.totalorder %v23330_v31, 16  ;;  %v877_v48 = vmax.f32 %v805_v42, 0.0  ;;  %v807_v44 = vadd.f32 %v23165_v55, %v723_v47  ;;  %vm23334_vm8 = vnez %v23049_v50  ;;  %v18277_v45 = vpop.f32.mrb[26].mxu1 }
 0x135   : > { %v23336_v39 = vsel %vm23334_vm8, %v17018_v5, %v23335_v26  ;;  %v18273_v31 = vsel %vm18127_vm6, %v901_v41, 0.0  ;;  %v746_v35 = vmul.f32 %v23156_v11, %v17977_v23  ;;  %v878_v42 = vmax.f32 %v806_v36, 0.0  ;;  %v18287_v37 = vpop.f32.mrb[27].mxu1  ;;  %v575_v36 = vpop.f32.mrb[28].mxu0  ;;  %vm23368_vm8 = vmmov %vm23316_vm10 }
 0x136   : > { %vm18267_vm2 = vcmp.lt.s32.totalorder %v23336_v39, 16  ;;  %23339 = vst [vmem:[#allocation37_spill] sm:$0xff] %v18273_v31  ;;  %v2034_v47 = vsel %vm23316_vm10, %v2029_v24, %v2033_v32  ;;  %v23340_v50 = vrot.slane %v18219_v38, 7  ;;  %v23341_v5 = vrot.slane %v18114_v20, 7  ;;  %vm23371_vm10 = vmmov %vm23368_vm8 }
 0x137   : > { %v747_v39 = vmul.f32 %v23163_v13, %v17992_v58  ;;  %v18291_v41 = vsel %vm18151_vm0, %v876_v14, 0.0  ;;  %v18295_v23 = vsel %vm18151_vm0, %v877_v48, 0.0  ;;  %v879_v24 = vmax.f32 %v807_v44, 0.0  ;;  %2527 = vmatprep.mubr.bf16.mxu1 %v2034_v47  ;;  %2740 = vmatprep.mubr.bf16.mxu0 %v2034_v47 }
 0x138   : > { %v2032_v26 = vsel %vm23342_vm14, %v23341_v5, %v23340_v50  ;;  %23343 = vst [vmem:[#allocation71_spill] sm:$0xff] %v18291_v41  ;;  %23344 = vst [vmem:[#allocation72_spill] sm:$0xff] %v18295_v23  ;;  %v830_v20 = vadd.f32 %v23164_v4, %v746_v35  ;;  %v18300_v50 = vsel %vm18164_vm11, %v878_v42, 0.0  ;;  %v724_v58 = vmul.f32 %v23156_v11, %v575_v36  ;;  %v577_v5 = vpop.f32.mrb[29].mxu0 }
 0x139   : > { %23345 = vst [vmem:[#allocation73_spill] sm:$0xff] %v18300_v50  ;;  %2528 = vmatmul.mubr.bf16.gmra.mrb[60].mxu1 %v2032_v26  ;;  %2741 = vmatmul.mubr.bf16.gmra.mrb[60].mxu0 %v2032_v26  ;;  %v831_v14 = vadd.f32 %v23165_v55, %v747_v39  ;;  %v748_v3 = vmul.f32 %v23156_v11, %v18056_v16  ;;  %v18312_v44 = vsel %vm18164_vm11, %v879_v24, 0.0  ;;  %v579_v42 = vpop.f32.mrb[30].mxu0 }
 0x13a   : > { %v18308_v48 = vpack.c.bf16 %v18300_v50, %v18291_v41  ;;  %23346 = vst [vmem:[#allocation74_spill] sm:$0xff] %v18312_v44  ;;  %v725_v35 = vmul.f32 %v23163_v13, %v577_v5  ;;  %v902_v47 = vmax.f32 %v830_v20, 0.0  ;;  %v18317_v26 = vpack.c.bf16 %v18312_v44, %v18295_v23  ;;  %v581_v36 = vpop.f32.mrb[31].mxu0  ;;  %v23352_v5 = vld [vmem:[#allocation55_spill] sm:$0xff]  ;;  %v23355_v44 = vld [vmem:[#allocation42_spill] sm:$0xff]  ;;  %v23359_v23 = vld [vmem:[#allocation57_spill] sm:$0xff] }
 0x13b   : > { %v808_v39 = vadd.f32 %v23164_v4, %v724_v58  ;;  %v726_v16 = vmul.f32 %v23156_v11, %v579_v42  ;;  %v903_v6 = vmax.f32 %v831_v14, 0.0  ;;  %v727_v24 = vmul.f32 %v23163_v13, %v581_v36  ;;  %v23348_v58 = vld [vmem:[#allocation50_spill] sm:$0xff]  ;;  %v18338_v14 = vpop.f32.mrb[28].mxu1  ;;  %v23362_v41 = vld [vmem:[#allocation43_spill] sm:$0xff] }
 0x13c   : > { %1773 = vst [vmem:[#allocation2 + $0x80] sm:$0xff] %v18308_v48  ;;  %v809_v15 = vadd.f32 %v23165_v55, %v725_v35  ;;  %v18327_v20 = vsel %vm18213_vm3, %v902_v47, 0.0  ;;  %v23349_v59 = vsel %vm17386_vm5, %v17493_v62, %v23348_v58  ;;  %1774 = vst [vmem:[#allocation2 + $0x88] sm:$0xff] %v18317_v26  ;;  %vm23353_vm0 = vnez %v23352_v5  ;;  %v23354_v47 = vld [vmem:[#allocation59_spill] sm:$0xff]  ;;  %v18356_v58 = vpop.f32.mrb[29].mxu1  ;;  %v23361_v5 = vld [vmem:[#allocation60_spill] sm:$0xff] }
 0x13d   : > { %23347 = vst [vmem:[#allocation75_spill] sm:$0xff] %v18327_v20  ;;  %vm18334_vm6 = vcmp.lt.s32.totalorder %v23349_v59, 16  ;;  %v880_v35 = vmax.f32 %v808_v39, 0.0  ;;  %v810_v36 = vadd.f32 %v23164_v4, %v726_v16  ;;  %v23356_v50 = vsel %vm23353_vm0, %v23354_v47, %v23355_v44 }
 0x13e   : > { %vm18347_vm11 = vcmp.lt.s32.totalorder %v23356_v50, 16  ;;  %v2037_v62 = vrot.slane %v18317_v26, 7  ;;  %v18354_v59 = vpack.c.bf16 %v18327_v20, %v18257_v34  ;;  %v881_v39 = vmax.f32 %v809_v15, 0.0  ;;  %v18372_v20 = vpop.f32.mrb[30].mxu1  ;;  %v23367_v34 = vld [vmem:[#allocation62_spill] sm:$0xff] }
 0x13f   : > { %v811_v16 = vadd.f32 %v23165_v55, %v727_v24  ;;  %vm23360_vm5 = vnez %v23359_v23  ;;  %v18370_v47 = vsel %vm18213_vm3, %v903_v6, 0.0  ;;  %v18376_v15 = vsub.s32 %v23367_v34, %v17678_v54  ;;  %v23374_v54 = vld [vmem:[#allocation51_spill] sm:$0xff] }
 0x140   : > { %v23363_v44 = vsel %vm23360_vm5, %v23361_v5, %v23362_v41  ;;  %23366 = vst [vmem:[#allocation50_spill] sm:$0xff] %v18370_v47  ;;  %v882_v24 = vmax.f32 %v810_v36, 0.0  ;;  %v2038_v23 = vsel %vm23368_vm8, %v2033_v32, %v2037_v62  ;;  %v23369_v8 = vrot.slane %v18308_v48, 7  ;;  %1785 = vst [vmem:[#allocation2 + $0xe0] sm:$0xff] %v18354_v59  ;;  %v18398_v32 = vpop.f32.mrb[31].mxu1 }
 0x141   : > { %vm18364_vm4 = vcmp.lt.s32.totalorder %v23363_v44, 16  ;;  %v23370_v41 = vrot.slane %v18219_v38, 7  ;;  %v18387_v6 = vpack.c.bf16 %v18370_v47, %v18273_v31  ;;  %v23373_v44 = vld [vmem:[#allocation5_spill] sm:$0xff]  ;;  %v18402_v38 = vsel %vm18250_vm13, %v880_v35, 0.0  ;;  %2537 = vmatprep.mubr.bf16.mxu1 %v2038_v23  ;;  %2750 = vmatprep.mubr.bf16.mxu0 %v2038_v23  ;;  %vm23418_vm5 = vmmov %vm23368_vm8 }
 0x142   : > { %v23375_v34 = vsel %vm23157_vm12, %v23373_v44, %v23374_v54  ;;  %23378 = vst [vmem:[#allocation55_spill] sm:$0xff] %v18402_v38  ;;  %v832_v47 = vadd.f32 %v23164_v4, %v748_v3  ;;  %v749_v53 = vmul.f32 %v23163_v13, %v18061_v57  ;;  %v18409_v44 = vsel %vm18250_vm13, %v881_v39, 0.0  ;;  %vm23388_vm13 = vmmov %vm23368_vm8 }
 0x143   : > { %v2036_v5 = vsel %vm23371_vm10, %v23370_v41, %v23369_v8  ;;  %vm18394_vm3 = vcmp.lt.s32.totalorder %v23375_v34, 16  ;;  %v883_v8 = vmax.f32 %v811_v16, 0.0  ;;  %v585_v41 = vpop.f32.mrb[32].mxu0  ;;  %23379 = vst [vmem:[#allocation59_spill] sm:$0xff] %v18409_v44  ;;  %v18413_v54 = vsel %vm18267_vm2, %v882_v24, 0.0  ;;  %1786 = vst [vmem:[#allocation2 + $0xe8] sm:$0xff] %v18387_v6 }
 0x144   : > { %23380 = vst [vmem:[#allocation42_spill] sm:$0xff] %v18413_v54  ;;  %v728_v35 = vmul.f32 %v23156_v11, %v585_v41  ;;  %v587_v34 = vpop.f32.mrb[33].mxu0  ;;  %2538 = vmatmul.mubr.bf16.gmra.mrb[64].mxu1 %v2036_v5  ;;  %2751 = vmatmul.mubr.bf16.gmra.mrb[64].mxu0 %v2036_v5  ;;  %v750_v3 = vmul.f32 %v23156_v11, %v18080_v0  ;;  %v904_v24 = vmax.f32 %v832_v47, 0.0  ;;  %vm1391_vm14 = vcmp.ne.s32.totalorder %v18376_v15, 0 }
 0x145   : > { %v18421_v57 = vpack.c.bf16 %v18413_v54, %v18402_v38  ;;  %v18425_v33 = vsel %vm18267_vm2, %v883_v8, 0.0  ;;  %v729_v39 = vmul.f32 %v23163_v13, %v587_v34  ;;  %v589_v16 = vpop.f32.mrb[34].mxu0  ;;  %v833_v31 = vadd.f32 %v23165_v55, %v749_v53 }
 0x146   : > { %23381 = vst [vmem:[#allocation57_spill] sm:$0xff] %v18425_v33  ;;  %v18430_v23 = vpack.c.bf16 %v18425_v33, %v18409_v44  ;;  %v812_v5 = vadd.f32 %v23164_v4, %v728_v35  ;;  %v730_v0 = vmul.f32 %v23156_v11, %v589_v16  ;;  %v591_v41 = vpop.f32.mrb[35].mxu0  ;;  %v751_v47 = vmul.f32 %v23163_v13, %v18093_v10  ;;  %v18441_v33 = vpop.f32.mrb[32].mxu1 }
 0x147   : > { %1775 = vst [vmem:[#allocation2 + $0x90] sm:$0xff] %v18421_v57  ;;  %v813_v9 = vadd.f32 %v23165_v55, %v729_v39  ;;  %v731_v8 = vmul.f32 %v23163_v13, %v591_v41  ;;  %v2039_v34 = vrot.slane %v18421_v57, 7  ;;  %v905_v54 = vmax.f32 %v833_v31, 0.0  ;;  %v23383_v39 = vld [vmem:[#allocation52_spill] sm:$0xff]  ;;  %v18455_v10 = vpop.f32.mrb[33].mxu1  ;;  %v23387_v31 = vld [vmem:[#allocation66_spill] sm:$0xff] }
 0x148   : > { %1776 = vst [vmem:[#allocation2 + $0x98] sm:$0xff] %v18430_v23  ;;  %v884_v35 = vmax.f32 %v812_v5, 0.0  ;;  %v814_v16 = vadd.f32 %v23164_v4, %v730_v0  ;;  %v2041_v53 = vrot.slane %v18430_v23, 7  ;;  %v23384_v41 = vsel %vm17412_vm15, %v17518_v1, %v23383_v39  ;;  %v18459_v0 = vpop.f32.mrb[34].mxu1  ;;  %vm23390_vm15 = vmmov %vm23368_vm8 }
 0x149   : > { %vm18451_vm12 = vcmp.lt.s32.totalorder %v23384_v41, 16  ;;  %v885_v49 = vmax.f32 %v813_v9, 0.0  ;;  %v815_v51 = vadd.f32 %v23165_v55, %v731_v8  ;;  %v834_v5 = vadd.f32 %v23164_v4, %v750_v3  ;;  %v23393_v3 = vld [vmem:[#allocation27_spill] sm:$0xff]  ;;  %v23406_v8 = vld [vmem:[#allocation56_spill] sm:$0xff] }
 0x14a   : > { %v18463_v29 = vsub.s32 %v23387_v31, %v18241_v30  ;;  %v886_v44 = vmax.f32 %v814_v16, 0.0  ;;  %v2042_v1 = vsel %vm23388_vm13, %v2037_v62, %v2041_v53  ;;  %v23389_v39 = vrot.slane %v18308_v48, 7  ;;  %v18483_v30 = vpop.f32.mrb[35].mxu1 }
 0x14b   : > { %v18471_v9 = vsel %vm18334_vm6, %v904_v24, 0.0  ;;  %v23395_v61 = vsel %vm17420_vm7, %v23393_v3, %v23394_v19  ;;  %v18487_v62 = vsel %vm18347_vm11, %v884_v35, 0.0  ;;  %v887_v16 = vmax.f32 %v815_v51, 0.0  ;;  %2547 = vmatprep.mubr.bf16.mxu1 %v2042_v1  ;;  %2760 = vmatprep.mubr.bf16.mxu0 %v2042_v1 }
 0x14c   : > { %v2040_v41 = vsel %vm23390_vm15, %v23389_v39, %v2039_v34  ;;  %23391 = vst [vmem:[#allocation60_spill] sm:$0xff] %v18471_v9  ;;  %vm18478_vm2 = vcmp.lt.s32.totalorder %v23395_v61, 16  ;;  %23398 = vst [vmem:[#allocation43_spill] sm:$0xff] %v18487_v62  ;;  %v906_v24 = vmax.f32 %v834_v5, 0.0  ;;  %v835_v31 = vadd.f32 %v23165_v55, %v751_v47 }
 0x14d   : > { %v18492_v61 = vsel %vm18347_vm11, %v885_v49, 0.0  ;;  %v18496_v19 = vsel %vm18364_vm4, %v886_v44, 0.0  ;;  %2548 = vmatmul.mubr.bf16.gmra.mrb[68].mxu1 %v2040_v41  ;;  %2761 = vmatmul.mubr.bf16.gmra.mrb[68].mxu0 %v2040_v41  ;;  %v18500_v35 = vsel %vm18334_vm6, %v905_v54, 0.0  ;;  %v752_v51 = vmul.f32 %v23156_v11, %v18142_v27  ;;  %v23405_v41 = vld [vmem:[#allocation16_spill] sm:$0xff]  ;;  %vm23417_vm11 = vmmov %vm23368_vm8 }
 0x14e   : > { %23399 = vst [vmem:[#allocation62_spill] sm:$0xff] %v18492_v61  ;;  %23400 = vst [vmem:[#allocation61_spill] sm:$0xff] %v18496_v19  ;;  %v18506_v47 = vpack.c.bf16 %v18496_v19, %v18487_v62  ;;  %v18510_v49 = vsel %vm18364_vm4, %v887_v16, 0.0  ;;  %v18514_v56 = vsel %vm18394_vm3, %v906_v24, 0.0  ;;  %v907_v5 = vmax.f32 %v835_v31, 0.0  ;;  %v23410_v24 = vld [vmem:[#allocation67_spill] sm:$0xff] }
 0x14f   : > { %23401 = vst [vmem:[#allocation5_spill] sm:$0xff] %v18500_v35  ;;  %23402 = vst [vmem:[#allocation51_spill] sm:$0xff] %v18510_v49  ;;  %v18518_v42 = vpack.c.bf16 %v18510_v49, %v18492_v61  ;;  %v18522_v27 = vpack.c.bf16 %v18514_v56, %v18471_v9  ;;  %v836_v54 = vadd.f32 %v23164_v4, %v752_v51  ;;  %vm1427_vm7 = vcmp.lt.s32.totalorder %v18376_v15, 0  ;;  %v23412_v31 = vld [vmem:[#allocation8_spill] sm:$0xff]  ;;  %v23413_v51 = vld [vmem:[#allocation58_spill] sm:$0xff] }
 0x150   : > { %23403 = vst [vmem:[#allocation63_spill] sm:$0xff] %v18514_v56  ;;  %1777 = vst [vmem:[#allocation2 + $0xa0] sm:$0xff] %v18506_v47  ;;  %v2043_v50 = vrot.slane %v18506_v47, 7  ;;  %v18530_v44 = vsel %vm18394_vm3, %v907_v5, 0.0  ;;  %v753_v1 = vmul.f32 %v23163_v13, %v18156_v25  ;;  %v754_v39 = vmul.f32 %v23156_v11, %v18175_v40  ;;  %v23423_v56 = vld [vmem:[#allocation65_spill] sm:$0xff] }
 0x151   : > { %23404 = vst [vmem:[#allocation52_spill] sm:$0xff] %v18530_v44  ;;  %v23407_v3 = vsel %vm17439_vm1, %v23405_v41, %v23406_v8  ;;  %1778 = vst [vmem:[#allocation2 + $0xa8] sm:$0xff] %v18518_v42  ;;  %v2045_v36 = vrot.slane %v18518_v42, 7  ;;  %v18550_v25 = vpack.c.bf16 %v18530_v44, %v18500_v35  ;;  %v908_v40 = vmax.f32 %v836_v54, 0.0 }
 0x152   : > { %vm18541_vm6 = vcmp.lt.s32.totalorder %v23407_v3, 16  ;;  %1787 = vst [vmem:[#allocation2 + $0xf0] sm:$0xff] %v18522_v27  ;;  %v755_v28 = vmul.f32 %v23163_v13, %v18186_v2  ;;  %vm23411_vm1 = vnez %v23410_v24  ;;  %v2049_v8 = vrot.slane %v17823_v7, 7  ;;  %vm23419_vm8 = vmmov %vm23418_vm5 }
 0x153   : > { %v23414_v5 = vsel %vm23411_vm1, %v23412_v31, %v23413_v51  ;;  %v837_v3 = vadd.f32 %v23165_v55, %v753_v1  ;;  %v838_v44 = vadd.f32 %v23164_v4, %v754_v39  ;;  %v18567_v54 = vadd.s32 18, %v18376_v15  ;;  %1788 = vst [vmem:[#allocation2 + $0xf8] sm:$0xff] %v18550_v25  ;;  %vm18606_vm3 = vmand %vm1427_vm7, %vm1391_vm14 }
 0x154   : > { %vm18559_vm0 = vcmp.lt.s32.totalorder %v23414_v5, 16  ;;  %v2046_v2 = vsel %vm23417_vm11, %v2041_v53, %v2045_v36  ;;  %v2044_v24 = vsel %vm23418_vm5, %v2039_v34, %v2043_v50  ;;  %v839_v31 = vadd.f32 %v23165_v55, %v755_v28  ;;  %vm23438_vm15 = vmmov %vm23418_vm5 }
 0x155   : > { %vm1392_vm4 = vcmp.ne.s32.totalorder %v18463_v29, 0  ;;  %2557 = vmatprep.mubr.bf16.mxu1 %v2046_v2  ;;  %2770 = vmatprep.mubr.bf16.mxu0 %v2046_v2  ;;  %v2050_v7 = vsel %vm23419_vm8, %v2045_v36, %v2049_v8  ;;  %v18577_v1 = vsel %vm18451_vm12, %v908_v40, 0.0  ;;  %v909_v39 = vmax.f32 %v837_v3, 0.0  ;;  %v23422_v36 = vld [vmem:[#allocation70_spill] sm:$0xff]  ;;  %vm23444_vm14 = vmmov %vm23418_vm5 }
 0x156   : > { %23420 = vst [vmem:[#allocation66_spill] sm:$0xff] %v18577_v1  ;;  %v910_v51 = vmax.f32 %v838_v44, 0.0  ;;  %2558 = vmatmul.mubr.bf16.gmra.mrb[72].mxu1 %v2044_v24  ;;  %2771 = vmatmul.mubr.bf16.gmra.mrb[72].mxu0 %v2044_v24  ;;  %v911_v53 = vmax.f32 %v839_v31, 0.0  ;;  %v756_v34 = vmul.f32 %v23156_v11, %v18237_v46  ;;  %v757_v28 = vmul.f32 %v23163_v13, %v18259_v22  ;;  %vm23454_vm1 = vmmov %vm23418_vm5 }
 0x157   : > { %v758_v5 = vmul.f32 %v23156_v11, %v18277_v45  ;;  %v23424_v40 = vsel %vm17578_vm9, %v23422_v36, %v23423_v56  ;;  %2567 = vmatprep.mubr.bf16.mxu1 %v2050_v7  ;;  %2780 = vmatprep.mubr.bf16.mxu0 %v2050_v7  ;;  %v18596_v46 = vsel %vm18451_vm12, %v909_v39, 0.0  ;;  %vm1428_vm9 = vcmp.lt.s32.totalorder %v18463_v29, 0  ;;  %v23432_v7 = vld [vmem:[#allocation29_spill] sm:$0xff]  ;;  %v23434_v39 = vld [vmem:[#allocation68_spill] sm:$0xff] }
 0x158   : > { %vm18590_vm10 = vcmp.lt.s32.totalorder %v23424_v40, 16  ;;  %23427 = vst [vmem:[#allocation64_spill] sm:$0xff] %v18596_v46  ;;  %v18600_v22 = vsel %vm18478_vm2, %v910_v51, 0.0  ;;  %v1500_v56 = vadd.s32 18, %v18463_v29  ;;  %v18618_v44 = vsel %vm18478_vm2, %v911_v53, 0.0  ;;  %v18631_v36 = vld [vmem:[#allocation2 + $0xb0] sm:$0xff]  ;;  %vm18667_vm2 = vmand %vm1428_vm9, %vm1392_vm4 }
 0x159   : > { %23428 = vst [vmem:[#allocation27_spill] sm:$0xff] %v18600_v22  ;;  %v18614_v38 = vpack.c.bf16 %v18600_v22, %v18577_v1  ;;  %23431 = vst [vmem:[#allocation54_spill] sm:$0xff] %v18618_v44  ;;  %v840_v24 = vadd.f32 %v23164_v4, %v756_v34  ;;  %v841_v31 = vadd.f32 %v23165_v55, %v757_v28  ;;  %vm23433_vm12 = vnez %v23432_v7 }
 0x15a   : > { %v23435_v51 = vsel %vm23433_vm12, %v17586_v43, %v23434_v39  ;;  %v2047_v40 = vrot.slane %v18631_v36, 7  ;;  %v18636_v52 = vpack.c.bf16 %v18618_v44, %v18596_v46  ;;  %v842_v53 = vadd.f32 %v23164_v4, %v758_v5 }
 0x15b   : > { %vm18627_vm13 = vcmp.lt.s32.totalorder %v23435_v51, 16  ;;  %v759_v34 = vmul.f32 %v23163_v13, %v18287_v37  ;;  %v2053_v28 = vrot.slane %v18012_v60, 7  ;;  %1789 = vst [vmem:[#allocation2 + $0x100] sm:$0xff] %v18614_v38  ;;  %v912_v43 = vmax.f32 %v840_v24, 0.0 }
 0x15c   : > { %v913_v7 = vmax.f32 %v841_v31, 0.0  ;;  %v760_v39 = vmul.f32 %v23156_v11, %v18338_v14  ;;  %1790 = vst [vmem:[#allocation2 + $0x108] sm:$0xff] %v18636_v52  ;;  %v914_v51 = vmax.f32 %v842_v53, 0.0  ;;  %v761_v5 = vmul.f32 %v23163_v13, %v18356_v58 }
 0x15d   : > { %v843_v44 = vadd.f32 %v23165_v55, %v759_v34  ;;  %v1535_v60 = vsel %vm18606_vm3, %v18567_v54, %v18376_v15  ;;  %v2048_v37 = vsel %vm23438_vm15, %v2043_v50, %v2047_v40  ;;  %v18656_v24 = vsel %vm18541_vm6, %v912_v43, 0.0 }
 0x15e   : > { %23439 = vst [vmem:[#allocation16_spill] sm:$0xff] %v18656_v24  ;;  %v18660_v14 = vsel %vm18541_vm6, %v913_v7, 0.0  ;;  %v844_v31 = vadd.f32 %v23164_v4, %v760_v39  ;;  %v18673_v15 = vsel %vm18559_vm0, %v914_v51, 0.0  ;;  %v845_v54 = vadd.f32 %v23165_v55, %v761_v5  ;;  %2568 = vmatmul.mubr.bf16.gmra.mrb[76].mxu1 %v2048_v37  ;;  %2781 = vmatmul.mubr.bf16.gmra.mrb[76].mxu0 %v2048_v37 }
 0x15f   : > { %23440 = vst [vmem:[#allocation56_spill] sm:$0xff] %v18660_v14  ;;  %23443 = vst [vmem:[#allocation67_spill] sm:$0xff] %v18673_v15  ;;  %v915_v50 = vmax.f32 %v843_v44, 0.0  ;;  %v762_v16 = vmul.f32 %v23156_v11, %v18372_v20  ;;  %v2054_v45 = vsel %vm23444_vm14, %v2049_v8, %v2053_v28  ;;  %v18681_v53 = vpack.c.bf16 %v18673_v15, %v18656_v24 }
 0x160   : > { %v916_v34 = vmax.f32 %v844_v31, 0.0  ;;  %v763_v43 = vmul.f32 %v23163_v13, %v18398_v32  ;;  %2577 = vmatprep.mubr.bf16.mxu1 %v2054_v45  ;;  %2790 = vmatprep.mubr.bf16.mxu0 %v2054_v45  ;;  %v917_v7 = vmax.f32 %v845_v54, 0.0  ;;  %v1536_v8 = vsel %vm18667_vm2, %v1500_v56, %v18463_v29 }
 0x161   : > { %v18687_v44 = vsel %vm18559_vm0, %v915_v50, 0.0  ;;  %v846_v20 = vadd.f32 %v23164_v4, %v762_v16  ;;  %v2051_v39 = vrot.slane %v17990_v63, 7  ;;  %v2057_v51 = vrot.slane %v18205_v17, 7  ;;  %1791 = vst [vmem:[#allocation2 + $0x110] sm:$0xff] %v18681_v53  ;;  %vm23455_vm0 = vmmov %vm23454_vm1 }
 0x162   : > { %23445 = vst [vmem:[#allocation8_spill] sm:$0xff] %v18687_v44  ;;  %v18698_v32 = vpack.c.bf16 %v18687_v44, %v18660_v14  ;;  %v847_v41 = vadd.f32 %v23165_v55, %v763_v43  ;;  %v18703_v5 = vsel %vm18590_vm10, %v916_v34, 0.0  ;;  %v18707_v37 = vsel %vm18590_vm10, %v917_v7, 0.0  ;;  %vm23461_vm11 = vmmov %vm23455_vm0 }
 0x163   : > { %23446 = vst [vmem:[#allocation58_spill] sm:$0xff] %v18703_v5  ;;  %23447 = vst [vmem:[#allocation69_spill] sm:$0xff] %v18707_v37  ;;  %v918_v29 = vmax.f32 %v846_v20, 0.0  ;;  %v764_v63 = vmul.f32 %v23156_v11, %v18441_v33  ;;  %v765_v56 = vmul.f32 %v23163_v13, %v18455_v10  ;;  %v766_v31 = vmul.f32 %v23156_v11, %v18459_v0 }
 0x164   : > { %1792 = vst [vmem:[#allocation2 + $0x118] sm:$0xff] %v18698_v32  ;;  %v919_v17 = vmax.f32 %v847_v41, 0.0  ;;  %v767_v58 = vmul.f32 %v23163_v13, %v18483_v30  ;;  %vm18723_vm7 = vcmp.lt.s32.totalorder %v1535_v60, 16  ;;  %vm18727_vm6 = vcmp.lt.s32.totalorder %v1536_v8, 16  ;;  %vm23462_vm5 = vmmov %vm23455_vm0 }
 0x165   : > { %v18720_v3 = vsel %vm18627_vm13, %v918_v29, 0.0  ;;  %v848_v50 = vadd.f32 %v23164_v4, %v764_v63  ;;  %v849_v10 = vadd.f32 %v23165_v55, %v765_v56  ;;  %v850_v0 = vadd.f32 %v23164_v4, %v766_v31  ;;  %v18766_v63 = vld [vmem:[#allocation2] sm:$0xff]  ;;  %vm23463_vm4 = vmmov %vm23455_vm0 }
 0x166   : > { %23448 = vst [vmem:[#allocation70_spill] sm:$0xff] %v18720_v3  ;;  %v1757_v11 = vpack.c.bf16 %v18720_v3, %v18703_v5  ;;  %v18735_v13 = vsel %vm18627_vm13, %v919_v17, 0.0  ;;  %v2052_v30 = vsel %vm23454_vm1, %v2047_v40, %v2051_v39  ;;  %v851_v45 = vadd.f32 %v23165_v55, %v767_v58  ;;  %23460 = vst [vmem:[#allocation78_spill] sm:$0xff] %v18766_v63  ;;  %v1798_v58 = vld [vmem:[#allocation2 + $0x8] sm:$0xc0] }
 0x167   : > { %23453 = vst [vmem:[#allocation65_spill] sm:$0xff] %v18735_v13  ;;  %v1758_v60 = vpack.c.bf16 %v18735_v13, %v18707_v37  ;;  %v920_v16 = vmax.f32 %v848_v50, 0.0  ;;  %2578 = vmatmul.mubr.bf16.gmra.mrb[80].mxu1 %v2052_v30  ;;  %2791 = vmatmul.mubr.bf16.gmra.mrb[80].mxu0 %v2052_v30  ;;  %v2058_v34 = vsel %vm23455_vm0, %v2053_v28, %v2057_v51  ;;  %v921_v2 = vmax.f32 %v849_v10, 0.0  ;;  %vm23464_vm8 = vmmov %vm23455_vm0 }
 0x168   : > { %1793 = vst [vmem:[#allocation2 + $0x120] sm:$0xff] %v1757_v11  ;;  %v922_v43 = vmax.f32 %v850_v0, 0.0  ;;  %2587 = vmatprep.mubr.bf16.mxu1 %v2058_v34  ;;  %2800 = vmatprep.mubr.bf16.mxu0 %v2058_v34  ;;  %v923_v40 = vmax.f32 %v851_v45, 0.0  ;;  %v2055_v28 = vrot.slane %v18184_v18, 7  ;;  %v2061_v41 = vrot.slane %v18387_v6, 7  ;;  %v18782_v34 = vld [vmem:[#allocation2 + $0x28] sm:$0xff]  ;;  %vm23465_vm10 = vmmov %vm23455_vm0 }
 0x169   : > { %1794 = vst [vmem:[#allocation2 + $0x128] sm:$0xff] %v1758_v60  ;;  %v18746_v4 = vsel %vm18723_vm7, %v920_v16, 0.0  ;;  %v18750_v7 = vsel %vm18723_vm7, %v921_v2, 0.0  ;;  %v22728_v17 = vshrl.u32 %v18766_v63, 16  ;;  %v22727_v56 = vshll.u32 %v18766_v63, 16  ;;  %vm23466_vm3 = vmmov %vm23455_vm0 }
 0x16a   : > { %23456 = vst [vmem:[#allocation29_spill] sm:$0xff] %v18746_v4  ;;  %23457 = vst [vmem:[#allocation68_spill] sm:$0xff] %v18750_v7  ;;  %v18754_v55 = vsel %vm18727_vm6, %v922_v43, 0.0  ;;  %v18761_v8 = vsel %vm18727_vm6, %v923_v40, 0.0  ;;  %v2056_v18 = vsel %vm23461_vm11, %v2051_v39, %v2055_v28  ;;  %v2062_v31 = vsel %vm23462_vm5, %v2057_v51, %v2061_v41  ;;  %v1797_v39 = vld [vmem:[#allocation2] sm:$0xc0] }
 0x16b   : > { %23458 = vst [vmem:[#allocation76_spill] sm:$0xff] %v18754_v55  ;;  %v1759_v20 = vpack.c.bf16 %v18754_v55, %v18746_v4  ;;  %23459 = vst [vmem:[#allocation77_spill] sm:$0xff] %v18761_v8  ;;  %v1760_v29 = vpack.c.bf16 %v18761_v8, %v18750_v7  ;;  %v2890_v50 = vrot.slane %v22728_v17, 6  ;;  %v2893_v33 = vrot.slane %v22727_v56, 7  ;;  %v18818_v8 = vld [vmem:[#allocation2 + $0x30] sm:$0xff] }
 0x16c   : > { %v2059_v54 = vrot.slane %v18354_v59, 7  ;;  %v2065_v11 = vrot.slane %v18550_v25, 7  ;;  %v2063_v10 = vrot.slane %v18522_v27, 7  ;;  %v2880_v0 = vshrl.u32 %v1798_v58, 16  ;;  %vm23467_vm9 = vmmov %vm23455_vm0 }
 0x16d   : > { %1795 = vst [vmem:[#allocation2 + $0x130] sm:$0xff] %v1759_v20  ;;  %1796 = vst [vmem:[#allocation2 + $0x138] sm:$0xff] %v1760_v29  ;;  %v2883_v30 = vshll.u32 %v1798_v58, 16  ;;  %v18779_v60 = vor.u32 %v2893_v33, %v2890_v50  ;;  %v2069_v51 = vrot.slane %v18636_v52, 7  ;;  %v2863_v16 = vshrl.u32 %v1797_v39, 16 }
 0x16e   : > { %v2866_v45 = vshll.u32 %v1797_v39, 16  ;;  %v22730_v2 = vshrl.u32 %v18782_v34, 16  ;;  %v2060_v43 = vsel %vm23463_vm4, %v2055_v28, %v2059_v54  ;;  %v2066_v59 = vsel %vm23464_vm8, %v2061_v41, %v2065_v11  ;;  %v18798_v41 = vld [vmem:[#allocation2 + $0x20] sm:$0xff]  ;;  %v18802_v39 = vld [vmem:[#allocation2 + $0x38] sm:$0xff]  ;;  %vm23469_vm12 = vmmov %vm23455_vm0 }
 0x16f   : > { %2588 = vmatmul.mubr.bf16.gmra.mrb[84].mxu1 %v2056_v18  ;;  %2801 = vmatmul.mubr.bf16.gmra.mrb[84].mxu0 %v2056_v18  ;;  %v2064_v40 = vsel %vm23465_vm10, %v2059_v54, %v2063_v10  ;;  %v22732_v20 = vshll.u32 %v18782_v34, 16  ;;  %v2067_v29 = vrot.slane %v18614_v38, 7  ;;  %v18792_v58 = vld [vmem:[#allocation2 + $0x120] sm:$0x7f]  ;;  %v18794_v50 = vrot.slane %v2880_v0, 6  ;;  %vm23470_vm13 = vmmov %vm23455_vm0 }
 0x170   : > { %2597 = vmatprep.mubr.bf16.mxu1 %v2062_v31  ;;  %2810 = vmatprep.mubr.bf16.mxu0 %v2062_v31  ;;  %v2071_v31 = vrot.slane %v18681_v53, 7  ;;  %v18796_v28 = vrot.slane %v2883_v30, 7  ;;  %v2070_v56 = vsel %vm23466_vm3, %v2065_v11, %v2069_v51  ;;  %v18806_v17 = vrot.slane %v2863_v16, 6  ;;  %vm23474_vm15 = vmmov %vm23455_vm0 }
 0x171   : > { %v18808_v0 = vrot.slane %v2866_v45, 7  ;;  %v2908_v30 = vrot.slane %v22730_v2, 6  ;;  %v2075_v18 = vrot.slane %v18792_v58, 7  ;;  %v2911_v54 = vrot.slane %v22732_v20, 7  ;;  %vm23498_vm14 = vmmov %vm23455_vm0 }
 0x172   : > { %v2068_v16 = vsel %vm23467_vm9, %v2063_v10, %v2067_v29  ;;  %v23468_v45 = vrot.slane %v18698_v32, 7  ;;  %v18826_v2 = vsel %vm23470_vm13, %v2067_v29, %v2071_v31  ;;  %v23471_v33 = vshrl.u32 %v18798_v41, 16 }
 0x173   : > { %v23472_v11 = vshll.u32 %v18798_v41, 16  ;;  %v23473_v10 = vshrl.u32 %v18802_v39, 16  ;;  %v18851_v55 = vsel %vm23474_vm15, %v2071_v31, %v2075_v18  ;;  %v23475_v3 = vshll.u32 %v18802_v39, 16 }
 0x174   : > { %v18833_v7 = vrot.slane %v23471_v33, 6  ;;  %v23477_v29 = vshll.u32 %v18818_v8, 16  ;;  %v18867_v33 = vld [vmem:[#allocation2 + $0x40] sm:$0xff]  ;;  %vm2861_vm2 = vsmask.f32 1280  ;;  %v23480_v15 = vshrl.u32 %v18317_v26, 16 }
 0x175   : > { %v18837_v4 = vrot.slane %v23472_v11, 7  ;;  %v18841_v13 = vrot.slane %v23473_v10, 6  ;;  %v18853_v11 = vor.u32 %v2911_v54, %v2908_v30  ;;  %v18857_v10 = vrot.slane %v23475_v3, 7  ;;  %v18872_v3 = vld [vmem:[#allocation2 + $0x58] sm:$0xff] }
 0x176   : > { %v18865_v20 = vrot.slane %v23477_v29, 7  ;;  %v22750_v29 = vshll.u32 %v18308_v48, 16  ;;  %v3016_v14 = vrot.slane %v23480_v15, 6  ;;  %v22756_v54 = vshll.u32 %v18430_v23, 16 }
 0x177   : > { %2598 = vmatmul.mubr.bf16.gmra.mrb[88].mxu1 %v2060_v43  ;;  %2811 = vmatmul.mubr.bf16.gmra.mrb[88].mxu0 %v2060_v43  ;;  %v2074_v43 = vsel %vm23469_vm12, %v2069_v51, %v23468_v45  ;;  %v18846_v45 = vld [vmem:[#allocation2 + $0x48] sm:$0xff]  ;;  %v23476_v51 = vshrl.u32 %v18818_v8, 16  ;;  %v22757_v1 = vshrl.u32 %v18421_v57, 16  ;;  %v23482_v15 = vshll.u32 %v18867_v33, 16 }
 0x178   : > { %2607 = vmatprep.mubr.bf16.mxu1 %v2066_v59  ;;  %2820 = vmatprep.mubr.bf16.mxu0 %v2066_v59  ;;  %v18812_v59 = vld [vmem:[#allocation2 + $0x128] sm:$0x7f]  ;;  %v23478_v5 = vshrl.u32 %v18846_v45, 16  ;;  %v23479_v31 = vshll.u32 %v18846_v45, 16  ;;  %v3010_v22 = vrot.slane %v22750_v29, 7  ;;  %v22762_v29 = vshrl.u32 %v18518_v42, 16 }
 0x179   : > { %v18861_v37 = vrot.slane %v23476_v51, 6  ;;  %v22749_v51 = vshrl.u32 %v18308_v48, 16  ;;  %v2938_v35 = vrot.slane %v23482_v15, 7  ;;  %v22760_v49 = vshll.u32 %v18518_v42, 16 }
 0x17a   : > { %v2944_v18 = vrot.slane %v23478_v5, 6  ;;  %v2947_v44 = vrot.slane %v23479_v31, 7  ;;  %v23481_v5 = vshrl.u32 %v18867_v33, 16  ;;  %v22761_v19 = vshrl.u32 %v18506_v47, 16 }
 0x17b   : > { %v3007_v24 = vrot.slane %v22749_v51, 6  ;;  %v22759_v51 = vshll.u32 %v18421_v57, 16  ;;  %v3052_v62 = vrot.slane %v22762_v29, 6  ;;  %v23490_v63 = vshll.u32 %v18631_v36, 16 }
 0x17c   : > { %v2935_v46 = vrot.slane %v23481_v5, 6  ;;  %v3037_v5 = vrot.slane %v22756_v54, 7  ;;  %v3043_v21 = vrot.slane %v22761_v19, 6  ;;  %vm4051_vm7 = vsmask.f32 256 }
 0x17d   : > { %v18912_v15 = vor.u32 %v3010_v22, %v3007_v24  ;;  %v18923_v24 = vld [vmem:[#allocation2 + $0xb8] sm:$0xff]  ;;  %vm7487_vm6 = vsmask.f32 7424  ;;  %vm10140_vm1 = vcmask 1046528   ;;  %vm11208_vm0 = vsmask.f32 6400 }
 0x17f   : > { %2608 = vmatmul.mubr.bf16.gmra.mrb[92].mxu1 %v2064_v40  ;;  %2821 = vmatmul.mubr.bf16.gmra.mrb[92].mxu0 %v2064_v40  ;;  %v22747_v40 = vshll.u32 %v18317_v26, 16  ;;  %23485 = vst [vmem:[#allocation80_spill] sm:$0xff] %v18912_v15 }
 0x180   : > { %2617 = vmatprep.mubr.bf16.mxu1 %v2070_v56  ;;  %2830 = vmatprep.mubr.bf16.mxu0 %v2070_v56  ;;  %v22751_v56 = vshrl.u32 %v18430_v23, 16 }
 0x181   : > { %v3019_v30 = vrot.slane %v22747_v40, 7  ;;  %v23483_v40 = vshrl.u32 %v18872_v3, 16 }
 0x182   : > { %v3034_v31 = vrot.slane %v22751_v56, 6  ;;  %v3025_v56 = vrot.slane %v22757_v1, 6  ;;  %v3055_v1 = vrot.slane %v22760_v49, 7 }
 0x183   : > { %v2962_v9 = vrot.slane %v23483_v40, 6  ;;  %v18910_v61 = vor.u32 %v3019_v30, %v3016_v14  ;;  %v3028_v40 = vrot.slane %v22759_v51, 7  ;;  %v22763_v14 = vshll.u32 %v18506_v47, 16 }
 0x184   : > { %v3038_v54 = vor.u32 %v3037_v5, %v3034_v31  ;;  %v22767_v30 = vshrl.u32 %v18923_v24, 16  ;;  %v22769_v51 = vshll.u32 %v18923_v24, 16  ;;  %v3056_v5 = vor.u32 %v3055_v1, %v3052_v62 }
 0x185   : > { %23484 = vst [vmem:[#allocation79_spill] sm:$0xff] %v18910_v61  ;;  %v3029_v22 = vor.u32 %v3028_v40, %v3025_v56  ;;  %v3046_v49 = vrot.slane %v22763_v14, 7  ;;  %v23488_v62 = vshll.u32 %v18872_v3, 16 }
 0x186   : > { %v18930_v31 = vsel %vm2861_vm2, %v18910_v61, %v3038_v54  ;;  %v3070_v56 = vrot.slane %v22767_v30, 6  ;;  %v3073_v40 = vrot.slane %v22769_v51, 7  ;;  %v18948_v14 = vsel %vm2861_vm2, %v3038_v54, %v3056_v5  ;;  %v18963_v54 = vld [vmem:[#allocation2 + $0x50] sm:$0xff] }
 0x187   : > { %2618 = vmatmul.mubr.bf16.gmra.mrb[96].mxu1 %v2068_v16  ;;  %2831 = vmatmul.mubr.bf16.gmra.mrb[96].mxu0 %v2068_v16  ;;  %v22770_v16 = vshrl.u32 %v18631_v36, 16  ;;  %23486 = vst [vmem:[#allocation81_spill] sm:$0xff] %v18930_v31  ;;  %v2965_v1 = vrot.slane %v23488_v62, 7  ;;  %23489 = vst [vmem:[#allocation83_spill] sm:$0xff] %v18948_v14  ;;  %v3047_v19 = vor.u32 %v3046_v49, %v3043_v21  ;;  %v3064_v31 = vrot.slane %v23490_v63, 7 }
 0x188   : > { %2627 = vmatprep.mubr.bf16.mxu1 %v2074_v43  ;;  %2840 = vmatprep.mubr.bf16.mxu0 %v2074_v43  ;;  %v18937_v43 = vsel %vm2861_vm2, %v18912_v15, %v3029_v22  ;;  %v23491_v30 = vor.u32 %v18796_v28, %v18794_v50  ;;  %v2903_v51 = vor.u32 %v18837_v4, %v18833_v7  ;;  %v22776_v21 = vshrl.u32 %v18963_v54, 16 }
 0x189   : > { %23487 = vst [vmem:[#allocation82_spill] sm:$0xff] %v18937_v43  ;;  %v3061_v29 = vrot.slane %v22770_v16, 6  ;;  %v2930_v16 = vor.u32 %v18857_v10, %v18841_v13  ;;  %v18961_v62 = vor.u32 %v3073_v40, %v3070_v56  ;;  %v22771_v49 = vshll.u32 %v18963_v54, 16 }
 0x18a   : > { %v2895_v43 = vsel %vm2861_vm2, %v23491_v30, %v18779_v60  ;;  %v18968_v63 = vsel %vm2861_vm2, %v3029_v22, %v3047_v19  ;;  %v2921_v28 = vor.u32 %v18865_v20, %v18861_v37  ;;  %v2948_v4 = vor.u32 %v2947_v44, %v2944_v18  ;;  %v18989_v37 = vld [vmem:[#allocation2 + $0x68] sm:$0xff] }
 0x18b   : > { %23492 = vst [vmem:[#allocation84_spill] sm:$0xff] %v18961_v62  ;;  %23493 = vst [vmem:[#allocation85_spill] sm:$0xff] %v18968_v63  ;;  %v18970_v50 = vor.u32 %v3064_v31, %v3061_v29  ;;  %v18974_v7 = vor.u32 %v2938_v35, %v2935_v46  ;;  %v18978_v13 = vsel %vm2861_vm2, %v3056_v5, %v18961_v62  ;;  %v23496_v10 = vrot.slane %v18812_v59, 7 }
 0x18c   : > { %23495 = vst [vmem:[#allocation87_spill] sm:$0xff] %v18978_v13  ;;  %v23497_v22 = vrot.slane %v18698_v32, 7  ;;  %v18987_v30 = vor.u32 %v2965_v1, %v2962_v9  ;;  %v22774_v35 = vshrl.u32 %v18989_v37, 16  ;;  %v23500_v44 = vor.u32 %v18808_v0, %v18806_v17 }
 0x18d   : > { %23494 = vst [vmem:[#allocation86_spill] sm:$0xff] %v18970_v50  ;;  %v18994_v46 = vsel %vm2861_vm2, %v3047_v19, %v18970_v50  ;;  %v19006_v9 = vsel %vm2861_vm2, %v18779_v60, %v18853_v11  ;;  %v19010_v20 = vsel %vm2861_vm2, %v18779_v60, %v2903_v51  ;;  %v22775_v19 = vshll.u32 %v18989_v37, 16 }
 0x18e   : > { %v2078_v29 = vsel %vm23498_vm14, %v23497_v22, %v23496_v10  ;;  %23499 = vst [vmem:[#allocation88_spill] sm:$0xff] %v18994_v46  ;;  %v2953_v18 = vrot.slane %v22776_v21, 6  ;;  %v2956_v17 = vrot.slane %v22771_v49, 7  ;;  %v22772_v0 = vshrl.u32 %v18387_v6, 16 }
 0x18f   : > { %2628 = vmatmul.mubr.bf16.gmra.mrb[100].mxu1 %v18826_v2  ;;  %2841 = vmatmul.mubr.bf16.gmra.mrb[100].mxu0 %v18826_v2  ;;  %v19001_v2 = vsel %vm2861_vm2, %v23500_v44, %v18779_v60  ;;  %v22773_v31 = vshll.u32 %v18387_v6, 16  ;;  %v19021_v5 = vsel %vm2861_vm2, %v18853_v11, %v2930_v16  ;;  %v19024_v56 = vsel %vm2861_vm2, %v2903_v51, %v2921_v28 }
 0x190   : > { %2637 = vmatprep.mubr.bf16.mxu1 %v2078_v29  ;;  %2850 = vmatprep.mubr.bf16.mxu0 %v2078_v29  ;;  %v19027_v60 = vsel %vm2861_vm2, %v2930_v16, %v2948_v4  ;;  %v19031_v40 = vsel %vm2861_vm2, %v2921_v28, %v18974_v7  ;;  %v19035_v1 = vsel %vm2861_vm2, %v2948_v4, %v18987_v30  ;;  %v19039_v10 = vrot.slane %v22774_v35, 6  ;;  %v19049_v28 = vld [vmem:[#allocation2 + $0x60] sm:$0xff] }
 0x191   : > { %v3124_v11 = vrot.slane %v22772_v0, 6  ;;  %v3127_v51 = vrot.slane %v22773_v31, 7  ;;  %v19047_v16 = vrot.slane %v22775_v19, 7  ;;  %v22777_v4 = vshrl.u32 %v18550_v25, 16 }
 0x192   : > { %v22778_v29 = vshll.u32 %v18550_v25, 16  ;;  %v19054_v44 = vor.u32 %v2956_v17, %v2953_v18  ;;  %v22781_v0 = vshrl.u32 %v18522_v27, 16  ;;  %v22780_v31 = vshll.u32 %v18522_v27, 16 }
 0x193   : > { %v3142_v21 = vrot.slane %v22777_v4, 6  ;;  %v19067_v18 = vor.u32 %v3127_v51, %v3124_v11  ;;  %v22783_v19 = vshrl.u32 %v18636_v52, 16  ;;  %v22786_v35 = vshll.u32 %v18636_v52, 16 }
 0x194   : > { %v3145_v22 = vrot.slane %v22778_v29, 7  ;;  %v3133_v17 = vrot.slane %v22781_v0, 6  ;;  %v3136_v49 = vrot.slane %v22780_v31, 7  ;;  %v22788_v29 = vshrl.u32 %v18614_v38, 16 }
 0x195   : > { %23501 = vst [vmem:[#allocation89_spill] sm:$0xff] %v19067_v18  ;;  %v22790_v50 = vshll.u32 %v18614_v38, 16  ;;  %v3160_v31 = vrot.slane %v22783_v19, 6  ;;  %v22791_v0 = vshrl.u32 %v18698_v32, 16  ;;  %v22792_v51 = vshll.u32 %v18698_v32, 16 }
 0x196   : > { %v3146_v4 = vor.u32 %v3145_v22, %v3142_v21  ;;  %v3163_v21 = vrot.slane %v22786_v35, 7  ;;  %v3151_v22 = vrot.slane %v22788_v29, 6  ;;  %v19094_v62 = vor.u32 %v3136_v49, %v3133_v17  ;;  %v15416_v49 = vld [vmem:[%s22572_s4 + $0x408] ss:$16 sps:$4 sm:$0xff]  }
 0x197   : > { %2638 = vmatmul.mubr.bf16.gmra.mrb[104].mxu1 %v18851_v55  ;;  %2851 = vmatmul.mubr.bf16.gmra.mrb[104].mxu0 %v18851_v55  ;;  %v19077_v55 = vld [vmem:[#allocation2 + $0x70] sm:$0xff]  ;;  %v3154_v11 = vrot.slane %v22790_v50, 7  ;;  %v3178_v19 = vrot.slane %v22791_v0, 6  ;;  %v22793_v46 = vshrl.u32 %v18681_v53, 16  ;;  %v22799_v29 = vshll.u32 %v18681_v53, 16 }
 0x198   : > { %3590 = vmatprep.mubr.bf16.mxu1 %v2895_v43  ;;  %3803 = vmatprep.mubr.bf16.mxu0 %v2895_v43  ;;  %v19086_v43 = vsel %vm2861_vm2, %v19067_v18, %v3146_v4  ;;  %v3164_v35 = vor.u32 %v3163_v21, %v3160_v31  ;;  %v3194_v13 = vshrl.u32 %v18812_v59, 16  ;;  %v3181_v17 = vrot.slane %v22792_v51, 7  ;;  %v15424_v21 = vld [vmem:[%s22572_s4 + $0x42c] ss:$16 sps:$4 sm:$0xff]  }
 0x199   : > { %23502 = vst [vmem:[#allocation90_spill] sm:$0xff] %v19086_v43  ;;  %v15413_v43 = vld [vmem:[%s22572_s4 + $0x400] ss:$16 sps:$4 sm:$0xff]   ;;  %v3155_v18 = vor.u32 %v3154_v11, %v3151_v22  ;;  %v3169_v50 = vrot.slane %v22793_v46, 6  ;;  %v3197_v0 = vshll.u32 %v18812_v59, 16  ;;  %v3185_v31 = vshrl.u32 %v18792_v58, 16 }
 0x19a   : > { %v15421_v11 = vld [vmem:[%s22572_s4 + $0x424] ss:$16 sps:$4 sm:$0xff]   ;;  %v19121_v22 = vsel %vm2861_vm2, %v3146_v4, %v3164_v35  ;;  %v3172_v59 = vrot.slane %v22799_v29, 7  ;;  %v3196_v46 = vrot.slane %v3194_v13, 6  ;;  %v3182_v63 = vor.u32 %v3181_v17, %v3178_v19  ;;  %v15419_v4 = vld [vmem:[%s22572_s4 + $0x420] ss:$16 sps:$4 sm:$0xff]  }
 0x19b   : > { %23503 = vst [vmem:[#allocation91_spill] sm:$0xff] %v19121_v22  ;;  %v19125_v51 = vsel %vm2861_vm2, %v19094_v62, %v3155_v18  ;;  %v3199_v14 = vrot.slane %v3197_v0, 7  ;;  %v3187_v15 = vrot.slane %v3185_v31, 6  ;;  %v3188_v61 = vshll.u32 %v18792_v58, 16  ;;  %v15422_v58 = vld [vmem:[%s22572_s4 + $0x428] ss:$16 sps:$4 sm:$0xff]  }
 0x19c   : > { %23504 = vst [vmem:[#allocation92_spill] sm:$0xff] %v19125_v51  ;;  %v19136_v51 = vld [vmem:[#allocation2 + $0xc8] sm:$0xff]  ;;  %v3173_v29 = vor.u32 %v3172_v59, %v3169_v50  ;;  %v23505_v22 = vshrl.u32 %v18782_v34, 16  ;;  %v23506_v19 = vshrl.u32 %v18798_v41, 16  ;;  %v19151_v17 = vsel %vm2861_vm2, %v3164_v35, %v3182_v63 }
 0x19d   : > { %23507 = vst [vmem:[#allocation93_spill] sm:$0xff] %v19151_v17  ;;  %v3200_v50 = vor.u32 %v3199_v14, %v3196_v46  ;;  %v3190_v31 = vrot.slane %v3188_v61, 7  ;;  %v23511_v35 = vshll.u32 %v18798_v41, 16  ;;  %v23512_v61 = vshrl.u32 %v18818_v8, 16 }
 0x19e   : > { %v4066_v0 = vrot.slane %v23506_v19, 7  ;;  %v23510_v19 = vshll.u32 %v18782_v34, 16 }
 0x19f   : > { %3591 = vmatmul.mubr.bf16.vlgmr.msra.gmra.mrb[36].mxu1 %v19001_v2  ;;  %3804 = vmatmul.mubr.bf16.vlgmr.msra.gmra.mrb[36].mxu0 %v19001_v2  ;;  %v4069_v2 = vrot.slane %v23505_v22, 7  ;;  %v23508_v22 = vshrl.u32 %v18802_v39, 16  ;;  %v4072_v46 = vrot.slane %v23512_v61, 7 }
 0x1a0   : > { %4535 = vmatpush1.bf16.msra.mxu1 %v15413_v43  ;;  %3600 = vmatprep.mubr.bf16.mxu1 %v19006_v9  ;;  %v15427_v43 = vld [vmem:[%s22572_s4 + $0x444] ss:$16 sps:$4 sm:$0xff]   ;;  %v19167_v14 = vor.u32 %v4066_v0, %v23511_v35  ;;  %v23515_v35 = vshll.u32 %v18818_v8, 16  ;;  %v23517_v8 = vshll.u32 %v18846_v45, 16 }
 0x1a1   : > { %3813 = vmatprep.mubr.bf16.mxu0 %v19006_v9  ;;  %4748 = vmatpush1.bf16.msra.mxu0 %v15416_v49  ;;  %v4075_v59 = vrot.slane %v23508_v22, 7  ;;  %v15430_v9 = vld [vmem:[%s22572_s4 + $0x44c] ss:$16 sps:$4 sm:$0xff]   ;;  %v19159_v49 = vsel %vm2861_vm2, %v3155_v18, %v3173_v29  ;;  %v19163_v13 = vor.u32 %v4069_v2, %v23510_v19  ;;  %v23513_v22 = vshll.u32 %v18802_v39, 16  ;;  %v19179_v19 = vld [vmem:[#allocation2 + $0xc0] sm:$0xff] }
 0x1a2   : > { %4536 = vmatprep.subr.bf16.mxu1 %v15421_v11  ;;  %4749 = vmatprep.subr.bf16.mxu0 %v15424_v21  ;;  %23509 = vst [vmem:[#allocation94_spill] sm:$0xff] %v19159_v49  ;;  %v19172_v11 = vsel %vm2861_vm2, %v3182_v63, %v3200_v50  ;;  %v3191_v21 = vor.u32 %v3190_v31, %v3187_v15  ;;  %v23514_v18 = vshrl.u32 %v18846_v45, 16  ;;  %v23516_v63 = vshrl.u32 %v18867_v33, 16  ;;  %v15425_v39 = vld [vmem:[%s22572_s4 + $0x440] ss:$16 sps:$4 sm:$0xff]  }
 0x1a3   : > { %v4076_v17 = vor.u32 %v4075_v59, %v23513_v22  ;;  %v4073_v61 = vor.u32 %v4072_v46, %v23515_v35  ;;  %v15428_v15 = vld [vmem:[%s22572_s4 + $0x448] ss:$16 sps:$4 sm:$0xff]   ;;  %v15436_v35 = vld [vmem:[%s22572_s4 + $0x46c] ss:$16 sps:$4 sm:$0xff]   ;;  %v23520_v45 = vshrl.u32 %v18963_v54, 16 }
 0x1a4   : > { %v4081_v49 = vrot.slane %v23514_v18, 7  ;;  %4537 = vmatpush1.bf16.msra.mxu1 %v15419_v4  ;;  %v4078_v50 = vrot.slane %v23516_v63, 7  ;;  %v19193_v4 = vsel %vm2861_vm2, %v3173_v29, %v3191_v21  ;;  %v23521_v63 = vshrl.u32 %v18989_v37, 16 }
 0x1a5   : > { %4750 = vmatpush1.bf16.msra.mxu0 %v15422_v58  ;;  %4538 = vmatprep.subr.bf16.mxu1 %v15427_v43  ;;  %v19196_v31 = vsel %vm4051_vm7, %v4069_v2, %v4076_v17  ;;  %v23518_v58 = vshrl.u32 %v18872_v3, 16  ;;  %v15433_v43 = vld [vmem:[%s22572_s4 + $0x464] ss:$16 sps:$4 sm:$0xff]   ;;  %v19209_v29 = vsel %vm4051_vm7, %v4066_v0, %v4073_v61  ;;  %v23519_v2 = vshll.u32 %v18867_v33, 16 }
 0x1a6   : > { %v4082_v22 = vor.u32 %v4081_v49, %v23517_v8  ;;  %4751 = vmatprep.subr.bf16.mxu0 %v15430_v9  ;;  %v4084_v21 = vrot.slane %v23520_v45, 7  ;;  %v4093_v9 = vrot.slane %v23521_v63, 7  ;;  %v23522_v33 = vshll.u32 %v18872_v3, 16 }
 0x1a7   : > { %v4087_v18 = vrot.slane %v23518_v58, 7  ;;  %v4079_v17 = vor.u32 %v4078_v50, %v23519_v2  ;;  %3601 = vmatmul.mubr.bf16.gmra.mrb[40].mxu1 %v19010_v20  ;;  %3814 = vmatmul.mubr.bf16.gmra.mrb[40].mxu0 %v19010_v20  ;;  %v19220_v58 = vld [vmem:[#allocation2 + $0xd8] sm:$0xff]  ;;  %v15431_v20 = vld [vmem:[%s22572_s4 + $0x460] ss:$16 sps:$4 sm:$0xff]   ;;  %v23523_v8 = vshll.u32 %v18963_v54, 16  ;;  %v23531_v0 = vshll.u32 %v18228_v12, 16 }
 0x1a8   : > { %v19224_v61 = vsel %vm4051_vm7, %v4075_v59, %v4082_v22  ;;  %3610 = vmatprep.mubr.bf16.mxu1 %v19021_v5  ;;  %3823 = vmatprep.mubr.bf16.mxu0 %v19021_v5  ;;  %v23524_v22 = vshll.u32 %v18989_v37, 16  ;;  %v15434_v5 = vld [vmem:[%s22572_s4 + $0x468] ss:$16 sps:$4 sm:$0xff]  }
 0x1a9   : > { %v4088_v2 = vor.u32 %v4087_v18, %v23522_v33  ;;  %v19235_v63 = vsel %vm4051_vm7, %v4072_v46, %v4079_v17  ;;  %v4085_v59 = vor.u32 %v4084_v21, %v23523_v8  ;;  %4539 = vmatpush1.bf16.msra.mxu1 %v15425_v39  ;;  %4752 = vmatpush1.bf16.msra.mxu0 %v15428_v15  ;;  %v19244_v33 = vld [vmem:[#allocation2 + $0xd0] sm:$0xff]  ;;  %v23525_v46 = vshrl.u32 %v19049_v28, 16  ;;  %v15442_v15 = vld [vmem:[%s22572_s4 + $0x48c] ss:$16 sps:$4 sm:$0xff]  }
 0x1aa   : > { %v4094_v3 = vor.u32 %v4093_v9, %v23524_v22  ;;  %v23526_v17 = vshrl.u32 %v18228_v12, 16  ;;  %4540 = vmatprep.subr.bf16.mxu1 %v15433_v43  ;;  %4753 = vmatprep.subr.bf16.mxu0 %v15436_v35  ;;  %v15439_v39 = vld [vmem:[%s22572_s4 + $0x484] ss:$16 sps:$4 sm:$0xff]   ;;  %v23529_v22 = vshrl.u32 %v19077_v55, 16  ;;  %v23532_v8 = vshrl.u32 %v18317_v26, 16 }
 0x1ab   : > { %v19248_v45 = vsel %vm4051_vm7, %v4081_v49, %v4088_v2  ;;  %v4090_v54 = vrot.slane %v23525_v46, 7  ;;  %v19262_v49 = vsel %vm4051_vm7, %v4078_v50, %v4085_v59  ;;  %v19269_v35 = vld [vmem:[#allocation2 + $0xe0] sm:$0xff] }
 0x1ac   : > { %v4099_v37 = vrot.slane %v23526_v17, 7  ;;  %23527 = vst [vmem:[#allocation95_spill] sm:$0xff] %v19262_v49  ;;  %v19265_v2 = vsel %vm4051_vm7, %v4087_v18, %v4094_v3  ;;  %v4096_v43 = vrot.slane %v23529_v22, 7  ;;  %v23530_v17 = vshll.u32 %v19049_v28, 16 }
 0x1ad   : > { %23528 = vst [vmem:[#allocation96_spill] sm:$0xff] %v19265_v2  ;;  %v4105_v50 = vrot.slane %v23532_v8, 7  ;;  %v23533_v18 = vshll.u32 %v19077_v55, 16  ;;  %v23534_v22 = vshrl.u32 %v18308_v48, 16  ;;  %v23535_v49 = vshrl.u32 %v18430_v23, 16  ;;  %4541 = vmatpush1.bf16.msra.mxu1 %v15431_v20  ;;  %4754 = vmatpush1.bf16.msra.mxu0 %v15434_v5 }
 0x1ae   : > { %v4091_v34 = vor.u32 %v4090_v54, %v23530_v17  ;;  %v4100_v41 = vor.u32 %v4099_v37, %v23531_v0  ;;  %v15437_v0 = vld [vmem:[%s22572_s4 + $0x480] ss:$16 sps:$4 sm:$0xff]   ;;  %v15440_v8 = vld [vmem:[%s22572_s4 + $0x488] ss:$16 sps:$4 sm:$0xff]   ;;  %v23538_v20 = vshrl.u32 %v18421_v57, 16  ;;  %4542 = vmatprep.subr.bf16.mxu1 %v15439_v39  ;;  %4755 = vmatprep.subr.bf16.mxu0 %v15442_v15  ;;  %v23541_v39 = vshrl.u32 %v18518_v42, 16 }
 0x1af   : > { %v4097_v3 = vor.u32 %v4096_v43, %v23533_v18  ;;  %v4102_v2 = vrot.slane %v23534_v22, 7  ;;  %v4111_v46 = vrot.slane %v23535_v49, 7  ;;  %v23537_v22 = vshll.u32 %v18317_v26, 16  ;;  %v15445_v49 = vld [vmem:[%s22572_s4 + $0x4a4] ss:$16 sps:$4 sm:$0xff]   ;;  %3611 = vmatmul.mubr.bf16.gmra.mrb[44].mxu1 %v19024_v56  ;;  %3824 = vmatmul.mubr.bf16.gmra.mrb[44].mxu0 %v19024_v56 }
 0x1b0   : > { %v19292_v17 = vsel %vm4051_vm7, %v4084_v21, %v4091_v34  ;;  %v19295_v18 = vsel %vm4051_vm7, %v4093_v9, %v4100_v41  ;;  %v4108_v5 = vrot.slane %v23538_v20, 7  ;;  %v15448_v34 = vld [vmem:[%s22572_s4 + $0x4ac] ss:$16 sps:$4 sm:$0xff]   ;;  %v23539_v41 = vshll.u32 %v18308_v48, 16  ;;  %3620 = vmatprep.mubr.bf16.mxu1 %v19027_v60  ;;  %3833 = vmatprep.mubr.bf16.mxu0 %v19027_v60  ;;  %v15446_v60 = vld [vmem:[%s22572_s4 + $0x4a8] ss:$16 sps:$4 sm:$0xff]  }
 0x1b1   : > { %23536 = vst [vmem:[#allocation97_spill] sm:$0xff] %v19295_v18  ;;  %v4106_v59 = vor.u32 %v4105_v50, %v23537_v22  ;;  %v19308_v21 = vsel %vm4051_vm7, %v4090_v54, %v4097_v3  ;;  %v23540_v9 = vshll.u32 %v18430_v23, 16  ;;  %v4117_v15 = vrot.slane %v23541_v39, 7  ;;  %4543 = vmatpush1.bf16.msra.mxu1 %v15437_v0  ;;  %4756 = vmatpush1.bf16.msra.mxu0 %v15440_v8  ;;  %v15443_v39 = vld [vmem:[%s22572_s4 + $0x4a0] ss:$16 sps:$4 sm:$0xff]  }
 0x1b2   : > { %v4103_v26 = vor.u32 %v4102_v2, %v23539_v41  ;;  %v23542_v18 = vshll.u32 %v18421_v57, 16  ;;  %v23543_v3 = vshrl.u32 %v18506_v47, 16  ;;  %v23544_v41 = vshrl.u32 %v18923_v24, 16  ;;  %4544 = vmatprep.subr.bf16.mxu1 %v15445_v49  ;;  %4757 = vmatprep.subr.bf16.mxu0 %v15448_v34 }
 0x1b3   : > { %v4112_v22 = vor.u32 %v4111_v46, %v23540_v9  ;;  %v19319_v20 = vsel %vm4051_vm7, %v4099_v37, %v4106_v59  ;;  %v23547_v37 = vshll.u32 %v18518_v42, 16  ;;  %v23548_v59 = vshrl.u32 %v18631_v36, 16 }
 0x1b4   : > { %v4109_v54 = vor.u32 %v4108_v5, %v23542_v18  ;;  %v4114_v48 = vrot.slane %v23543_v3, 7  ;;  %v4123_v23 = vrot.slane %v23544_v41, 7  ;;  %v19330_v9 = vsel %vm4051_vm7, %v4096_v43, %v4103_v26  ;;  %v15451_v3 = vld [vmem:[%s22572_s4 + $0x4c4] ss:$16 sps:$4 sm:$0xff]  }
 0x1b5   : > { %23545 = vst [vmem:[#allocation98_spill] sm:$0xff] %v19330_v9  ;;  %v19333_v56 = vsel %vm4051_vm7, %v4105_v50, %v4112_v22  ;;  %v4118_v57 = vor.u32 %v4117_v15, %v23547_v37  ;;  %v4120_v18 = vrot.slane %v23548_v59, 7  ;;  %v23550_v50 = vshll.u32 %v18506_v47, 16  ;;  %4545 = vmatpush1.bf16.msra.mxu1 %v15443_v39  ;;  %4758 = vmatpush1.bf16.msra.mxu0 %v15446_v60 }
 0x1b6   : > { %23546 = vst [vmem:[#allocation99_spill] sm:$0xff] %v19333_v56  ;;  %v19346_v43 = vsel %vm4051_vm7, %v4102_v2, %v4109_v54  ;;  %v23551_v26 = vshll.u32 %v18923_v24, 16  ;;  %v23552_v0 = vshrl.u32 %v19136_v51, 16  ;;  %v15454_v2 = vld [vmem:[%s22572_s4 + $0x4cc] ss:$16 sps:$4 sm:$0xff]   ;;  %v23554_v47 = vshll.u32 %v18631_v36, 16  ;;  %4546 = vmatprep.subr.bf16.mxu1 %v15451_v3 }
 0x1b7   : > { %23549 = vst [vmem:[#allocation100_spill] sm:$0xff] %v19346_v43  ;;  %v4115_v42 = vor.u32 %v4114_v48, %v23550_v50  ;;  %v19361_v54 = vsel %vm4051_vm7, %v4111_v46, %v4118_v57  ;;  %v23555_v41 = vshrl.u32 %v19179_v19, 16  ;;  %v23556_v49 = vshrl.u32 %v19220_v58, 16  ;;  %4759 = vmatprep.subr.bf16.mxu0 %v15454_v2  ;;  %3621 = vmatmul.mubr.bf16.gmra.mrb[48].mxu1 %v19031_v40 }
 0x1b8   : > { %v4124_v22 = vor.u32 %v4123_v23, %v23551_v26  ;;  %v4129_v8 = vrot.slane %v23552_v0, 7  ;;  %23553 = vst [vmem:[#allocation101_spill] sm:$0xff] %v19361_v54  ;;  %v4121_v24 = vor.u32 %v4120_v18, %v23554_v47  ;;  %v23559_v26 = vshll.u32 %v19136_v51, 16  ;;  %3834 = vmatmul.mubr.bf16.gmra.mrb[48].mxu0 %v19031_v40  ;;  %3630 = vmatprep.mubr.bf16.mxu1 %v19035_v1 }
 0x1b9   : > { %v4126_v37 = vrot.slane %v23555_v41, 7  ;;  %v4135_v34 = vrot.slane %v23556_v49, 7  ;;  %v19370_v59 = vsel %vm4051_vm7, %v4108_v5, %v4115_v42  ;;  %v23560_v46 = vshrl.u32 %v19244_v33, 16  ;;  %3843 = vmatprep.mubr.bf16.mxu0 %v19035_v1  ;;  %v15458_v1 = vld [vmem:[%s22572_s4 + $0x4e8] ss:$16 sps:$4 sm:$0xff]  }
 0x1ba   : > { %23557 = vst [vmem:[#allocation102_spill] sm:$0xff] %v19370_v59  ;;  %v19373_v50 = vsel %vm4051_vm7, %v4117_v15, %v4124_v22  ;;  %v4130_v0 = vor.u32 %v4129_v8, %v23559_v26  ;;  %v19380_v36 = vsel %vm4051_vm7, %v4114_v48, %v4121_v24  ;;  %v23562_v47 = vshll.u32 %v19179_v19, 16  ;;  %v15449_v15 = vld [vmem:[%s22572_s4 + $0x4c0] ss:$16 sps:$4 sm:$0xff]   ;;  %v15452_v48 = vld [vmem:[%s22572_s4 + $0x4c8] ss:$16 sps:$4 sm:$0xff]  }
 0x1bb   : > { %23558 = vst [vmem:[#allocation103_spill] sm:$0xff] %v19373_v50  ;;  %v4132_v57 = vrot.slane %v23560_v46, 7  ;;  %23561 = vst [vmem:[#allocation104_spill] sm:$0xff] %v19380_v36  ;;  %v23563_v49 = vshll.u32 %v19220_v58, 16  ;;  %v23564_v5 = vshrl.u32 %v18387_v6, 16  ;;  %v23566_v24 = vshll.u32 %v19244_v33, 16  ;;  %4547 = vmatpush1.bf16.msra.mxu1 %v15449_v15  ;;  %4760 = vmatpush1.bf16.msra.mxu0 %v15452_v48 }
 0x1bc   : > { %v4127_v41 = vor.u32 %v4126_v37, %v23562_v47  ;;  %v19395_v22 = vsel %vm4051_vm7, %v4123_v23, %v4130_v0  ;;  %v23567_v46 = vshrl.u32 %v19269_v35, 16  ;;  %v23568_v39 = vshrl.u32 %v18550_v25, 16  ;;  %v15460_v23 = vld [vmem:[%s22572_s4 + $0x4ec] ss:$16 sps:$4 sm:$0xff]  }
 0x1bd   : > { %v4136_v54 = vor.u32 %v4135_v34, %v23563_v49  ;;  %v4141_v42 = vrot.slane %v23564_v5, 7  ;;  %23565 = vst [vmem:[#allocation105_spill] sm:$0xff] %v19395_v22  ;;  %v4133_v26 = vor.u32 %v4132_v57, %v23566_v24  ;;  %v15457_v49 = vld [vmem:[%s22572_s4 + $0x4e4] ss:$16 sps:$4 sm:$0xff]   ;;  %v23571_v24 = vshll.u32 %v18387_v6, 16  ;;  %4761 = vmatprep.subr.bf16.mxu0 %v15460_v23 }
 0x1be   : > { %v4138_v47 = vrot.slane %v23567_v46, 7  ;;  %v4147_v60 = vrot.slane %v23568_v39, 7  ;;  %v19410_v0 = vsel %vm4051_vm7, %v4120_v18, %v4127_v41  ;;  %v23572_v3 = vshrl.u32 %v18522_v27, 16  ;;  %4548 = vmatprep.subr.bf16.mxu1 %v15457_v49 }
 0x1bf   : > { %23569 = vst [vmem:[#allocation106_spill] sm:$0xff] %v19410_v0  ;;  %v19413_v5 = vsel %vm4051_vm7, %v4129_v8, %v4136_v54  ;;  %v4142_v46 = vor.u32 %v4141_v42, %v23571_v24  ;;  %v19422_v39 = vsel %vm4051_vm7, %v4126_v37, %v4133_v26  ;;  %v23574_v22 = vshll.u32 %v19269_v35, 16  ;;  %4762 = vmatpush1.bf16.msra.mxu0 %v15458_v1  ;;  %v19908_v0 = vld [vmem:[#allocation2 + $0x130] sm:$0xff] }
 0x1c0   : > { %23570 = vst [vmem:[#allocation107_spill] sm:$0xff] %v19413_v5  ;;  %v4144_v2 = vrot.slane %v23572_v3, 7  ;;  %23573 = vst [vmem:[#allocation108_spill] sm:$0xff] %v19422_v39  ;;  %v23575_v41 = vshll.u32 %v18550_v25, 16  ;;  %v23576_v54 = vshrl.u32 %v18636_v52, 16  ;;  %v23578_v40 = vshll.u32 %v18522_v27, 16 }
 0x1c1   : > { %v4139_v18 = vor.u32 %v4138_v47, %v23574_v22  ;;  %v19433_v24 = vsel %vm4051_vm7, %v4135_v34, %v4142_v46  ;;  %v23579_v26 = vshrl.u32 %v18614_v38, 16  ;;  %v23580_v22 = vshrl.u32 %v18698_v32, 16  ;;  %23673 = vst [vmem:[#allocation145_spill] sm:$0xff] %v19908_v0 }
 0x1c2   : > { %v4148_v8 = vor.u32 %v4147_v60, %v23575_v41  ;;  %v4153_v6 = vrot.slane %v23576_v54, 7  ;;  %23577 = vst [vmem:[#allocation109_spill] sm:$0xff] %v19433_v24  ;;  %v4145_v37 = vor.u32 %v4144_v2, %v23578_v40  ;;  %v15455_v41 = vld [vmem:[%s22572_s4 + $0x4e0] ss:$16 sps:$4 sm:$0xff]   ;;  %v23584_v46 = vshll.u32 %v18636_v52, 16 }
 0x1c3   : > { %v4150_v3 = vrot.slane %v23579_v26, 7  ;;  %v19441_v25 = vrot.slane %v23580_v22, 7  ;;  %v19450_v27 = vsel %vm4051_vm7, %v4132_v57, %v4139_v18  ;;  %v23585_v15 = vshrl.u32 %v18681_v53, 16  ;;  %v15463_v40 = vld [vmem:[%s22572_s4 + $0x504] ss:$16 sps:$4 sm:$0xff]   ;;  %4549 = vmatpush1.bf16.msra.mxu1 %v15455_v41 }
 0x1c4   : > { %23582 = vst [vmem:[#allocation111_spill] sm:$0xff] %v19450_v27  ;;  %v19453_v34 = vsel %vm4051_vm7, %v4141_v42, %v4148_v8  ;;  %v4154_v54 = vor.u32 %v4153_v6, %v23584_v46  ;;  %v15466_v57 = vld [vmem:[%s22572_s4 + $0x50c] ss:$16 sps:$4 sm:$0xff]   ;;  %v19468_v42 = vsel %vm4051_vm7, %v4138_v47, %v4145_v37  ;;  %v23588_v52 = vshll.u32 %v18614_v38, 16  ;;  %4550 = vmatprep.subr.bf16.mxu1 %v15463_v40  ;;  %v15469_v41 = vld [vmem:[%s22572_s4 + $0x524] ss:$16 sps:$4 sm:$0xff]  }
 0x1c5   : > { %23581 = vst [vmem:[#allocation110_spill] sm:$0xff] %v19441_v25  ;;  %23583 = vst [vmem:[#allocation112_spill] sm:$0xff] %v19453_v34  ;;  %v19459_v48 = vrot.slane %v23585_v15, 7  ;;  %v23589_v8 = vshll.u32 %v18698_v32, 16  ;;  %v2984_v49 = vor.u32 %v19047_v16, %v19039_v10  ;;  %v23591_v22 = vshll.u32 %v18681_v53, 16  ;;  %4763 = vmatprep.subr.bf16.mxu0 %v15466_v57  ;;  %v23653_v34 = vld [vmem:[#allocation94_spill] sm:$0xff] }
 0x1c6   : > { %23587 = vst [vmem:[#allocation114_spill] sm:$0xff] %v19468_v42  ;;  %v4151_v18 = vor.u32 %v4150_v3, %v23588_v52  ;;  %v19478_v23 = vsel %vm4051_vm7, %v4147_v60, %v4154_v54  ;;  %v15461_v32 = vld [vmem:[%s22572_s4 + $0x500] ss:$16 sps:$4 sm:$0xff]   ;;  %v15464_v10 = vld [vmem:[%s22572_s4 + $0x508] ss:$16 sps:$4 sm:$0xff]   ;;  %v2958_v16 = vsel %vm2861_vm2, %v18974_v7, %v19054_v44  ;;  %v23595_v60 = vshrl.u32 %v19049_v28, 16 }
 0x1c7   : > { %23586 = vst [vmem:[#allocation113_spill] sm:$0xff] %v19459_v48  ;;  %v4160_v26 = vor.u32 %v19441_v25, %v23589_v8  ;;  %23590 = vst [vmem:[#allocation115_spill] sm:$0xff] %v19478_v23  ;;  %v4157_v46 = vor.u32 %v19459_v48, %v23591_v22  ;;  %3631 = vmatmul.mubr.bf16.gmra.mrb[52].mxu1 %v2958_v16  ;;  %3844 = vmatmul.mubr.bf16.gmra.mrb[52].mxu0 %v2958_v16  ;;  %v23597_v1 = vshrl.u32 %v18228_v12, 16  ;;  %v15467_v40 = vld [vmem:[%s22572_s4 + $0x520] ss:$16 sps:$4 sm:$0xff]  }
 0x1c8   : > { %v19484_v47 = vsel %vm4051_vm7, %v4144_v2, %v4151_v18  ;;  %v2971_v2 = vrot.slane %v23595_v60, 6  ;;  %v2985_v7 = vsel %vm2861_vm2, %v18987_v30, %v2984_v49  ;;  %4551 = vmatpush1.bf16.msra.mxu1 %v15461_v32  ;;  %4764 = vmatpush1.bf16.msra.mxu0 %v15464_v10  ;;  %v15470_v57 = vld [vmem:[%s22572_s4 + $0x528] ss:$16 sps:$4 sm:$0xff]   ;;  %v15478_v30 = vld [vmem:[%s22572_s4 + $0x54c] ss:$16 sps:$4 sm:$0xff]   ;;  %v23600_v10 = vshll.u32 %v19077_v55, 16 }
 0x1c9   : > { %23592 = vst [vmem:[#allocation116_spill] sm:$0xff] %v19484_v47  ;;  %v19487_v38 = vsel %vm4051_vm7, %v4153_v6, %v4160_v26  ;;  %v19496_v53 = vsel %vm4051_vm7, %v4150_v3, %v4157_v46  ;;  %v23596_v6 = vshll.u32 %v19049_v28, 16  ;;  %v15472_v3 = vld [vmem:[%s22572_s4 + $0x52c] ss:$16 sps:$4 sm:$0xff]   ;;  %v2998_v54 = vrot.slane %v23597_v1, 6  ;;  %3640 = vmatprep.mubr.bf16.mxu1 %v2985_v7  ;;  %3853 = vmatprep.mubr.bf16.mxu0 %v2985_v7  ;;  %v19782_v25 = vld [vmem:[#allocation2 + $0xf0] sm:$0xff] }
 0x1ca   : > { %23593 = vst [vmem:[#allocation117_spill] sm:$0xff] %v19487_v38  ;;  %23594 = vst [vmem:[#allocation118_spill] sm:$0xff] %v19496_v53  ;;  %v23598_v28 = vshll.u32 %v18228_v12, 16  ;;  %4552 = vmatprep.subr.bf16.mxu1 %v15469_v41  ;;  %4765 = vmatprep.subr.bf16.mxu0 %v15472_v3  ;;  %v15475_v12 = vld [vmem:[%s22572_s4 + $0x544] ss:$16 sps:$4 sm:$0xff]   ;;  %v23599_v46 = vshrl.u32 %v19077_v55, 16 }
 0x1cb   : > { %v2974_v37 = vrot.slane %v23596_v6, 7  ;;  %v15473_v8 = vld [vmem:[%s22572_s4 + $0x540] ss:$16 sps:$4 sm:$0xff]   ;;  %v15476_v26 = vld [vmem:[%s22572_s4 + $0x548] ss:$16 sps:$4 sm:$0xff]   ;;  %v2992_v16 = vrot.slane %v23600_v10, 7 }
 0x1cc   : > { %v3001_v15 = vrot.slane %v23598_v28, 7  ;;  %4553 = vmatpush1.bf16.msra.mxu1 %v15467_v40  ;;  %4766 = vmatpush1.bf16.msra.mxu0 %v15470_v57  ;;  %v2989_v32 = vrot.slane %v23599_v46, 6  ;;  %v15481_v60 = vld [vmem:[%s22572_s4 + $0x564] ss:$16 sps:$4 sm:$0xff]   ;;  %v15479_v55 = vld [vmem:[%s22572_s4 + $0x560] ss:$16 sps:$4 sm:$0xff]  }
 0x1cd   : > { %v2975_v52 = vor.u32 %v2974_v37, %v2971_v2  ;;  %4554 = vmatprep.subr.bf16.mxu1 %v15475_v12  ;;  %4767 = vmatprep.subr.bf16.mxu0 %v15478_v30  ;;  %v15484_v2 = vld [vmem:[%s22572_s4 + $0x56c] ss:$16 sps:$4 sm:$0xff]   ;;  %v15482_v6 = vld [vmem:[%s22572_s4 + $0x568] ss:$16 sps:$4 sm:$0xff]   ;;  %v15487_v41 = vld [vmem:[%s22572_s4 + $0x584] ss:$16 sps:$4 sm:$0xff]  }
 0x1ce   : > { %v3002_v18 = vor.u32 %v3001_v15, %v2998_v54  ;;  %v2993_v37 = vor.u32 %v2992_v16, %v2989_v32  ;;  %v15485_v3 = vld [vmem:[%s22572_s4 + $0x580] ss:$16 sps:$4 sm:$0xff]   ;;  %v15488_v7 = vld [vmem:[%s22572_s4 + $0x588] ss:$16 sps:$4 sm:$0xff]   ;;  %v15493_v54 = vld [vmem:[%s22572_s4 + $0x5a4] ss:$16 sps:$4 sm:$0xff]  }
 0x1cf   : > { %v2976_v22 = vsel %vm2861_vm2, %v19054_v44, %v2975_v52  ;;  %v15496_v28 = vld [vmem:[%s22572_s4 + $0x5ac] ss:$16 sps:$4 sm:$0xff]   ;;  %v23601_v15 = vld [vmem:[#allocation79_spill] sm:$0xff]  ;;  %v23603_v10 = vld [vmem:[#allocation81_spill] sm:$0xff] }
 0x1d0   : > { %3641 = vmatmul.mubr.bf16.gmra.mrb[56].mxu1 %v2976_v22  ;;  %3854 = vmatmul.mubr.bf16.gmra.mrb[56].mxu0 %v2976_v22  ;;  %v3003_v44 = vsel %vm2861_vm2, %v2984_v49, %v3002_v18  ;;  %v15490_v49 = vld [vmem:[%s22572_s4 + $0x58c] ss:$16 sps:$4 sm:$0xff]   ;;  %v2994_v1 = vsel %vm2861_vm2, %v2975_v52, %v2993_v37  ;;  %v3021_v40 = vsel %vm2861_vm2, %v3002_v18, %v23601_v15  ;;  %v15491_v57 = vld [vmem:[%s22572_s4 + $0x5a0] ss:$16 sps:$4 sm:$0xff]   ;;  %v15494_v52 = vld [vmem:[%s22572_s4 + $0x5a8] ss:$16 sps:$4 sm:$0xff]  }
 0x1d1   : > { %3650 = vmatprep.mubr.bf16.mxu1 %v3003_v44  ;;  %3863 = vmatprep.mubr.bf16.mxu0 %v3003_v44  ;;  %v15499_v12 = vld [vmem:[%s22572_s4 + $0x5c4] ss:$16 sps:$4 sm:$0xff]   ;;  %v15502_v30 = vld [vmem:[%s22572_s4 + $0x5cc] ss:$16 sps:$4 sm:$0xff]   ;;  %v15497_v18 = vld [vmem:[%s22572_s4 + $0x5c0] ss:$16 sps:$4 sm:$0xff]  }
 0x1d2   : > { %4555 = vmatpush1.bf16.msra.mxu1 %v15473_v8  ;;  %4768 = vmatpush1.bf16.msra.mxu0 %v15476_v26  ;;  %v15500_v8 = vld [vmem:[%s22572_s4 + $0x5c8] ss:$16 sps:$4 sm:$0xff]   ;;  %v15505_v46 = vld [vmem:[%s22572_s4 + $0x5e4] ss:$16 sps:$4 sm:$0xff]   ;;  %v15508_v32 = vld [vmem:[%s22572_s4 + $0x5ec] ss:$16 sps:$4 sm:$0xff]  }
 0x1d3   : > { %4556 = vmatprep.subr.bf16.mxu1 %v15481_v60  ;;  %4769 = vmatprep.subr.bf16.mxu0 %v15484_v2  ;;  %v23602_v26 = vld [vmem:[#allocation80_spill] sm:$0xff]  ;;  %v15503_v16 = vld [vmem:[%s22572_s4 + $0x5e0] ss:$16 sps:$4 sm:$0xff]   ;;  %v15511_v2 = vld [vmem:[%s22572_s4 + $0x604] ss:$16 sps:$4 sm:$0xff]  }
 0x1d4   : > { %v3012_v22 = vsel %vm2861_vm2, %v2993_v37, %v23602_v26  ;;  %v15506_v60 = vld [vmem:[%s22572_s4 + $0x5e8] ss:$16 sps:$4 sm:$0xff]   ;;  %v15514_v44 = vld [vmem:[%s22572_s4 + $0x60c] ss:$16 sps:$4 sm:$0xff]   ;;  %v23606_v37 = vld [vmem:[#allocation85_spill] sm:$0xff] }
 0x1d5   : > { %v19807_v38 = vld [vmem:[#allocation2 + $0x118] sm:$0xff]  ;;  %v19809_v47 = vld [vmem:[#allocation2 + $0x110] sm:$0xff] }
 0x1d6   : > { %4557 = vmatpush1.bf16.msra.mxu1 %v15479_v55  ;;  %4770 = vmatpush1.bf16.msra.mxu0 %v15482_v6  ;;  %v23604_v55 = vld [vmem:[#allocation82_spill] sm:$0xff]  ;;  %v23605_v6 = vld [vmem:[#allocation83_spill] sm:$0xff]  ;;  %23650 = vst [vmem:[#allocation124_spill] sm:$0xff] %v19807_v38  ;;  %23651 = vst [vmem:[#allocation125_spill] sm:$0xff] %v19809_v47 }
 0x1d7   : > { %4558 = vmatprep.subr.bf16.mxu1 %v15487_v41  ;;  %4771 = vmatprep.subr.bf16.mxu0 %v15490_v49  ;;  %v23607_v41 = vshrl.u32 %v19136_v51, 16 }
 0x1d8   : > { %3651 = vmatmul.mubr.bf16.gmra.mrb[60].mxu1 %v2994_v1  ;;  %3864 = vmatmul.mubr.bf16.gmra.mrb[60].mxu0 %v2994_v1  ;;  %v23609_v1 = vld [vmem:[#allocation87_spill] sm:$0xff] }
 0x1d9   : > { %3660 = vmatprep.mubr.bf16.mxu1 %v3021_v40  ;;  %3873 = vmatprep.mubr.bf16.mxu0 %v3021_v40  ;;  %v3088_v49 = vrot.slane %v23607_v41, 6  ;;  %v23611_v40 = vshll.u32 %v19179_v19, 16  ;;  %v19648_v41 = vld [vmem:[#allocation2 + $0x48] sm:$0xff] }
 0x1da   : > { %4559 = vmatpush1.bf16.msra.mxu1 %v15485_v3  ;;  %4772 = vmatpush1.bf16.msra.mxu0 %v15488_v7  ;;  %v23608_v3 = vshll.u32 %v19136_v51, 16  ;;  %v23614_v51 = vshrl.u32 %v19220_v58, 16  ;;  %23620 = vst [vmem:[#allocation80_spill] sm:$0xff] %v19648_v41 }
 0x1db   : > { %4560 = vmatprep.subr.bf16.mxu1 %v15493_v54  ;;  %4773 = vmatprep.subr.bf16.mxu0 %v15496_v28  ;;  %v23610_v28 = vshrl.u32 %v19179_v19, 16  ;;  %v23616_v19 = vld [vmem:[#allocation86_spill] sm:$0xff] }
 0x1dc   : > { %v3091_v7 = vrot.slane %v23608_v3, 7  ;;  %v23621_v3 = vshrl.u32 %v19269_v35, 16 }
 0x1dd   : > { %v3079_v15 = vrot.slane %v23610_v28, 6 }
 0x1de   : > { %4561 = vmatpush1.bf16.msra.mxu1 %v15491_v57  ;;  %4774 = vmatpush1.bf16.msra.mxu0 %v15494_v52  ;;  %v3092_v54 = vor.u32 %v3091_v7, %v3088_v49  ;;  %v3082_v57 = vrot.slane %v23611_v40, 7  ;;  %v23612_v52 = vld [vmem:[#allocation88_spill] sm:$0xff]  ;;  %v3115_v7 = vrot.slane %v23621_v3, 6  ;;  %v22809_v40 = vshll.u32 %v19648_v41, 16  ;;  %v19679_v3 = vld [vmem:[#allocation2 + $0x58] sm:$0xff] }
 0x1df   : > { %4562 = vmatprep.subr.bf16.mxu1 %v15499_v12  ;;  %4775 = vmatprep.subr.bf16.mxu0 %v15502_v30  ;;  %v23613_v12 = vld [vmem:[#allocation84_spill] sm:$0xff]  ;;  %23632 = vst [vmem:[#allocation87_spill] sm:$0xff] %v19679_v3 }
 0x1e0   : > { %3661 = vmatmul.mubr.bf16.gmra.mrb[64].mxu1 %v3012_v22  ;;  %3874 = vmatmul.mubr.bf16.gmra.mrb[64].mxu0 %v3012_v22  ;;  %v3093_v30 = vsel %vm2861_vm2, %v23613_v12, %v3092_v54  ;;  %v3083_v22 = vor.u32 %v3082_v57, %v3079_v15  ;;  %v19661_v12 = vrot.slane %v22809_v40, 1 }
 0x1e1   : > { %3670 = vmatprep.mubr.bf16.mxu1 %v23603_v10  ;;  %3883 = vmatprep.mubr.bf16.mxu0 %v23603_v10 }
 0x1e2   : > { %4563 = vmatpush1.bf16.msra.mxu1 %v15497_v18  ;;  %4776 = vmatpush1.bf16.msra.mxu0 %v15500_v8  ;;  %v3106_v18 = vrot.slane %v23614_v51, 6  ;;  %v23615_v8 = vshll.u32 %v19220_v58, 16  ;;  %v3084_v10 = vsel %vm2861_vm2, %v23616_v19, %v3083_v22  ;;  %23624 = vst [vmem:[#allocation81_spill] sm:$0xff] %v19661_v12  ;;  %v16104_v51 = vld [vmem:[#allocation2 + $0x8] sm:$0x80]  ;;  %v23627_v19 = vld [vmem:[#allocation78_spill] sm:$0xff] }
 0x1e3   : > { %4564 = vmatprep.subr.bf16.mxu1 %v15505_v46  ;;  %4777 = vmatprep.subr.bf16.mxu0 %v15508_v32  ;;  %v7387_v32 = vld [vmem:[#allocation2 + $0x38] sm:$0xff] }
 0x1e4   : > { %v3109_v26 = vrot.slane %v23615_v8, 7  ;;  %v7508_v58 = vshll.u32 %v7387_v32, 16  ;;  %v7520_v28 = vshrl.u32 %v7387_v32, 16  ;;  %v16105_v8 = vld [vmem:[#allocation2] sm:$0x80] }
 0x1e6   : > { %4565 = vmatpush1.bf16.msra.mxu1 %v15503_v16  ;;  %4778 = vmatpush1.bf16.msra.mxu0 %v15506_v60  ;;  %v3110_v46 = vor.u32 %v3109_v26, %v3106_v18  ;;  %v23617_v16 = vshrl.u32 %v19244_v33, 16  ;;  %v4060_v18 = vshrl.u32 %v16104_v51, 16  ;;  %v4053_v26 = vshrl.u32 %v16105_v8, 16  ;;  %v19784_v8 = vld [vmem:[#allocation2 + $0x108] sm:$0xff] }
 0x1e7   : > { %5859 = vmatprep.subr.bf16.mxu1 %v15511_v2  ;;  %6072 = vmatprep.subr.bf16.mxu0 %v15514_v44  ;;  %v23618_v2 = vshll.u32 %v19244_v33, 16  ;;  %v23622_v33 = vshll.u32 %v19269_v35, 16  ;;  %23647 = vst [vmem:[#allocation121_spill] sm:$0xff] %v19784_v8 }
 0x1e8   : > { %3671 = vmatmul.mubr.bf16.gmra.mrb[68].mxu1 %v23604_v55  ;;  %3884 = vmatmul.mubr.bf16.gmra.mrb[68].mxu0 %v23604_v55  ;;  %v3097_v60 = vrot.slane %v23617_v16, 6  ;;  %v3111_v55 = vsel %vm2861_vm2, %v3092_v54, %v3110_v46  ;;  %v23623_v54 = vld [vmem:[#allocation89_spill] sm:$0xff] }
 0x1e9   : > { %3680 = vmatprep.mubr.bf16.mxu1 %v23605_v6  ;;  %3893 = vmatprep.mubr.bf16.mxu0 %v23605_v6  ;;  %v3100_v44 = vrot.slane %v23618_v2, 7  ;;  %v3129_v15 = vsel %vm2861_vm2, %v3110_v46, %v23623_v54  ;;  %v4062_v2 = vrot.slane %v4060_v18, 7  ;;  %v19689_v54 = vld [vmem:[#allocation2 + $0x68] sm:$0xff] }
 0x1ea   : > { %v19765_v18 = vld [vmem:[#allocation2 + $0xe8] sm:$0xff]  ;;  %v10153_v40 = vrot.slane %v19689_v54, 1 }
 0x1eb   : > { %v3101_v6 = vor.u32 %v3100_v44, %v3097_v60  ;;  %v19672_v60 = vld [vmem:[#allocation2 + $0x40] sm:$0xff]  ;;  %v23630_v44 = vshll.u32 %v23627_v19, 16  ;;  %23641 = vst [vmem:[#allocation119_spill] sm:$0xff] %v19765_v18 }
 0x1ec   : > { %23629 = vst [vmem:[#allocation83_spill] sm:$0xff] %v19672_v60  ;;  %v22828_v23 = vrot.slane %v19672_v60, 1 }
 0x1ed   : > { %v3102_v49 = vsel %vm2861_vm2, %v3083_v22, %v3101_v6  ;;  %v23625_v22 = vld [vmem:[#allocation90_spill] sm:$0xff] }
 0x1f0   : > { %3681 = vmatmul.mubr.bf16.gmra.mrb[72].mxu1 %v23606_v37  ;;  %3894 = vmatmul.mubr.bf16.gmra.mrb[72].mxu0 %v23606_v37  ;;  %v19646_v37 = vrot.slane %v7508_v58, 1  ;;  %v4055_v58 = vrot.slane %v4053_v26, 7  ;;  %v19716_v26 = vld [vmem:[#allocation2 + $0x88] sm:$0xff] }
 0x1f1   : > { %3690 = vmatprep.mubr.bf16.mxu1 %v23609_v1  ;;  %3903 = vmatprep.mubr.bf16.mxu0 %v23609_v1  ;;  %v3118_v1 = vrot.slane %v23622_v33, 7 }
 0x1f2   : > { %23619 = vst [vmem:[#allocation79_spill] sm:$0xff] %v19646_v37  ;;  %v8831_v57 = vor.u32 %v7520_v28, %v19646_v37  ;;  %v19687_v28 = vld [vmem:[#allocation2 + $0x50] sm:$0xff]  ;;  %v19773_v37 = vld [vmem:[#allocation2 + $0xe0] sm:$0xff] }
 0x1f3   : > { %23633 = vst [vmem:[#allocation88_spill] sm:$0xff] %v19687_v28 }
 0x1f4   : > { %v19668_v32 = vsel %vm7487_vm6, %v8831_v57, %v19661_v12  ;;  %v19755_v12 = vld [vmem:[#allocation2 + $0xc0] sm:$0xff] }
 0x1f5   : > { %23626 = vst [vmem:[#allocation82_spill] sm:$0xff] %v19668_v32  ;;  %23638 = vst [vmem:[#allocation90_spill] sm:$0xff] %v19755_v12  ;;  %v23645_v32 = vld [vmem:[#allocation93_spill] sm:$0xff] }
 0x1f6   : > { %23646 = vst [vmem:[#allocation93_spill] sm:$0xff] %v19782_v25 }
 0x1f8   : > { %3691 = vmatmul.mubr.bf16.gmra.mrb[76].mxu1 %v23612_v52  ;;  %3904 = vmatmul.mubr.bf16.gmra.mrb[76].mxu0 %v23612_v52  ;;  %v3119_v52 = vor.u32 %v3118_v1, %v3115_v7 }
 0x1f9   : > { %3700 = vmatprep.mubr.bf16.mxu1 %v3093_v30  ;;  %3913 = vmatprep.mubr.bf16.mxu0 %v3093_v30  ;;  %v7386_v30 = vld [vmem:[#allocation2 + $0x30] sm:$0xff] }
 0x1fa   : > { %v3120_v35 = vsel %vm2861_vm2, %v3101_v6, %v3119_v52  ;;  %v7496_v46 = vshll.u32 %v7386_v30, 16  ;;  %v3138_v7 = vsel %vm2861_vm2, %v3119_v52, %v19094_v62  ;;  %v7512_v1 = vshrl.u32 %v7386_v30, 16  ;;  %v19702_v52 = vld [vmem:[#allocation2 + $0x60] sm:$0xff]  ;;  %v19704_v30 = vld [vmem:[#allocation2 + $0x78] sm:$0xff] }
 0x1fb   : > { %v10151_v53 = vrot.slane %v19702_v52, 1  ;;  %v10157_v42 = vrot.slane %v19704_v30, 1 }
 0x1fc   : > { %v19676_v6 = vrot.slane %v7496_v46, 1  ;;  %v19733_v46 = vld [vmem:[#allocation2 + $0xa8] sm:$0xff] }
 0x1fe   : > { %23631 = vst [vmem:[#allocation85_spill] sm:$0xff] %v19676_v6 }
 0x200   : > { %3701 = vmatmul.mubr.bf16.gmra.mrb[80].mxu1 %v3084_v10  ;;  %3914 = vmatmul.mubr.bf16.gmra.mrb[80].mxu0 %v3084_v10  ;;  %v23628_v10 = vshrl.u32 %v23627_v19, 16  ;;  %v23642_v19 = vld [vmem:[#allocation92_spill] sm:$0xff] }
 0x201   : > { %3710 = vmatprep.mubr.bf16.mxu1 %v3111_v55  ;;  %3923 = vmatprep.mubr.bf16.mxu0 %v3111_v55  ;;  %23643 = vst [vmem:[#allocation92_spill] sm:$0xff] %v19773_v37 }
 0x202   : > { %v4063_v16 = vrot.slane %v23628_v10, 7  ;;  %v19749_v10 = vld [vmem:[#allocation2 + $0xc8] sm:$0xff] }
 0x203   : > { %23637 = vst [vmem:[#allocation89_spill] sm:$0xff] %v19749_v10 }
 0x204   : > { %v4064_v55 = vor.u32 %v4063_v16, %v23630_v44  ;;  %v19685_v33 = vsel %vm4051_vm7, %v4063_v16, %v19163_v13  ;;  %v19699_v62 = vsel %vm4051_vm7, %v4063_v16, %v19167_v14  ;;  %v19714_v14 = vld [vmem:[#allocation2 + $0x70] sm:$0xff]  ;;  %v19725_v44 = vld [vmem:[#allocation2 + $0x98] sm:$0xff]  ;;  %v10149_v16 = vrot.slane %v19679_v3, 1 }
 0x205   : > { %v19747_v13 = vld [vmem:[#allocation2 + $0xb0] sm:$0xff] }
 0x206   : > { %v19695_v57 = vsel %vm4051_vm7, %v4055_v58, %v4064_v55  ;;  %23636 = vst [vmem:[#allocation86_spill] sm:$0xff] %v19747_v13 }
 0x208   : > { %3711 = vmatmul.mubr.bf16.gmra.mrb[84].mxu1 %v3102_v49  ;;  %3924 = vmatmul.mubr.bf16.gmra.mrb[84].mxu0 %v3102_v49  ;;  %v22808_v49 = vshll.u32 %v19672_v60, 16 }
 0x209   : > { %3720 = vmatprep.mubr.bf16.mxu1 %v3129_v15  ;;  %3933 = vmatprep.mubr.bf16.mxu0 %v3129_v15  ;;  %v19692_v15 = vsel %vm4051_vm7, %v4062_v2, %v4064_v55  ;;  %v19723_v2 = vld [vmem:[#allocation2 + $0x80] sm:$0xff]  ;;  %v19741_v55 = vld [vmem:[#allocation2 + $0xb8] sm:$0xff] }
 0x20a   : > { %v19710_v51 = vrot.slane %v22808_v49, 1  ;;  %v19739_v49 = vld [vmem:[#allocation2 + $0xa0] sm:$0xff]  ;;  %v10173_v24 = vrot.slane %v19741_v55, 1 }
 0x20c   : > { %23635 = vst [vmem:[#allocation84_spill] sm:$0xff] %v19710_v51 }
 0x210   : > { %3721 = vmatmul.mubr.bf16.gmra.mrb[88].mxu1 %v3120_v35  ;;  %3934 = vmatmul.mubr.bf16.gmra.mrb[88].mxu0 %v3120_v35  ;;  %v23634_v35 = vld [vmem:[#allocation91_spill] sm:$0xff] }
 0x211   : > { %3730 = vmatprep.mubr.bf16.mxu1 %v23625_v22  ;;  %3943 = vmatprep.mubr.bf16.mxu0 %v23625_v22  ;;  %v8819_v22 = vor.u32 %v7512_v1, %v19676_v6  ;;  %v19763_v6 = vld [vmem:[#allocation2 + $0xd0] sm:$0xff]  ;;  %v19775_v1 = vld [vmem:[#allocation2 + $0xf8] sm:$0xff] }
 0x212   : > { %23640 = vst [vmem:[#allocation91_spill] sm:$0xff] %v19763_v6  ;;  %23644 = vst [vmem:[#allocation120_spill] sm:$0xff] %v19775_v1 }
 0x213   : > { %v19788_v58 = vsel %vm7487_vm6, %v8819_v22, %v19710_v51  ;;  %v19802_v51 = vld [vmem:[#allocation2 + $0x100] sm:$0xff]  ;;  %v10147_v22 = vrot.slane %v19687_v28, 1 }
 0x214   : > { %23648 = vst [vmem:[#allocation122_spill] sm:$0xff] %v19788_v58  ;;  %23649 = vst [vmem:[#allocation123_spill] sm:$0xff] %v19802_v51 }
 0x215   : > { %v19828_v27 = vsel %vm10140_vm1, %v22828_v23, %v10147_v22  ;;  %v19834_v48 = vsel %vm10140_vm1, %v10147_v22, %v10151_v53  ;;  %v19843_v23 = vsel %vm10140_vm1, %v10153_v40, %v10157_v42  ;;  %v10161_v22 = vrot.slane %v19716_v26, 1 }
 0x216   : > { %23654 = vst [vmem:[#allocation94_spill] sm:$0xff] %v19828_v27  ;;  %23656 = vst [vmem:[#allocation128_spill] sm:$0xff] %v19834_v48  ;;  %v10159_v48 = vrot.slane %v19723_v2, 1 }
 0x217   : > { %23657 = vst [vmem:[#allocation129_spill] sm:$0xff] %v19843_v23  ;;  %v10171_v23 = vrot.slane %v19747_v13, 1 }
 0x218   : > { %3731 = vmatmul.mubr.bf16.gmra.mrb[92].mxu1 %v3138_v7  ;;  %3944 = vmatmul.mubr.bf16.gmra.mrb[92].mxu0 %v3138_v7  ;;  %v19757_v7 = vld [vmem:[#allocation2 + $0xd8] sm:$0xff] }
 0x219   : > { %3740 = vmatprep.mubr.bf16.mxu1 %v23634_v35  ;;  %3953 = vmatprep.mubr.bf16.mxu0 %v23634_v35  ;;  %v19731_v35 = vld [vmem:[#allocation2 + $0x90] sm:$0xff]  ;;  %23639 = vst [vmem:[#allocation78_spill] sm:$0xff] %v19757_v7 }
 0x220   : > { %3741 = vmatmul.mubr.bf16.gmra.mrb[96].mxu1 %v23642_v19  ;;  %3954 = vmatmul.mubr.bf16.gmra.mrb[96].mxu0 %v23642_v19  ;;  %v22825_v19 = vrot.slane %v19648_v41, 1 }
 0x221   : > { %3750 = vmatprep.mubr.bf16.mxu1 %v23645_v32  ;;  %3963 = vmatprep.mubr.bf16.mxu0 %v23645_v32  ;;  %v19831_v32 = vsel %vm10140_vm1, %v10149_v16, %v10153_v40  ;;  %v19856_v40 = vsel %vm10140_vm1, %v10157_v42, %v10161_v22 }
 0x222   : > { %v19820_v58 = vsel %vm10140_vm1, %v22825_v19, %v10149_v16  ;;  %23655 = vst [vmem:[#allocation127_spill] sm:$0xff] %v19831_v32  ;;  %v10155_v19 = vrot.slane %v19714_v14, 1  ;;  %v10165_v32 = vrot.slane %v19725_v44, 1  ;;  %23659 = vst [vmem:[#allocation131_spill] sm:$0xff] %v19856_v40  ;;  %v19906_v40 = vld [vmem:[#allocation2 + $0x138] sm:$0xff] }
 0x223   : > { %23652 = vst [vmem:[#allocation126_spill] sm:$0xff] %v19820_v58  ;;  %v10169_v58 = vrot.slane %v19733_v46, 1  ;;  %23672 = vst [vmem:[#allocation144_spill] sm:$0xff] %v19906_v40 }
 0x224   : > { %v19846_v16 = vsel %vm10140_vm1, %v10151_v53, %v10155_v19  ;;  %v19859_v53 = vsel %vm10140_vm1, %v10155_v19, %v10159_v48 }
 0x225   : > { %23658 = vst [vmem:[#allocation130_spill] sm:$0xff] %v19846_v16  ;;  %23660 = vst [vmem:[#allocation132_spill] sm:$0xff] %v19859_v53  ;;  %v19862_v16 = vsel %vm10140_vm1, %v10161_v22, %v10165_v32  ;;  %v19869_v39 = vsel %vm10140_vm1, %v10165_v32, %v10169_v58  ;;  %v19875_v42 = vsel %vm10140_vm1, %v10169_v58, %v10173_v24  ;;  %v10177_v22 = vrot.slane %v19749_v10, 1  ;;  %v19889_v58 = vld [vmem:[#allocation2 + $0x128] sm:$0xff] }
 0x226   : > { %23661 = vst [vmem:[#allocation133_spill] sm:$0xff] %v19862_v16  ;;  %23663 = vst [vmem:[#allocation135_spill] sm:$0xff] %v19869_v39  ;;  %v10175_v16 = vrot.slane %v19755_v12, 1  ;;  %v10181_v53 = vrot.slane %v19757_v7, 1  ;;  %v10185_v32 = vrot.slane %v19765_v18, 1  ;;  %v10183_v39 = vrot.slane %v19773_v37, 1 }
 0x227   : > { %23665 = vst [vmem:[#allocation137_spill] sm:$0xff] %v19875_v42  ;;  %23667 = vst [vmem:[#allocation139_spill] sm:$0xff] %v19889_v58 }
 0x228   : > { %3751 = vmatmul.mubr.bf16.gmra.mrb[100].mxu1 %v23653_v34  ;;  %3964 = vmatmul.mubr.bf16.gmra.mrb[100].mxu0 %v23653_v34  ;;  %v10167_v34 = vrot.slane %v19739_v49, 1  ;;  %v19897_v42 = vsel %vm10140_vm1, %v10171_v23, %v10175_v16 }
 0x229   : > { %3760 = vmatprep.mubr.bf16.mxu1 %v19172_v11  ;;  %3973 = vmatprep.mubr.bf16.mxu0 %v19172_v11  ;;  %v10163_v11 = vrot.slane %v19731_v35, 1  ;;  %23670 = vst [vmem:[#allocation142_spill] sm:$0xff] %v19897_v42  ;;  %v10191_v42 = vrot.slane %v19802_v51, 1 }
 0x22a   : > { %v19878_v19 = vsel %vm10140_vm1, %v10167_v34, %v10171_v23  ;;  %v19914_v23 = vsel %vm10140_vm1, %v10181_v53, %v10185_v32 }
 0x22b   : > { %v19866_v27 = vsel %vm10140_vm1, %v10159_v48, %v10163_v11  ;;  %v19872_v5 = vsel %vm10140_vm1, %v10163_v11, %v10167_v34  ;;  %23666 = vst [vmem:[#allocation138_spill] sm:$0xff] %v19878_v19  ;;  %v10179_v48 = vrot.slane %v19763_v6, 1  ;;  %v10189_v11 = vrot.slane %v19775_v1, 1  ;;  %v19891_v34 = vld [vmem:[#allocation2 + $0x120] sm:$0xff]  ;;  %23675 = vst [vmem:[#allocation147_spill] sm:$0xff] %v19914_v23 }
 0x22c   : > { %23662 = vst [vmem:[#allocation134_spill] sm:$0xff] %v19866_v27  ;;  %23664 = vst [vmem:[#allocation136_spill] sm:$0xff] %v19872_v5  ;;  %v19894_v19 = vsel %vm10140_vm1, %v10173_v24, %v10177_v22  ;;  %v19900_v5 = vsel %vm10140_vm1, %v10177_v22, %v10181_v53  ;;  %v10187_v27 = vrot.slane %v19782_v25, 1  ;;  %v10201_v53 = vrot.slane %v19889_v58, 1  ;;  %v15509_v23 = vld [vmem:[%s22572_s4 + $0x600] ss:$16 sps:$4 sm:$0xff]  }
 0x22d   : > { %23668 = vst [vmem:[#allocation140_spill] sm:$0xff] %v19891_v34  ;;  %23669 = vst [vmem:[#allocation141_spill] sm:$0xff] %v19894_v19  ;;  %v19911_v24 = vsel %vm10140_vm1, %v10175_v16, %v10179_v48  ;;  %v19917_v22 = vsel %vm10140_vm1, %v10179_v48, %v10183_v39  ;;  %v10036_v19 = vld [vmem:[#allocation2 + $0x38] sm:$0xfe]  ;;  %v10197_v16 = vrot.slane %v19807_v38, 1  ;;  %v10199_v48 = vrot.slane %v19891_v34, 1 }
 0x22e   : > { %23671 = vst [vmem:[#allocation143_spill] sm:$0xff] %v19900_v5  ;;  %23674 = vst [vmem:[#allocation146_spill] sm:$0xff] %v19911_v24  ;;  %v19920_v5 = vsel %vm10140_vm1, %v10185_v32, %v10189_v11  ;;  %v10195_v24 = vrot.slane %v19809_v47, 1 }
 0x22f   : > { %23676 = vst [vmem:[#allocation148_spill] sm:$0xff] %v19917_v22  ;;  %23677 = vst [vmem:[#allocation149_spill] sm:$0xff] %v19920_v5  ;;  %v10035_v22 = vld [vmem:[#allocation2 + $0x30] sm:$0xfe]  ;;  %v15512_v5 = vld [vmem:[%s22572_s4 + $0x608] ss:$16 sps:$4 sm:$0xff]  }
 0x230   : > { %3761 = vmatmul.mubr.bf16.gmra.mrb[104].mxu1 %v19193_v4  ;;  %3974 = vmatmul.mubr.bf16.gmra.mrb[104].mxu0 %v19193_v4  ;;  %v10193_v4 = vrot.slane %v19784_v8, 1  ;;  %v19946_v50 = vsel %vm10140_vm1, %v10191_v42, %v10195_v24  ;;  %v11210_v56 = vshrl.u32 %v10035_v22, 16 }
 0x231   : > { %4566 = vmatprep.mubr.bf16.mxu1 %v19692_v15  ;;  %4779 = vmatprep.mubr.bf16.mxu0 %v19692_v15  ;;  %v19923_v15 = vsel %vm10140_vm1, %v10183_v39, %v10187_v27  ;;  %v19935_v39 = vsel %vm10140_vm1, %v10187_v27, %v10191_v42  ;;  %23682 = vst [vmem:[#allocation154_spill] sm:$0xff] %v19946_v50  ;;  %v23686_v42 = vrot.slane %v19906_v40, 1 }
 0x232   : > { %23678 = vst [vmem:[#allocation150_spill] sm:$0xff] %v19923_v15  ;;  %v19932_v32 = vsel %vm10140_vm1, %v10189_v11, %v10193_v4  ;;  %23680 = vst [vmem:[#allocation152_spill] sm:$0xff] %v19935_v39  ;;  %v19943_v36 = vsel %vm10140_vm1, %v10193_v4, %v10197_v16  ;;  %v19949_v11 = vsel %vm10140_vm1, %v10197_v16, %v10201_v53  ;;  %v15517_v15 = vld [vmem:[%s22572_s4 + $0x624] ss:$16 sps:$4 sm:$0xff]   ;;  %v23685_v4 = vshrl.u32 %v19672_v60, 16 }
 0x233   : > { %23679 = vst [vmem:[#allocation151_spill] sm:$0xff] %v19932_v32  ;;  %23681 = vst [vmem:[#allocation153_spill] sm:$0xff] %v19943_v36  ;;  %v19952_v27 = vsel %vm10140_vm1, %v10195_v24, %v10199_v48  ;;  %v19965_v50 = vsel %vm10140_vm1, %v10201_v53, %v23686_v42  ;;  %v23688_v16 = vrot.slane %v19908_v0, 1  ;;  %v11225_v39 = vshll.u32 %v10036_v19, 16  ;;  %v15515_v53 = vld [vmem:[%s22572_s4 + $0x620] ss:$16 sps:$4 sm:$0xff]  }
 0x234   : > { %23683 = vst [vmem:[#allocation155_spill] sm:$0xff] %v19949_v11  ;;  %23684 = vst [vmem:[#allocation156_spill] sm:$0xff] %v19952_v27  ;;  %v11217_v36 = vrot.slane %v23685_v4, 1  ;;  %v11222_v27 = vshrl.u32 %v10036_v19, 16  ;;  %v15520_v11 = vld [vmem:[%s22572_s4 + $0x62c] ss:$16 sps:$4 sm:$0xff]  }
 0x235   : > { %23687 = vst [vmem:[#allocation157_spill] sm:$0xff] %v19965_v50  ;;  %v19970_v24 = vsel %vm10140_vm1, %v10199_v48, %v23688_v16  ;;  %v23690_v32 = vshrl.u32 %v19648_v41, 16  ;;  %v23691_v4 = vshll.u32 %v19648_v41, 16  ;;  %v11213_v42 = vshll.u32 %v10035_v22, 16  ;;  %v15523_v22 = vld [vmem:[%s22572_s4 + $0x644] ss:$16 sps:$4 sm:$0xff]  }
 0x236   : > { %23689 = vst [vmem:[#allocation158_spill] sm:$0xff] %v19970_v24  ;;  %v11224_v48 = vrot.slane %v11222_v27, 1  ;;  %v23692_v16 = vshll.u32 %v19672_v60, 16  ;;  %v23693_v24 = vshrl.u32 %v19679_v3, 16  ;;  %v11212_v41 = vrot.slane %v11210_v56, 1 }
 0x237   : > { %v11229_v59 = vrot.slane %v23690_v32, 1  ;;  %v11230_v43 = vrot.slane %v23691_v4, 2  ;;  %v15518_v4 = vld [vmem:[%s22572_s4 + $0x628] ss:$16 sps:$4 sm:$0xff]   ;;  %v11215_v27 = vrot.slane %v11213_v42, 2  ;;  %v23695_v60 = vshrl.u32 %v19687_v28, 16 }
 0x238   : > { %4567 = vmatmul.mubr.bf16.vlgmr.msra.gmra.mrb[36].mxu1 %v19695_v57  ;;  %4780 = vmatmul.mubr.bf16.vlgmr.msra.gmra.mrb[36].mxu0 %v19695_v57  ;;  %v11218_v19 = vrot.slane %v23692_v16, 2  ;;  %v11237_v32 = vrot.slane %v23693_v24, 1  ;;  %v11227_v57 = vrot.slane %v11225_v39, 2  ;;  %v15526_v56 = vld [vmem:[%s22572_s4 + $0x64c] ss:$16 sps:$4 sm:$0xff]  }
 0x239   : > { %5860 = vmatpush1.bf16.msra.mxu1 %v15509_v23  ;;  %4576 = vmatprep.mubr.bf16.mxu1 %v19685_v33  ;;  %v11231_v50 = vor.u32 %v11230_v43, %v11229_v59  ;;  %v23694_v23 = vshll.u32 %v19679_v3, 16  ;;  %v11233_v9 = vrot.slane %v23695_v60, 1  ;;  %v23696_v59 = vshll.u32 %v19687_v28, 16 }
 0x23a   : > { %4789 = vmatprep.mubr.bf16.mxu0 %v19685_v33  ;;  %6073 = vmatpush1.bf16.msra.mxu0 %v15512_v5  ;;  %v11219_v24 = vor.u32 %v11218_v19, %v11217_v36  ;;  %v11228_v43 = vor.u32 %v11227_v57, %v11224_v48  ;;  %v23697_v33 = vshrl.u32 %v19689_v54, 16  ;;  %v23698_v36 = vshll.u32 %v19689_v54, 16 }
 0x23b   : > { %v11238_v16 = vrot.slane %v23694_v23, 2  ;;  %5861 = vmatprep.subr.bf16.mxu1 %v15517_v15  ;;  %6074 = vmatprep.subr.bf16.mxu0 %v15520_v11  ;;  %v11234_v5 = vrot.slane %v23696_v59, 2  ;;  %v11216_v19 = vor.u32 %v11215_v27, %v11212_v41  ;;  %v23699_v60 = vshrl.u32 %v19702_v52, 16  ;;  %v15521_v41 = vld [vmem:[%s22572_s4 + $0x640] ss:$16 sps:$4 sm:$0xff]  }
 0x23c   : > { %v11245_v39 = vrot.slane %v23697_v33, 1  ;;  %v11246_v42 = vrot.slane %v23698_v36, 2  ;;  %v23700_v11 = vshll.u32 %v19702_v52, 16  ;;  %v20014_v48 = vsel %vm11208_vm0, %v11228_v43, %v11231_v50 }
 0x23d   : > { %v11239_v23 = vor.u32 %v11238_v16, %v11237_v32  ;;  %v11241_v15 = vrot.slane %v23699_v60, 1  ;;  %5862 = vmatpush1.bf16.msra.mxu1 %v15515_v53  ;;  %23701 = vst [vmem:[#allocation159_spill] sm:$0xff] %v20014_v48  ;;  %v11235_v57 = vor.u32 %v11234_v5, %v11233_v9  ;;  %v23702_v28 = vshrl.u32 %v19704_v30, 16  ;;  %v15524_v32 = vld [vmem:[%s22572_s4 + $0x648] ss:$16 sps:$4 sm:$0xff]  }
 0x23e   : > { %v11242_v3 = vrot.slane %v23700_v11, 2  ;;  %v11247_v59 = vor.u32 %v11246_v42, %v11245_v39  ;;  %6075 = vmatpush1.bf16.msra.mxu0 %v15518_v4  ;;  %5863 = vmatprep.subr.bf16.mxu1 %v15523_v22  ;;  %v20025_v53 = vsel %vm11208_vm0, %v11216_v19, %v11219_v24  ;;  %v23705_v16 = vshll.u32 %v19704_v30, 16  ;;  %v15529_v4 = vld [vmem:[%s22572_s4 + $0x664] ss:$16 sps:$4 sm:$0xff]   ;;  %v15532_v22 = vld [vmem:[%s22572_s4 + $0x66c] ss:$16 sps:$4 sm:$0xff]  }
 0x23f   : > { %v11253_v33 = vrot.slane %v23702_v28, 1  ;;  %23703 = vst [vmem:[#allocation160_spill] sm:$0xff] %v20025_v53  ;;  %v20028_v27 = vsel %vm11208_vm0, %v11231_v50, %v11239_v23  ;;  %6076 = vmatprep.subr.bf16.mxu0 %v15526_v56  ;;  %v20039_v43 = vsel %vm11208_vm0, %v11219_v24, %v11235_v57  ;;  %v23708_v50 = vshrl.u32 %v19714_v14, 16 }
 0x240   : > { %23704 = vst [vmem:[#allocation161_spill] sm:$0xff] %v20028_v27  ;;  %v11243_v9 = vor.u32 %v11242_v3, %v11241_v15  ;;  %v11254_v28 = vrot.slane %v23705_v16, 2  ;;  %23706 = vst [vmem:[#allocation162_spill] sm:$0xff] %v20039_v43  ;;  %v20042_v5 = vsel %vm11208_vm0, %v11239_v23, %v11247_v59  ;;  %v23709_v39 = vshll.u32 %v19714_v14, 16  ;;  %4577 = vmatmul.mubr.bf16.gmra.mrb[40].mxu1 %v19699_v62 }
 0x241   : > { %23707 = vst [vmem:[#allocation163_spill] sm:$0xff] %v20042_v5  ;;  %v11249_v3 = vrot.slane %v23708_v50, 1  ;;  %4790 = vmatmul.mubr.bf16.gmra.mrb[40].mxu0 %v19699_v62  ;;  %v23711_v24 = vshrl.u32 %v19716_v26, 16  ;;  %v23712_v23 = vshll.u32 %v19716_v26, 16  ;;  %4586 = vmatprep.mubr.bf16.mxu1 %v19196_v31  ;;  %v23713_v16 = vshrl.u32 %v19723_v2, 16 }
 0x242   : > { %v11250_v56 = vrot.slane %v23709_v39, 2  ;;  %v20051_v36 = vsel %vm11208_vm0, %v11235_v57, %v11243_v9  ;;  %v11255_v42 = vor.u32 %v11254_v28, %v11253_v33  ;;  %4799 = vmatprep.mubr.bf16.mxu0 %v19196_v31  ;;  %v23714_v57 = vshll.u32 %v19723_v2, 16  ;;  %5864 = vmatpush1.bf16.msra.mxu1 %v15521_v41  ;;  %v15527_v33 = vld [vmem:[%s22572_s4 + $0x660] ss:$16 sps:$4 sm:$0xff]   ;;  %v15530_v28 = vld [vmem:[%s22572_s4 + $0x668] ss:$16 sps:$4 sm:$0xff]  }
 0x243   : > { %23710 = vst [vmem:[#allocation164_spill] sm:$0xff] %v20051_v36  ;;  %v11261_v19 = vrot.slane %v23711_v24, 1  ;;  %v11262_v60 = vrot.slane %v23712_v23, 2  ;;  %v11257_v62 = vrot.slane %v23713_v16, 1  ;;  %6077 = vmatpush1.bf16.msra.mxu0 %v15524_v32  ;;  %v23716_v39 = vshrl.u32 %v19725_v44, 16  ;;  %5865 = vmatprep.subr.bf16.mxu1 %v15529_v4 }
 0x244   : > { %v11251_v11 = vor.u32 %v11250_v56, %v11249_v3  ;;  %v11258_v50 = vrot.slane %v23714_v57, 2  ;;  %v20071_v31 = vsel %vm11208_vm0, %v11247_v59, %v11255_v42  ;;  %v23717_v24 = vshll.u32 %v19725_v44, 16  ;;  %6078 = vmatprep.subr.bf16.mxu0 %v15532_v22  ;;  %v15535_v41 = vld [vmem:[%s22572_s4 + $0x684] ss:$16 sps:$4 sm:$0xff]   ;;  %v15538_v32 = vld [vmem:[%s22572_s4 + $0x68c] ss:$16 sps:$4 sm:$0xff]  }
 0x245   : > { %23715 = vst [vmem:[#allocation165_spill] sm:$0xff] %v20071_v31  ;;  %v11263_v3 = vor.u32 %v11262_v60, %v11261_v19  ;;  %v11269_v56 = vrot.slane %v23716_v39, 1  ;;  %v23719_v60 = vshrl.u32 %v19731_v35, 16  ;;  %v23720_v57 = vshll.u32 %v19731_v35, 16 }
 0x246   : > { %v11270_v23 = vrot.slane %v23717_v24, 2  ;;  %v20084_v59 = vsel %vm11208_vm0, %v11243_v9, %v11251_v11  ;;  %v11259_v19 = vor.u32 %v11258_v50, %v11257_v62  ;;  %v23722_v24 = vshrl.u32 %v19733_v46, 16  ;;  %5866 = vmatpush1.bf16.msra.mxu1 %v15527_v33  ;;  %v15541_v33 = vld [vmem:[%s22572_s4 + $0x6a4] ss:$16 sps:$4 sm:$0xff]  }
 0x247   : > { %23718 = vst [vmem:[#allocation166_spill] sm:$0xff] %v20084_v59  ;;  %v11265_v16 = vrot.slane %v23719_v60, 1  ;;  %v11266_v39 = vrot.slane %v23720_v57, 2  ;;  %v20091_v4 = vsel %vm11208_vm0, %v11255_v42, %v11263_v3  ;;  %v23723_v31 = vshll.u32 %v19733_v46, 16  ;;  %6079 = vmatpush1.bf16.msra.mxu0 %v15530_v28  ;;  %v15533_v42 = vld [vmem:[%s22572_s4 + $0x680] ss:$16 sps:$4 sm:$0xff]   ;;  %5867 = vmatprep.subr.bf16.mxu1 %v15535_v41 }
 0x248   : > { %23721 = vst [vmem:[#allocation167_spill] sm:$0xff] %v20091_v4  ;;  %v11271_v22 = vor.u32 %v11270_v23, %v11269_v56  ;;  %v11277_v15 = vrot.slane %v23722_v24, 1  ;;  %v20098_v9 = vsel %vm11208_vm0, %v11251_v11, %v11259_v19  ;;  %v23725_v50 = vshrl.u32 %v19739_v49, 16  ;;  %6080 = vmatprep.subr.bf16.mxu0 %v15538_v32  ;;  %v15544_v28 = vld [vmem:[%s22572_s4 + $0x6ac] ss:$16 sps:$4 sm:$0xff]   ;;  %4587 = vmatmul.mubr.bf16.gmra.mrb[44].mxu1 %v19209_v29 }
 0x249   : > { %v11278_v36 = vrot.slane %v23723_v31, 2  ;;  %23724 = vst [vmem:[#allocation168_spill] sm:$0xff] %v20098_v9  ;;  %v11267_v62 = vor.u32 %v11266_v39, %v11265_v16  ;;  %v23726_v59 = vshll.u32 %v19739_v49, 16  ;;  %v15536_v31 = vld [vmem:[%s22572_s4 + $0x688] ss:$16 sps:$4 sm:$0xff]   ;;  %v23728_v23 = vshrl.u32 %v19741_v55, 16  ;;  %4800 = vmatmul.mubr.bf16.gmra.mrb[44].mxu0 %v19209_v29  ;;  %4596 = vmatprep.mubr.bf16.mxu1 %v19224_v61 }
 0x24a   : > { %v11273_v60 = vrot.slane %v23725_v50, 1  ;;  %v20111_v11 = vsel %vm11208_vm0, %v11263_v3, %v11271_v22  ;;  %v23729_v39 = vshll.u32 %v19741_v55, 16  ;;  %v23732_v50 = vshll.u32 %v19747_v13, 16  ;;  %4809 = vmatprep.mubr.bf16.mxu0 %v19224_v61  ;;  %5868 = vmatpush1.bf16.msra.mxu1 %v15533_v42  ;;  %v15542_v61 = vld [vmem:[%s22572_s4 + $0x6a8] ss:$16 sps:$4 sm:$0xff]   ;;  %v20568_v9 = vld [vmem:[#allocation2 + $0x50] sm:$0xff] }
 0x24b   : > { %v11274_v57 = vrot.slane %v23726_v59, 2  ;;  %23727 = vst [vmem:[#allocation169_spill] sm:$0xff] %v20111_v11  ;;  %v11279_v56 = vor.u32 %v11278_v36, %v11277_v15  ;;  %v11285_v16 = vrot.slane %v23728_v23, 1  ;;  %v20124_v3 = vsel %vm11208_vm0, %v11259_v19, %v11267_v62  ;;  %6081 = vmatpush1.bf16.msra.mxu0 %v15536_v31  ;;  %5869 = vmatprep.subr.bf16.mxu1 %v15541_v33  ;;  %v15550_v42 = vld [vmem:[%s22572_s4 + $0x6cc] ss:$16 sps:$4 sm:$0xff]  }
 0x24c   : > { %v11286_v59 = vrot.slane %v23729_v39, 2  ;;  %23730 = vst [vmem:[#allocation170_spill] sm:$0xff] %v20124_v3  ;;  %v23731_v15 = vshrl.u32 %v19747_v13, 16  ;;  %v11282_v23 = vrot.slane %v23732_v50, 2  ;;  %v23736_v32 = vshll.u32 %v19749_v10, 16  ;;  %6082 = vmatprep.subr.bf16.mxu0 %v15544_v28  ;;  %v20883_v13 = vld [vmem:[#allocation2 + $0x110] sm:$0xff] }
 0x24d   : > { %v11275_v36 = vor.u32 %v11274_v57, %v11273_v60  ;;  %v20135_v39 = vsel %vm11208_vm0, %v11271_v22, %v11279_v56  ;;  %v15539_v60 = vld [vmem:[%s22572_s4 + $0x6a0] ss:$16 sps:$4 sm:$0xff]   ;;  %v23741_v41 = vshrl.u32 %v19757_v7, 16  ;;  %v23745_v28 = vshll.u32 %v19763_v6, 16 }
 0x24e   : > { %v11281_v24 = vrot.slane %v23731_v15, 1  ;;  %23733 = vst [vmem:[#allocation171_spill] sm:$0xff] %v20135_v39  ;;  %v11287_v19 = vor.u32 %v11286_v59, %v11285_v16  ;;  %v23735_v15 = vshrl.u32 %v19749_v10, 16  ;;  %v11294_v22 = vrot.slane %v23736_v32, 2  ;;  %5870 = vmatpush1.bf16.msra.mxu1 %v15539_v60  ;;  %v15553_v60 = vld [vmem:[%s22572_s4 + $0x6e4] ss:$16 sps:$4 sm:$0xff]  }
 0x24f   : > { %v20143_v57 = vsel %vm11208_vm0, %v11267_v62, %v11275_v36  ;;  %v23739_v59 = vshrl.u32 %v19755_v12, 16  ;;  %v23740_v62 = vshll.u32 %v19755_v12, 16  ;;  %6083 = vmatpush1.bf16.msra.mxu0 %v15542_v61  ;;  %v15556_v61 = vld [vmem:[%s22572_s4 + $0x6ec] ss:$16 sps:$4 sm:$0xff]  }
 0x250   : > { %23734 = vst [vmem:[#allocation172_spill] sm:$0xff] %v20143_v57  ;;  %v11283_v29 = vor.u32 %v11282_v23, %v11281_v24  ;;  %v11293_v50 = vrot.slane %v23735_v15, 1  ;;  %v15547_v23 = vld [vmem:[%s22572_s4 + $0x6c4] ss:$16 sps:$4 sm:$0xff]   ;;  %v20163_v31 = vsel %vm11208_vm0, %v11279_v56, %v11287_v19  ;;  %v11301_v57 = vrot.slane %v23741_v41, 1  ;;  %6084 = vmatprep.subr.bf16.mxu0 %v15550_v42  ;;  %4597 = vmatmul.mubr.bf16.gmra.mrb[48].mxu1 %v19235_v63 }
 0x251   : > { %23737 = vst [vmem:[#allocation173_spill] sm:$0xff] %v20163_v31  ;;  %v11289_v24 = vrot.slane %v23739_v59, 1  ;;  %v11290_v16 = vrot.slane %v23740_v62, 2  ;;  %v15545_v56 = vld [vmem:[%s22572_s4 + $0x6c0] ss:$16 sps:$4 sm:$0xff]   ;;  %v23744_v59 = vshrl.u32 %v19763_v6, 16  ;;  %5871 = vmatprep.subr.bf16.mxu1 %v15547_v23  ;;  %4810 = vmatmul.mubr.bf16.gmra.mrb[48].mxu0 %v19235_v63 }
 0x252   : > { %v20166_v32 = vsel %vm11208_vm0, %v11275_v36, %v11283_v29  ;;  %v11295_v15 = vor.u32 %v11294_v22, %v11293_v50  ;;  %v23743_v50 = vshll.u32 %v19757_v7, 16  ;;  %v15548_v41 = vld [vmem:[%s22572_s4 + $0x6c8] ss:$16 sps:$4 sm:$0xff]   ;;  %v23746_v31 = vshrl.u32 %v19765_v18, 16  ;;  %4606 = vmatprep.mubr.bf16.mxu1 %v19248_v45  ;;  %4819 = vmatprep.mubr.bf16.mxu0 %v19248_v45  ;;  %v20873_v7 = vld [vmem:[#allocation2 + $0x100] sm:$0xff] }
 0x253   : > { %23738 = vst [vmem:[#allocation174_spill] sm:$0xff] %v20166_v32  ;;  %v11297_v33 = vrot.slane %v23744_v59, 1  ;;  %v11298_v32 = vrot.slane %v23745_v28, 2  ;;  %v11291_v62 = vor.u32 %v11290_v16, %v11289_v24  ;;  %5872 = vmatpush1.bf16.msra.mxu1 %v15545_v56  ;;  %6085 = vmatpush1.bf16.msra.mxu0 %v15548_v41  ;;  %v15554_v45 = vld [vmem:[%s22572_s4 + $0x6e8] ss:$16 sps:$4 sm:$0xff]   ;;  %v5440_v12 = vshrl.u32 %v20873_v7, 16 }
 0x254   : > { %v20180_v36 = vsel %vm11208_vm0, %v11287_v19, %v11295_v15  ;;  %v11302_v22 = vrot.slane %v23743_v50, 2  ;;  %v11309_v19 = vrot.slane %v23746_v31, 1  ;;  %v23748_v50 = vshrl.u32 %v19773_v37, 16  ;;  %5873 = vmatprep.subr.bf16.mxu1 %v15553_v60  ;;  %6086 = vmatprep.subr.bf16.mxu0 %v15556_v61  ;;  %v15559_v56 = vld [vmem:[%s22572_s4 + $0x704] ss:$16 sps:$4 sm:$0xff]  }
 0x255   : > { %23742 = vst [vmem:[#allocation175_spill] sm:$0xff] %v20180_v36  ;;  %v23747_v36 = vshll.u32 %v19765_v18, 16  ;;  %v11299_v24 = vor.u32 %v11298_v32, %v11297_v33  ;;  %v23749_v31 = vshll.u32 %v19773_v37, 16  ;;  %v20210_v23 = vsel %vm11208_vm0, %v11283_v29, %v11291_v62  ;;  %v15562_v41 = vld [vmem:[%s22572_s4 + $0x70c] ss:$16 sps:$4 sm:$0xff]   ;;  %v20863_v18 = vld [vmem:[#allocation2 + $0xf0] sm:$0xff] }
 0x256   : > { %v11305_v3 = vrot.slane %v23748_v50, 1  ;;  %v11303_v16 = vor.u32 %v11302_v22, %v11301_v57  ;;  %23751 = vst [vmem:[#allocation176_spill] sm:$0xff] %v20210_v23  ;;  %v23752_v50 = vshll.u32 %v19775_v1, 16  ;;  %v23753_v57 = vshrl.u32 %v19782_v25, 16  ;;  %v15617_v23 = vld [vmem:[%s22572_s4 + $0x840] ss:$16 sps:$4 sm:$0xff]  }
 0x257   : > { %v11310_v39 = vrot.slane %v23747_v36, 2  ;;  %v11306_v28 = vrot.slane %v23749_v31, 2  ;;  %v23750_v36 = vshrl.u32 %v19775_v1, 16  ;;  %v20222_v22 = vsel %vm11208_vm0, %v11291_v62, %v11299_v24  ;;  %6087 = vmatpush1.bf16.msra.mxu0 %v15554_v45  ;;  %v15568_v45 = vld [vmem:[%s22572_s4 + $0x72c] ss:$16 sps:$4 sm:$0xff]   ;;  %v20853_v1 = vld [vmem:[#allocation2 + $0xe0] sm:$0xff] }
 0x258   : > { %v11318_v11 = vrot.slane %v23752_v50, 2  ;;  %v11313_v32 = vrot.slane %v23753_v57, 1  ;;  %v20219_v33 = vsel %vm11208_vm0, %v11295_v15, %v11303_v16  ;;  %23755 = vst [vmem:[#allocation178_spill] sm:$0xff] %v20222_v22  ;;  %v23756_v29 = vshll.u32 %v19782_v25, 16  ;;  %6088 = vmatprep.subr.bf16.mxu0 %v15562_v41 }
 0x259   : > { %v11317_v59 = vrot.slane %v23750_v36, 1  ;;  %v11311_v42 = vor.u32 %v11310_v39, %v11309_v19  ;;  %23754 = vst [vmem:[#allocation177_spill] sm:$0xff] %v20219_v33  ;;  %v11307_v63 = vor.u32 %v11306_v28, %v11305_v3  ;;  %v15551_v19 = vld [vmem:[%s22572_s4 + $0x6e0] ss:$16 sps:$4 sm:$0xff]   ;;  %v23758_v62 = vshrl.u32 %v19784_v8, 16 }
 0x25a   : > { %v11314_v39 = vrot.slane %v23756_v29, 2  ;;  %v23759_v28 = vshll.u32 %v19784_v8, 16  ;;  %v23762_v57 = vshll.u32 %v19802_v51, 16  ;;  %5874 = vmatpush1.bf16.msra.mxu1 %v15551_v19  ;;  %v15565_v19 = vld [vmem:[%s22572_s4 + $0x724] ss:$16 sps:$4 sm:$0xff]   ;;  %v5408_v37 = vshrl.u32 %v20853_v1, 16 }
 0x25b   : > { %v20233_v15 = vsel %vm11208_vm0, %v11303_v16, %v11311_v42  ;;  %v11319_v31 = vor.u32 %v11318_v11, %v11317_v59  ;;  %v11325_v3 = vrot.slane %v23758_v62, 1  ;;  %v20246_v16 = vsel %vm11208_vm0, %v11299_v24, %v11307_v63  ;;  %5875 = vmatprep.subr.bf16.mxu1 %v15559_v56  ;;  %v23775_v56 = vld [vmem:[#allocation95_spill] sm:$0xff] }
 0x25c   : > { %23757 = vst [vmem:[#allocation179_spill] sm:$0xff] %v20233_v15  ;;  %v11326_v36 = vrot.slane %v23759_v28, 2  ;;  %23760 = vst [vmem:[#allocation180_spill] sm:$0xff] %v20246_v16  ;;  %v11315_v11 = vor.u32 %v11314_v39, %v11313_v32  ;;  %v23761_v59 = vshrl.u32 %v19802_v51, 16  ;;  %v11322_v29 = vrot.slane %v23762_v57, 2  ;;  %4607 = vmatmul.mubr.bf16.gmra.mrb[52].mxu1 %v23775_v56  ;;  %4820 = vmatmul.mubr.bf16.gmra.mrb[52].mxu0 %v23775_v56  ;;  %v20832_v51 = vld [vmem:[#allocation2 + $0xc0] sm:$0xff] }
 0x25d   : > { %v20253_v60 = vsel %vm11208_vm0, %v11311_v42, %v11319_v31  ;;  %v23764_v62 = vshrl.u32 %v19807_v38, 16  ;;  %v23765_v15 = vshll.u32 %v19807_v38, 16  ;;  %v23767_v39 = vshrl.u32 %v19809_v47, 16  ;;  %v15557_v42 = vld [vmem:[%s22572_s4 + $0x700] ss:$16 sps:$4 sm:$0xff]  }
 0x25e   : > { %v11321_v50 = vrot.slane %v23761_v59, 1  ;;  %23763 = vst [vmem:[#allocation181_spill] sm:$0xff] %v20253_v60  ;;  %v11327_v61 = vor.u32 %v11326_v36, %v11325_v3  ;;  %v20260_v24 = vsel %vm11208_vm0, %v11307_v63, %v11315_v11  ;;  %v23768_v16 = vshll.u32 %v19809_v47, 16  ;;  %5876 = vmatpush1.bf16.msra.mxu1 %v15557_v42  ;;  %v20529_v60 = vld [vmem:[#allocation2 + $0x40] sm:$0xff] }
 0x25f   : > { %v11333_v28 = vrot.slane %v23764_v62, 1  ;;  %v11334_v22 = vrot.slane %v23765_v15, 2  ;;  %23766 = vst [vmem:[#allocation182_spill] sm:$0xff] %v20260_v24  ;;  %v11329_v59 = vrot.slane %v23767_v39, 1  ;;  %v15560_v15 = vld [vmem:[%s22572_s4 + $0x708] ss:$16 sps:$4 sm:$0xff]   ;;  %5877 = vmatprep.subr.bf16.mxu1 %v15565_v19 }
 0x260   : > { %v11323_v32 = vor.u32 %v11322_v29, %v11321_v50  ;;  %v11330_v57 = vrot.slane %v23768_v16, 2  ;;  %v20273_v63 = vsel %vm11208_vm0, %v11319_v31, %v11327_v61  ;;  %v23770_v36 = vshrl.u32 %v19889_v58, 16  ;;  %6089 = vmatpush1.bf16.msra.mxu0 %v15560_v15  ;;  %v15571_v15 = vld [vmem:[%s22572_s4 + $0x744] ss:$16 sps:$4 sm:$0xff]   ;;  %v15569_v19 = vld [vmem:[%s22572_s4 + $0x740] ss:$16 sps:$4 sm:$0xff]  }
 0x261   : > { %23769 = vst [vmem:[#allocation183_spill] sm:$0xff] %v20273_v63  ;;  %v11335_v3 = vor.u32 %v11334_v22, %v11333_v28  ;;  %v23771_v29 = vshll.u32 %v19889_v58, 16  ;;  %v23773_v62 = vshrl.u32 %v19891_v34, 16  ;;  %v23774_v39 = vshll.u32 %v19891_v34, 16  ;;  %6090 = vmatprep.subr.bf16.mxu0 %v15568_v45  ;;  %v15572_v45 = vld [vmem:[%s22572_s4 + $0x748] ss:$16 sps:$4 sm:$0xff]  }
 0x262   : > { %v11341_v50 = vrot.slane %v23770_v36, 1  ;;  %v20286_v31 = vsel %vm11208_vm0, %v11315_v11, %v11323_v32  ;;  %v11331_v22 = vor.u32 %v11330_v57, %v11329_v59  ;;  %v23777_v63 = vshrl.u32 %v19906_v40, 16  ;;  %v23779_v57 = vld [vmem:[#allocation96_spill] sm:$0xff]  ;;  %v20773_v58 = vld [vmem:[#allocation2 + $0xa0] sm:$0xff] }
 0x263   : > { %v11342_v16 = vrot.slane %v23771_v29, 2  ;;  %23772 = vst [vmem:[#allocation184_spill] sm:$0xff] %v20286_v31  ;;  %v11337_v28 = vrot.slane %v23773_v62, 1  ;;  %v11338_v36 = vrot.slane %v23774_v39, 2  ;;  %v20295_v41 = vsel %vm11208_vm0, %v11327_v61, %v11335_v3  ;;  %4616 = vmatprep.mubr.bf16.mxu1 %v23779_v57  ;;  %4829 = vmatprep.mubr.bf16.mxu0 %v23779_v57  ;;  %v15563_v61 = vld [vmem:[%s22572_s4 + $0x720] ss:$16 sps:$4 sm:$0xff]  }
 0x264   : > { %23776 = vst [vmem:[#allocation95_spill] sm:$0xff] %v20295_v41  ;;  %v11349_v24 = vrot.slane %v23777_v63, 1  ;;  %v23778_v11 = vshll.u32 %v19906_v40, 16  ;;  %v20304_v62 = vsel %vm11208_vm0, %v11323_v32, %v11331_v22  ;;  %v15566_v63 = vld [vmem:[%s22572_s4 + $0x728] ss:$16 sps:$4 sm:$0xff]   ;;  %v23782_v56 = vshrl.u32 %v19908_v0, 16  ;;  %5878 = vmatpush1.bf16.msra.mxu1 %v15563_v61  ;;  %4830 = vmatmul.mubr.bf16.gmra.mrb[56].mxu0 %v19292_v17 }
 0x265   : > { %v11343_v29 = vor.u32 %v11342_v16, %v11341_v50  ;;  %23780 = vst [vmem:[#allocation96_spill] sm:$0xff] %v20304_v62  ;;  %v11339_v39 = vor.u32 %v11338_v36, %v11337_v28  ;;  %v23783_v28 = vshll.u32 %v19908_v0, 16  ;;  %v15574_v36 = vld [vmem:[%s22572_s4 + $0x74c] ss:$16 sps:$4 sm:$0xff]   ;;  %6091 = vmatpush1.bf16.msra.mxu0 %v15566_v63  ;;  %5879 = vmatprep.subr.bf16.mxu1 %v15571_v15  ;;  %v23787_v57 = vld [vmem:[#allocation97_spill] sm:$0xff]  ;;  %v5424_v6 = vshrl.u32 %v20863_v18, 16 }
 0x266   : > { %v11350_v59 = vrot.slane %v23778_v11, 2  ;;  %v11345_v32 = vrot.slane %v23782_v56, 1  ;;  %6092 = vmatprep.subr.bf16.mxu0 %v15574_v36  ;;  %4617 = vmatmul.mubr.bf16.gmra.mrb[56].mxu1 %v19292_v17  ;;  %v15578_v61 = vld [vmem:[%s22572_s4 + $0x768] ss:$16 sps:$4 sm:$0xff]   ;;  %v15583_v17 = vld [vmem:[%s22572_s4 + $0x784] ss:$16 sps:$4 sm:$0xff]  }
 0x267   : > { %v20313_v50 = vsel %vm11208_vm0, %v11335_v3, %v11343_v29  ;;  %v11346_v42 = vrot.slane %v23783_v28, 2  ;;  %v20328_v3 = vsel %vm11208_vm0, %v11331_v22, %v11339_v39  ;;  %4626 = vmatprep.mubr.bf16.mxu1 %v23787_v57  ;;  %4839 = vmatprep.mubr.bf16.mxu0 %v23787_v57  ;;  %v15586_v63 = vld [vmem:[%s22572_s4 + $0x78c] ss:$16 sps:$4 sm:$0xff]   ;;  %v15581_v56 = vld [vmem:[%s22572_s4 + $0x780] ss:$16 sps:$4 sm:$0xff]  }
 0x268   : > { %23781 = vst [vmem:[#allocation185_spill] sm:$0xff] %v20313_v50  ;;  %v20315_v16 = vor.u32 %v11350_v59, %v11349_v24  ;;  %23784 = vst [vmem:[#allocation186_spill] sm:$0xff] %v20328_v3  ;;  %v15580_v59 = vld [vmem:[%s22572_s4 + $0x76c] ss:$16 sps:$4 sm:$0xff]   ;;  %5880 = vmatpush1.bf16.msra.mxu1 %v15569_v19  ;;  %v15589_v28 = vld [vmem:[%s22572_s4 + $0x7a4] ss:$16 sps:$4 sm:$0xff]  }
 0x269   : > { %v20334_v11 = vor.u32 %v11346_v42, %v11345_v32  ;;  %6093 = vmatpush1.bf16.msra.mxu0 %v15572_v45  ;;  %v15584_v32 = vld [vmem:[%s22572_s4 + $0x788] ss:$16 sps:$4 sm:$0xff]   ;;  %v15592_v42 = vld [vmem:[%s22572_s4 + $0x7ac] ss:$16 sps:$4 sm:$0xff]   ;;  %v15587_v15 = vld [vmem:[%s22572_s4 + $0x7a0] ss:$16 sps:$4 sm:$0xff]  }
 0x26a   : > { %v20332_v24 = vsel %vm11208_vm0, %v11343_v29, %v20315_v16  ;;  %v15577_v29 = vld [vmem:[%s22572_s4 + $0x764] ss:$16 sps:$4 sm:$0xff]   ;;  %6094 = vmatprep.subr.bf16.mxu0 %v15580_v59  ;;  %v15590_v36 = vld [vmem:[%s22572_s4 + $0x7a8] ss:$16 sps:$4 sm:$0xff]   ;;  %v15593_v19 = vld [vmem:[%s22572_s4 + $0x7c0] ss:$16 sps:$4 sm:$0xff]  }
 0x26b   : > { %23785 = vst [vmem:[#allocation187_spill] sm:$0xff] %v20332_v24  ;;  %v20344_v22 = vsel %vm11208_vm0, %v11339_v39, %v20334_v11  ;;  %v15575_v39 = vld [vmem:[%s22572_s4 + $0x760] ss:$16 sps:$4 sm:$0xff]   ;;  %5881 = vmatprep.subr.bf16.mxu1 %v15577_v29  ;;  %v15596_v45 = vld [vmem:[%s22572_s4 + $0x7c8] ss:$16 sps:$4 sm:$0xff]  }
 0x26c   : > { %23786 = vst [vmem:[#allocation188_spill] sm:$0xff] %v20344_v22  ;;  %5882 = vmatpush1.bf16.msra.mxu1 %v15575_v39  ;;  %4840 = vmatmul.mubr.bf16.gmra.mrb[60].mxu0 %v19308_v21  ;;  %v15601_v29 = vld [vmem:[%s22572_s4 + $0x7e4] ss:$16 sps:$4 sm:$0xff]   ;;  %v15604_v59 = vld [vmem:[%s22572_s4 + $0x7ec] ss:$16 sps:$4 sm:$0xff]  }
 0x26d   : > { %6095 = vmatpush1.bf16.msra.mxu0 %v15578_v61  ;;  %5883 = vmatprep.subr.bf16.mxu1 %v15583_v17  ;;  %v23788_v57 = vld [vmem:[#allocation98_spill] sm:$0xff]  ;;  %v23789_v39 = vld [vmem:[#allocation99_spill] sm:$0xff]  ;;  %v5104_v22 = vld [vmem:[#allocation2 + $0x10] sm:$0x80] }
 0x26e   : > { %6096 = vmatprep.subr.bf16.mxu0 %v15586_v63  ;;  %4627 = vmatmul.mubr.bf16.gmra.mrb[60].mxu1 %v19308_v21  ;;  %v15595_v21 = vld [vmem:[%s22572_s4 + $0x7c4] ss:$16 sps:$4 sm:$0xff]   ;;  %v15599_v61 = vld [vmem:[%s22572_s4 + $0x7e0] ss:$16 sps:$4 sm:$0xff]   ;;  %v15602_v17 = vld [vmem:[%s22572_s4 + $0x7e8] ss:$16 sps:$4 sm:$0xff]  }
 0x26f   : > { %4636 = vmatprep.mubr.bf16.mxu1 %v19319_v20  ;;  %4849 = vmatprep.mubr.bf16.mxu0 %v19319_v20  ;;  %v15598_v20 = vld [vmem:[%s22572_s4 + $0x7cc] ss:$16 sps:$4 sm:$0xff]   ;;  %v15607_v63 = vld [vmem:[%s22572_s4 + $0x804] ss:$16 sps:$4 sm:$0xff]   ;;  %v5208_v24 = vshrl.u32 %v5104_v22, 16 }
 0x270   : > { %5884 = vmatpush1.bf16.msra.mxu1 %v15581_v56  ;;  %v15610_v56 = vld [vmem:[%s22572_s4 + $0x80c] ss:$16 sps:$4 sm:$0xff]  }
 0x271   : > { %6097 = vmatpush1.bf16.msra.mxu0 %v15584_v32  ;;  %5885 = vmatprep.subr.bf16.mxu1 %v15589_v28  ;;  %v23790_v32 = vld [vmem:[#allocation100_spill] sm:$0xff]  ;;  %v23791_v28 = vld [vmem:[#allocation101_spill] sm:$0xff]  ;;  %v5210_v41 = vrot.slane %v5208_v24, 7 }
 0x272   : > { %6098 = vmatprep.subr.bf16.mxu0 %v15592_v42  ;;  %v23792_v42 = vld [vmem:[#allocation102_spill] sm:$0xff]  ;;  %v15613_v24 = vld [vmem:[%s22572_s4 + $0x824] ss:$16 sps:$4 sm:$0xff]  }
 0x274   : > { %5886 = vmatpush1.bf16.msra.mxu1 %v15587_v15  ;;  %4850 = vmatmul.mubr.bf16.gmra.mrb[64].mxu0 %v23788_v57  ;;  %v20430_v15 = vld [vmem:[#allocation2] sm:$0xff] }
 0x275   : > { %6099 = vmatpush1.bf16.msra.mxu0 %v15590_v36  ;;  %5887 = vmatprep.subr.bf16.mxu1 %v15595_v21  ;;  %23793 = vst [vmem:[#allocation97_spill] sm:$0xff] %v20430_v15  ;;  %v22891_v36 = vshll.u32 %v20430_v15, 16  ;;  %v22890_v21 = vshrl.u32 %v20430_v15, 16 }
 0x276   : > { %6100 = vmatprep.subr.bf16.mxu0 %v15598_v20  ;;  %4637 = vmatmul.mubr.bf16.gmra.mrb[64].mxu1 %v23788_v57  ;;  %v23794_v20 = vld [vmem:[#allocation103_spill] sm:$0xff] }
 0x277   : > { %4646 = vmatprep.mubr.bf16.mxu1 %v23789_v39  ;;  %4859 = vmatprep.mubr.bf16.mxu0 %v23789_v39 }
 0x278   : > { %5888 = vmatpush1.bf16.msra.mxu1 %v15593_v19  ;;  %v11357_v19 = vrot.slane %v22890_v21, 1 }
 0x279   : > { %6101 = vmatpush1.bf16.msra.mxu0 %v15596_v45  ;;  %5889 = vmatprep.subr.bf16.mxu1 %v15601_v29  ;;  %v11358_v45 = vrot.slane %v22891_v36, 2 }
 0x27a   : > { %6102 = vmatprep.subr.bf16.mxu0 %v15604_v59  ;;  %v23796_v59 = vld [vmem:[#allocation104_spill] sm:$0xff] }
 0x27b   : > { %v20440_v29 = vor.u32 %v11358_v45, %v11357_v19  ;;  %v23808_v45 = vld [vmem:[#allocation116_spill] sm:$0xff] }
 0x27c   : > { %5890 = vmatpush1.bf16.msra.mxu1 %v15599_v61  ;;  %4860 = vmatmul.mubr.bf16.gmra.mrb[68].mxu0 %v23790_v32  ;;  %v23799_v61 = vld [vmem:[#allocation105_spill] sm:$0xff] }
 0x27d   : > { %6103 = vmatpush1.bf16.msra.mxu0 %v15602_v17  ;;  %6814 = vmatprep.subr.bf16.mxu1 %v15607_v63  ;;  %23795 = vst [vmem:[#allocation98_spill] sm:$0xff] %v20440_v29  ;;  %v20447_v57 = vsel %vm11208_vm0, %v20315_v16, %v20440_v29  ;;  %v20452_v39 = vsel %vm11208_vm0, %v20334_v11, %v20440_v29  ;;  %v23800_v17 = vld [vmem:[#allocation106_spill] sm:$0xff]  ;;  %v23801_v63 = vld [vmem:[#allocation107_spill] sm:$0xff]  ;;  %v23803_v16 = vld [vmem:[#allocation109_spill] sm:$0xff] }
 0x27e   : > { %7027 = vmatprep.subr.bf16.mxu0 %v15610_v56  ;;  %4647 = vmatmul.mubr.bf16.gmra.mrb[68].mxu1 %v23790_v32  ;;  %23797 = vst [vmem:[#allocation99_spill] sm:$0xff] %v20447_v57  ;;  %23798 = vst [vmem:[#allocation100_spill] sm:$0xff] %v20452_v39  ;;  %v23802_v56 = vld [vmem:[#allocation108_spill] sm:$0xff]  ;;  %v23804_v11 = vld [vmem:[#allocation111_spill] sm:$0xff] }
 0x27f   : > { %4656 = vmatprep.mubr.bf16.mxu1 %v23791_v28  ;;  %4869 = vmatprep.mubr.bf16.mxu0 %v23791_v28  ;;  %v23805_v32 = vld [vmem:[#allocation112_spill] sm:$0xff]  ;;  %v23806_v28 = vld [vmem:[#allocation114_spill] sm:$0xff]  ;;  %v20491_v39 = vld [vmem:[#allocation2 + $0x20] sm:$0xff] }
 0x280   : > { %v5212_v29 = vshrl.u32 %v20491_v39, 16 }
 0x284   : > { %4870 = vmatmul.mubr.bf16.gmra.mrb[72].mxu0 %v23792_v42 }
 0x285   : > { %4879 = vmatprep.mubr.bf16.mxu0 %v23794_v20 }
 0x286   : > { %4657 = vmatmul.mubr.bf16.gmra.mrb[72].mxu1 %v23792_v42  ;;  %v23807_v42 = vld [vmem:[#allocation115_spill] sm:$0xff] }
 0x287   : > { %4666 = vmatprep.mubr.bf16.mxu1 %v23794_v20  ;;  %v3985_v20 = vld [vmem:[#allocation2 + $0x128] sm:$0xff] }
 0x288   : > { %v4171_v19 = vshrl.u32 %v3985_v20, 16 }
 0x28c   : > { %4880 = vmatmul.mubr.bf16.gmra.mrb[76].mxu0 %v23796_v59 }
 0x28d   : > { %4889 = vmatprep.mubr.bf16.mxu0 %v23799_v61 }
 0x28e   : > { %4667 = vmatmul.mubr.bf16.gmra.mrb[76].mxu1 %v23796_v59  ;;  %v20474_v59 = vrot.slane %v4171_v19, 7  ;;  %v23810_v19 = vld [vmem:[#allocation118_spill] sm:$0xff] }
 0x28f   : > { %4676 = vmatprep.mubr.bf16.mxu1 %v23799_v61  ;;  %v4174_v61 = vshll.u32 %v3985_v20, 16  ;;  %v23811_v20 = vld [vmem:[#allocation110_spill] sm:$0xff] }
 0x294   : > { %4890 = vmatmul.mubr.bf16.gmra.mrb[80].mxu0 %v23800_v17 }
 0x295   : > { %4899 = vmatprep.mubr.bf16.mxu0 %v23801_v63 }
 0x296   : > { %4677 = vmatmul.mubr.bf16.gmra.mrb[80].mxu1 %v23800_v17  ;;  %v3984_v17 = vld [vmem:[#allocation2 + $0x120] sm:$0xff] }
 0x297   : > { %4686 = vmatprep.mubr.bf16.mxu1 %v23801_v63  ;;  %v23809_v63 = vld [vmem:[#allocation117_spill] sm:$0xff] }
 0x29c   : > { %4900 = vmatmul.mubr.bf16.gmra.mrb[84].mxu0 %v23802_v56 }
 0x29d   : > { %4909 = vmatprep.mubr.bf16.mxu0 %v23803_v16 }
 0x29e   : > { %4687 = vmatmul.mubr.bf16.gmra.mrb[84].mxu1 %v23802_v56  ;;  %v20478_v56 = vld [vmem:[#allocation2 + $0x28] sm:$0xff] }
 0x29f   : > { %4696 = vmatprep.mubr.bf16.mxu1 %v23803_v16  ;;  %v4163_v16 = vshrl.u32 %v3984_v17, 16 }
 0x2a4   : > { %4910 = vmatmul.mubr.bf16.gmra.mrb[88].mxu0 %v23804_v11 }
 0x2a5   : > { %4919 = vmatprep.mubr.bf16.mxu0 %v23805_v32 }
 0x2a6   : > { %4697 = vmatmul.mubr.bf16.gmra.mrb[88].mxu1 %v23804_v11  ;;  %v20481_v11 = vor.u32 %v4174_v61, %v20474_v59  ;;  %v20493_v61 = vld [vmem:[#allocation2 + $0x38] sm:$0xff] }
 0x2a7   : > { %4706 = vmatprep.mubr.bf16.mxu1 %v23805_v32  ;;  %v5224_v32 = vshrl.u32 %v20478_v56, 16  ;;  %v5243_v62 = vshll.u32 %v20493_v61, 16 }
 0x2a9   : > { %v5226_v36 = vrot.slane %v5224_v32, 7  ;;  %v23812_v32 = vld [vmem:[#allocation113_spill] sm:$0xff] }
 0x2ac   : > { %4920 = vmatmul.mubr.bf16.gmra.mrb[92].mxu0 %v23806_v28 }
 0x2ad   : > { %4929 = vmatprep.mubr.bf16.mxu0 %v23807_v42 }
 0x2ae   : > { %4707 = vmatmul.mubr.bf16.gmra.mrb[92].mxu1 %v23806_v28  ;;  %v5105_v28 = vld [vmem:[#allocation2 + $0x18] sm:$0x80] }
 0x2af   : > { %4716 = vmatprep.mubr.bf16.mxu1 %v23807_v42  ;;  %v20484_v42 = vrot.slane %v4163_v16, 7  ;;  %v5220_v21 = vshrl.u32 %v5105_v28, 16  ;;  %v5227_v16 = vshll.u32 %v20478_v56, 16 }
 0x2b1   : > { %v5229_v57 = vor.u32 %v5227_v16, %v5226_v36  ;;  %v20508_v16 = vld [vmem:[#allocation2 + $0x48] sm:$0xff] }
 0x2b4   : > { %4930 = vmatmul.mubr.bf16.gmra.mrb[96].mxu0 %v23808_v45 }
 0x2b5   : > { %4939 = vmatprep.mubr.bf16.mxu0 %v23809_v63 }
 0x2b6   : > { %4717 = vmatmul.mubr.bf16.gmra.mrb[96].mxu1 %v23808_v45  ;;  %v4166_v45 = vshll.u32 %v3984_v17, 16 }
 0x2b7   : > { %4726 = vmatprep.mubr.bf16.mxu1 %v23809_v63  ;;  %v4177_v63 = vsel %vm4051_vm7, %v23811_v20, %v20481_v11  ;;  %v5240_v20 = vshrl.u32 %v20493_v61, 16 }
 0x2b8   : > { %v20497_v17 = vor.u32 %v4166_v45, %v20484_v42  ;;  %v20505_v45 = vld [vmem:[#allocation2 + $0x30] sm:$0xff] }
 0x2b9   : > { %v5242_v50 = vrot.slane %v5240_v20, 7  ;;  %v5232_v22 = vshrl.u32 %v20505_v45, 16 }
 0x2ba   : > { %v4169_v28 = vsel %vm4051_vm7, %v23812_v32, %v20497_v17  ;;  %v5256_v32 = vshrl.u32 %v20508_v16, 16 }
 0x2bb   : > { %v5234_v20 = vrot.slane %v5232_v22, 7  ;;  %v20535_v22 = vld [vmem:[#allocation2 + $0x58] sm:$0xff] }
 0x2bc   : > { %4940 = vmatmul.mubr.bf16.gmra.mrb[100].mxu0 %v23810_v19  ;;  %v5272_v33 = vshrl.u32 %v20535_v22, 16 }
 0x2bd   : > { %4949 = vmatprep.mubr.bf16.mxu0 %v4177_v63 }
 0x2be   : > { %4727 = vmatmul.mubr.bf16.gmra.mrb[100].mxu1 %v23810_v19  ;;  %v5222_v19 = vrot.slane %v5220_v21, 7  ;;  %v5215_v21 = vshll.u32 %v20491_v39, 16 }
 0x2bf   : > { %4736 = vmatprep.mubr.bf16.mxu1 %v4177_v63  ;;  %v5214_v63 = vrot.slane %v5212_v29, 7  ;;  %v5245_v29 = vor.u32 %v5243_v62, %v5242_v50  ;;  %v15616_v62 = vld [vmem:[%s22572_s4 + $0x82c] ss:$16 sps:$4 sm:$0xff]  }
 0x2c0   : > { %v5230_v3 = vsel %vm4051_vm7, %v5222_v19, %v5229_v57  ;;  %v15605_v57 = vld [vmem:[%s22572_s4 + $0x800] ss:$16 sps:$4 sm:$0xff]  }
 0x2c1   : > { %v5217_v31 = vor.u32 %v5215_v21, %v5214_v63  ;;  %v20527_v21 = vrot.slane %v5256_v32, 7 }
 0x2c3   : > { %v5218_v19 = vsel %vm4051_vm7, %v5210_v41, %v5217_v31  ;;  %v5235_v31 = vshll.u32 %v20505_v45, 16  ;;  %v15611_v41 = vld [vmem:[%s22572_s4 + $0x820] ss:$16 sps:$4 sm:$0xff]  }
 0x2c4   : > { %4950 = vmatmul.mubr.bf16.gmra.mrb[104].mxu0 %v4169_v28 }
 0x2c5   : > { %6104 = vmatprep.mubr.bf16.mxu0 %v5230_v3  ;;  %v5237_v32 = vor.u32 %v5235_v31, %v5234_v20 }
 0x2c6   : > { %4737 = vmatmul.mubr.bf16.gmra.mrb[104].mxu1 %v4169_v28  ;;  %v5246_v28 = vsel %vm4051_vm7, %v5226_v36, %v5245_v29  ;;  %v15614_v36 = vld [vmem:[%s22572_s4 + $0x828] ss:$16 sps:$4 sm:$0xff]   ;;  %v15619_v29 = vld [vmem:[%s22572_s4 + $0x844] ss:$16 sps:$4 sm:$0xff]  }
 0x2c7   : > { %5891 = vmatprep.mubr.bf16.mxu1 %v5230_v3  ;;  %v15608_v3 = vld [vmem:[%s22572_s4 + $0x808] ss:$16 sps:$4 sm:$0xff]  }
 0x2cc   : > { %6105 = vmatmul.mubr.bf16.vlgmr.msra.gmra.mrb[36].mxu0 %v5218_v19 }
 0x2cd   : > { %6114 = vmatprep.mubr.bf16.mxu0 %v5246_v28  ;;  %7028 = vmatpush1.bf16.msra.mxu0 %v15608_v3 }
 0x2ce   : > { %5892 = vmatmul.mubr.bf16.vlgmr.msra.gmra.mrb[36].mxu1 %v5218_v19  ;;  %v5259_v19 = vshll.u32 %v20508_v16, 16  ;;  %7029 = vmatprep.subr.bf16.mxu0 %v15616_v62  ;;  %v5238_v62 = vsel %vm4051_vm7, %v5214_v63, %v5237_v32  ;;  %v5251_v63 = vshll.u32 %v20529_v60, 16  ;;  %v20571_v32 = vld [vmem:[#allocation2 + $0x68] sm:$0xff] }
 0x2cf   : > { %6815 = vmatpush1.bf16.msra.mxu1 %v15605_v57  ;;  %5901 = vmatprep.mubr.bf16.mxu1 %v5246_v28  ;;  %v5248_v57 = vshrl.u32 %v20529_v60, 16  ;;  %v15622_v28 = vld [vmem:[%s22572_s4 + $0x84c] ss:$16 sps:$4 sm:$0xff]  }
 0x2d0   : > { %6816 = vmatprep.subr.bf16.mxu1 %v15613_v24  ;;  %v5261_v3 = vor.u32 %v5259_v19, %v20527_v21  ;;  %v15620_v24 = vld [vmem:[%s22572_s4 + $0x848] ss:$16 sps:$4 sm:$0xff]   ;;  %v15625_v19 = vld [vmem:[%s22572_s4 + $0x864] ss:$16 sps:$4 sm:$0xff]  }
 0x2d1   : > { %7030 = vmatpush1.bf16.msra.mxu0 %v15614_v36  ;;  %v20557_v31 = vrot.slane %v5248_v57, 7  ;;  %v5275_v57 = vshll.u32 %v20535_v22, 16 }
 0x2d2   : > { %7031 = vmatprep.subr.bf16.mxu0 %v15622_v28  ;;  %v5262_v36 = vsel %vm4051_vm7, %v5242_v50, %v5261_v3  ;;  %v15623_v28 = vld [vmem:[%s22572_s4 + $0x860] ss:$16 sps:$4 sm:$0xff]   ;;  %v5264_v3 = vshrl.u32 %v20568_v9, 16 }
 0x2d3   : > { %6817 = vmatpush1.bf16.msra.mxu1 %v15611_v41  ;;  %v15628_v41 = vld [vmem:[%s22572_s4 + $0x86c] ss:$16 sps:$4 sm:$0xff]   ;;  %v5253_v50 = vor.u32 %v5251_v63, %v20557_v31  ;;  %v15629_v63 = vld [vmem:[%s22572_s4 + $0x880] ss:$16 sps:$4 sm:$0xff]  }
 0x2d4   : > { %6818 = vmatprep.subr.bf16.mxu1 %v15619_v29  ;;  %6115 = vmatmul.mubr.bf16.gmra.mrb[40].mxu0 %v5238_v62  ;;  %v20566_v29 = vrot.slane %v5272_v33, 7  ;;  %v15626_v33 = vld [vmem:[%s22572_s4 + $0x868] ss:$16 sps:$4 sm:$0xff]   ;;  %v20597_v4 = vrot.slane %v5264_v3, 7 }
 0x2d5   : > { %6124 = vmatprep.mubr.bf16.mxu0 %v5262_v36  ;;  %7032 = vmatpush1.bf16.msra.mxu0 %v15620_v24  ;;  %v20612_v3 = vld [vmem:[#allocation2 + $0x78] sm:$0xff] }
 0x2d6   : > { %5902 = vmatmul.mubr.bf16.gmra.mrb[40].mxu1 %v5238_v62  ;;  %7033 = vmatprep.subr.bf16.mxu0 %v15628_v41  ;;  %v15631_v62 = vld [vmem:[%s22572_s4 + $0x884] ss:$16 sps:$4 sm:$0xff]   ;;  %v5277_v24 = vor.u32 %v5275_v57, %v20566_v29  ;;  %v5254_v41 = vsel %vm4051_vm7, %v5234_v20, %v5253_v50  ;;  %v5267_v50 = vshll.u32 %v20568_v9, 16 }
 0x2d7   : > { %5911 = vmatprep.mubr.bf16.mxu1 %v5262_v36  ;;  %6819 = vmatpush1.bf16.msra.mxu1 %v15617_v23  ;;  %v15634_v23 = vld [vmem:[%s22572_s4 + $0x88c] ss:$16 sps:$4 sm:$0xff]   ;;  %v5288_v36 = vshrl.u32 %v20571_v32, 16  ;;  %v15637_v57 = vld [vmem:[%s22572_s4 + $0x8a4] ss:$16 sps:$4 sm:$0xff]  }
 0x2d8   : > { %6820 = vmatprep.subr.bf16.mxu1 %v15625_v19  ;;  %v15632_v19 = vld [vmem:[%s22572_s4 + $0x888] ss:$16 sps:$4 sm:$0xff]   ;;  %v20609_v20 = vld [vmem:[#allocation2 + $0x60] sm:$0xff] }
 0x2d9   : > { %7034 = vmatpush1.bf16.msra.mxu0 %v15626_v33  ;;  %v5278_v33 = vsel %vm4051_vm7, %v20527_v21, %v5277_v24  ;;  %v20607_v5 = vrot.slane %v5288_v36, 7  ;;  %v15638_v21 = vld [vmem:[%s22572_s4 + $0x8a8] ss:$16 sps:$4 sm:$0xff]   ;;  %v5269_v24 = vor.u32 %v5267_v50, %v20597_v4  ;;  %v5280_v36 = vshrl.u32 %v20609_v20, 16  ;;  %v15641_v50 = vld [vmem:[%s22572_s4 + $0x8c0] ss:$16 sps:$4 sm:$0xff]  }
 0x2da   : > { %7035 = vmatprep.subr.bf16.mxu0 %v15634_v23  ;;  %v15635_v23 = vld [vmem:[%s22572_s4 + $0x8a0] ss:$16 sps:$4 sm:$0xff]  }
 0x2db   : > { %6821 = vmatpush1.bf16.msra.mxu1 %v15623_v28  ;;  %v15640_v28 = vld [vmem:[%s22572_s4 + $0x8ac] ss:$16 sps:$4 sm:$0xff]   ;;  %v20639_v43 = vrot.slane %v5280_v36, 7 }
 0x2dc   : > { %6822 = vmatprep.subr.bf16.mxu1 %v15631_v62  ;;  %6125 = vmatmul.mubr.bf16.gmra.mrb[44].mxu0 %v5254_v41  ;;  %v5291_v62 = vshll.u32 %v20571_v32, 16  ;;  %v20654_v36 = vld [vmem:[#allocation2 + $0x88] sm:$0xff] }
 0x2dd   : > { %6134 = vmatprep.mubr.bf16.mxu0 %v5278_v33  ;;  %7036 = vmatpush1.bf16.msra.mxu0 %v15632_v19 }
 0x2de   : > { %5912 = vmatmul.mubr.bf16.gmra.mrb[44].mxu1 %v5254_v41  ;;  %7037 = vmatprep.subr.bf16.mxu0 %v15640_v28  ;;  %v15643_v41 = vld [vmem:[%s22572_s4 + $0x8c4] ss:$16 sps:$4 sm:$0xff]   ;;  %v5293_v19 = vor.u32 %v5291_v62, %v20607_v5  ;;  %v5270_v28 = vsel %vm4051_vm7, %v20557_v31, %v5269_v24  ;;  %v5283_v24 = vshll.u32 %v20609_v20, 16 }
 0x2df   : > { %5921 = vmatprep.mubr.bf16.mxu1 %v5278_v33  ;;  %6823 = vmatpush1.bf16.msra.mxu1 %v15629_v63  ;;  %v15646_v63 = vld [vmem:[%s22572_s4 + $0x8cc] ss:$16 sps:$4 sm:$0xff]   ;;  %v5304_v33 = vshrl.u32 %v20612_v3, 16  ;;  %v15649_v62 = vld [vmem:[%s22572_s4 + $0x8e4] ss:$16 sps:$4 sm:$0xff]  }
 0x2e0   : > { %6824 = vmatprep.subr.bf16.mxu1 %v15637_v57  ;;  %v15644_v57 = vld [vmem:[%s22572_s4 + $0x8c8] ss:$16 sps:$4 sm:$0xff]   ;;  %v20651_v31 = vld [vmem:[#allocation2 + $0x70] sm:$0xff] }
 0x2e1   : > { %7038 = vmatpush1.bf16.msra.mxu0 %v15638_v21  ;;  %v5294_v21 = vsel %vm4051_vm7, %v20566_v29, %v5293_v19  ;;  %v20649_v27 = vrot.slane %v5304_v33, 7  ;;  %v15650_v29 = vld [vmem:[%s22572_s4 + $0x8e8] ss:$16 sps:$4 sm:$0xff]   ;;  %v5285_v19 = vor.u32 %v5283_v24, %v20639_v43  ;;  %v5296_v33 = vshrl.u32 %v20651_v31, 16  ;;  %v15653_v24 = vld [vmem:[%s22572_s4 + $0x900] ss:$16 sps:$4 sm:$0xff]  }
 0x2e2   : > { %7039 = vmatprep.subr.bf16.mxu0 %v15646_v63  ;;  %v15647_v63 = vld [vmem:[%s22572_s4 + $0x8e0] ss:$16 sps:$4 sm:$0xff]  }
 0x2e3   : > { %6825 = vmatpush1.bf16.msra.mxu1 %v15635_v23  ;;  %v15652_v23 = vld [vmem:[%s22572_s4 + $0x8ec] ss:$16 sps:$4 sm:$0xff]   ;;  %v20681_v53 = vrot.slane %v5296_v33, 7 }
 0x2e4   : > { %6826 = vmatprep.subr.bf16.mxu1 %v15643_v41  ;;  %6135 = vmatmul.mubr.bf16.gmra.mrb[48].mxu0 %v5270_v28  ;;  %v5307_v41 = vshll.u32 %v20612_v3, 16  ;;  %v20696_v33 = vld [vmem:[#allocation2 + $0x98] sm:$0xff] }
 0x2e5   : > { %6144 = vmatprep.mubr.bf16.mxu0 %v5294_v21  ;;  %7040 = vmatpush1.bf16.msra.mxu0 %v15644_v57 }
 0x2e6   : > { %5922 = vmatmul.mubr.bf16.gmra.mrb[48].mxu1 %v5270_v28  ;;  %7041 = vmatprep.subr.bf16.mxu0 %v15652_v23  ;;  %v15655_v28 = vld [vmem:[%s22572_s4 + $0x904] ss:$16 sps:$4 sm:$0xff]   ;;  %v5309_v57 = vor.u32 %v5307_v41, %v20649_v27  ;;  %v5286_v23 = vsel %vm4051_vm7, %v20597_v4, %v5285_v19  ;;  %v5299_v19 = vshll.u32 %v20651_v31, 16 }
 0x2e7   : > { %5931 = vmatprep.mubr.bf16.mxu1 %v5294_v21  ;;  %6827 = vmatpush1.bf16.msra.mxu1 %v15641_v50  ;;  %v15658_v50 = vld [vmem:[%s22572_s4 + $0x90c] ss:$16 sps:$4 sm:$0xff]   ;;  %v5320_v21 = vshrl.u32 %v20654_v36, 16  ;;  %v15661_v41 = vld [vmem:[%s22572_s4 + $0x924] ss:$16 sps:$4 sm:$0xff]  }
 0x2e8   : > { %6828 = vmatprep.subr.bf16.mxu1 %v15649_v62  ;;  %v15656_v62 = vld [vmem:[%s22572_s4 + $0x908] ss:$16 sps:$4 sm:$0xff]   ;;  %v20693_v4 = vld [vmem:[#allocation2 + $0x80] sm:$0xff] }
 0x2e9   : > { %7042 = vmatpush1.bf16.msra.mxu0 %v15650_v29  ;;  %v5310_v29 = vsel %vm4051_vm7, %v20607_v5, %v5309_v57  ;;  %v20691_v48 = vrot.slane %v5320_v21, 7  ;;  %v15662_v5 = vld [vmem:[%s22572_s4 + $0x928] ss:$16 sps:$4 sm:$0xff]   ;;  %v5301_v57 = vor.u32 %v5299_v19, %v20681_v53  ;;  %v5312_v21 = vshrl.u32 %v20693_v4, 16  ;;  %v15665_v19 = vld [vmem:[%s22572_s4 + $0x940] ss:$16 sps:$4 sm:$0xff]  }
 0x2ea   : > { %7043 = vmatprep.subr.bf16.mxu0 %v15658_v50  ;;  %v15659_v50 = vld [vmem:[%s22572_s4 + $0x920] ss:$16 sps:$4 sm:$0xff]  }
 0x2eb   : > { %6829 = vmatpush1.bf16.msra.mxu1 %v15647_v63  ;;  %v15664_v63 = vld [vmem:[%s22572_s4 + $0x92c] ss:$16 sps:$4 sm:$0xff]   ;;  %v20723_v15 = vrot.slane %v5312_v21, 7 }
 0x2ec   : > { %6830 = vmatprep.subr.bf16.mxu1 %v15655_v28  ;;  %6145 = vmatmul.mubr.bf16.gmra.mrb[52].mxu0 %v5286_v23  ;;  %v5323_v28 = vshll.u32 %v20654_v36, 16  ;;  %v20738_v21 = vld [vmem:[#allocation2 + $0xa8] sm:$0xff] }
 0x2ed   : > { %6154 = vmatprep.mubr.bf16.mxu0 %v5310_v29  ;;  %7044 = vmatpush1.bf16.msra.mxu0 %v15656_v62 }
 0x2ee   : > { %5932 = vmatmul.mubr.bf16.gmra.mrb[52].mxu1 %v5286_v23  ;;  %7045 = vmatprep.subr.bf16.mxu0 %v15664_v63  ;;  %v15667_v23 = vld [vmem:[%s22572_s4 + $0x944] ss:$16 sps:$4 sm:$0xff]   ;;  %v5325_v62 = vor.u32 %v5323_v28, %v20691_v48  ;;  %v5302_v63 = vsel %vm4051_vm7, %v20639_v43, %v5301_v57  ;;  %v5315_v57 = vshll.u32 %v20693_v4, 16 }
 0x2ef   : > { %5941 = vmatprep.mubr.bf16.mxu1 %v5310_v29  ;;  %6831 = vmatpush1.bf16.msra.mxu1 %v15653_v24  ;;  %v15670_v24 = vld [vmem:[%s22572_s4 + $0x94c] ss:$16 sps:$4 sm:$0xff]   ;;  %v5336_v29 = vshrl.u32 %v20696_v33, 16  ;;  %v15673_v28 = vld [vmem:[%s22572_s4 + $0x964] ss:$16 sps:$4 sm:$0xff]  }
 0x2f0   : > { %6832 = vmatprep.subr.bf16.mxu1 %v15661_v41  ;;  %v15668_v41 = vld [vmem:[%s22572_s4 + $0x948] ss:$16 sps:$4 sm:$0xff]   ;;  %v20735_v43 = vld [vmem:[#allocation2 + $0x90] sm:$0xff] }
 0x2f1   : > { %7046 = vmatpush1.bf16.msra.mxu0 %v15662_v5  ;;  %v5326_v5 = vsel %vm4051_vm7, %v20649_v27, %v5325_v62  ;;  %v20733_v0 = vrot.slane %v5336_v29, 7  ;;  %v15674_v27 = vld [vmem:[%s22572_s4 + $0x968] ss:$16 sps:$4 sm:$0xff]   ;;  %v5317_v62 = vor.u32 %v5315_v57, %v20723_v15  ;;  %v5328_v29 = vshrl.u32 %v20735_v43, 16  ;;  %v15677_v57 = vld [vmem:[%s22572_s4 + $0x980] ss:$16 sps:$4 sm:$0xff]  }
 0x2f2   : > { %7047 = vmatprep.subr.bf16.mxu0 %v15670_v24  ;;  %v15671_v24 = vld [vmem:[%s22572_s4 + $0x960] ss:$16 sps:$4 sm:$0xff]  }
 0x2f3   : > { %6833 = vmatpush1.bf16.msra.mxu1 %v15659_v50  ;;  %v15676_v50 = vld [vmem:[%s22572_s4 + $0x96c] ss:$16 sps:$4 sm:$0xff]   ;;  %v5330_v40 = vrot.slane %v5328_v29, 7  ;;  %v15683_v29 = vld [vmem:[%s22572_s4 + $0x9a0] ss:$16 sps:$4 sm:$0xff]  }
 0x2f4   : > { %6834 = vmatprep.subr.bf16.mxu1 %v15667_v23  ;;  %6155 = vmatmul.mubr.bf16.gmra.mrb[56].mxu0 %v5302_v63  ;;  %v5339_v23 = vshll.u32 %v20696_v33, 16 }
 0x2f5   : > { %6164 = vmatprep.mubr.bf16.mxu0 %v5326_v5  ;;  %7048 = vmatpush1.bf16.msra.mxu0 %v15668_v41 }
 0x2f6   : > { %5942 = vmatmul.mubr.bf16.gmra.mrb[56].mxu1 %v5302_v63  ;;  %7049 = vmatprep.subr.bf16.mxu0 %v15676_v50  ;;  %v15679_v63 = vld [vmem:[%s22572_s4 + $0x984] ss:$16 sps:$4 sm:$0xff]   ;;  %v5341_v41 = vor.u32 %v5339_v23, %v20733_v0  ;;  %v5318_v50 = vsel %vm4051_vm7, %v20681_v53, %v5317_v62  ;;  %v5331_v53 = vshll.u32 %v20735_v43, 16  ;;  %v5355_v62 = vshll.u32 %v20738_v21, 16 }
 0x2f7   : > { %5951 = vmatprep.mubr.bf16.mxu1 %v5326_v5  ;;  %6835 = vmatpush1.bf16.msra.mxu1 %v15665_v19  ;;  %v15682_v19 = vld [vmem:[%s22572_s4 + $0x98c] ss:$16 sps:$4 sm:$0xff]   ;;  %v5352_v5 = vshrl.u32 %v20738_v21, 16  ;;  %v15685_v23 = vld [vmem:[%s22572_s4 + $0x9a4] ss:$16 sps:$4 sm:$0xff]  }
 0x2f8   : > { %6836 = vmatprep.subr.bf16.mxu1 %v15673_v28  ;;  %v15680_v28 = vld [vmem:[%s22572_s4 + $0x988] ss:$16 sps:$4 sm:$0xff]  }
 0x2f9   : > { %7050 = vmatpush1.bf16.msra.mxu0 %v15674_v27  ;;  %v5342_v27 = vsel %vm4051_vm7, %v20691_v48, %v5341_v41  ;;  %v5354_v34 = vrot.slane %v5352_v5, 7  ;;  %v5333_v48 = vor.u32 %v5331_v53, %v5330_v40  ;;  %v20784_v41 = vld [vmem:[#allocation2 + $0xb8] sm:$0xff]  ;;  %v15691_v5 = vld [vmem:[%s22572_s4 + $0x9c4] ss:$16 sps:$4 sm:$0xff]  }
 0x2fa   : > { %7051 = vmatprep.subr.bf16.mxu0 %v15682_v19  ;;  %v5344_v19 = vshrl.u32 %v20773_v58, 16 }
 0x2fb   : > { %6837 = vmatpush1.bf16.msra.mxu1 %v15671_v24  ;;  %v15688_v24 = vld [vmem:[%s22572_s4 + $0x9ac] ss:$16 sps:$4 sm:$0xff]  }
 0x2fc   : > { %6838 = vmatprep.subr.bf16.mxu1 %v15679_v63  ;;  %6165 = vmatmul.mubr.bf16.gmra.mrb[60].mxu0 %v5318_v50  ;;  %v15686_v63 = vld [vmem:[%s22572_s4 + $0x9a8] ss:$16 sps:$4 sm:$0xff]   ;;  %v5346_v53 = vrot.slane %v5344_v19, 7 }
 0x2fd   : > { %6174 = vmatprep.mubr.bf16.mxu0 %v5342_v27  ;;  %7052 = vmatpush1.bf16.msra.mxu0 %v15680_v28  ;;  %v5357_v28 = vor.u32 %v5355_v62, %v5354_v34  ;;  %v15697_v62 = vld [vmem:[%s22572_s4 + $0x9e4] ss:$16 sps:$4 sm:$0xff]   ;;  %v20812_v19 = vld [vmem:[#allocation2 + $0xc8] sm:$0xff] }
 0x2fe   : > { %5952 = vmatmul.mubr.bf16.gmra.mrb[60].mxu1 %v5318_v50  ;;  %7053 = vmatprep.subr.bf16.mxu0 %v15688_v24  ;;  %v5368_v50 = vshrl.u32 %v20784_v41, 16  ;;  %v5334_v24 = vsel %vm4051_vm7, %v20723_v15, %v5333_v48  ;;  %v5347_v15 = vshll.u32 %v20773_v58, 16  ;;  %v20810_v48 = vld [vmem:[#allocation2 + $0xb0] sm:$0xff] }
 0x2ff   : > { %5961 = vmatprep.mubr.bf16.mxu1 %v5342_v27  ;;  %6839 = vmatpush1.bf16.msra.mxu1 %v15677_v57  ;;  %v15694_v57 = vld [vmem:[%s22572_s4 + $0x9cc] ss:$16 sps:$4 sm:$0xff]   ;;  %v15689_v27 = vld [vmem:[%s22572_s4 + $0x9c0] ss:$16 sps:$4 sm:$0xff]  }
 0x300   : > { %6840 = vmatprep.subr.bf16.mxu1 %v15685_v23  ;;  %v15692_v23 = vld [vmem:[%s22572_s4 + $0x9c8] ss:$16 sps:$4 sm:$0xff]  }
 0x301   : > { %7054 = vmatpush1.bf16.msra.mxu0 %v15686_v63  ;;  %v5358_v63 = vsel %vm4051_vm7, %v20733_v0, %v5357_v28  ;;  %v15698_v0 = vld [vmem:[%s22572_s4 + $0x9e8] ss:$16 sps:$4 sm:$0xff]   ;;  %v5349_v28 = vor.u32 %v5347_v15, %v5346_v53  ;;  %v5387_v15 = vshll.u32 %v20812_v19, 16 }
 0x302   : > { %7055 = vmatprep.subr.bf16.mxu0 %v15694_v57  ;;  %v5371_v57 = vshll.u32 %v20784_v41, 16 }
 0x303   : > { %6841 = vmatpush1.bf16.msra.mxu1 %v15683_v29  ;;  %v15700_v29 = vld [vmem:[%s22572_s4 + $0x9ec] ss:$16 sps:$4 sm:$0xff]   ;;  %v5350_v38 = vsel %vm4051_vm7, %v5330_v40, %v5349_v28  ;;  %v5376_v40 = vshrl.u32 %v20832_v51, 16 }
 0x304   : > { %6842 = vmatprep.subr.bf16.mxu1 %v15691_v5  ;;  %6175 = vmatmul.mubr.bf16.gmra.mrb[64].mxu0 %v5334_v24  ;;  %v5370_v5 = vrot.slane %v5368_v50, 7  ;;  %v15706_v50 = vld [vmem:[%s22572_s4 + $0xa0c] ss:$16 sps:$4 sm:$0xff]  }
 0x305   : > { %6184 = vmatprep.mubr.bf16.mxu0 %v5358_v63  ;;  %7056 = vmatpush1.bf16.msra.mxu0 %v15692_v23  ;;  %v5360_v23 = vshrl.u32 %v20810_v48, 16 }
 0x306   : > { %5962 = vmatmul.mubr.bf16.gmra.mrb[64].mxu1 %v5334_v24  ;;  %v15695_v24 = vld [vmem:[%s22572_s4 + $0x9e0] ss:$16 sps:$4 sm:$0xff]   ;;  %7057 = vmatprep.subr.bf16.mxu0 %v15700_v29  ;;  %v5373_v47 = vor.u32 %v5371_v57, %v5370_v5  ;;  %v5363_v57 = vshll.u32 %v20810_v48, 16 }
 0x307   : > { %5971 = vmatprep.mubr.bf16.mxu1 %v5358_v63  ;;  %6843 = vmatpush1.bf16.msra.mxu1 %v15689_v27  ;;  %v15703_v63 = vld [vmem:[%s22572_s4 + $0xa04] ss:$16 sps:$4 sm:$0xff]   ;;  %v5384_v27 = vshrl.u32 %v20812_v19, 16  ;;  %v5362_v8 = vrot.slane %v5360_v23, 7 }
 0x308   : > { %6844 = vmatprep.subr.bf16.mxu1 %v15697_v62  ;;  %v5374_v62 = vsel %vm4051_vm7, %v5354_v34, %v5373_v47  ;;  %v5378_v34 = vrot.slane %v5376_v40, 7 }
 0x309   : > { %7058 = vmatpush1.bf16.msra.mxu0 %v15698_v0  ;;  %v5386_v29 = vrot.slane %v5384_v27, 7 }
 0x30a   : > { %8353 = vmatprep.subr.bf16.mxu0 %v15706_v50 }
 0x30b   : > { %6845 = vmatpush1.bf16.msra.mxu1 %v15695_v24  ;;  %v20835_v24 = vld [vmem:[#allocation2 + $0xd8] sm:$0xff]  ;;  %v5389_v0 = vor.u32 %v5387_v15, %v5386_v29  ;;  %v20845_v15 = vld [vmem:[#allocation2 + $0xe8] sm:$0xff] }
 0x30c   : > { %8140 = vmatprep.subr.bf16.mxu1 %v15703_v63  ;;  %6185 = vmatmul.mubr.bf16.gmra.mrb[68].mxu0 %v5350_v38  ;;  %v5400_v28 = vshrl.u32 %v20835_v24, 16  ;;  %v5379_v63 = vshll.u32 %v20832_v51, 16  ;;  %v5403_v23 = vshll.u32 %v20835_v24, 16  ;;  %v5416_v40 = vshrl.u32 %v20845_v15, 16 }
 0x30d   : > { %6194 = vmatprep.mubr.bf16.mxu0 %v5374_v62  ;;  %v5390_v50 = vsel %vm4051_vm7, %v5370_v5, %v5389_v0 }
 0x30e   : > { %5972 = vmatmul.mubr.bf16.gmra.mrb[68].mxu1 %v5350_v38  ;;  %v5365_v38 = vor.u32 %v5363_v57, %v5362_v8  ;;  %v5402_v27 = vrot.slane %v5400_v28, 7  ;;  %v5381_v25 = vor.u32 %v5379_v63, %v5378_v34  ;;  %v5418_v28 = vrot.slane %v5416_v40, 7  ;;  %v20855_v63 = vld [vmem:[#allocation2 + $0xf8] sm:$0xff] }
 0x30f   : > { %5981 = vmatprep.mubr.bf16.mxu1 %v5374_v62  ;;  %v20843_v62 = vld [vmem:[#allocation2 + $0xd0] sm:$0xff] }
 0x310   : > { %v5366_v47 = vsel %vm4051_vm7, %v5346_v53, %v5365_v38  ;;  %v5392_v57 = vshrl.u32 %v20843_v62, 16  ;;  %v5405_v53 = vor.u32 %v5403_v23, %v5402_v27  ;;  %v5382_v38 = vsel %vm4051_vm7, %v5362_v8, %v5381_v25 }
 0x311   : > { %v5395_v5 = vshll.u32 %v20843_v62, 16  ;;  %v5432_v8 = vshrl.u32 %v20855_v63, 16 }
 0x312   : > { %v5406_v0 = vsel %vm4051_vm7, %v5386_v29, %v5405_v53  ;;  %v5411_v29 = vshll.u32 %v20853_v1, 16 }
 0x313   : > { %v5434_v40 = vrot.slane %v5432_v8, 7 }
 0x314   : > { %6195 = vmatmul.mubr.bf16.gmra.mrb[72].mxu0 %v5366_v47 }
 0x315   : > { %6204 = vmatprep.mubr.bf16.mxu0 %v5390_v50 }
 0x316   : > { %5982 = vmatmul.mubr.bf16.gmra.mrb[72].mxu1 %v5366_v47  ;;  %v5394_v47 = vrot.slane %v5392_v57, 7 }
 0x317   : > { %5991 = vmatprep.mubr.bf16.mxu1 %v5390_v50  ;;  %v5419_v50 = vshll.u32 %v20845_v15, 16 }
 0x318   : > { %v5397_v23 = vor.u32 %v5395_v5, %v5394_v47  ;;  %v20865_v5 = vld [vmem:[#allocation2 + $0x108] sm:$0xff] }
 0x319   : > { %v5421_v25 = vor.u32 %v5419_v50, %v5418_v28 }
 0x31a   : > { %v5398_v57 = vsel %vm4051_vm7, %v5378_v34, %v5397_v23 }
 0x31b   : > { %v5422_v53 = vsel %vm4051_vm7, %v5402_v27, %v5421_v25  ;;  %v5427_v27 = vshll.u32 %v20863_v18, 16 }
 0x31c   : > { %6205 = vmatmul.mubr.bf16.gmra.mrb[76].mxu0 %v5382_v38 }
 0x31d   : > { %6214 = vmatprep.mubr.bf16.mxu0 %v5406_v0 }
 0x31e   : > { %5992 = vmatmul.mubr.bf16.gmra.mrb[76].mxu1 %v5382_v38  ;;  %v5410_v38 = vrot.slane %v5408_v37, 7  ;;  %v5448_v37 = vshrl.u32 %v20865_v5, 16 }
 0x31f   : > { %6001 = vmatprep.mubr.bf16.mxu1 %v5406_v0  ;;  %v5435_v0 = vshll.u32 %v20855_v63, 16 }
 0x320   : > { %v5413_v50 = vor.u32 %v5411_v29, %v5410_v38  ;;  %v5450_v8 = vrot.slane %v5448_v37, 7  ;;  %v20875_v29 = vld [vmem:[#allocation2 + $0x118] sm:$0xff] }
 0x321   : > { %v5437_v34 = vor.u32 %v5435_v0, %v5434_v40 }
 0x322   : > { %v5414_v23 = vsel %vm4051_vm7, %v5394_v47, %v5413_v50 }
 0x323   : > { %v5438_v25 = vsel %vm4051_vm7, %v5418_v28, %v5437_v34  ;;  %v5443_v28 = vshll.u32 %v20873_v7, 16 }
 0x324   : > { %6215 = vmatmul.mubr.bf16.gmra.mrb[80].mxu0 %v5398_v57 }
 0x325   : > { %6224 = vmatprep.mubr.bf16.mxu0 %v5422_v53 }
 0x326   : > { %6002 = vmatmul.mubr.bf16.gmra.mrb[80].mxu1 %v5398_v57  ;;  %v5426_v57 = vrot.slane %v5424_v6, 7  ;;  %v5464_v6 = vshrl.u32 %v20875_v29, 16 }
 0x327   : > { %6011 = vmatprep.mubr.bf16.mxu1 %v5422_v53  ;;  %v5451_v53 = vshll.u32 %v20865_v5, 16 }
 0x328   : > { %v5429_v0 = vor.u32 %v5427_v27, %v5426_v57  ;;  %v5466_v37 = vrot.slane %v5464_v6, 7 }
 0x329   : > { %v5453_v47 = vor.u32 %v5451_v53, %v5450_v8  ;;  %v5456_v53 = vshrl.u32 %v20883_v13, 16 }
 0x32a   : > { %v5430_v50 = vsel %vm4051_vm7, %v5410_v38, %v5429_v0  ;;  %v5459_v0 = vshll.u32 %v20883_v13, 16 }
 0x32b   : > { %v5454_v34 = vsel %vm4051_vm7, %v5434_v40, %v5453_v47  ;;  %v20889_v47 = vld [vmem:[#allocation2 + $0x138] sm:$0xff] }
 0x32c   : > { %6225 = vmatmul.mubr.bf16.gmra.mrb[84].mxu0 %v5414_v23 }
 0x32d   : > { %6234 = vmatprep.mubr.bf16.mxu0 %v5438_v25 }
 0x32e   : > { %6012 = vmatmul.mubr.bf16.gmra.mrb[84].mxu1 %v5414_v23  ;;  %v5442_v23 = vrot.slane %v5440_v12, 7  ;;  %v5458_v12 = vrot.slane %v5456_v53, 7 }
 0x32f   : > { %6021 = vmatprep.mubr.bf16.mxu1 %v5438_v25  ;;  %v5467_v25 = vshll.u32 %v20875_v29, 16 }
 0x330   : > { %v5445_v27 = vor.u32 %v5443_v28, %v5442_v23  ;;  %v5461_v6 = vor.u32 %v5459_v0, %v5458_v12  ;;  %v5478_v53 = vsel %vm4051_vm7, %v5458_v12, %v20497_v17  ;;  %v15701_v17 = vld [vmem:[%s22572_s4 + $0xa00] ss:$16 sps:$4 sm:$0xff]   ;;  %v15709_v12 = vld [vmem:[%s22572_s4 + $0xa24] ss:$16 sps:$4 sm:$0xff]  }
 0x331   : > { %v5469_v10 = vor.u32 %v5467_v25, %v5466_v37  ;;  %v5499_v25 = vshll.u32 %v20889_v47, 16 }
 0x332   : > { %v5446_v38 = vsel %vm4051_vm7, %v5426_v57, %v5445_v27  ;;  %v5462_v28 = vsel %vm4051_vm7, %v5442_v23, %v5461_v6  ;;  %v5486_v57 = vsel %vm4051_vm7, %v5466_v37, %v20481_v11  ;;  %v20896_v27 = vld [vmem:[#allocation2 + $0x130] sm:$0xff] }
 0x333   : > { %v5470_v40 = vsel %vm4051_vm7, %v5450_v8, %v5469_v10  ;;  %v5488_v10 = vshrl.u32 %v20896_v27, 16  ;;  %v5491_v23 = vshll.u32 %v20896_v27, 16  ;;  %v15715_v6 = vld [vmem:[%s22572_s4 + $0xa44] ss:$16 sps:$4 sm:$0xff]  }
 0x334   : > { %6235 = vmatmul.mubr.bf16.gmra.mrb[88].mxu0 %v5430_v50 }
 0x335   : > { %6244 = vmatprep.mubr.bf16.mxu0 %v5454_v34 }
 0x336   : > { %6022 = vmatmul.mubr.bf16.gmra.mrb[88].mxu1 %v5430_v50  ;;  %v5496_v50 = vshrl.u32 %v20889_v47, 16 }
 0x337   : > { %6031 = vmatprep.mubr.bf16.mxu1 %v5454_v34 }
 0x338   : > { %v5498_v34 = vrot.slane %v5496_v50, 7  ;;  %v15716_v50 = vld [vmem:[%s22572_s4 + $0xa48] ss:$16 sps:$4 sm:$0xff]  }
 0x33a   : > { %v5501_v8 = vor.u32 %v5499_v25, %v5498_v34  ;;  %v15719_v34 = vld [vmem:[%s22572_s4 + $0xa60] ss:$16 sps:$4 sm:$0xff]   ;;  %v15722_v25 = vld [vmem:[%s22572_s4 + $0xa68] ss:$16 sps:$4 sm:$0xff]  }
 0x33c   : > { %6245 = vmatmul.mubr.bf16.gmra.mrb[92].mxu0 %v5446_v38  ;;  %v5502_v11 = vsel %vm4051_vm7, %v20474_v59, %v5501_v8  ;;  %v15704_v59 = vld [vmem:[%s22572_s4 + $0xa08] ss:$16 sps:$4 sm:$0xff]  }
 0x33d   : > { %6254 = vmatprep.mubr.bf16.mxu0 %v5470_v40  ;;  %v15728_v8 = vld [vmem:[%s22572_s4 + $0xa88] ss:$16 sps:$4 sm:$0xff]  }
 0x33e   : > { %6032 = vmatmul.mubr.bf16.gmra.mrb[92].mxu1 %v5446_v38  ;;  %v5490_v38 = vrot.slane %v5488_v10, 7  ;;  %v15725_v10 = vld [vmem:[%s22572_s4 + $0xa80] ss:$16 sps:$4 sm:$0xff]  }
 0x33f   : > { %6041 = vmatprep.mubr.bf16.mxu1 %v5470_v40  ;;  %v15710_v40 = vld [vmem:[%s22572_s4 + $0xa28] ss:$16 sps:$4 sm:$0xff]  }
 0x340   : > { %v5493_v37 = vor.u32 %v5491_v23, %v5490_v38  ;;  %v15736_v38 = vld [vmem:[%s22572_s4 + $0xaac] ss:$16 sps:$4 sm:$0xff]   ;;  %v15731_v23 = vld [vmem:[%s22572_s4 + $0xaa0] ss:$16 sps:$4 sm:$0xff]  }
 0x342   : > { %v5494_v0 = vsel %vm4051_vm7, %v20484_v42, %v5493_v37  ;;  %v15712_v42 = vld [vmem:[%s22572_s4 + $0xa2c] ss:$16 sps:$4 sm:$0xff]   ;;  %v15737_v37 = vld [vmem:[%s22572_s4 + $0xac0] ss:$16 sps:$4 sm:$0xff]  }
 0x344   : > { %6255 = vmatmul.mubr.bf16.gmra.mrb[96].mxu0 %v5462_v28 }
 0x345   : > { %6264 = vmatprep.mubr.bf16.mxu0 %v5486_v57 }
 0x346   : > { %6042 = vmatmul.mubr.bf16.gmra.mrb[96].mxu1 %v5462_v28  ;;  %v15721_v28 = vld [vmem:[%s22572_s4 + $0xa64] ss:$16 sps:$4 sm:$0xff]  }
 0x347   : > { %6051 = vmatprep.mubr.bf16.mxu1 %v5486_v57  ;;  %v15724_v57 = vld [vmem:[%s22572_s4 + $0xa6c] ss:$16 sps:$4 sm:$0xff]  }
 0x34c   : > { %6265 = vmatmul.mubr.bf16.gmra.mrb[100].mxu0 %v5478_v53 }
 0x34d   : > { %6274 = vmatprep.mubr.bf16.mxu0 %v5502_v11 }
 0x34e   : > { %6052 = vmatmul.mubr.bf16.gmra.mrb[100].mxu1 %v5478_v53  ;;  %v15733_v53 = vld [vmem:[%s22572_s4 + $0xaa4] ss:$16 sps:$4 sm:$0xff]  }
 0x34f   : > { %6061 = vmatprep.mubr.bf16.mxu1 %v5502_v11  ;;  %v15734_v11 = vld [vmem:[%s22572_s4 + $0xaa8] ss:$16 sps:$4 sm:$0xff]  }
 0x354   : > { %6275 = vmatmul.mubr.bf16.gmra.mrb[104].mxu0 %v5494_v0 }
 0x355   : > { %7059 = vmatprep.mubr.bf16.mxu0 %v20478_v56 }
 0x356   : > { %6062 = vmatmul.mubr.bf16.gmra.mrb[104].mxu1 %v5494_v0  ;;  %v15740_v0 = vld [vmem:[%s22572_s4 + $0xac8] ss:$16 sps:$4 sm:$0xff]  }
 0x357   : > { %6846 = vmatprep.mubr.bf16.mxu1 %v20478_v56  ;;  %v15707_v56 = vld [vmem:[%s22572_s4 + $0xa20] ss:$16 sps:$4 sm:$0xff]  }
 0x35c   : > { %7060 = vmatmul.mubr.bf16.vlgmr.msra.gmra.mrb[36].mxu0 %v20491_v39 }
 0x35d   : > { %7069 = vmatprep.mubr.bf16.mxu0 %v20493_v61  ;;  %8354 = vmatpush1.bf16.msra.mxu0 %v15704_v59  ;;  %v15748_v59 = vld [vmem:[%s22572_s4 + $0xaec] ss:$16 sps:$4 sm:$0xff]  }
 0x35e   : > { %6847 = vmatmul.mubr.bf16.vlgmr.msra.gmra.mrb[36].mxu1 %v20491_v39  ;;  %8355 = vmatprep.subr.bf16.mxu0 %v15712_v42  ;;  %v15718_v39 = vld [vmem:[%s22572_s4 + $0xa4c] ss:$16 sps:$4 sm:$0xff]   ;;  %v15746_v42 = vld [vmem:[%s22572_s4 + $0xae8] ss:$16 sps:$4 sm:$0xff]  }
 0x35f   : > { %8141 = vmatpush1.bf16.msra.mxu1 %v15701_v17  ;;  %6856 = vmatprep.mubr.bf16.mxu1 %v20493_v61  ;;  %v15713_v61 = vld [vmem:[%s22572_s4 + $0xa40] ss:$16 sps:$4 sm:$0xff]   ;;  %v15745_v17 = vld [vmem:[%s22572_s4 + $0xae4] ss:$16 sps:$4 sm:$0xff]  }
 0x360   : > { %8142 = vmatprep.subr.bf16.mxu1 %v15709_v12  ;;  %v15743_v12 = vld [vmem:[%s22572_s4 + $0xae0] ss:$16 sps:$4 sm:$0xff]  }
 0x361   : > { %8356 = vmatpush1.bf16.msra.mxu0 %v15710_v40  ;;  %v15752_v40 = vld [vmem:[%s22572_s4 + $0xb08] ss:$16 sps:$4 sm:$0xff]  }
 0x362   : > { %8357 = vmatprep.subr.bf16.mxu0 %v15718_v39  ;;  %v15760_v39 = vld [vmem:[%s22572_s4 + $0xb2c] ss:$16 sps:$4 sm:$0xff]  }
 0x363   : > { %8143 = vmatpush1.bf16.msra.mxu1 %v15707_v56  ;;  %v15749_v56 = vld [vmem:[%s22572_s4 + $0xb00] ss:$16 sps:$4 sm:$0xff]  }
 0x364   : > { %8144 = vmatprep.subr.bf16.mxu1 %v15715_v6  ;;  %7070 = vmatmul.mubr.bf16.gmra.mrb[40].mxu0 %v20505_v45  ;;  %v15757_v6 = vld [vmem:[%s22572_s4 + $0xb24] ss:$16 sps:$4 sm:$0xff]  }
 0x365   : > { %7079 = vmatprep.mubr.bf16.mxu0 %v20508_v16  ;;  %8358 = vmatpush1.bf16.msra.mxu0 %v15716_v50  ;;  %v15758_v50 = vld [vmem:[%s22572_s4 + $0xb28] ss:$16 sps:$4 sm:$0xff]  }
 0x366   : > { %6857 = vmatmul.mubr.bf16.gmra.mrb[40].mxu1 %v20505_v45  ;;  %8359 = vmatprep.subr.bf16.mxu0 %v15724_v57  ;;  %v15727_v45 = vld [vmem:[%s22572_s4 + $0xa84] ss:$16 sps:$4 sm:$0xff]   ;;  %v15764_v57 = vld [vmem:[%s22572_s4 + $0xb48] ss:$16 sps:$4 sm:$0xff]  }
 0x367   : > { %6866 = vmatprep.mubr.bf16.mxu1 %v20508_v16  ;;  %8145 = vmatpush1.bf16.msra.mxu1 %v15713_v61  ;;  %v15730_v16 = vld [vmem:[%s22572_s4 + $0xa8c] ss:$16 sps:$4 sm:$0xff]   ;;  %v15755_v61 = vld [vmem:[%s22572_s4 + $0xb20] ss:$16 sps:$4 sm:$0xff]  }
 0x368   : > { %8146 = vmatprep.subr.bf16.mxu1 %v15721_v28  ;;  %v15761_v28 = vld [vmem:[%s22572_s4 + $0xb40] ss:$16 sps:$4 sm:$0xff]  }
 0x369   : > { %8360 = vmatpush1.bf16.msra.mxu0 %v15722_v25  ;;  %v15772_v25 = vld [vmem:[%s22572_s4 + $0xb6c] ss:$16 sps:$4 sm:$0xff]  }
 0x36a   : > { %8361 = vmatprep.subr.bf16.mxu0 %v15730_v16  ;;  %v15770_v16 = vld [vmem:[%s22572_s4 + $0xb68] ss:$16 sps:$4 sm:$0xff]  }
 0x36b   : > { %8147 = vmatpush1.bf16.msra.mxu1 %v15719_v34  ;;  %v15769_v34 = vld [vmem:[%s22572_s4 + $0xb64] ss:$16 sps:$4 sm:$0xff]  }
 0x36c   : > { %8148 = vmatprep.subr.bf16.mxu1 %v15727_v45  ;;  %7080 = vmatmul.mubr.bf16.gmra.mrb[44].mxu0 %v20529_v60  ;;  %v15767_v45 = vld [vmem:[%s22572_s4 + $0xb60] ss:$16 sps:$4 sm:$0xff]  }
 0x36d   : > { %7089 = vmatprep.mubr.bf16.mxu0 %v20535_v22  ;;  %8362 = vmatpush1.bf16.msra.mxu0 %v15728_v8  ;;  %v15776_v8 = vld [vmem:[%s22572_s4 + $0xb88] ss:$16 sps:$4 sm:$0xff]  }
 0x36e   : > { %6867 = vmatmul.mubr.bf16.gmra.mrb[44].mxu1 %v20529_v60  ;;  %8363 = vmatprep.subr.bf16.mxu0 %v15736_v38  ;;  %v15739_v60 = vld [vmem:[%s22572_s4 + $0xac4] ss:$16 sps:$4 sm:$0xff]   ;;  %v15784_v38 = vld [vmem:[%s22572_s4 + $0xbac] ss:$16 sps:$4 sm:$0xff]  }
 0x36f   : > { %6876 = vmatprep.mubr.bf16.mxu1 %v20535_v22  ;;  %8149 = vmatpush1.bf16.msra.mxu1 %v15725_v10  ;;  %v15742_v22 = vld [vmem:[%s22572_s4 + $0xacc] ss:$16 sps:$4 sm:$0xff]   ;;  %v15773_v10 = vld [vmem:[%s22572_s4 + $0xb80] ss:$16 sps:$4 sm:$0xff]  }
 0x370   : > { %8150 = vmatprep.subr.bf16.mxu1 %v15733_v53  ;;  %v15781_v53 = vld [vmem:[%s22572_s4 + $0xba4] ss:$16 sps:$4 sm:$0xff]  }
 0x371   : > { %8364 = vmatpush1.bf16.msra.mxu0 %v15734_v11  ;;  %v15782_v11 = vld [vmem:[%s22572_s4 + $0xba8] ss:$16 sps:$4 sm:$0xff]  }
 0x372   : > { %8365 = vmatprep.subr.bf16.mxu0 %v15742_v22  ;;  %v15788_v22 = vld [vmem:[%s22572_s4 + $0xbc8] ss:$16 sps:$4 sm:$0xff]  }
 0x373   : > { %8151 = vmatpush1.bf16.msra.mxu1 %v15731_v23  ;;  %v15779_v23 = vld [vmem:[%s22572_s4 + $0xba0] ss:$16 sps:$4 sm:$0xff]  }
 0x374   : > { %8152 = vmatprep.subr.bf16.mxu1 %v15739_v60  ;;  %7090 = vmatmul.mubr.bf16.gmra.mrb[48].mxu0 %v20568_v9  ;;  %v15785_v60 = vld [vmem:[%s22572_s4 + $0xbc0] ss:$16 sps:$4 sm:$0xff]  }
 0x375   : > { %7099 = vmatprep.mubr.bf16.mxu0 %v20571_v32  ;;  %8366 = vmatpush1.bf16.msra.mxu0 %v15740_v0  ;;  %v15796_v0 = vld [vmem:[%s22572_s4 + $0xbec] ss:$16 sps:$4 sm:$0xff]  }
 0x376   : > { %6877 = vmatmul.mubr.bf16.gmra.mrb[48].mxu1 %v20568_v9  ;;  %8367 = vmatprep.subr.bf16.mxu0 %v15748_v59  ;;  %v15751_v9 = vld [vmem:[%s22572_s4 + $0xb04] ss:$16 sps:$4 sm:$0xff]   ;;  %v15794_v59 = vld [vmem:[%s22572_s4 + $0xbe8] ss:$16 sps:$4 sm:$0xff]  }
 0x377   : > { %6886 = vmatprep.mubr.bf16.mxu1 %v20571_v32  ;;  %8153 = vmatpush1.bf16.msra.mxu1 %v15737_v37  ;;  %v15754_v32 = vld [vmem:[%s22572_s4 + $0xb0c] ss:$16 sps:$4 sm:$0xff]   ;;  %v15793_v37 = vld [vmem:[%s22572_s4 + $0xbe4] ss:$16 sps:$4 sm:$0xff]  }
 0x378   : > { %8154 = vmatprep.subr.bf16.mxu1 %v15745_v17  ;;  %v15791_v17 = vld [vmem:[%s22572_s4 + $0xbe0] ss:$16 sps:$4 sm:$0xff]  }
 0x379   : > { %8368 = vmatpush1.bf16.msra.mxu0 %v15746_v42 }
 0x37a   : > { %8369 = vmatprep.subr.bf16.mxu0 %v15754_v32  ;;  %v23815_v32 = vld [vmem:[#allocation82_spill] sm:$0xff] }
 0x37b   : > { %8155 = vmatpush1.bf16.msra.mxu1 %v15743_v12  ;;  %v23814_v12 = vld [vmem:[#allocation85_spill] sm:$0xff] }
 0x37c   : > { %8156 = vmatprep.subr.bf16.mxu1 %v15751_v9  ;;  %7100 = vmatmul.mubr.bf16.gmra.mrb[52].mxu0 %v20609_v20  ;;  %v15808_v9 = vld [vmem:[%s22572_s4 + $0xc2c] ss:$16 sps:$4 sm:$0xff]  }
 0x37d   : > { %7109 = vmatprep.mubr.bf16.mxu0 %v20612_v3  ;;  %8370 = vmatpush1.bf16.msra.mxu0 %v15752_v40  ;;  %v15806_v40 = vld [vmem:[%s22572_s4 + $0xc28] ss:$16 sps:$4 sm:$0xff]  }
 0x37e   : > { %6887 = vmatmul.mubr.bf16.gmra.mrb[52].mxu1 %v20609_v20  ;;  %8371 = vmatprep.subr.bf16.mxu0 %v15760_v39  ;;  %v15763_v20 = vld [vmem:[%s22572_s4 + $0xb44] ss:$16 sps:$4 sm:$0xff]   ;;  %v15814_v39 = vld [vmem:[%s22572_s4 + $0xc4c] ss:$16 sps:$4 sm:$0xff]  }
 0x37f   : > { %6896 = vmatprep.mubr.bf16.mxu1 %v20612_v3  ;;  %8157 = vmatpush1.bf16.msra.mxu1 %v15749_v56  ;;  %v15766_v3 = vld [vmem:[%s22572_s4 + $0xb4c] ss:$16 sps:$4 sm:$0xff]   ;;  %v15803_v56 = vld [vmem:[%s22572_s4 + $0xc20] ss:$16 sps:$4 sm:$0xff]  }
 0x380   : > { %8158 = vmatprep.subr.bf16.mxu1 %v15757_v6  ;;  %v15811_v6 = vld [vmem:[%s22572_s4 + $0xc44] ss:$16 sps:$4 sm:$0xff]  }
 0x381   : > { %8372 = vmatpush1.bf16.msra.mxu0 %v15758_v50 }
 0x382   : > { %8373 = vmatprep.subr.bf16.mxu0 %v15766_v3  ;;  %v23818_v3 = vld [vmem:[#allocation81_spill] sm:$0xff] }
 0x383   : > { %8159 = vmatpush1.bf16.msra.mxu1 %v15755_v61  ;;  %v23816_v61 = vld [vmem:[#allocation87_spill] sm:$0xff] }
 0x384   : > { %8160 = vmatprep.subr.bf16.mxu1 %v15763_v20  ;;  %7110 = vmatmul.mubr.bf16.gmra.mrb[56].mxu0 %v20651_v31  ;;  %v23817_v50 = vshll.u32 %v23816_v61, 16 }
 0x385   : > { %7119 = vmatprep.mubr.bf16.mxu0 %v20654_v36  ;;  %8374 = vmatpush1.bf16.msra.mxu0 %v15764_v57 }
 0x386   : > { %6897 = vmatmul.mubr.bf16.gmra.mrb[56].mxu1 %v20651_v31  ;;  %8375 = vmatprep.subr.bf16.mxu0 %v15772_v25  ;;  %v15775_v31 = vld [vmem:[%s22572_s4 + $0xb84] ss:$16 sps:$4 sm:$0xff]   ;;  %v7542_v20 = vrot.slane %v23817_v50, 1  ;;  %v15809_v25 = vld [vmem:[%s22572_s4 + $0xc40] ss:$16 sps:$4 sm:$0xff]   ;;  %v23833_v50 = vshll.u32 %v19714_v14, 16 }
 0x387   : > { %6906 = vmatprep.mubr.bf16.mxu1 %v20654_v36  ;;  %8161 = vmatpush1.bf16.msra.mxu1 %v15761_v28  ;;  %v15778_v36 = vld [vmem:[%s22572_s4 + $0xb8c] ss:$16 sps:$4 sm:$0xff]  }
 0x388   : > { %8162 = vmatprep.subr.bf16.mxu1 %v15769_v34  ;;  %v23819_v28 = vld [vmem:[#allocation80_spill] sm:$0xff] }
 0x389   : > { %8376 = vmatpush1.bf16.msra.mxu0 %v15770_v16  ;;  %v23820_v57 = vshrl.u32 %v23819_v28, 16  ;;  %v15817_v16 = vld [vmem:[%s22572_s4 + $0xc64] ss:$16 sps:$4 sm:$0xff]  }
 0x38a   : > { %8377 = vmatprep.subr.bf16.mxu0 %v15778_v36  ;;  %v23821_v36 = vld [vmem:[#allocation122_spill] sm:$0xff] }
 0x38b   : > { %8163 = vmatpush1.bf16.msra.mxu1 %v15767_v45  ;;  %v7538_v34 = vor.u32 %v23820_v57, %v23818_v3  ;;  %v15812_v45 = vld [vmem:[%s22572_s4 + $0xc48] ss:$16 sps:$4 sm:$0xff]   ;;  %v15847_v3 = vld [vmem:[%s22572_s4 + $0xd04] ss:$16 sps:$4 sm:$0xff]   ;;  %v15850_v57 = vld [vmem:[%s22572_s4 + $0xd0c] ss:$16 sps:$4 sm:$0xff]  }
 0x38c   : > { %8164 = vmatprep.subr.bf16.mxu1 %v15775_v31  ;;  %7120 = vmatmul.mubr.bf16.gmra.mrb[60].mxu0 %v20693_v4  ;;  %v15820_v31 = vld [vmem:[%s22572_s4 + $0xc6c] ss:$16 sps:$4 sm:$0xff]  }
 0x38d   : > { %7129 = vmatprep.mubr.bf16.mxu0 %v20696_v33  ;;  %8378 = vmatpush1.bf16.msra.mxu0 %v15776_v8  ;;  %v15815_v8 = vld [vmem:[%s22572_s4 + $0xc60] ss:$16 sps:$4 sm:$0xff]  }
 0x38e   : > { %6907 = vmatmul.mubr.bf16.gmra.mrb[60].mxu1 %v20693_v4  ;;  %8379 = vmatprep.subr.bf16.mxu0 %v15784_v38  ;;  %v15787_v4 = vld [vmem:[%s22572_s4 + $0xbc4] ss:$16 sps:$4 sm:$0xff]   ;;  %v23822_v38 = vld [vmem:[#allocation88_spill] sm:$0xff] }
 0x38f   : > { %6916 = vmatprep.mubr.bf16.mxu1 %v20696_v33  ;;  %8165 = vmatpush1.bf16.msra.mxu1 %v15773_v10  ;;  %v15790_v33 = vld [vmem:[%s22572_s4 + $0xbcc] ss:$16 sps:$4 sm:$0xff]   ;;  %v21216_v10 = vsel %vm7487_vm6, %v7538_v34, %v7542_v20  ;;  %v23834_v34 = vshll.u32 %v19716_v26, 16 }
 0x390   : > { %8166 = vmatprep.subr.bf16.mxu1 %v15781_v53  ;;  %v15818_v53 = vld [vmem:[%s22572_s4 + $0xc68] ss:$16 sps:$4 sm:$0xff]  }
 0x391   : > { %8380 = vmatpush1.bf16.msra.mxu0 %v15782_v11 }
 0x392   : > { %8381 = vmatprep.subr.bf16.mxu0 %v15790_v33  ;;  %v15826_v33 = vld [vmem:[%s22572_s4 + $0xc8c] ss:$16 sps:$4 sm:$0xff]  }
 0x393   : > { %8167 = vmatpush1.bf16.msra.mxu1 %v15779_v23  ;;  %v23823_v23 = vshll.u32 %v23822_v38, 16 }
 0x394   : > { %8168 = vmatprep.subr.bf16.mxu1 %v15787_v4  ;;  %7130 = vmatmul.mubr.bf16.gmra.mrb[64].mxu0 %v20735_v43  ;;  %v15823_v4 = vld [vmem:[%s22572_s4 + $0xc84] ss:$16 sps:$4 sm:$0xff]  }
 0x395   : > { %7139 = vmatprep.mubr.bf16.mxu0 %v20738_v21  ;;  %8382 = vmatpush1.bf16.msra.mxu0 %v15788_v22  ;;  %v7534_v11 = vrot.slane %v23823_v23, 1 }
 0x396   : > { %6917 = vmatmul.mubr.bf16.gmra.mrb[64].mxu1 %v20735_v43  ;;  %8383 = vmatprep.subr.bf16.mxu0 %v15796_v0  ;;  %v15799_v43 = vld [vmem:[%s22572_s4 + $0xc04] ss:$16 sps:$4 sm:$0xff]  }
 0x397   : > { %6926 = vmatprep.mubr.bf16.mxu1 %v20738_v21  ;;  %8169 = vmatpush1.bf16.msra.mxu1 %v15785_v60  ;;  %v15802_v21 = vld [vmem:[%s22572_s4 + $0xc0c] ss:$16 sps:$4 sm:$0xff]   ;;  %v23824_v60 = vshll.u32 %v19689_v54, 16  ;;  %v23826_v0 = vld [vmem:[#allocation83_spill] sm:$0xff] }
 0x398   : > { %8170 = vmatprep.subr.bf16.mxu1 %v15793_v37  ;;  %v23825_v37 = vld [vmem:[#allocation84_spill] sm:$0xff] }
 0x399   : > { %8384 = vmatpush1.bf16.msra.mxu0 %v15794_v59  ;;  %v7558_v22 = vrot.slane %v23824_v60, 1  ;;  %v23837_v60 = vshll.u32 %v19723_v2, 16 }
 0x39a   : > { %9678 = vmatprep.subr.bf16.mxu0 %v15802_v21 }
 0x39b   : > { %8171 = vmatpush1.bf16.msra.mxu1 %v15791_v17  ;;  %v23827_v17 = vshrl.u32 %v23826_v0, 16 }
 0x39c   : > { %9465 = vmatprep.subr.bf16.mxu1 %v15799_v43  ;;  %7140 = vmatmul.mubr.bf16.gmra.mrb[68].mxu0 %v20773_v58  ;;  %v23828_v43 = vshrl.u32 %v23816_v61, 16  ;;  %v15842_v61 = vld [vmem:[%s22572_s4 + $0xce8] ss:$16 sps:$4 sm:$0xff]  }
 0x39d   : > { %7149 = vmatprep.mubr.bf16.mxu0 %v20784_v41  ;;  %v7530_v59 = vor.u32 %v23827_v17, %v23825_v37  ;;  %v15859_v37 = vld [vmem:[%s22572_s4 + $0xd44] ss:$16 sps:$4 sm:$0xff]   ;;  %v15862_v17 = vld [vmem:[%s22572_s4 + $0xd4c] ss:$16 sps:$4 sm:$0xff]  }
 0x39e   : > { %6927 = vmatmul.mubr.bf16.gmra.mrb[68].mxu1 %v20773_v58  ;;  %v16108_v58 = vld [vmem:[#allocation2 + $0x120] sm:$0xff]  ;;  %v7554_v21 = vor.u32 %v23828_v43, %v7542_v20  ;;  %v7566_v20 = vrot.slane %v23833_v50, 1 }
 0x39f   : > { %6936 = vmatprep.mubr.bf16.mxu1 %v20784_v41  ;;  %v7384_v41 = vld [vmem:[#allocation2 + $0x20] sm:$0xff] }
 0x3a4   : > { %7150 = vmatmul.mubr.bf16.gmra.mrb[72].mxu0 %v20810_v48 }
 0x3a5   : > { %7159 = vmatprep.mubr.bf16.mxu0 %v20812_v19 }
 0x3a6   : > { %6937 = vmatmul.mubr.bf16.gmra.mrb[72].mxu1 %v20810_v48 }
 0x3a7   : > { %6946 = vmatprep.mubr.bf16.mxu1 %v20812_v19  ;;  %v7491_v19 = vshll.u32 %v7384_v41, 16 }
 0x3ac   : > { %7160 = vmatmul.mubr.bf16.gmra.mrb[76].mxu0 %v20832_v51 }
 0x3ad   : > { %7169 = vmatprep.mubr.bf16.mxu0 %v20835_v24 }
 0x3ae   : > { %6947 = vmatmul.mubr.bf16.gmra.mrb[76].mxu1 %v20832_v51  ;;  %v16107_v51 = vld [vmem:[#allocation2 + $0x128] sm:$0xff] }
 0x3af   : > { %6956 = vmatprep.mubr.bf16.mxu1 %v20835_v24 }
 0x3b4   : > { %7170 = vmatmul.mubr.bf16.gmra.mrb[80].mxu0 %v20843_v62 }
 0x3b5   : > { %7179 = vmatprep.mubr.bf16.mxu0 %v20845_v15 }
 0x3b6   : > { %6957 = vmatmul.mubr.bf16.gmra.mrb[80].mxu1 %v20843_v62 }
 0x3b7   : > { %6966 = vmatprep.mubr.bf16.mxu1 %v20845_v15  ;;  %v7493_v15 = vrot.slane %v7491_v19, 1  ;;  %v15830_v19 = vld [vmem:[%s22572_s4 + $0xca8] ss:$16 sps:$4 sm:$0xff]  }
 0x3bc   : > { %7180 = vmatmul.mubr.bf16.gmra.mrb[84].mxu0 %v20853_v1 }
 0x3bd   : > { %7189 = vmatprep.mubr.bf16.mxu0 %v20855_v63 }
 0x3be   : > { %6967 = vmatmul.mubr.bf16.gmra.mrb[84].mxu1 %v20853_v1 }
 0x3bf   : > { %6976 = vmatprep.mubr.bf16.mxu1 %v20855_v63  ;;  %v7489_v63 = vshrl.u32 %v7384_v41, 16  ;;  %v21259_v41 = vsel %vm7487_vm6, %v7554_v21, %v7558_v22  ;;  %v23839_v21 = vshrl.u32 %v19714_v14, 16  ;;  %v15865_v14 = vld [vmem:[%s22572_s4 + $0xd64] ss:$16 sps:$4 sm:$0xff]  }
 0x3c4   : > { %7190 = vmatmul.mubr.bf16.gmra.mrb[88].mxu0 %v20863_v18 }
 0x3c5   : > { %7199 = vmatprep.mubr.bf16.mxu0 %v20865_v5 }
 0x3c6   : > { %6977 = vmatmul.mubr.bf16.gmra.mrb[88].mxu1 %v20863_v18  ;;  %v7385_v18 = vld [vmem:[#allocation2 + $0x28] sm:$0xff] }
 0x3c7   : > { %6986 = vmatprep.mubr.bf16.mxu1 %v20865_v5  ;;  %v7503_v1 = vshll.u32 %v7385_v18, 16  ;;  %v7501_v48 = vshrl.u32 %v7385_v18, 16  ;;  %v15797_v5 = vld [vmem:[%s22572_s4 + $0xc00] ss:$16 sps:$4 sm:$0xff]   ;;  %v15824_v18 = vld [vmem:[%s22572_s4 + $0xc88] ss:$16 sps:$4 sm:$0xff]  }
 0x3cc   : > { %7200 = vmatmul.mubr.bf16.gmra.mrb[92].mxu0 %v20873_v7 }
 0x3cd   : > { %7209 = vmatprep.mubr.bf16.mxu0 %v20875_v29 }
 0x3ce   : > { %6987 = vmatmul.mubr.bf16.gmra.mrb[92].mxu1 %v20873_v7  ;;  %v7505_v7 = vrot.slane %v7503_v1, 1  ;;  %v21248_v1 = vsel %vm7487_vm6, %v7530_v59, %v7534_v11  ;;  %v23838_v59 = vshll.u32 %v19725_v44, 16 }
 0x3cf   : > { %6996 = vmatprep.mubr.bf16.mxu1 %v20875_v29  ;;  %v7494_v29 = vor.u32 %v7493_v15, %v7489_v63  ;;  %v15838_v15 = vld [vmem:[%s22572_s4 + $0xccc] ss:$16 sps:$4 sm:$0xff]   ;;  %v23830_v63 = vshll.u32 %v19704_v30, 16 }
 0x3d0   : > { %v7506_v24 = vor.u32 %v7505_v7, %v7501_v48  ;;  %v15832_v7 = vld [vmem:[%s22572_s4 + $0xcac] ss:$16 sps:$4 sm:$0xff]   ;;  %v15827_v48 = vld [vmem:[%s22572_s4 + $0xca0] ss:$16 sps:$4 sm:$0xff]   ;;  %v7606_v43 = vrot.slane %v23838_v59, 1 }
 0x3d1   : > { %v7499_v42 = vsel %vm7487_vm6, %v7494_v29, %v23814_v12  ;;  %v23831_v29 = vshrl.u32 %v23822_v38, 16  ;;  %v23832_v12 = vshrl.u32 %v19689_v54, 16  ;;  %v15841_v54 = vld [vmem:[%s22572_s4 + $0xce4] ss:$16 sps:$4 sm:$0xff]   ;;  %v15848_v38 = vld [vmem:[%s22572_s4 + $0xd08] ss:$16 sps:$4 sm:$0xff]  }
 0x3d4   : > { %7210 = vmatmul.mubr.bf16.gmra.mrb[96].mxu0 %v20883_v13 }
 0x3d5   : > { %7219 = vmatprep.mubr.bf16.mxu0 %v16107_v51 }
 0x3d6   : > { %6997 = vmatmul.mubr.bf16.gmra.mrb[96].mxu1 %v20883_v13  ;;  %v23813_v13 = vld [vmem:[#allocation79_spill] sm:$0xff] }
 0x3d7   : > { %7006 = vmatprep.mubr.bf16.mxu1 %v16107_v51  ;;  %v7511_v62 = vsel %vm7487_vm6, %v7506_v24, %v23813_v13  ;;  %v15821_v51 = vld [vmem:[%s22572_s4 + $0xc80] ss:$16 sps:$4 sm:$0xff]   ;;  %v23829_v24 = vshll.u32 %v19702_v52, 16 }
 0x3d9   : > { %v7550_v13 = vrot.slane %v23829_v24, 1 }
 0x3dc   : > { %7220 = vmatmul.mubr.bf16.gmra.mrb[100].mxu0 %v16108_v58 }
 0x3dd   : > { %7229 = vmatprep.mubr.bf16.mxu0 %v20889_v47 }
 0x3de   : > { %7007 = vmatmul.mubr.bf16.gmra.mrb[100].mxu1 %v16108_v58  ;;  %v15829_v58 = vld [vmem:[%s22572_s4 + $0xca4] ss:$16 sps:$4 sm:$0xff]  }
 0x3df   : > { %7016 = vmatprep.mubr.bf16.mxu1 %v20889_v47  ;;  %v15800_v47 = vld [vmem:[%s22572_s4 + $0xc08] ss:$16 sps:$4 sm:$0xff]  }
 0x3e4   : > { %7230 = vmatmul.mubr.bf16.gmra.mrb[104].mxu0 %v20896_v27 }
 0x3e5   : > { %8385 = vmatprep.mubr.bf16.mxu0 %v7511_v62 }
 0x3e6   : > { %7017 = vmatmul.mubr.bf16.gmra.mrb[104].mxu1 %v20896_v27  ;;  %v15805_v27 = vld [vmem:[%s22572_s4 + $0xc24] ss:$16 sps:$4 sm:$0xff]  }
 0x3e7   : > { %8172 = vmatprep.mubr.bf16.mxu1 %v7511_v62  ;;  %v15835_v62 = vld [vmem:[%s22572_s4 + $0xcc4] ss:$16 sps:$4 sm:$0xff]  }
 0x3ec   : > { %8386 = vmatmul.mubr.bf16.vlgmr.msra.gmra.mrb[36].mxu0 %v7499_v42 }
 0x3ed   : > { %8395 = vmatprep.mubr.bf16.mxu0 %v23815_v32  ;;  %9679 = vmatpush1.bf16.msra.mxu0 %v15800_v47  ;;  %v7546_v47 = vor.u32 %v23831_v29, %v7534_v11  ;;  %v15874_v29 = vld [vmem:[%s22572_s4 + $0xd8c] ss:$16 sps:$4 sm:$0xff]  }
 0x3ee   : > { %8173 = vmatmul.mubr.bf16.vlgmr.msra.gmra.mrb[36].mxu1 %v7499_v42  ;;  %9680 = vmatprep.subr.bf16.mxu0 %v15808_v9  ;;  %v7570_v42 = vor.u32 %v23832_v12, %v7558_v22  ;;  %v15836_v9 = vld [vmem:[%s22572_s4 + $0xcc8] ss:$16 sps:$4 sm:$0xff]   ;;  %v7582_v22 = vrot.slane %v23837_v60, 1 }
 0x3ef   : > { %9466 = vmatpush1.bf16.msra.mxu1 %v15797_v5  ;;  %8182 = vmatprep.mubr.bf16.mxu1 %v23815_v32  ;;  %v7574_v5 = vrot.slane %v23830_v63, 1 }
 0x3f0   : > { %9467 = vmatprep.subr.bf16.mxu1 %v15805_v27  ;;  %v15833_v27 = vld [vmem:[%s22572_s4 + $0xcc0] ss:$16 sps:$4 sm:$0xff]  }
 0x3f1   : > { %9681 = vmatpush1.bf16.msra.mxu0 %v15806_v40  ;;  %v15844_v40 = vld [vmem:[%s22572_s4 + $0xcec] ss:$16 sps:$4 sm:$0xff]  }
 0x3f2   : > { %9682 = vmatprep.subr.bf16.mxu0 %v15814_v39  ;;  %v15839_v39 = vld [vmem:[%s22572_s4 + $0xce0] ss:$16 sps:$4 sm:$0xff]  }
 0x3f3   : > { %9468 = vmatpush1.bf16.msra.mxu1 %v15803_v56  ;;  %v21290_v56 = vsel %vm7487_vm6, %v7546_v47, %v7550_v13  ;;  %v23842_v47 = vshll.u32 %v19733_v46, 16 }
 0x3f4   : > { %9469 = vmatprep.subr.bf16.mxu1 %v15811_v6  ;;  %8396 = vmatmul.mubr.bf16.gmra.mrb[40].mxu0 %v23821_v36  ;;  %v21301_v6 = vsel %vm7487_vm6, %v7570_v42, %v7574_v5  ;;  %v23843_v42 = vshrl.u32 %v19723_v2, 16  ;;  %v15877_v2 = vld [vmem:[%s22572_s4 + $0xda4] ss:$16 sps:$4 sm:$0xff]  }
 0x3f5   : > { %8405 = vmatprep.mubr.bf16.mxu0 %v21216_v10  ;;  %9683 = vmatpush1.bf16.msra.mxu0 %v15812_v45  ;;  %v23835_v45 = vshrl.u32 %v19702_v52, 16  ;;  %v15853_v52 = vld [vmem:[%s22572_s4 + $0xd24] ss:$16 sps:$4 sm:$0xff]   ;;  %v7622_v12 = vrot.slane %v23842_v47, 1 }
 0x3f6   : > { %8183 = vmatmul.mubr.bf16.gmra.mrb[40].mxu1 %v23821_v36  ;;  %9684 = vmatprep.subr.bf16.mxu0 %v15820_v31  ;;  %v23836_v31 = vshrl.u32 %v19704_v30, 16  ;;  %v15856_v30 = vld [vmem:[%s22572_s4 + $0xd2c] ss:$16 sps:$4 sm:$0xff]  }
 0x3f7   : > { %8192 = vmatprep.mubr.bf16.mxu1 %v21216_v10  ;;  %9470 = vmatpush1.bf16.msra.mxu1 %v15809_v25  ;;  %v7590_v25 = vrot.slane %v23834_v34, 1 }
 0x3f8   : > { %9471 = vmatprep.subr.bf16.mxu1 %v15817_v16  ;;  %v7562_v16 = vor.u32 %v23835_v45, %v7550_v13  ;;  %v15863_v13 = vld [vmem:[%s22572_s4 + $0xd60] ss:$16 sps:$4 sm:$0xff]   ;;  %v15886_v45 = vld [vmem:[%s22572_s4 + $0xdcc] ss:$16 sps:$4 sm:$0xff]  }
 0x3f9   : > { %9685 = vmatpush1.bf16.msra.mxu0 %v15818_v53  ;;  %v15845_v53 = vld [vmem:[%s22572_s4 + $0xd00] ss:$16 sps:$4 sm:$0xff]  }
 0x3fa   : > { %9686 = vmatprep.subr.bf16.mxu0 %v15826_v33  ;;  %v21332_v23 = vsel %vm7487_vm6, %v7562_v16, %v7566_v20  ;;  %v15854_v33 = vld [vmem:[%s22572_s4 + $0xd28] ss:$16 sps:$4 sm:$0xff]   ;;  %v23846_v16 = vshrl.u32 %v19733_v46, 16  ;;  %v15889_v46 = vld [vmem:[%s22572_s4 + $0xde4] ss:$16 sps:$4 sm:$0xff]  }
 0x3fb   : > { %9472 = vmatpush1.bf16.msra.mxu1 %v15815_v8  ;;  %v7586_v8 = vor.u32 %v23836_v31, %v7574_v5  ;;  %v15871_v5 = vld [vmem:[%s22572_s4 + $0xd84] ss:$16 sps:$4 sm:$0xff]  }
 0x3fc   : > { %9473 = vmatprep.subr.bf16.mxu1 %v15823_v4  ;;  %8406 = vmatmul.mubr.bf16.gmra.mrb[44].mxu0 %v21248_v1  ;;  %v15851_v4 = vld [vmem:[%s22572_s4 + $0xd20] ss:$16 sps:$4 sm:$0xff]   ;;  %v7634_v31 = vor.u32 %v23846_v16, %v7622_v12 }
 0x3fd   : > { %8415 = vmatprep.mubr.bf16.mxu0 %v21259_v41  ;;  %9687 = vmatpush1.bf16.msra.mxu0 %v15824_v18  ;;  %v21343_v11 = vsel %vm7487_vm6, %v7586_v8, %v7590_v25  ;;  %v23840_v18 = vshrl.u32 %v19716_v26, 16  ;;  %v15868_v26 = vld [vmem:[%s22572_s4 + $0xd6c] ss:$16 sps:$4 sm:$0xff]   ;;  %v23847_v8 = vshrl.u32 %v19731_v35, 16 }
 0x3fe   : > { %8193 = vmatmul.mubr.bf16.gmra.mrb[44].mxu1 %v21248_v1  ;;  %9688 = vmatprep.subr.bf16.mxu0 %v15832_v7  ;;  %v15857_v7 = vld [vmem:[%s22572_s4 + $0xd40] ss:$16 sps:$4 sm:$0xff]  }
 0x3ff   : > { %8202 = vmatprep.mubr.bf16.mxu1 %v21259_v41  ;;  %9474 = vmatpush1.bf16.msra.mxu1 %v15821_v51  ;;  %v7578_v51 = vor.u32 %v23839_v21, %v7566_v20  ;;  %v15875_v20 = vld [vmem:[%s22572_s4 + $0xda0] ss:$16 sps:$4 sm:$0xff]   ;;  %v15898_v21 = vld [vmem:[%s22572_s4 + $0xe0c] ss:$16 sps:$4 sm:$0xff]  }
 0x400   : > { %9475 = vmatprep.subr.bf16.mxu1 %v15829_v58  ;;  %v7602_v58 = vor.u32 %v23840_v18, %v7590_v25  ;;  %v15883_v25 = vld [vmem:[%s22572_s4 + $0xdc4] ss:$16 sps:$4 sm:$0xff]  }
 0x401   : > { %9689 = vmatpush1.bf16.msra.mxu0 %v15830_v19  ;;  %v21374_v19 = vsel %vm7487_vm6, %v7578_v51, %v7582_v22  ;;  %v23850_v51 = vshrl.u32 %v19741_v55, 16 }
 0x402   : > { %9690 = vmatprep.subr.bf16.mxu0 %v15838_v15  ;;  %v21385_v24 = vsel %vm7487_vm6, %v7602_v58, %v7606_v43  ;;  %v23841_v15 = vshll.u32 %v19731_v35, 16  ;;  %v15892_v35 = vld [vmem:[%s22572_s4 + $0xdec] ss:$16 sps:$4 sm:$0xff]   ;;  %v23851_v58 = vld [vmem:[#allocation89_spill] sm:$0xff] }
 0x403   : > { %9476 = vmatpush1.bf16.msra.mxu1 %v15827_v48  ;;  %v15860_v48 = vld [vmem:[%s22572_s4 + $0xd48] ss:$16 sps:$4 sm:$0xff]   ;;  %v23858_v47 = vshrl.u32 %v23851_v58, 16 }
 0x404   : > { %9477 = vmatprep.subr.bf16.mxu1 %v15835_v62  ;;  %8416 = vmatmul.mubr.bf16.gmra.mrb[48].mxu0 %v21290_v56  ;;  %v15866_v62 = vld [vmem:[%s22572_s4 + $0xd68] ss:$16 sps:$4 sm:$0xff]   ;;  %v7598_v63 = vrot.slane %v23841_v15, 1 }
 0x405   : > { %8425 = vmatprep.mubr.bf16.mxu0 %v21301_v6  ;;  %9691 = vmatpush1.bf16.msra.mxu0 %v15836_v9  ;;  %v23844_v9 = vshrl.u32 %v19725_v44, 16  ;;  %v15880_v44 = vld [vmem:[%s22572_s4 + $0xdac] ss:$16 sps:$4 sm:$0xff]  }
 0x406   : > { %8203 = vmatmul.mubr.bf16.gmra.mrb[48].mxu1 %v21290_v56  ;;  %9692 = vmatprep.subr.bf16.mxu0 %v15844_v40  ;;  %v15869_v40 = vld [vmem:[%s22572_s4 + $0xd80] ss:$16 sps:$4 sm:$0xff]  }
 0x407   : > { %8212 = vmatprep.mubr.bf16.mxu1 %v21301_v6  ;;  %9478 = vmatpush1.bf16.msra.mxu1 %v15833_v27  ;;  %v7594_v27 = vor.u32 %v23843_v42, %v7582_v22  ;;  %v15887_v22 = vld [vmem:[%s22572_s4 + $0xde0] ss:$16 sps:$4 sm:$0xff]   ;;  %v23859_v42 = vld [vmem:[#allocation78_spill] sm:$0xff] }
 0x408   : > { %9479 = vmatprep.subr.bf16.mxu1 %v15841_v54  ;;  %v7618_v54 = vor.u32 %v23844_v9, %v7606_v43  ;;  %v15895_v43 = vld [vmem:[%s22572_s4 + $0xe04] ss:$16 sps:$4 sm:$0xff]  }
 0x409   : > { %9693 = vmatpush1.bf16.msra.mxu0 %v15842_v61  ;;  %v21416_v61 = vsel %vm7487_vm6, %v7594_v27, %v7598_v63  ;;  %v23860_v27 = vshll.u32 %v23859_v42, 16 }
 0x40a   : > { %9694 = vmatprep.subr.bf16.mxu0 %v15850_v57  ;;  %v21427_v50 = vsel %vm7487_vm6, %v7618_v54, %v7622_v12  ;;  %v23845_v57 = vshll.u32 %v19739_v49, 16 }
 0x40b   : > { %9480 = vmatpush1.bf16.msra.mxu1 %v15839_v39  ;;  %v15872_v39 = vld [vmem:[%s22572_s4 + $0xd88] ss:$16 sps:$4 sm:$0xff]   ;;  %v7670_v9 = vrot.slane %v23860_v27, 1 }
 0x40c   : > { %9481 = vmatprep.subr.bf16.mxu1 %v15847_v3  ;;  %8426 = vmatmul.mubr.bf16.gmra.mrb[52].mxu0 %v21332_v23  ;;  %v15878_v3 = vld [vmem:[%s22572_s4 + $0xda8] ss:$16 sps:$4 sm:$0xff]   ;;  %v7614_v34 = vrot.slane %v23845_v57, 1  ;;  %v23864_v57 = vshrl.u32 %v23859_v42, 16 }
 0x40d   : > { %8435 = vmatprep.mubr.bf16.mxu0 %v21343_v11  ;;  %9695 = vmatpush1.bf16.msra.mxu0 %v15848_v38  ;;  %v23848_v38 = vshll.u32 %v19741_v55, 16 }
 0x40e   : > { %8213 = vmatmul.mubr.bf16.gmra.mrb[52].mxu1 %v21332_v23  ;;  %9696 = vmatprep.subr.bf16.mxu0 %v15856_v30  ;;  %v15881_v30 = vld [vmem:[%s22572_s4 + $0xdc0] ss:$16 sps:$4 sm:$0xff]  }
 0x40f   : > { %8222 = vmatprep.mubr.bf16.mxu1 %v21343_v11  ;;  %9482 = vmatpush1.bf16.msra.mxu1 %v15845_v53  ;;  %v7610_v53 = vor.u32 %v23847_v8, %v7598_v63  ;;  %v23856_v63 = vld [vmem:[#allocation90_spill] sm:$0xff] }
 0x410   : > { %9483 = vmatprep.subr.bf16.mxu1 %v15853_v52  ;;  %v7638_v52 = vrot.slane %v23848_v38, 1 }
 0x411   : > { %9697 = vmatpush1.bf16.msra.mxu0 %v15854_v33  ;;  %v21458_v33 = vsel %vm7487_vm6, %v7610_v53, %v7614_v34 }
 0x412   : > { %9698 = vmatprep.subr.bf16.mxu0 %v15862_v17  ;;  %v21469_v60 = vsel %vm7487_vm6, %v7634_v31, %v7638_v52  ;;  %v23849_v17 = vshrl.u32 %v19739_v49, 16  ;;  %v7650_v18 = vor.u32 %v23850_v51, %v7638_v52  ;;  %v23868_v52 = vld [vmem:[#allocation92_spill] sm:$0xff] }
 0x413   : > { %9484 = vmatpush1.bf16.msra.mxu1 %v15851_v4  ;;  %v15884_v4 = vld [vmem:[%s22572_s4 + $0xdc8] ss:$16 sps:$4 sm:$0xff]  }
 0x414   : > { %9485 = vmatprep.subr.bf16.mxu1 %v15859_v37  ;;  %8436 = vmatmul.mubr.bf16.gmra.mrb[56].mxu0 %v21374_v19  ;;  %v15890_v37 = vld [vmem:[%s22572_s4 + $0xde8] ss:$16 sps:$4 sm:$0xff]   ;;  %v7626_v59 = vor.u32 %v23849_v17, %v7614_v34  ;;  %v7682_v34 = vor.u32 %v23864_v57, %v7670_v9 }
 0x415   : > { %8445 = vmatprep.mubr.bf16.mxu0 %v21385_v24  ;;  %9699 = vmatpush1.bf16.msra.mxu0 %v15860_v48 }
 0x416   : > { %8223 = vmatmul.mubr.bf16.gmra.mrb[56].mxu1 %v21374_v19  ;;  %9700 = vmatprep.subr.bf16.mxu0 %v15868_v26 }
 0x417   : > { %8232 = vmatprep.mubr.bf16.mxu1 %v21385_v24  ;;  %9486 = vmatpush1.bf16.msra.mxu1 %v15857_v7  ;;  %v23852_v7 = vshll.u32 %v23851_v58, 16 }
 0x418   : > { %9487 = vmatprep.subr.bf16.mxu1 %v15865_v14  ;;  %v23853_v14 = vld [vmem:[#allocation86_spill] sm:$0xff] }
 0x419   : > { %9701 = vmatpush1.bf16.msra.mxu0 %v15866_v62  ;;  %v7654_v48 = vrot.slane %v23852_v7, 1  ;;  %v23854_v26 = vshll.u32 %v23853_v14, 16  ;;  %v23855_v62 = vshrl.u32 %v23853_v14, 16 }
 0x41a   : > { %9702 = vmatprep.subr.bf16.mxu0 %v15874_v29 }
 0x41b   : > { %9488 = vmatpush1.bf16.msra.mxu1 %v15863_v13  ;;  %v7630_v49 = vrot.slane %v23854_v26, 1  ;;  %v21499_v55 = vsel %vm7487_vm6, %v7650_v18, %v7654_v48  ;;  %v7666_v12 = vor.u32 %v23858_v47, %v7654_v48  ;;  %v23874_v18 = vld [vmem:[#allocation93_spill] sm:$0xff]  ;;  %v23880_v47 = vld [vmem:[#allocation123_spill] sm:$0xff] }
 0x41c   : > { %9489 = vmatprep.subr.bf16.mxu1 %v15871_v5  ;;  %8446 = vmatmul.mubr.bf16.gmra.mrb[60].mxu0 %v21416_v61  ;;  %v23857_v5 = vshll.u32 %v23856_v63, 16  ;;  %v23875_v58 = vshll.u32 %v23874_v18, 16  ;;  %v23877_v26 = vld [vmem:[#allocation121_spill] sm:$0xff]  ;;  %v23885_v57 = vshrl.u32 %v23880_v47, 16 }
 0x41d   : > { %8455 = vmatprep.mubr.bf16.mxu0 %v21427_v50  ;;  %9703 = vmatpush1.bf16.msra.mxu0 %v15872_v39  ;;  %v21494_v13 = vsel %vm7487_vm6, %v7626_v59, %v7630_v49  ;;  %v7642_v15 = vor.u32 %v23855_v62, %v7630_v49  ;;  %v23861_v39 = vshrl.u32 %v23856_v63, 16  ;;  %v23878_v49 = vshll.u32 %v23877_v26, 16 }
 0x41e   : > { %8233 = vmatmul.mubr.bf16.gmra.mrb[60].mxu1 %v21416_v61  ;;  %9704 = vmatprep.subr.bf16.mxu0 %v15880_v44  ;;  %v7646_v29 = vrot.slane %v23857_v5, 1  ;;  %v23862_v44 = vld [vmem:[#allocation91_spill] sm:$0xff]  ;;  %v7694_v7 = vrot.slane %v23875_v58, 1  ;;  %v23879_v5 = vshrl.u32 %v23874_v18, 16  ;;  %v23882_v27 = vshrl.u32 %v23877_v26, 16 }
 0x41f   : > { %8242 = vmatprep.mubr.bf16.mxu1 %v21427_v50  ;;  %9490 = vmatpush1.bf16.msra.mxu1 %v15869_v40  ;;  %v21517_v40 = vsel %vm7487_vm6, %v7666_v12, %v7670_v9  ;;  %v23867_v53 = vshrl.u32 %v23862_v44, 16  ;;  %v7718_v62 = vrot.slane %v23878_v49, 1  ;;  %v23881_v12 = vshll.u32 %v23880_v47, 16  ;;  %v7421_v26 = vld [vmem:[#allocation2 + $0x148] sm:$0x1] }
 0x420   : > { %9491 = vmatprep.subr.bf16.mxu1 %v15877_v2  ;;  %v21512_v54 = vsel %vm7487_vm6, %v7642_v15, %v7646_v29  ;;  %v7658_v2 = vor.u32 %v23861_v39, %v7646_v29  ;;  %v7706_v29 = vor.u32 %v23879_v5, %v7694_v7  ;;  %v23883_v39 = vld [vmem:[#allocation124_spill] sm:$0xff]  ;;  %v7780_v5 = vshll.u32 %v7421_v26, 16 }
 0x421   : > { %9705 = vmatpush1.bf16.msra.mxu0 %v15878_v3  ;;  %v7710_v42 = vrot.slane %v23881_v12, 1  ;;  %v7730_v9 = vor.u32 %v23882_v27, %v7718_v62  ;;  %v23898_v12 = vld [vmem:[#allocation145_spill] sm:$0xff]  ;;  %v15920_v26 = vld [vmem:[%s22572_s4 + $0xe88] ss:$16 sps:$4 sm:$0xff]  }
 0x422   : > { %9706 = vmatprep.subr.bf16.mxu0 %v15886_v45 }
 0x423   : > { %9492 = vmatpush1.bf16.msra.mxu1 %v15875_v20  ;;  %v23863_v20 = vshll.u32 %v23862_v44, 16 }
 0x424   : > { %9493 = vmatprep.subr.bf16.mxu1 %v15883_v25  ;;  %8456 = vmatmul.mubr.bf16.gmra.mrb[64].mxu0 %v21458_v33  ;;  %v23865_v25 = vld [vmem:[#allocation119_spill] sm:$0xff] }
 0x425   : > { %8465 = vmatprep.mubr.bf16.mxu0 %v21469_v60  ;;  %9707 = vmatpush1.bf16.msra.mxu0 %v15884_v4  ;;  %v7662_v3 = vrot.slane %v23863_v20, 1  ;;  %v23866_v45 = vshll.u32 %v23865_v25, 16  ;;  %v21584_v20 = vsel %vm7487_vm6, %v7706_v29, %v7710_v42 }
 0x426   : > { %8243 = vmatmul.mubr.bf16.gmra.mrb[64].mxu1 %v21458_v33  ;;  %9708 = vmatprep.subr.bf16.mxu0 %v15892_v35 }
 0x427   : > { %8252 = vmatprep.mubr.bf16.mxu1 %v21469_v60  ;;  %9494 = vmatpush1.bf16.msra.mxu1 %v15881_v30  ;;  %v7686_v16 = vrot.slane %v23866_v45, 1  ;;  %v21530_v31 = vsel %vm7487_vm6, %v7658_v2, %v7662_v3  ;;  %v7674_v38 = vor.u32 %v23867_v53, %v7662_v3  ;;  %v23869_v30 = vshll.u32 %v23868_v52, 16 }
 0x428   : > { %9495 = vmatprep.subr.bf16.mxu1 %v15889_v46  ;;  %v23870_v46 = vshrl.u32 %v23865_v25, 16  ;;  %v23884_v2 = vshll.u32 %v23883_v39, 16  ;;  %v23886_v25 = vld [vmem:[#allocation125_spill] sm:$0xff]  ;;  %v23888_v53 = vshrl.u32 %v23883_v39, 16 }
 0x429   : > { %9709 = vmatpush1.bf16.msra.mxu0 %v15890_v37  ;;  %v21535_v8 = vsel %vm7487_vm6, %v7682_v34, %v7686_v16  ;;  %v7678_v4 = vrot.slane %v23869_v30, 1  ;;  %v7722_v34 = vor.u32 %v23885_v57, %v7710_v42  ;;  %v23887_v45 = vshll.u32 %v23886_v25, 16 }
 0x42a   : > { %10784 = vmatprep.subr.bf16.mxu0 %v15898_v21  ;;  %v7698_v35 = vor.u32 %v23870_v46, %v7686_v16  ;;  %v23873_v21 = vshrl.u32 %v23868_v52, 16  ;;  %v7734_v44 = vrot.slane %v23884_v2, 1  ;;  %v23889_v52 = vld [vmem:[#allocation139_spill] sm:$0xff]  ;;  %v23899_v42 = vshll.u32 %v23898_v12, 16 }
 0x42b   : > { %9496 = vmatpush1.bf16.msra.mxu1 %v15887_v22  ;;  %v23871_v22 = vld [vmem:[#allocation120_spill] sm:$0xff]  ;;  %v21548_v59 = vsel %vm7487_vm6, %v7674_v38, %v7678_v4  ;;  %v7726_v16 = vrot.slane %v23887_v45, 1  ;;  %v23890_v30 = vshll.u32 %v23889_v52, 16  ;;  %v23894_v18 = vshrl.u32 %v23889_v52, 16  ;;  %v15893_v52 = vld [vmem:[%s22572_s4 + $0xe00] ss:$16 sps:$4 sm:$0xff]  }
 0x42c   : > { %10571 = vmatprep.subr.bf16.mxu1 %v15895_v43  ;;  %8466 = vmatmul.mubr.bf16.gmra.mrb[68].mxu0 %v21494_v13  ;;  %v23872_v37 = vshll.u32 %v23871_v22, 16  ;;  %v7690_v51 = vor.u32 %v23873_v21, %v7678_v4  ;;  %v23876_v48 = vshrl.u32 %v23871_v22, 16  ;;  %v21589_v3 = vsel %vm7487_vm6, %v7730_v9, %v7734_v44 }
 0x42d   : > { %8475 = vmatprep.mubr.bf16.mxu0 %v21499_v55  ;;  %v7746_v38 = vor.u32 %v23888_v53, %v7734_v44  ;;  %v7750_v4 = vrot.slane %v23890_v30, 1  ;;  %v21602_v46 = vsel %vm7487_vm6, %v7722_v34, %v7726_v16  ;;  %v23891_v22 = vshrl.u32 %v23886_v25, 16  ;;  %v7420_v44 = vld [vmem:[#allocation2 + $0x140] sm:$0x1]  ;;  %v15896_v30 = vld [vmem:[%s22572_s4 + $0xe08] ss:$16 sps:$4 sm:$0xff]  }
 0x42e   : > { %8253 = vmatmul.mubr.bf16.gmra.mrb[68].mxu1 %v21494_v13  ;;  %v7702_v17 = vrot.slane %v23872_v37, 1  ;;  %v21566_v15 = vsel %vm7487_vm6, %v7690_v51, %v7694_v7  ;;  %v23895_v7 = vld [vmem:[#allocation144_spill] sm:$0xff]  ;;  %v7758_v27 = vrot.slane %v23899_v42, 1  ;;  %v7782_v2 = vrot.slane %v7780_v5, 1  ;;  %v15925_v5 = vld [vmem:[%s22572_s4 + $0xea4] ss:$16 sps:$4 sm:$0xff]  }
 0x42f   : > { %8262 = vmatprep.mubr.bf16.mxu1 %v21499_v55  ;;  %v7738_v37 = vor.u32 %v23891_v22, %v7726_v16  ;;  %v7762_v58 = vor.u32 %v23894_v18, %v7750_v4  ;;  %v23900_v9 = vshrl.u32 %v23895_v7, 16  ;;  %v7772_v34 = vshll.u32 %v7420_v44, 16  ;;  %v15904_v22 = vld [vmem:[%s22572_s4 + $0xe2c] ss:$16 sps:$4 sm:$0xff]   ;;  %v15926_v42 = vld [vmem:[%s22572_s4 + $0xea8] ss:$16 sps:$4 sm:$0xff]  }
 0x430   : > { %v21553_v43 = vsel %vm7487_vm6, %v7698_v35, %v7702_v17  ;;  %v7714_v14 = vor.u32 %v23876_v48, %v7702_v17  ;;  %v21607_v35 = vsel %vm7487_vm6, %v7746_v38, %v7750_v4  ;;  %v23892_v17 = vld [vmem:[#allocation140_spill] sm:$0xff]  ;;  %v23896_v48 = vshll.u32 %v23895_v7, 16  ;;  %v15901_v4 = vld [vmem:[%s22572_s4 + $0xe24] ss:$16 sps:$4 sm:$0xff]  }
 0x431   : > { %v23893_v21 = vshll.u32 %v23892_v17, 16  ;;  %v23897_v29 = vshrl.u32 %v23892_v17, 16  ;;  %v23901_v45 = vshrl.u32 %v23898_v12, 16  ;;  %v7774_v53 = vrot.slane %v7772_v34, 1  ;;  %v15907_v17 = vld [vmem:[%s22572_s4 + $0xe44] ss:$16 sps:$4 sm:$0xff]  }
 0x432   : > { %v21571_v63 = vsel %vm7487_vm6, %v7714_v14, %v7718_v62  ;;  %v7766_v14 = vrot.slane %v23896_v48, 1  ;;  %v15916_v18 = vld [vmem:[%s22572_s4 + $0xe6c] ss:$16 sps:$4 sm:$0xff]   ;;  %v15914_v48 = vld [vmem:[%s22572_s4 + $0xe68] ss:$16 sps:$4 sm:$0xff]  }
 0x433   : > { %v7742_v51 = vrot.slane %v23893_v21, 1  ;;  %v21646_v16 = vor.u32 %v23901_v45, %v7758_v27  ;;  %v15908_v21 = vld [vmem:[%s22572_s4 + $0xe48] ss:$16 sps:$4 sm:$0xff]   ;;  %v15940_v44 = vld [vmem:[%s22572_s4 + $0xeec] ss:$16 sps:$4 sm:$0xff]  }
 0x434   : > { %8476 = vmatmul.mubr.bf16.gmra.mrb[72].mxu0 %v21512_v54  ;;  %v21625_v62 = vsel %vm7487_vm6, %v7762_v58, %v7766_v14  ;;  %v21635_v39 = vor.u32 %v23900_v9, %v7766_v14  ;;  %v15911_v58 = vld [vmem:[%s22572_s4 + $0xe60] ss:$16 sps:$4 sm:$0xff]   ;;  %v15932_v9 = vld [vmem:[%s22572_s4 + $0xec8] ss:$16 sps:$4 sm:$0xff]  }
 0x435   : > { %8485 = vmatprep.mubr.bf16.mxu0 %v21517_v40  ;;  %v21620_v49 = vsel %vm7487_vm6, %v7738_v37, %v7742_v51  ;;  %v7754_v47 = vor.u32 %v23897_v29, %v7742_v51  ;;  %v7775_v38 = vsel %vm7487_vm6, %v21646_v16, %v7774_v53  ;;  %v15902_v37 = vld [vmem:[%s22572_s4 + $0xe28] ss:$16 sps:$4 sm:$0xff]   ;;  %v15913_v51 = vld [vmem:[%s22572_s4 + $0xe64] ss:$16 sps:$4 sm:$0xff]   ;;  %v15917_v14 = vld [vmem:[%s22572_s4 + $0xe80] ss:$16 sps:$4 sm:$0xff]  }
 0x436   : > { %8263 = vmatmul.mubr.bf16.gmra.mrb[72].mxu1 %v21512_v54  ;;  %v7783_v25 = vsel %vm7487_vm6, %v21635_v39, %v7782_v2  ;;  %v15928_v29 = vld [vmem:[%s22572_s4 + $0xeac] ss:$16 sps:$4 sm:$0xff]   ;;  %v15937_v2 = vld [vmem:[%s22572_s4 + $0xee4] ss:$16 sps:$4 sm:$0xff]   ;;  %v15935_v34 = vld [vmem:[%s22572_s4 + $0xee0] ss:$16 sps:$4 sm:$0xff]  }
 0x437   : > { %8272 = vmatprep.mubr.bf16.mxu1 %v21517_v40  ;;  %v21638_v57 = vsel %vm7487_vm6, %v7754_v47, %v7758_v27  ;;  %v15923_v47 = vld [vmem:[%s22572_s4 + $0xea0] ss:$16 sps:$4 sm:$0xff]   ;;  %v15944_v53 = vld [vmem:[%s22572_s4 + $0xf08] ss:$16 sps:$4 sm:$0xff]  }
 0x438   : > { %v15929_v27 = vld [vmem:[%s22572_s4 + $0xec0] ss:$16 sps:$4 sm:$0xff]  }
 0x439   : > { %v15941_v45 = vld [vmem:[%s22572_s4 + $0xf00] ss:$16 sps:$4 sm:$0xff]  }
 0x43c   : > { %8486 = vmatmul.mubr.bf16.gmra.mrb[76].mxu0 %v21530_v31 }
 0x43d   : > { %8495 = vmatprep.mubr.bf16.mxu0 %v21535_v8 }
 0x43e   : > { %8273 = vmatmul.mubr.bf16.gmra.mrb[76].mxu1 %v21530_v31 }
 0x43f   : > { %8282 = vmatprep.mubr.bf16.mxu1 %v21535_v8 }
 0x444   : > { %8496 = vmatmul.mubr.bf16.gmra.mrb[80].mxu0 %v21548_v59 }
 0x445   : > { %8505 = vmatprep.mubr.bf16.mxu0 %v21553_v43 }
 0x446   : > { %8283 = vmatmul.mubr.bf16.gmra.mrb[80].mxu1 %v21548_v59 }
 0x447   : > { %8292 = vmatprep.mubr.bf16.mxu1 %v21553_v43 }
 0x44c   : > { %8506 = vmatmul.mubr.bf16.gmra.mrb[84].mxu0 %v21566_v15 }
 0x44d   : > { %8515 = vmatprep.mubr.bf16.mxu0 %v21571_v63 }
 0x44e   : > { %8293 = vmatmul.mubr.bf16.gmra.mrb[84].mxu1 %v21566_v15 }
 0x44f   : > { %8302 = vmatprep.mubr.bf16.mxu1 %v21571_v63 }
 0x454   : > { %8516 = vmatmul.mubr.bf16.gmra.mrb[88].mxu0 %v21584_v20 }
 0x455   : > { %8525 = vmatprep.mubr.bf16.mxu0 %v21589_v3 }
 0x456   : > { %8303 = vmatmul.mubr.bf16.gmra.mrb[88].mxu1 %v21584_v20 }
 0x457   : > { %8312 = vmatprep.mubr.bf16.mxu1 %v21589_v3 }
 0x45c   : > { %8526 = vmatmul.mubr.bf16.gmra.mrb[92].mxu0 %v21602_v46 }
 0x45d   : > { %8535 = vmatprep.mubr.bf16.mxu0 %v21607_v35 }
 0x45e   : > { %8313 = vmatmul.mubr.bf16.gmra.mrb[92].mxu1 %v21602_v46 }
 0x45f   : > { %8322 = vmatprep.mubr.bf16.mxu1 %v21607_v35 }
 0x464   : > { %8536 = vmatmul.mubr.bf16.gmra.mrb[96].mxu0 %v21620_v49 }
 0x465   : > { %8545 = vmatprep.mubr.bf16.mxu0 %v21625_v62 }
 0x466   : > { %8323 = vmatmul.mubr.bf16.gmra.mrb[96].mxu1 %v21620_v49 }
 0x467   : > { %8332 = vmatprep.mubr.bf16.mxu1 %v21625_v62 }
 0x46c   : > { %8546 = vmatmul.mubr.bf16.gmra.mrb[100].mxu0 %v21638_v57 }
 0x46d   : > { %8555 = vmatprep.mubr.bf16.mxu0 %v7783_v25 }
 0x46e   : > { %8333 = vmatmul.mubr.bf16.gmra.mrb[100].mxu1 %v21638_v57 }
 0x46f   : > { %8342 = vmatprep.mubr.bf16.mxu1 %v7783_v25  ;;  %v15938_v25 = vld [vmem:[%s22572_s4 + $0xee8] ss:$16 sps:$4 sm:$0xff]  }
 0x474   : > { %8556 = vmatmul.mubr.bf16.gmra.mrb[104].mxu0 %v7775_v38 }
 0x475   : > { %9710 = vmatprep.mubr.bf16.mxu0 %v23815_v32 }
 0x476   : > { %8343 = vmatmul.mubr.bf16.gmra.mrb[104].mxu1 %v7775_v38  ;;  %v15949_v38 = vld [vmem:[%s22572_s4 + $0xf24] ss:$16 sps:$4 sm:$0xff]  }
 0x477   : > { %9497 = vmatprep.mubr.bf16.mxu1 %v23815_v32  ;;  %v15899_v32 = vld [vmem:[%s22572_s4 + $0xe20] ss:$16 sps:$4 sm:$0xff]  }
 0x47c   : > { %9711 = vmatmul.mubr.bf16.vlgmr.msra.gmra.mrb[36].mxu0 %v23821_v36 }
 0x47d   : > { %9720 = vmatprep.mubr.bf16.mxu0 %v21216_v10  ;;  %10785 = vmatpush1.bf16.msra.mxu0 %v15896_v30  ;;  %v15947_v30 = vld [vmem:[%s22572_s4 + $0xf20] ss:$16 sps:$4 sm:$0xff]  }
 0x47e   : > { %9498 = vmatmul.mubr.bf16.vlgmr.msra.gmra.mrb[36].mxu1 %v23821_v36  ;;  %10786 = vmatprep.subr.bf16.mxu0 %v15904_v22  ;;  %v15910_v36 = vld [vmem:[%s22572_s4 + $0xe4c] ss:$16 sps:$4 sm:$0xff]   ;;  %v15953_v22 = vld [vmem:[%s22572_s4 + $0xf40] ss:$16 sps:$4 sm:$0xff]  }
 0x47f   : > { %10572 = vmatpush1.bf16.msra.mxu1 %v15893_v52  ;;  %9507 = vmatprep.mubr.bf16.mxu1 %v21216_v10  ;;  %v15905_v10 = vld [vmem:[%s22572_s4 + $0xe40] ss:$16 sps:$4 sm:$0xff]   ;;  %v15952_v52 = vld [vmem:[%s22572_s4 + $0xf2c] ss:$16 sps:$4 sm:$0xff]  }
 0x480   : > { %10573 = vmatprep.subr.bf16.mxu1 %v15901_v4  ;;  %v15950_v4 = vld [vmem:[%s22572_s4 + $0xf28] ss:$16 sps:$4 sm:$0xff]  }
 0x481   : > { %10787 = vmatpush1.bf16.msra.mxu0 %v15902_v37  ;;  %v15961_v37 = vld [vmem:[%s22572_s4 + $0xf64] ss:$16 sps:$4 sm:$0xff]  }
 0x482   : > { %10788 = vmatprep.subr.bf16.mxu0 %v15910_v36  ;;  %v15959_v36 = vld [vmem:[%s22572_s4 + $0xf60] ss:$16 sps:$4 sm:$0xff]  }
 0x483   : > { %10574 = vmatpush1.bf16.msra.mxu1 %v15899_v32  ;;  %v15956_v32 = vld [vmem:[%s22572_s4 + $0xf48] ss:$16 sps:$4 sm:$0xff]  }
 0x484   : > { %10575 = vmatprep.subr.bf16.mxu1 %v15907_v17  ;;  %9721 = vmatmul.mubr.bf16.gmra.mrb[40].mxu0 %v21248_v1  ;;  %v15964_v17 = vld [vmem:[%s22572_s4 + $0xf6c] ss:$16 sps:$4 sm:$0xff]  }
 0x485   : > { %9730 = vmatprep.mubr.bf16.mxu0 %v21259_v41  ;;  %10789 = vmatpush1.bf16.msra.mxu0 %v15908_v21  ;;  %v15965_v21 = vld [vmem:[%s22572_s4 + $0xf80] ss:$16 sps:$4 sm:$0xff]  }
 0x486   : > { %9508 = vmatmul.mubr.bf16.gmra.mrb[40].mxu1 %v21248_v1  ;;  %10790 = vmatprep.subr.bf16.mxu0 %v15916_v18  ;;  %v15919_v1 = vld [vmem:[%s22572_s4 + $0xe84] ss:$16 sps:$4 sm:$0xff]  }
 0x487   : > { %9517 = vmatprep.mubr.bf16.mxu1 %v21259_v41  ;;  %10576 = vmatpush1.bf16.msra.mxu1 %v15905_v10  ;;  %v15922_v41 = vld [vmem:[%s22572_s4 + $0xe8c] ss:$16 sps:$4 sm:$0xff]   ;;  %v15962_v10 = vld [vmem:[%s22572_s4 + $0xf68] ss:$16 sps:$4 sm:$0xff]   ;;  %v15973_v18 = vld [vmem:[%s22572_s4 + $0xfa4] ss:$16 sps:$4 sm:$0xff]  }
 0x488   : > { %10577 = vmatprep.subr.bf16.mxu1 %v15913_v51  ;;  %v15968_v51 = vld [vmem:[%s22572_s4 + $0xf88] ss:$16 sps:$4 sm:$0xff]  }
 0x489   : > { %10791 = vmatpush1.bf16.msra.mxu0 %v15914_v48  ;;  %v15971_v48 = vld [vmem:[%s22572_s4 + $0xfa0] ss:$16 sps:$4 sm:$0xff]  }
 0x48a   : > { %10792 = vmatprep.subr.bf16.mxu0 %v15922_v41  ;;  %v15977_v41 = vld [vmem:[%s22572_s4 + $0xfc0] ss:$16 sps:$4 sm:$0xff]  }
 0x48b   : > { %10578 = vmatpush1.bf16.msra.mxu1 %v15911_v58  ;;  %v15976_v58 = vld [vmem:[%s22572_s4 + $0xfac] ss:$16 sps:$4 sm:$0xff]  }
 0x48c   : > { %10579 = vmatprep.subr.bf16.mxu1 %v15919_v1  ;;  %9731 = vmatmul.mubr.bf16.gmra.mrb[44].mxu0 %v21290_v56  ;;  %v15974_v1 = vld [vmem:[%s22572_s4 + $0xfa8] ss:$16 sps:$4 sm:$0xff]  }
 0x48d   : > { %9740 = vmatprep.mubr.bf16.mxu0 %v21301_v6  ;;  %10793 = vmatpush1.bf16.msra.mxu0 %v15920_v26  ;;  %v15985_v26 = vld [vmem:[%s22572_s4 + $0xfe4] ss:$16 sps:$4 sm:$0xff]  }
 0x48e   : > { %9518 = vmatmul.mubr.bf16.gmra.mrb[44].mxu1 %v21290_v56  ;;  %10794 = vmatprep.subr.bf16.mxu0 %v15928_v29  ;;  %v15931_v56 = vld [vmem:[%s22572_s4 + $0xec4] ss:$16 sps:$4 sm:$0xff]   ;;  %v15983_v29 = vld [vmem:[%s22572_s4 + $0xfe0] ss:$16 sps:$4 sm:$0xff]  }
 0x48f   : > { %9527 = vmatprep.mubr.bf16.mxu1 %v21301_v6  ;;  %10580 = vmatpush1.bf16.msra.mxu1 %v15917_v14  ;;  %v15934_v6 = vld [vmem:[%s22572_s4 + $0xecc] ss:$16 sps:$4 sm:$0xff]   ;;  %v15980_v14 = vld [vmem:[%s22572_s4 + $0xfc8] ss:$16 sps:$4 sm:$0xff]  }
 0x490   : > { %10581 = vmatprep.subr.bf16.mxu1 %v15925_v5  ;;  %v15988_v5 = vld [vmem:[%s22572_s4 + $0xfec] ss:$16 sps:$4 sm:$0xff]  }
 0x491   : > { %10795 = vmatpush1.bf16.msra.mxu0 %v15926_v42 }
 0x492   : > { %10796 = vmatprep.subr.bf16.mxu0 %v15934_v6 }
 0x493   : > { %10582 = vmatpush1.bf16.msra.mxu1 %v15923_v47  ;;  %v15986_v47 = vld [vmem:[%s22572_s4 + $0xfe8] ss:$16 sps:$4 sm:$0xff]  }
 0x494   : > { %10583 = vmatprep.subr.bf16.mxu1 %v15931_v56  ;;  %9741 = vmatmul.mubr.bf16.gmra.mrb[48].mxu0 %v21332_v23  ;;  %v23905_v56 = vrot.slane %v23819_v28, 1  ;;  %v15997_v28 = vld [vmem:[%s22572_s4 + $0x1024] ss:$16 sps:$4 sm:$0xff]  }
 0x495   : > { %9750 = vmatprep.mubr.bf16.mxu0 %v21343_v11  ;;  %10797 = vmatpush1.bf16.msra.mxu0 %v15932_v9 }
 0x496   : > { %9528 = vmatmul.mubr.bf16.gmra.mrb[48].mxu1 %v21332_v23  ;;  %10798 = vmatprep.subr.bf16.mxu0 %v15940_v44  ;;  %v15943_v23 = vld [vmem:[%s22572_s4 + $0xf04] ss:$16 sps:$4 sm:$0xff]   ;;  %v23906_v44 = vrot.slane %v23826_v0, 1  ;;  %v15998_v0 = vld [vmem:[%s22572_s4 + $0x1028] ss:$16 sps:$4 sm:$0xff]  }
 0x497   : > { %9537 = vmatprep.mubr.bf16.mxu1 %v21343_v11  ;;  %10584 = vmatpush1.bf16.msra.mxu1 %v15929_v27  ;;  %v15946_v11 = vld [vmem:[%s22572_s4 + $0xf0c] ss:$16 sps:$4 sm:$0xff]   ;;  %v16110_v27 = vld [vmem:[#allocation2 + $0x30] sm:$0xfe] }
 0x498   : > { %10585 = vmatprep.subr.bf16.mxu1 %v15937_v2  ;;  %v10141_v9 = vrot.slane %v16110_v27, 1  ;;  %v15992_v2 = vld [vmem:[%s22572_s4 + $0x1008] ss:$16 sps:$4 sm:$0xff]   ;;  %v16063_v27 = vld [vmem:[%s22572_s4 + $0x1184] ss:$16 sps:$4 sm:$0xff]  }
 0x499   : > { %10799 = vmatpush1.bf16.msra.mxu0 %v15938_v25  ;;  %v16000_v25 = vld [vmem:[%s22572_s4 + $0x102c] ss:$16 sps:$4 sm:$0xff]  }
 0x49a   : > { %10800 = vmatprep.subr.bf16.mxu0 %v15946_v11  ;;  %v15995_v11 = vld [vmem:[%s22572_s4 + $0x1020] ss:$16 sps:$4 sm:$0xff]  }
 0x49b   : > { %10586 = vmatpush1.bf16.msra.mxu1 %v15935_v34  ;;  %v10143_v34 = vsel %vm10140_vm1, %v10141_v9, %v23906_v44  ;;  %v16066_v9 = vld [vmem:[%s22572_s4 + $0x118c] ss:$16 sps:$4 sm:$0xff]   ;;  %v16064_v44 = vld [vmem:[%s22572_s4 + $0x1188] ss:$16 sps:$4 sm:$0xff]  }
 0x49c   : > { %10587 = vmatprep.subr.bf16.mxu1 %v15943_v23  ;;  %9751 = vmatmul.mubr.bf16.gmra.mrb[52].mxu0 %v21374_v19  ;;  %v23907_v23 = vld [vmem:[#allocation126_spill] sm:$0xff] }
 0x49d   : > { %9760 = vmatprep.mubr.bf16.mxu0 %v21385_v24  ;;  %10801 = vmatpush1.bf16.msra.mxu0 %v15944_v53  ;;  %v16006_v53 = vld [vmem:[%s22572_s4 + $0x104c] ss:$16 sps:$4 sm:$0xff]  }
 0x49e   : > { %9538 = vmatmul.mubr.bf16.gmra.mrb[52].mxu1 %v21374_v19  ;;  %10802 = vmatprep.subr.bf16.mxu0 %v15952_v52  ;;  %v15955_v19 = vld [vmem:[%s22572_s4 + $0xf44] ss:$16 sps:$4 sm:$0xff]   ;;  %v16004_v52 = vld [vmem:[%s22572_s4 + $0x1048] ss:$16 sps:$4 sm:$0xff]  }
 0x49f   : > { %9547 = vmatprep.mubr.bf16.mxu1 %v21385_v24  ;;  %10588 = vmatpush1.bf16.msra.mxu1 %v15941_v45  ;;  %v15958_v24 = vld [vmem:[%s22572_s4 + $0xf4c] ss:$16 sps:$4 sm:$0xff]   ;;  %v16003_v45 = vld [vmem:[%s22572_s4 + $0x1044] ss:$16 sps:$4 sm:$0xff]  }
 0x4a0   : > { %10589 = vmatprep.subr.bf16.mxu1 %v15949_v38  ;;  %v16001_v38 = vld [vmem:[%s22572_s4 + $0x1040] ss:$16 sps:$4 sm:$0xff]  }
 0x4a1   : > { %10803 = vmatpush1.bf16.msra.mxu0 %v15950_v4  ;;  %v16012_v4 = vld [vmem:[%s22572_s4 + $0x106c] ss:$16 sps:$4 sm:$0xff]  }
 0x4a2   : > { %10804 = vmatprep.subr.bf16.mxu0 %v15958_v24  ;;  %v23909_v24 = vld [vmem:[#allocation127_spill] sm:$0xff] }
 0x4a3   : > { %10590 = vmatpush1.bf16.msra.mxu1 %v15947_v30  ;;  %v16009_v30 = vld [vmem:[%s22572_s4 + $0x1064] ss:$16 sps:$4 sm:$0xff]  }
 0x4a4   : > { %10591 = vmatprep.subr.bf16.mxu1 %v15955_v19  ;;  %9761 = vmatmul.mubr.bf16.gmra.mrb[56].mxu0 %v21416_v61  ;;  %v23908_v19 = vld [vmem:[#allocation94_spill] sm:$0xff] }
 0x4a5   : > { %9770 = vmatprep.mubr.bf16.mxu0 %v21427_v50  ;;  %10805 = vmatpush1.bf16.msra.mxu0 %v15956_v32  ;;  %v16010_v32 = vld [vmem:[%s22572_s4 + $0x1068] ss:$16 sps:$4 sm:$0xff]  }
 0x4a6   : > { %9548 = vmatmul.mubr.bf16.gmra.mrb[56].mxu1 %v21416_v61  ;;  %10806 = vmatprep.subr.bf16.mxu0 %v15964_v17  ;;  %v15967_v61 = vld [vmem:[%s22572_s4 + $0xf84] ss:$16 sps:$4 sm:$0xff]   ;;  %v16018_v17 = vld [vmem:[%s22572_s4 + $0x108c] ss:$16 sps:$4 sm:$0xff]  }
 0x4a7   : > { %9557 = vmatprep.mubr.bf16.mxu1 %v21427_v50  ;;  %10592 = vmatpush1.bf16.msra.mxu1 %v15953_v22  ;;  %v15970_v50 = vld [vmem:[%s22572_s4 + $0xf8c] ss:$16 sps:$4 sm:$0xff]   ;;  %v16007_v22 = vld [vmem:[%s22572_s4 + $0x1060] ss:$16 sps:$4 sm:$0xff]  }
 0x4a8   : > { %10593 = vmatprep.subr.bf16.mxu1 %v15961_v37  ;;  %v16015_v37 = vld [vmem:[%s22572_s4 + $0x1084] ss:$16 sps:$4 sm:$0xff]  }
 0x4a9   : > { %10807 = vmatpush1.bf16.msra.mxu0 %v15962_v10  ;;  %v16016_v10 = vld [vmem:[%s22572_s4 + $0x1088] ss:$16 sps:$4 sm:$0xff]  }
 0x4aa   : > { %10808 = vmatprep.subr.bf16.mxu0 %v15970_v50  ;;  %v16024_v50 = vld [vmem:[%s22572_s4 + $0x10ac] ss:$16 sps:$4 sm:$0xff]  }
 0x4ab   : > { %10594 = vmatpush1.bf16.msra.mxu1 %v15959_v36  ;;  %v16013_v36 = vld [vmem:[%s22572_s4 + $0x1080] ss:$16 sps:$4 sm:$0xff]  }
 0x4ac   : > { %10595 = vmatprep.subr.bf16.mxu1 %v15967_v61  ;;  %9771 = vmatmul.mubr.bf16.gmra.mrb[60].mxu0 %v21458_v33  ;;  %v16021_v61 = vld [vmem:[%s22572_s4 + $0x10a4] ss:$16 sps:$4 sm:$0xff]  }
 0x4ad   : > { %9780 = vmatprep.mubr.bf16.mxu0 %v21469_v60  ;;  %10809 = vmatpush1.bf16.msra.mxu0 %v15968_v51  ;;  %v23911_v51 = vld [vmem:[#allocation129_spill] sm:$0xff] }
 0x4ae   : > { %9558 = vmatmul.mubr.bf16.gmra.mrb[60].mxu1 %v21458_v33  ;;  %10810 = vmatprep.subr.bf16.mxu0 %v15976_v58  ;;  %v15979_v33 = vld [vmem:[%s22572_s4 + $0xfc4] ss:$16 sps:$4 sm:$0xff]   ;;  %v16022_v58 = vld [vmem:[%s22572_s4 + $0x10a8] ss:$16 sps:$4 sm:$0xff]  }
 0x4af   : > { %9567 = vmatprep.mubr.bf16.mxu1 %v21469_v60  ;;  %10596 = vmatpush1.bf16.msra.mxu1 %v15965_v21  ;;  %v15982_v60 = vld [vmem:[%s22572_s4 + $0xfcc] ss:$16 sps:$4 sm:$0xff]  }
 0x4b0   : > { %10597 = vmatprep.subr.bf16.mxu1 %v15973_v18  ;;  %v23910_v21 = vld [vmem:[#allocation128_spill] sm:$0xff]  ;;  %v16019_v18 = vld [vmem:[%s22572_s4 + $0x10a0] ss:$16 sps:$4 sm:$0xff]  }
 0x4b1   : > { %10811 = vmatpush1.bf16.msra.mxu0 %v15974_v1  ;;  %v16030_v1 = vld [vmem:[%s22572_s4 + $0x10cc] ss:$16 sps:$4 sm:$0xff]  }
 0x4b2   : > { %10812 = vmatprep.subr.bf16.mxu0 %v15982_v60  ;;  %v16028_v60 = vld [vmem:[%s22572_s4 + $0x10c8] ss:$16 sps:$4 sm:$0xff]  }
 0x4b3   : > { %10598 = vmatpush1.bf16.msra.mxu1 %v15971_v48  ;;  %v16027_v48 = vld [vmem:[%s22572_s4 + $0x10c4] ss:$16 sps:$4 sm:$0xff]  }
 0x4b4   : > { %10599 = vmatprep.subr.bf16.mxu1 %v15979_v33  ;;  %9781 = vmatmul.mubr.bf16.gmra.mrb[64].mxu0 %v21494_v13  ;;  %v16025_v33 = vld [vmem:[%s22572_s4 + $0x10c0] ss:$16 sps:$4 sm:$0xff]  }
 0x4b5   : > { %9790 = vmatprep.mubr.bf16.mxu0 %v21499_v55  ;;  %10813 = vmatpush1.bf16.msra.mxu0 %v15980_v14  ;;  %v16036_v14 = vld [vmem:[%s22572_s4 + $0x10ec] ss:$16 sps:$4 sm:$0xff]  }
 0x4b6   : > { %9568 = vmatmul.mubr.bf16.gmra.mrb[64].mxu1 %v21494_v13  ;;  %10814 = vmatprep.subr.bf16.mxu0 %v15988_v5  ;;  %v15991_v13 = vld [vmem:[%s22572_s4 + $0x1004] ss:$16 sps:$4 sm:$0xff]  }
 0x4b7   : > { %9577 = vmatprep.mubr.bf16.mxu1 %v21499_v55  ;;  %10600 = vmatpush1.bf16.msra.mxu1 %v15977_v41  ;;  %v15994_v55 = vld [vmem:[%s22572_s4 + $0x100c] ss:$16 sps:$4 sm:$0xff]   ;;  %v16033_v41 = vld [vmem:[%s22572_s4 + $0x10e4] ss:$16 sps:$4 sm:$0xff]  }
 0x4b8   : > { %10601 = vmatprep.subr.bf16.mxu1 %v15985_v26  ;;  %v23912_v26 = vld [vmem:[#allocation130_spill] sm:$0xff]  ;;  %v23913_v5 = vld [vmem:[#allocation131_spill] sm:$0xff] }
 0x4b9   : > { %10815 = vmatpush1.bf16.msra.mxu0 %v15986_v47  ;;  %v16034_v47 = vld [vmem:[%s22572_s4 + $0x10e8] ss:$16 sps:$4 sm:$0xff]  }
 0x4ba   : > { %11948 = vmatprep.subr.bf16.mxu0 %v15994_v55  ;;  %v16042_v55 = vld [vmem:[%s22572_s4 + $0x110c] ss:$16 sps:$4 sm:$0xff]  }
 0x4bb   : > { %10602 = vmatpush1.bf16.msra.mxu1 %v15983_v29  ;;  %v16031_v29 = vld [vmem:[%s22572_s4 + $0x10e0] ss:$16 sps:$4 sm:$0xff]  }
 0x4bc   : > { %11735 = vmatprep.subr.bf16.mxu1 %v15991_v13  ;;  %9791 = vmatmul.mubr.bf16.gmra.mrb[68].mxu0 %v21512_v54  ;;  %v16039_v13 = vld [vmem:[%s22572_s4 + $0x1104] ss:$16 sps:$4 sm:$0xff]  }
 0x4bd   : > { %9800 = vmatprep.mubr.bf16.mxu0 %v21517_v40 }
 0x4be   : > { %9578 = vmatmul.mubr.bf16.gmra.mrb[68].mxu1 %v21512_v54  ;;  %v21904_v54 = vld [vmem:[#allocation2 + $0x158] sm:$0x1] }
 0x4bf   : > { %9587 = vmatprep.mubr.bf16.mxu1 %v21517_v40  ;;  %v23902_v40 = vld [vmem:[#allocation97_spill] sm:$0xff] }
 0x4c4   : > { %9801 = vmatmul.mubr.bf16.gmra.mrb[72].mxu0 %v21530_v31 }
 0x4c5   : > { %9810 = vmatprep.mubr.bf16.mxu0 %v21535_v8 }
 0x4c6   : > { %9588 = vmatmul.mubr.bf16.gmra.mrb[72].mxu1 %v21530_v31  ;;  %v23903_v31 = vshll.u32 %v23902_v40, 16 }
 0x4c7   : > { %9597 = vmatprep.mubr.bf16.mxu1 %v21535_v8 }
 0x4c8   : > { %v9091_v8 = vrot.slane %v23903_v31, 1  ;;  %v16040_v31 = vld [vmem:[%s22572_s4 + $0x1108] ss:$16 sps:$4 sm:$0xff]  }
 0x4cc   : > { %9811 = vmatmul.mubr.bf16.gmra.mrb[76].mxu0 %v21548_v59 }
 0x4cd   : > { %9820 = vmatprep.mubr.bf16.mxu0 %v21553_v43 }
 0x4ce   : > { %9598 = vmatmul.mubr.bf16.gmra.mrb[76].mxu1 %v21548_v59  ;;  %v9105_v59 = vshll.u32 %v21904_v54, 16 }
 0x4cf   : > { %9607 = vmatprep.mubr.bf16.mxu1 %v21553_v43  ;;  %v9092_v43 = vsel %vm7487_vm6, %v21635_v39, %v9091_v8 }
 0x4d4   : > { %9821 = vmatmul.mubr.bf16.gmra.mrb[80].mxu0 %v21566_v15 }
 0x4d5   : > { %9830 = vmatprep.mubr.bf16.mxu0 %v21571_v63 }
 0x4d6   : > { %9608 = vmatmul.mubr.bf16.gmra.mrb[80].mxu1 %v21566_v15  ;;  %v23904_v15 = vshrl.u32 %v23902_v40, 16  ;;  %v16037_v40 = vld [vmem:[%s22572_s4 + $0x1100] ss:$16 sps:$4 sm:$0xff]  }
 0x4d7   : > { %9617 = vmatprep.mubr.bf16.mxu1 %v21571_v63 }
 0x4d8   : > { %v9103_v63 = vor.u32 %v23904_v15, %v9091_v8  ;;  %v23915_v15 = vld [vmem:[#allocation133_spill] sm:$0xff] }
 0x4dc   : > { %9831 = vmatmul.mubr.bf16.gmra.mrb[84].mxu0 %v21584_v20 }
 0x4dd   : > { %9840 = vmatprep.mubr.bf16.mxu0 %v21589_v3 }
 0x4de   : > { %9618 = vmatmul.mubr.bf16.gmra.mrb[84].mxu1 %v21584_v20  ;;  %v9107_v20 = vrot.slane %v9105_v59, 1  ;;  %v16048_v59 = vld [vmem:[%s22572_s4 + $0x112c] ss:$16 sps:$4 sm:$0xff]  }
 0x4df   : > { %9627 = vmatprep.mubr.bf16.mxu1 %v21589_v3  ;;  %v21915_v3 = vld [vmem:[#allocation2 + $0x150] sm:$0x1] }
 0x4e4   : > { %9841 = vmatmul.mubr.bf16.gmra.mrb[88].mxu0 %v21602_v46 }
 0x4e5   : > { %9850 = vmatprep.mubr.bf16.mxu0 %v21607_v35 }
 0x4e6   : > { %9628 = vmatmul.mubr.bf16.gmra.mrb[88].mxu1 %v21602_v46  ;;  %v9097_v46 = vshll.u32 %v21915_v3, 16 }
 0x4e7   : > { %9637 = vmatprep.mubr.bf16.mxu1 %v21607_v35  ;;  %v9108_v35 = vsel %vm7487_vm6, %v9103_v63, %v9107_v20  ;;  %v16046_v20 = vld [vmem:[%s22572_s4 + $0x1128] ss:$16 sps:$4 sm:$0xff]  }
 0x4ec   : > { %9851 = vmatmul.mubr.bf16.gmra.mrb[92].mxu0 %v21620_v49 }
 0x4ed   : > { %9860 = vmatprep.mubr.bf16.mxu0 %v21625_v62 }
 0x4ee   : > { %9638 = vmatmul.mubr.bf16.gmra.mrb[92].mxu1 %v21620_v49  ;;  %v9084_v49 = vsel %vm7487_vm6, %v21646_v16, %v9091_v8  ;;  %v15989_v16 = vld [vmem:[%s22572_s4 + $0x1000] ss:$16 sps:$4 sm:$0xff]   ;;  %v16045_v8 = vld [vmem:[%s22572_s4 + $0x1124] ss:$16 sps:$4 sm:$0xff]  }
 0x4ef   : > { %9647 = vmatprep.mubr.bf16.mxu1 %v21625_v62  ;;  %v9099_v62 = vrot.slane %v9097_v46, 1  ;;  %v16051_v46 = vld [vmem:[%s22572_s4 + $0x1144] ss:$16 sps:$4 sm:$0xff]  }
 0x4f1   : > { %v9100_v39 = vsel %vm7487_vm6, %v9103_v63, %v9099_v62  ;;  %v16043_v63 = vld [vmem:[%s22572_s4 + $0x1120] ss:$16 sps:$4 sm:$0xff]   ;;  %v16052_v62 = vld [vmem:[%s22572_s4 + $0x1148] ss:$16 sps:$4 sm:$0xff]  }
 0x4f4   : > { %9861 = vmatmul.mubr.bf16.gmra.mrb[96].mxu0 %v21638_v57 }
 0x4f5   : > { %9870 = vmatprep.mubr.bf16.mxu0 %v9092_v43 }
 0x4f6   : > { %9648 = vmatmul.mubr.bf16.gmra.mrb[96].mxu1 %v21638_v57  ;;  %v16109_v57 = vld [vmem:[#allocation2 + $0x38] sm:$0xfe] }
 0x4f7   : > { %9657 = vmatprep.mubr.bf16.mxu1 %v9092_v43  ;;  %v10144_v42 = vrot.slane %v16109_v57, 1  ;;  %v23914_v43 = vld [vmem:[#allocation132_spill] sm:$0xff] }
 0x4f8   : > { %v16060_v57 = vld [vmem:[%s22572_s4 + $0x116c] ss:$16 sps:$4 sm:$0xff]  }
 0x4f9   : > { %v10146_v6 = vsel %vm10140_vm1, %v10144_v42, %v23905_v56  ;;  %v23916_v42 = vld [vmem:[#allocation134_spill] sm:$0xff]  ;;  %v23917_v56 = vld [vmem:[#allocation135_spill] sm:$0xff] }
 0x4fc   : > { %9871 = vmatmul.mubr.bf16.gmra.mrb[100].mxu0 %v9084_v49 }
 0x4fd   : > { %9880 = vmatprep.mubr.bf16.mxu0 %v9108_v35 }
 0x4fe   : > { %9658 = vmatmul.mubr.bf16.gmra.mrb[100].mxu1 %v9084_v49  ;;  %v16049_v49 = vld [vmem:[%s22572_s4 + $0x1140] ss:$16 sps:$4 sm:$0xff]  }
 0x4ff   : > { %9667 = vmatprep.mubr.bf16.mxu1 %v9108_v35  ;;  %v16054_v35 = vld [vmem:[%s22572_s4 + $0x114c] ss:$16 sps:$4 sm:$0xff]  }
 0x504   : > { %9881 = vmatmul.mubr.bf16.gmra.mrb[104].mxu0 %v9100_v39 }
 0x505   : > { %10816 = vmatprep.mubr.bf16.mxu0 %v10146_v6 }
 0x506   : > { %9668 = vmatmul.mubr.bf16.gmra.mrb[104].mxu1 %v9100_v39  ;;  %v16057_v39 = vld [vmem:[%s22572_s4 + $0x1164] ss:$16 sps:$4 sm:$0xff]  }
 0x507   : > { %10603 = vmatprep.mubr.bf16.mxu1 %v10146_v6  ;;  %v16055_v6 = vld [vmem:[%s22572_s4 + $0x1160] ss:$16 sps:$4 sm:$0xff]  }
 0x50c   : > { %10817 = vmatmul.mubr.bf16.vlgmr.msra.gmra.mrb[36].mxu0 %v10143_v34 }
 0x50d   : > { %10826 = vmatprep.mubr.bf16.mxu0 %v23907_v23  ;;  %11949 = vmatpush1.bf16.msra.mxu0 %v15992_v2  ;;  %v16061_v2 = vld [vmem:[%s22572_s4 + $0x1180] ss:$16 sps:$4 sm:$0xff]  }
 0x50e   : > { %10604 = vmatmul.mubr.bf16.vlgmr.msra.gmra.mrb[36].mxu1 %v10143_v34  ;;  %11950 = vmatprep.subr.bf16.mxu0 %v16000_v25  ;;  %v16069_v34 = vld [vmem:[%s22572_s4 + $0x11a4] ss:$16 sps:$4 sm:$0xff]   ;;  %v23918_v25 = vld [vmem:[#allocation136_spill] sm:$0xff] }
 0x50f   : > { %11736 = vmatpush1.bf16.msra.mxu1 %v15989_v16  ;;  %10613 = vmatprep.mubr.bf16.mxu1 %v23907_v23  ;;  %v16058_v16 = vld [vmem:[%s22572_s4 + $0x1168] ss:$16 sps:$4 sm:$0xff]   ;;  %v23919_v23 = vld [vmem:[#allocation137_spill] sm:$0xff] }
 0x510   : > { %11737 = vmatprep.subr.bf16.mxu1 %v15997_v28  ;;  %v16072_v28 = vld [vmem:[%s22572_s4 + $0x11ac] ss:$16 sps:$4 sm:$0xff]  }
 0x511   : > { %11951 = vmatpush1.bf16.msra.mxu0 %v15998_v0  ;;  %v16070_v0 = vld [vmem:[%s22572_s4 + $0x11a8] ss:$16 sps:$4 sm:$0xff]  }
 0x512   : > { %11952 = vmatprep.subr.bf16.mxu0 %v16006_v53  ;;  %v16078_v53 = vld [vmem:[%s22572_s4 + $0x11cc] ss:$16 sps:$4 sm:$0xff]  }
 0x513   : > { %11738 = vmatpush1.bf16.msra.mxu1 %v15995_v11  ;;  %v16067_v11 = vld [vmem:[%s22572_s4 + $0x11a0] ss:$16 sps:$4 sm:$0xff]  }
 0x514   : > { %11739 = vmatprep.subr.bf16.mxu1 %v16003_v45  ;;  %10827 = vmatmul.mubr.bf16.gmra.mrb[40].mxu0 %v23908_v19  ;;  %v16075_v45 = vld [vmem:[%s22572_s4 + $0x11c4] ss:$16 sps:$4 sm:$0xff]  }
 0x515   : > { %10836 = vmatprep.mubr.bf16.mxu0 %v23909_v24  ;;  %11953 = vmatpush1.bf16.msra.mxu0 %v16004_v52  ;;  %v16076_v52 = vld [vmem:[%s22572_s4 + $0x11c8] ss:$16 sps:$4 sm:$0xff]  }
 0x516   : > { %10614 = vmatmul.mubr.bf16.gmra.mrb[40].mxu1 %v23908_v19  ;;  %11954 = vmatprep.subr.bf16.mxu0 %v16012_v4  ;;  %v16084_v4 = vld [vmem:[%s22572_s4 + $0x11ec] ss:$16 sps:$4 sm:$0xff]  }
 0x517   : > { %10623 = vmatprep.mubr.bf16.mxu1 %v23909_v24  ;;  %11740 = vmatpush1.bf16.msra.mxu1 %v16001_v38  ;;  %v16073_v38 = vld [vmem:[%s22572_s4 + $0x11c0] ss:$16 sps:$4 sm:$0xff]   ;;  %v23920_v19 = vld [vmem:[#allocation138_spill] sm:$0xff] }
 0x518   : > { %11741 = vmatprep.subr.bf16.mxu1 %v16009_v30  ;;  %v16081_v30 = vld [vmem:[%s22572_s4 + $0x11e4] ss:$16 sps:$4 sm:$0xff]  }
 0x519   : > { %11955 = vmatpush1.bf16.msra.mxu0 %v16010_v32  ;;  %v23921_v24 = vld [vmem:[#allocation141_spill] sm:$0xff]  ;;  %v16082_v32 = vld [vmem:[%s22572_s4 + $0x11e8] ss:$16 sps:$4 sm:$0xff]  }
 0x51a   : > { %11956 = vmatprep.subr.bf16.mxu0 %v16018_v17  ;;  %v23923_v17 = vld [vmem:[#allocation143_spill] sm:$0xff] }
 0x51b   : > { %11742 = vmatpush1.bf16.msra.mxu1 %v16007_v22  ;;  %v16079_v22 = vld [vmem:[%s22572_s4 + $0x11e0] ss:$16 sps:$4 sm:$0xff]  }
 0x51c   : > { %11743 = vmatprep.subr.bf16.mxu1 %v16015_v37  ;;  %10837 = vmatmul.mubr.bf16.gmra.mrb[44].mxu0 %v23910_v21  ;;  %v23922_v37 = vld [vmem:[#allocation142_spill] sm:$0xff] }
 0x51d   : > { %10846 = vmatprep.mubr.bf16.mxu0 %v23911_v51  ;;  %11957 = vmatpush1.bf16.msra.mxu0 %v16016_v10  ;;  %v23925_v10 = vld [vmem:[#allocation147_spill] sm:$0xff] }
 0x51e   : > { %10624 = vmatmul.mubr.bf16.gmra.mrb[44].mxu1 %v23910_v21  ;;  %11958 = vmatprep.subr.bf16.mxu0 %v16024_v50  ;;  %v23927_v50 = vld [vmem:[#allocation149_spill] sm:$0xff]  ;;  %v23928_v21 = vld [vmem:[#allocation150_spill] sm:$0xff] }
 0x51f   : > { %10633 = vmatprep.mubr.bf16.mxu1 %v23911_v51  ;;  %11744 = vmatpush1.bf16.msra.mxu1 %v16013_v36  ;;  %v23924_v36 = vld [vmem:[#allocation146_spill] sm:$0xff]  ;;  %v23929_v51 = vld [vmem:[#allocation151_spill] sm:$0xff] }
 0x520   : > { %11745 = vmatprep.subr.bf16.mxu1 %v16021_v61  ;;  %v23926_v61 = vld [vmem:[#allocation148_spill] sm:$0xff] }
 0x521   : > { %11959 = vmatpush1.bf16.msra.mxu0 %v16022_v58  ;;  %v23931_v58 = vld [vmem:[#allocation153_spill] sm:$0xff] }
 0x522   : > { %11960 = vmatprep.subr.bf16.mxu0 %v16030_v1  ;;  %v23933_v1 = vld [vmem:[#allocation155_spill] sm:$0xff] }
 0x523   : > { %11746 = vmatpush1.bf16.msra.mxu1 %v16019_v18  ;;  %v23930_v18 = vld [vmem:[#allocation152_spill] sm:$0xff] }
 0x524   : > { %11747 = vmatprep.subr.bf16.mxu1 %v16027_v48  ;;  %10847 = vmatmul.mubr.bf16.gmra.mrb[48].mxu0 %v23912_v26  ;;  %v23932_v48 = vld [vmem:[#allocation154_spill] sm:$0xff] }
 0x525   : > { %10856 = vmatprep.mubr.bf16.mxu0 %v23913_v5  ;;  %11961 = vmatpush1.bf16.msra.mxu0 %v16028_v60  ;;  %v23935_v60 = vld [vmem:[#allocation157_spill] sm:$0xff] }
 0x526   : > { %10634 = vmatmul.mubr.bf16.gmra.mrb[48].mxu1 %v23912_v26  ;;  %11962 = vmatprep.subr.bf16.mxu0 %v16036_v14  ;;  %v23936_v26 = vld [vmem:[#allocation158_spill] sm:$0xff] }
 0x527   : > { %10643 = vmatprep.mubr.bf16.mxu1 %v23913_v5  ;;  %11748 = vmatpush1.bf16.msra.mxu1 %v16025_v33  ;;  %v23934_v33 = vld [vmem:[#allocation156_spill] sm:$0xff]  ;;  %v23937_v5 = vrot.slane %v23895_v7, 1 }
 0x528   : > { %11749 = vmatprep.subr.bf16.mxu1 %v16033_v41  ;;  %v16111_v41 = vld [vmem:[#allocation2] sm:$0xff] }
 0x529   : > { %11963 = vmatpush1.bf16.msra.mxu0 %v16034_v47  ;;  %v10209_v14 = vrot.slane %v16111_v41, 1  ;;  %v10213_v47 = vrot.slane %v21904_v54, 1  ;;  %v23940_v54 = vld [vmem:[#allocation160_spill] sm:$0xff]  ;;  %v23975_v41 = vld [vmem:[#allocation6_spill] sm:$0xff] }
 0x52a   : > { %11964 = vmatprep.subr.bf16.mxu0 %v16042_v55  ;;  %v23938_v55 = vrot.slane %v23898_v12, 1  ;;  %v23941_v12 = vld [vmem:[#allocation161_spill] sm:$0xff] }
 0x52b   : > { %11750 = vmatpush1.bf16.msra.mxu1 %v16031_v29  ;;  %v10210_v29 = vsel %vm10140_vm1, %v23937_v5, %v10209_v14 }
 0x52c   : > { %11751 = vmatprep.subr.bf16.mxu1 %v16039_v13  ;;  %10857 = vmatmul.mubr.bf16.gmra.mrb[52].mxu0 %v23914_v43  ;;  %v10214_v13 = vsel %vm10140_vm1, %v10209_v14, %v10213_v47 }
 0x52d   : > { %10866 = vmatprep.mubr.bf16.mxu0 %v23915_v15  ;;  %11965 = vmatpush1.bf16.msra.mxu0 %v16040_v31  ;;  %v10211_v31 = vrot.slane %v21915_v3, 1  ;;  %v23943_v3 = vld [vmem:[#allocation163_spill] sm:$0xff] }
 0x52e   : > { %10644 = vmatmul.mubr.bf16.gmra.mrb[52].mxu1 %v23914_v43  ;;  %11966 = vmatprep.subr.bf16.mxu0 %v16048_v59  ;;  %v23942_v59 = vld [vmem:[#allocation162_spill] sm:$0xff]  ;;  %v23944_v43 = vld [vmem:[#allocation164_spill] sm:$0xff] }
 0x52f   : > { %10653 = vmatprep.mubr.bf16.mxu1 %v23915_v15  ;;  %11752 = vmatpush1.bf16.msra.mxu1 %v16037_v40  ;;  %v10208_v40 = vsel %vm10140_vm1, %v23938_v55, %v10209_v14  ;;  %v10212_v7 = vsel %vm10140_vm1, %v10209_v14, %v10211_v31  ;;  %v23945_v15 = vld [vmem:[#allocation165_spill] sm:$0xff] }
 0x530   : > { %11753 = vmatprep.subr.bf16.mxu1 %v16045_v8  ;;  %v23939_v8 = vld [vmem:[#allocation159_spill] sm:$0xff] }
 0x531   : > { %11967 = vmatpush1.bf16.msra.mxu0 %v16046_v20  ;;  %v23947_v20 = vld [vmem:[#allocation167_spill] sm:$0xff] }
 0x532   : > { %11968 = vmatprep.subr.bf16.mxu0 %v16054_v35  ;;  %v23949_v35 = vld [vmem:[#allocation169_spill] sm:$0xff] }
 0x533   : > { %11754 = vmatpush1.bf16.msra.mxu1 %v16043_v63  ;;  %v23946_v63 = vld [vmem:[#allocation166_spill] sm:$0xff] }
 0x534   : > { %11755 = vmatprep.subr.bf16.mxu1 %v16051_v46  ;;  %10867 = vmatmul.mubr.bf16.gmra.mrb[56].mxu0 %v23916_v42  ;;  %v23948_v46 = vld [vmem:[#allocation168_spill] sm:$0xff] }
 0x535   : > { %10876 = vmatprep.mubr.bf16.mxu0 %v23917_v56  ;;  %11969 = vmatpush1.bf16.msra.mxu0 %v16052_v62  ;;  %v23951_v62 = vld [vmem:[#allocation171_spill] sm:$0xff] }
 0x536   : > { %10654 = vmatmul.mubr.bf16.gmra.mrb[56].mxu1 %v23916_v42  ;;  %11970 = vmatprep.subr.bf16.mxu0 %v16060_v57  ;;  %v23953_v57 = vld [vmem:[#allocation173_spill] sm:$0xff]  ;;  %v23954_v42 = vld [vmem:[#allocation174_spill] sm:$0xff] }
 0x537   : > { %10663 = vmatprep.mubr.bf16.mxu1 %v23917_v56  ;;  %11756 = vmatpush1.bf16.msra.mxu1 %v16049_v49  ;;  %v23950_v49 = vld [vmem:[#allocation170_spill] sm:$0xff]  ;;  %v23955_v56 = vld [vmem:[#allocation175_spill] sm:$0xff] }
 0x538   : > { %11757 = vmatprep.subr.bf16.mxu1 %v16057_v39  ;;  %v23952_v39 = vld [vmem:[#allocation172_spill] sm:$0xff] }
 0x539   : > { %11971 = vmatpush1.bf16.msra.mxu0 %v16058_v16  ;;  %v23957_v16 = vld [vmem:[#allocation177_spill] sm:$0xff] }
 0x53a   : > { %11972 = vmatprep.subr.bf16.mxu0 %v16066_v9  ;;  %v23959_v9 = vld [vmem:[#allocation179_spill] sm:$0xff] }
 0x53b   : > { %11758 = vmatpush1.bf16.msra.mxu1 %v16055_v6  ;;  %v23956_v6 = vld [vmem:[#allocation176_spill] sm:$0xff] }
 0x53c   : > { %11759 = vmatprep.subr.bf16.mxu1 %v16063_v27  ;;  %10877 = vmatmul.mubr.bf16.gmra.mrb[60].mxu0 %v23918_v25  ;;  %v23958_v27 = vld [vmem:[#allocation178_spill] sm:$0xff] }
 0x53d   : > { %10886 = vmatprep.mubr.bf16.mxu0 %v23919_v23  ;;  %11973 = vmatpush1.bf16.msra.mxu0 %v16064_v44  ;;  %v23961_v44 = vld [vmem:[#allocation181_spill] sm:$0xff] }
 0x53e   : > { %10664 = vmatmul.mubr.bf16.gmra.mrb[60].mxu1 %v23918_v25  ;;  %11974 = vmatprep.subr.bf16.mxu0 %v16072_v28  ;;  %v23963_v28 = vld [vmem:[#allocation183_spill] sm:$0xff]  ;;  %v23964_v25 = vld [vmem:[#allocation184_spill] sm:$0xff] }
 0x53f   : > { %10673 = vmatprep.mubr.bf16.mxu1 %v23919_v23  ;;  %11760 = vmatpush1.bf16.msra.mxu1 %v16061_v2  ;;  %v23960_v2 = vld [vmem:[#allocation180_spill] sm:$0xff]  ;;  %v23965_v23 = vld [vmem:[#allocation95_spill] sm:$0xff] }
 0x540   : > { %11761 = vmatprep.subr.bf16.mxu1 %v16069_v34  ;;  %v23962_v34 = vld [vmem:[#allocation182_spill] sm:$0xff] }
 0x541   : > { %11975 = vmatpush1.bf16.msra.mxu0 %v16070_v0  ;;  %v23967_v0 = vld [vmem:[#allocation185_spill] sm:$0xff] }
 0x542   : > { %11976 = vmatprep.subr.bf16.mxu0 %v16078_v53  ;;  %v23968_v53 = vld [vmem:[#allocation186_spill] sm:$0xff] }
 0x543   : > { %11762 = vmatpush1.bf16.msra.mxu1 %v16067_v11  ;;  %v23966_v11 = vld [vmem:[#allocation96_spill] sm:$0xff] }
 0x544   : > { %11763 = vmatprep.subr.bf16.mxu1 %v16075_v45  ;;  %10887 = vmatmul.mubr.bf16.gmra.mrb[64].mxu0 %v23920_v19  ;;  %v11142_v45 = vld [vmem:[#allocation2 + $0x158] sm:$0x3] }
 0x545   : > { %10896 = vmatprep.mubr.bf16.mxu0 %v23921_v24  ;;  %11977 = vmatpush1.bf16.msra.mxu0 %v16076_v52  ;;  %v11371_v52 = vshrl.u32 %v11142_v45, 16 }
 0x546   : > { %10674 = vmatmul.mubr.bf16.gmra.mrb[64].mxu1 %v23920_v19  ;;  %11978 = vmatprep.subr.bf16.mxu0 %v16084_v4 }
 0x547   : > { %10683 = vmatprep.mubr.bf16.mxu1 %v23921_v24  ;;  %11764 = vmatpush1.bf16.msra.mxu1 %v16073_v38  ;;  %v23969_v38 = vld [vmem:[#allocation187_spill] sm:$0xff]  ;;  %v11373_v4 = vrot.slane %v11371_v52, 1  ;;  %v11141_v24 = vld [vmem:[#allocation2 + $0x150] sm:$0x3] }
 0x548   : > { %11765 = vmatprep.subr.bf16.mxu1 %v16081_v30  ;;  %v11374_v30 = vshll.u32 %v11142_v45, 16 }
 0x549   : > { %11979 = vmatpush1.bf16.msra.mxu0 %v16082_v32  ;;  %v23971_v32 = vld [vmem:[#allocation99_spill] sm:$0xff] }
 0x54a   : > { %v11376_v19 = vrot.slane %v11374_v30, 2 }
 0x54b   : > { %11766 = vmatpush1.bf16.msra.mxu1 %v16079_v22  ;;  %v23970_v22 = vld [vmem:[#allocation188_spill] sm:$0xff] }
 0x54c   : > { %10897 = vmatmul.mubr.bf16.gmra.mrb[68].mxu0 %v23922_v37 }
 0x54d   : > { %10906 = vmatprep.mubr.bf16.mxu0 %v23923_v17 }
 0x54e   : > { %10684 = vmatmul.mubr.bf16.gmra.mrb[68].mxu1 %v23922_v37  ;;  %v11362_v37 = vshrl.u32 %v11141_v24, 16 }
 0x54f   : > { %10693 = vmatprep.mubr.bf16.mxu1 %v23923_v17  ;;  %v11365_v17 = vshll.u32 %v11141_v24, 16 }
 0x554   : > { %10907 = vmatmul.mubr.bf16.gmra.mrb[72].mxu0 %v23924_v36 }
 0x555   : > { %10916 = vmatprep.mubr.bf16.mxu0 %v23925_v10 }
 0x556   : > { %10694 = vmatmul.mubr.bf16.gmra.mrb[72].mxu1 %v23924_v36  ;;  %v11377_v36 = vor.u32 %v11376_v19, %v11373_v4  ;;  %v23981_v19 = vld [vmem:[#allocation36_spill] sm:$0xff] }
 0x557   : > { %10703 = vmatprep.mubr.bf16.mxu1 %v23925_v10  ;;  %v11364_v10 = vrot.slane %v11362_v37, 1 }
 0x55c   : > { %10917 = vmatmul.mubr.bf16.gmra.mrb[76].mxu0 %v23926_v61 }
 0x55d   : > { %10926 = vmatprep.mubr.bf16.mxu0 %v23927_v50 }
 0x55e   : > { %10704 = vmatmul.mubr.bf16.gmra.mrb[76].mxu1 %v23926_v61  ;;  %v11367_v61 = vrot.slane %v11365_v17, 2 }
 0x55f   : > { %10713 = vmatprep.mubr.bf16.mxu1 %v23927_v50  ;;  %v23972_v50 = vld [vmem:[#allocation98_spill] sm:$0xff] }
 0x564   : > { %10927 = vmatmul.mubr.bf16.gmra.mrb[80].mxu0 %v23928_v21 }
 0x565   : > { %10936 = vmatprep.mubr.bf16.mxu0 %v23929_v51 }
 0x566   : > { %10714 = vmatmul.mubr.bf16.gmra.mrb[80].mxu1 %v23928_v21  ;;  %v11378_v21 = vsel %vm11208_vm0, %v23972_v50, %v11377_v36  ;;  %v23982_v36 = vld [vmem:[#allocation10_spill] sm:$0xff] }
 0x567   : > { %10723 = vmatprep.mubr.bf16.mxu1 %v23929_v51  ;;  %v23973_v51 = vld [vmem:[#allocation100_spill] sm:$0xff] }
 0x56c   : > { %10937 = vmatmul.mubr.bf16.gmra.mrb[84].mxu0 %v23930_v18 }
 0x56d   : > { %10946 = vmatprep.mubr.bf16.mxu0 %v23931_v58 }
 0x56e   : > { %10724 = vmatmul.mubr.bf16.gmra.mrb[84].mxu1 %v23930_v18  ;;  %v11368_v18 = vor.u32 %v11367_v61, %v11364_v10 }
 0x56f   : > { %10733 = vmatprep.mubr.bf16.mxu1 %v23931_v58 }
 0x570   : > { %v11369_v58 = vsel %vm11208_vm0, %v23972_v50, %v11368_v18 }
 0x574   : > { %10947 = vmatmul.mubr.bf16.gmra.mrb[88].mxu0 %v23932_v48 }
 0x575   : > { %10956 = vmatprep.mubr.bf16.mxu0 %v23933_v1 }
 0x576   : > { %10734 = vmatmul.mubr.bf16.gmra.mrb[88].mxu1 %v23932_v48  ;;  %v12305_v48 = vld [vmem:[%s22573_s5] sm:$0xf] }
 0x577   : > { %10743 = vmatprep.mubr.bf16.mxu1 %v23933_v1  ;;  %v23974_v1 = vld [vmem:[#allocation4_spill] sm:$0xff]  ;;  %v22262_v14 = vrot.slane %v12305_v48, %v23975_v41 }
 0x57c   : > { %10957 = vmatmul.mubr.bf16.gmra.mrb[92].mxu0 %v23934_v33 }
 0x57d   : > { %10966 = vmatprep.mubr.bf16.mxu0 %v23935_v60 }
 0x57e   : > { %10744 = vmatmul.mubr.bf16.gmra.mrb[92].mxu1 %v23934_v33  ;;  %v12317_v33 = vsub.s32 2, %v23974_v1 }
 0x57f   : > { %10753 = vmatprep.mubr.bf16.mxu1 %v23935_v60  ;;  %v12321_v60 = vsub.s32 3, %v23974_v1  ;;  %v23984_v1 = vld [vmem:[#allocation21_spill] sm:$0xff] }
 0x581   : > { %v22269_v55 = vrot.slane %v12305_v48, %v12321_v60 }
 0x584   : > { %10967 = vmatmul.mubr.bf16.gmra.mrb[96].mxu0 %v23936_v26 }
 0x585   : > { %10976 = vmatprep.mubr.bf16.mxu0 %v10210_v29 }
 0x586   : > { %10754 = vmatmul.mubr.bf16.gmra.mrb[96].mxu1 %v23936_v26  ;;  %v23976_v26 = vld [vmem:[#allocation7_spill] sm:$0xff] }
 0x587   : > { %10763 = vmatprep.mubr.bf16.mxu1 %v10210_v29  ;;  %v22265_v5 = vrot.slane %v12305_v48, %v23976_v26  ;;  %v22267_v29 = vrot.slane %v12305_v48, %v12317_v33 }
 0x58c   : > { %10977 = vmatmul.mubr.bf16.gmra.mrb[100].mxu0 %v10208_v40 }
 0x58d   : > { %10986 = vmatprep.mubr.bf16.mxu0 %v10214_v13 }
 0x58e   : > { %10764 = vmatmul.mubr.bf16.gmra.mrb[100].mxu1 %v10208_v40 }
 0x58f   : > { %10773 = vmatprep.mubr.bf16.mxu1 %v10214_v13 }
 0x594   : > { %10987 = vmatmul.mubr.bf16.gmra.mrb[104].mxu0 %v10212_v7 }
 0x595   : > { %11980 = vmatprep.mubr.bf16.mxu0 %v23939_v8 }
 0x596   : > { %10774 = vmatmul.mubr.bf16.gmra.mrb[104].mxu1 %v10212_v7 }
 0x597   : > { %11767 = vmatprep.mubr.bf16.mxu1 %v23939_v8 }
 0x59c   : > { %11981 = vmatmul.mubr.bf16.vlgmr.msra.gmra.mrb[36].mxu0 %v23940_v54 }
 0x59d   : > { %11990 = vmatprep.mubr.bf16.mxu0 %v23941_v12 }
 0x59e   : > { %11768 = vmatmul.mubr.bf16.vlgmr.msra.gmra.mrb[36].mxu1 %v23940_v54 }
 0x59f   : > { %11777 = vmatprep.mubr.bf16.mxu1 %v23941_v12 }
 0x5a4   : > { %11991 = vmatmul.mubr.bf16.gmra.mrb[40].mxu0 %v23942_v59 }
 0x5a5   : > { %12000 = vmatprep.mubr.bf16.mxu0 %v23943_v3 }
 0x5a6   : > { %11778 = vmatmul.mubr.bf16.gmra.mrb[40].mxu1 %v23942_v59  ;;  %v23977_v59 = vld [vmem:[#allocation31_spill] sm:$0xff] }
 0x5a7   : > { %11787 = vmatprep.mubr.bf16.mxu1 %v23943_v3 }
 0x5ac   : > { %12001 = vmatmul.mubr.bf16.gmra.mrb[44].mxu0 %v23944_v43 }
 0x5ad   : > { %12010 = vmatprep.mubr.bf16.mxu0 %v23945_v15 }
 0x5ae   : > { %11788 = vmatmul.mubr.bf16.gmra.mrb[44].mxu1 %v23944_v43 }
 0x5af   : > { %11797 = vmatprep.mubr.bf16.mxu1 %v23945_v15 }
 0x5b4   : > { %12011 = vmatmul.mubr.bf16.gmra.mrb[48].mxu0 %v23946_v63 }
 0x5b5   : > { %12020 = vmatprep.mubr.bf16.mxu0 %v23947_v20 }
 0x5b6   : > { %11798 = vmatmul.mubr.bf16.gmra.mrb[48].mxu1 %v23946_v63 }
 0x5b7   : > { %11807 = vmatprep.mubr.bf16.mxu1 %v23947_v20 }
 0x5bc   : > { %12021 = vmatmul.mubr.bf16.gmra.mrb[52].mxu0 %v23948_v46 }
 0x5bd   : > { %12030 = vmatprep.mubr.bf16.mxu0 %v23949_v35 }
 0x5be   : > { %11808 = vmatmul.mubr.bf16.gmra.mrb[52].mxu1 %v23948_v46  ;;  %v23978_v46 = vld [vmem:[#allocation30_spill] sm:$0xff] }
 0x5bf   : > { %11817 = vmatprep.mubr.bf16.mxu1 %v23949_v35 }
 0x5c4   : > { %12031 = vmatmul.mubr.bf16.gmra.mrb[56].mxu0 %v23950_v49 }
 0x5c5   : > { %12040 = vmatprep.mubr.bf16.mxu0 %v23951_v62 }
 0x5c6   : > { %11818 = vmatmul.mubr.bf16.gmra.mrb[56].mxu1 %v23950_v49 }
 0x5c7   : > { %11827 = vmatprep.mubr.bf16.mxu1 %v23951_v62 }
 0x5cc   : > { %12041 = vmatmul.mubr.bf16.gmra.mrb[60].mxu0 %v23952_v39 }
 0x5cd   : > { %12050 = vmatprep.mubr.bf16.mxu0 %v23953_v57 }
 0x5ce   : > { %11828 = vmatmul.mubr.bf16.gmra.mrb[60].mxu1 %v23952_v39 }
 0x5cf   : > { %11837 = vmatprep.mubr.bf16.mxu1 %v23953_v57  ;;  %v23979_v57 = vld [vmem:[#allocation32_spill] sm:$0xff] }
 0x5d4   : > { %12051 = vmatmul.mubr.bf16.gmra.mrb[64].mxu0 %v23954_v42 }
 0x5d5   : > { %12060 = vmatprep.mubr.bf16.mxu0 %v23955_v56 }
 0x5d6   : > { %11838 = vmatmul.mubr.bf16.gmra.mrb[64].mxu1 %v23954_v42 }
 0x5d7   : > { %11847 = vmatprep.mubr.bf16.mxu1 %v23955_v56 }
 0x5dc   : > { %12061 = vmatmul.mubr.bf16.gmra.mrb[68].mxu0 %v23956_v6 }
 0x5dd   : > { %12070 = vmatprep.mubr.bf16.mxu0 %v23957_v16 }
 0x5de   : > { %11848 = vmatmul.mubr.bf16.gmra.mrb[68].mxu1 %v23956_v6 }
 0x5df   : > { %11857 = vmatprep.mubr.bf16.mxu1 %v23957_v16  ;;  %v23980_v16 = vld [vmem:[#allocation28_spill] sm:$0xff] }
 0x5e4   : > { %12071 = vmatmul.mubr.bf16.gmra.mrb[72].mxu0 %v23958_v27 }
 0x5e5   : > { %12080 = vmatprep.mubr.bf16.mxu0 %v23959_v9 }
 0x5e6   : > { %11858 = vmatmul.mubr.bf16.gmra.mrb[72].mxu1 %v23958_v27 }
 0x5e7   : > { %11867 = vmatprep.mubr.bf16.mxu1 %v23959_v9 }
 0x5ec   : > { %12081 = vmatmul.mubr.bf16.gmra.mrb[76].mxu0 %v23960_v2 }
 0x5ed   : > { %12090 = vmatprep.mubr.bf16.mxu0 %v23961_v44 }
 0x5ee   : > { %11868 = vmatmul.mubr.bf16.gmra.mrb[76].mxu1 %v23960_v2 }
 0x5ef   : > { %11877 = vmatprep.mubr.bf16.mxu1 %v23961_v44 }
 0x5f4   : > { %12091 = vmatmul.mubr.bf16.gmra.mrb[80].mxu0 %v23962_v34 }
 0x5f5   : > { %12100 = vmatprep.mubr.bf16.mxu0 %v23963_v28 }
 0x5f6   : > { %11878 = vmatmul.mubr.bf16.gmra.mrb[80].mxu1 %v23962_v34 }
 0x5f7   : > { %11887 = vmatprep.mubr.bf16.mxu1 %v23963_v28 }
 0x5fc   : > { %12101 = vmatmul.mubr.bf16.gmra.mrb[84].mxu0 %v23964_v25 }
 0x5fd   : > { %12110 = vmatprep.mubr.bf16.mxu0 %v23965_v23 }
 0x5fe   : > { %11888 = vmatmul.mubr.bf16.gmra.mrb[84].mxu1 %v23964_v25 }
 0x5ff   : > { %11897 = vmatprep.mubr.bf16.mxu1 %v23965_v23 }
 0x604   : > { %12111 = vmatmul.mubr.bf16.gmra.mrb[88].mxu0 %v23966_v11 }
 0x605   : > { %12120 = vmatprep.mubr.bf16.mxu0 %v23967_v0 }
 0x606   : > { %11898 = vmatmul.mubr.bf16.gmra.mrb[88].mxu1 %v23966_v11 }
 0x607   : > { %11907 = vmatprep.mubr.bf16.mxu1 %v23967_v0 }
 0x60c   : > { %12121 = vmatmul.mubr.bf16.gmra.mrb[92].mxu0 %v23968_v53 }
 0x60d   : > { %12130 = vmatprep.mubr.bf16.mxu0 %v23969_v38 }
 0x60e   : > { %11908 = vmatmul.mubr.bf16.gmra.mrb[92].mxu1 %v23968_v53 }
 0x60f   : > { %11917 = vmatprep.mubr.bf16.mxu1 %v23969_v38 }
 0x614   : > { %12131 = vmatmul.mubr.bf16.gmra.mrb[96].mxu0 %v23970_v22 }
 0x615   : > { %12140 = vmatprep.mubr.bf16.mxu0 %v23971_v32 }
 0x616   : > { %11918 = vmatmul.mubr.bf16.gmra.mrb[96].mxu1 %v23970_v22 }
 0x617   : > { %11927 = vmatprep.mubr.bf16.mxu1 %v23971_v32 }
 0x61c   : > { %12141 = vmatmul.mubr.bf16.gmra.mrb[100].mxu0 %v23973_v51 }
 0x61d   : > { %12150 = vmatprep.mubr.bf16.mxu0 %v11378_v21 }
 0x61e   : > { %11928 = vmatmul.mubr.bf16.gmra.mrb[100].mxu1 %v23973_v51  ;;  %v23983_v51 = vld [vmem:[#allocation38_spill] sm:$0xff] }
 0x61f   : > { %11937 = vmatprep.mubr.bf16.mxu1 %v11378_v21 }
 0x624   : > { %12151 = vmatmul.mubr.bf16.gmra.mrb[104].mxu0 %v11369_v58 }
 0x626   : > { %11938 = vmatmul.mubr.bf16.gmra.mrb[104].mxu1 %v11369_v58 }
 0x66f   : > { %v11982_v13 = vpop.f32.mrb[36].mxu0 }
 0x670   : > { %v11984_v7 = vpop.f32.mrb[37].mxu0  ;;  %v12329_v43 = vadd.f32 %v22267_v29, %v11982_v13 }
 0x671   : > { %v11769_v47 = vpop.f32.mrb[36].mxu1  ;;  %v11986_v12 = vpop.f32.mrb[38].mxu0  ;;  %v12330_v49 = vadd.f32 %v22269_v55, %v11984_v7 }
 0x672   : > { %v12327_v40 = vadd.f32 %v22262_v14, %v11769_v47  ;;  %v11771_v31 = vpop.f32.mrb[37].mxu1  ;;  %v11988_v20 = vpop.f32.mrb[39].mxu0  ;;  %v12333_v56 = vadd.f32 %v22267_v29, %v11986_v12 }
 0x673   : > { %v12328_v8 = vadd.f32 %v22265_v5, %v11771_v31  ;;  %v11773_v54 = vpop.f32.mrb[38].mxu1  ;;  %v12334_v9 = vadd.f32 %v22269_v55, %v11988_v20 }
 0x674   : > { %v12471_v3 = vmul.f32 %v12327_v40, %v23977_v59  ;;  %v12331_v15 = vadd.f32 %v22262_v14, %v11773_v54  ;;  %v11775_v63 = vpop.f32.mrb[39].mxu1 }
 0x675   : > { %v12472_v35 = vmul.f32 %v12328_v8, %v23978_v46  ;;  %v12332_v62 = vadd.f32 %v22265_v5, %v11775_v63  ;;  %v23985_v63 = vld [vmem:[#allocation44_spill] sm:$0xff] }
 0x676   : > { %v12543_v39 = vadd.f32 %v12471_v3, %v12329_v43  ;;  %v12473_v42 = vmul.f32 %v12331_v15, %v23979_v57 }
 0x677   : > { %v12544_v6 = vadd.f32 %v12472_v35, %v12330_v49  ;;  %v12474_v27 = vmul.f32 %v12332_v62, %v23980_v16  ;;  %v11992_v23 = vpop.f32.mrb[40].mxu0  ;;  %v23987_v16 = vld [vmem:[#allocation3_spill] sm:$0xff] }
 0x678   : > { %v12615_v2 = vmax.f32 %v12543_v39, 0.0  ;;  %v12545_v44 = vadd.f32 %v12473_v42, %v12333_v56  ;;  %v11994_v53 = vpop.f32.mrb[41].mxu0  ;;  %v12337_v22 = vadd.f32 %v22267_v29, %v11992_v23  ;;  %v23986_v39 = vld [vmem:[#allocation22_spill] sm:$0xff] }
 0x679   : > { %v12616_v34 = vmax.f32 %v12544_v6, 0.0  ;;  %v12546_v28 = vadd.f32 %v12474_v27, %v12334_v9  ;;  %v11779_v25 = vpop.f32.mrb[40].mxu1  ;;  %v11996_v4 = vpop.f32.mrb[42].mxu0  ;;  %v12338_v61 = vadd.f32 %v22269_v55, %v11994_v53 }
 0x67a   : > { %12687 = vst [vmem:[%s22285_s11] sm:$0xff] %v12615_v2  ;;  %v12617_v11 = vmax.f32 %v12545_v44, 0.0  ;;  %v12335_v0 = vadd.f32 %v22262_v14, %v11779_v25  ;;  %v11781_v45 = vpop.f32.mrb[41].mxu1  ;;  %v11998_v17 = vpop.f32.mrb[43].mxu0  ;;  %v12341_v58 = vadd.f32 %v22267_v29, %v11996_v4  ;;  %v23988_v44 = vld [vmem:[#allocation23_spill] sm:$0xff] }
 0x67b   : > { %12688 = vst [vmem:[%s22285_s11 + $0x8] sm:$0xff] %v12616_v34  ;;  %v12618_v38 = vmax.f32 %v12546_v28, 0.0  ;;  %v12336_v52 = vadd.f32 %v22265_v5, %v11781_v45  ;;  %v11783_v30 = vpop.f32.mrb[42].mxu1  ;;  %v12342_v60 = vadd.f32 %v22269_v55, %v11998_v17 }
 0x67c   : > { %12689 = vst [vmem:[%s22285_s11 + $0x10] sm:$0xff] %v12617_v11  ;;  %v12475_v24 = vmul.f32 %v12335_v0, %v23981_v19  ;;  %v12339_v32 = vadd.f32 %v22262_v14, %v11783_v30  ;;  %v11785_v37 = vpop.f32.mrb[43].mxu1 }
 0x67d   : > { %12690 = vst [vmem:[%s22285_s11 + $0x18] sm:$0xff] %v12618_v38  ;;  %v12476_v10 = vmul.f32 %v12336_v52, %v23982_v36  ;;  %v12340_v50 = vadd.f32 %v22265_v5, %v11785_v37  ;;  %v23989_v37 = vld [vmem:[#allocation45_spill] sm:$0xff] }
 0x67e   : > { %v12547_v21 = vadd.f32 %v12475_v24, %v12337_v22  ;;  %v12477_v18 = vmul.f32 %v12339_v32, %v23983_v51 }
 0x67f   : > { %v12548_v48 = vadd.f32 %v12476_v10, %v12338_v61  ;;  %v12478_v33 = vmul.f32 %v12340_v50, %v23984_v1  ;;  %v12002_v31 = vpop.f32.mrb[44].mxu0  ;;  %v23991_v1 = vld [vmem:[#allocation46_spill] sm:$0xff] }
 0x680   : > { %v12619_v41 = vmax.f32 %v12547_v21, 0.0  ;;  %v12549_v26 = vadd.f32 %v12477_v18, %v12341_v58  ;;  %v12004_v12 = vpop.f32.mrb[45].mxu0  ;;  %v12345_v46 = vadd.f32 %v22267_v29, %v12002_v31  ;;  %v23990_v21 = vld [vmem:[#allocation24_spill] sm:$0xff] }
 0x681   : > { %v12620_v47 = vmax.f32 %v12548_v48, 0.0  ;;  %v12550_v13 = vadd.f32 %v12478_v33, %v12342_v60  ;;  %v11789_v40 = vpop.f32.mrb[44].mxu1  ;;  %v12006_v15 = vpop.f32.mrb[46].mxu0  ;;  %v12346_v42 = vadd.f32 %v22269_v55, %v12004_v12 }
 0x682   : > { %12691 = vst [vmem:[%s22285_s11 + $0x20] sm:$0xff] %v12619_v41  ;;  %v12621_v7 = vmax.f32 %v12549_v26, 0.0  ;;  %v12343_v8 = vadd.f32 %v22262_v14, %v11789_v40  ;;  %v11791_v54 = vpop.f32.mrb[45].mxu1  ;;  %v12008_v62 = vpop.f32.mrb[47].mxu0  ;;  %v12349_v9 = vadd.f32 %v22267_v29, %v12006_v15  ;;  %v23992_v26 = vld [vmem:[#allocation25_spill] sm:$0xff] }
 0x683   : > { %12692 = vst [vmem:[%s22285_s11 + $0x28] sm:$0xff] %v12620_v47  ;;  %v12622_v59 = vmax.f32 %v12550_v13, 0.0  ;;  %v12344_v3 = vadd.f32 %v22265_v5, %v11791_v54  ;;  %v11793_v43 = vpop.f32.mrb[46].mxu1  ;;  %v12350_v28 = vadd.f32 %v22269_v55, %v12008_v62 }
 0x684   : > { %12693 = vst [vmem:[%s22285_s11 + $0x30] sm:$0xff] %v12621_v7  ;;  %v12479_v20 = vmul.f32 %v12343_v8, %v23985_v63  ;;  %v12347_v35 = vadd.f32 %v22262_v14, %v11793_v43  ;;  %v11795_v49 = vpop.f32.mrb[47].mxu1 }
 0x685   : > { %12694 = vst [vmem:[%s22285_s11 + $0x38] sm:$0xff] %v12622_v59  ;;  %v12480_v57 = vmul.f32 %v12344_v3, %v23986_v39  ;;  %v12348_v56 = vadd.f32 %v22265_v5, %v11795_v49  ;;  %v23993_v49 = vld [vmem:[#allocation47_spill] sm:$0xff] }
 0x686   : > { %v12551_v6 = vadd.f32 %v12479_v20, %v12345_v46  ;;  %v12481_v27 = vmul.f32 %v12347_v35, %v23987_v16 }
 0x687   : > { %v12552_v2 = vadd.f32 %v12480_v57, %v12346_v42  ;;  %v12482_v34 = vmul.f32 %v12348_v56, %v23988_v44  ;;  %v12012_v53 = vpop.f32.mrb[48].mxu0  ;;  %v23995_v44 = vld [vmem:[#allocation48_spill] sm:$0xff] }
 0x688   : > { %v12623_v25 = vmax.f32 %v12551_v6, 0.0  ;;  %v12553_v23 = vadd.f32 %v12481_v27, %v12349_v9  ;;  %v12014_v4 = vpop.f32.mrb[49].mxu0  ;;  %v12353_v36 = vadd.f32 %v22267_v29, %v12012_v53  ;;  %v23994_v6 = vld [vmem:[#allocation19_spill] sm:$0xff] }
 0x689   : > { %v12624_v11 = vmax.f32 %v12552_v2, 0.0  ;;  %v12554_v0 = vadd.f32 %v12482_v34, %v12350_v28  ;;  %v11799_v45 = vpop.f32.mrb[48].mxu1  ;;  %v12016_v32 = vpop.f32.mrb[50].mxu0  ;;  %v12354_v18 = vadd.f32 %v22269_v55, %v12014_v4 }
 0x68a   : > { %12695 = vst [vmem:[%s22285_s11 + $0x40] sm:$0xff] %v12623_v25  ;;  %v12625_v38 = vmax.f32 %v12553_v23, 0.0  ;;  %v12351_v52 = vadd.f32 %v22262_v14, %v11799_v45  ;;  %v11801_v30 = vpop.f32.mrb[49].mxu1  ;;  %v12018_v50 = vpop.f32.mrb[51].mxu0  ;;  %v12357_v60 = vadd.f32 %v22267_v29, %v12016_v32  ;;  %v23996_v23 = vld [vmem:[#allocation39_spill] sm:$0xff] }
 0x68b   : > { %12696 = vst [vmem:[%s22285_s11 + $0x48] sm:$0xff] %v12624_v11  ;;  %v12626_v19 = vmax.f32 %v12554_v0, 0.0  ;;  %v12352_v24 = vadd.f32 %v22265_v5, %v11801_v30  ;;  %v11803_v22 = vpop.f32.mrb[50].mxu1  ;;  %v12358_v13 = vadd.f32 %v22269_v55, %v12018_v50 }
 0x68c   : > { %12697 = vst [vmem:[%s22285_s11 + $0x50] sm:$0xff] %v12625_v38  ;;  %v12483_v17 = vmul.f32 %v12351_v52, %v23989_v37  ;;  %v12355_v10 = vadd.f32 %v22262_v14, %v11803_v22  ;;  %v11805_v61 = vpop.f32.mrb[51].mxu1 }
 0x68d   : > { %12698 = vst [vmem:[%s22285_s11 + $0x58] sm:$0xff] %v12626_v19  ;;  %v12484_v51 = vmul.f32 %v12352_v24, %v23990_v21  ;;  %v12356_v58 = vadd.f32 %v22265_v5, %v11805_v61  ;;  %v23997_v61 = vld [vmem:[#allocation49_spill] sm:$0xff] }
 0x68e   : > { %v12555_v48 = vadd.f32 %v12483_v17, %v12353_v36  ;;  %v12485_v33 = vmul.f32 %v12355_v10, %v23991_v1 }
 0x68f   : > { %v12556_v41 = vadd.f32 %v12484_v51, %v12354_v18  ;;  %v12486_v47 = vmul.f32 %v12356_v58, %v23992_v26  ;;  %v12022_v12 = vpop.f32.mrb[52].mxu0  ;;  %v23999_v26 = vld [vmem:[#allocation41_spill] sm:$0xff] }
 0x690   : > { %v12627_v40 = vmax.f32 %v12555_v48, 0.0  ;;  %v12557_v31 = vadd.f32 %v12485_v33, %v12357_v60  ;;  %v12024_v15 = vpop.f32.mrb[53].mxu0  ;;  %v12361_v39 = vadd.f32 %v22267_v29, %v12022_v12  ;;  %v23998_v48 = vld [vmem:[#allocation40_spill] sm:$0xff] }
 0x691   : > { %v12628_v7 = vmax.f32 %v12556_v41, 0.0  ;;  %v12558_v8 = vadd.f32 %v12486_v47, %v12358_v13  ;;  %v11809_v54 = vpop.f32.mrb[52].mxu1  ;;  %v12026_v35 = vpop.f32.mrb[54].mxu0  ;;  %v12362_v27 = vadd.f32 %v22269_v55, %v12024_v15 }
 0x692   : > { %12699 = vst [vmem:[%s22285_s11 + $0x60] sm:$0xff] %v12627_v40  ;;  %v12629_v59 = vmax.f32 %v12557_v31, 0.0  ;;  %v12359_v3 = vadd.f32 %v22262_v14, %v11809_v54  ;;  %v11811_v43 = vpop.f32.mrb[53].mxu1  ;;  %v12028_v56 = vpop.f32.mrb[55].mxu0  ;;  %v12365_v28 = vadd.f32 %v22267_v29, %v12026_v35  ;;  %v24000_v31 = vld [vmem:[#allocation35_spill] sm:$0xff] }
 0x693   : > { %12700 = vst [vmem:[%s22285_s11 + $0x68] sm:$0xff] %v12628_v7  ;;  %v12630_v63 = vmax.f32 %v12558_v8, 0.0  ;;  %v12360_v20 = vadd.f32 %v22265_v5, %v11811_v43  ;;  %v11813_v46 = vpop.f32.mrb[54].mxu1  ;;  %v12366_v0 = vadd.f32 %v22269_v55, %v12028_v56 }
 0x694   : > { %12701 = vst [vmem:[%s22285_s11 + $0x70] sm:$0xff] %v12629_v59  ;;  %v12487_v62 = vmul.f32 %v12359_v3, %v23993_v49  ;;  %v12363_v57 = vadd.f32 %v22262_v14, %v11813_v46  ;;  %v11815_v42 = vpop.f32.mrb[55].mxu1 }
 0x695   : > { %12702 = vst [vmem:[%s22285_s11 + $0x78] sm:$0xff] %v12630_v63  ;;  %v12488_v16 = vmul.f32 %v12360_v20, %v23994_v6  ;;  %v12364_v9 = vadd.f32 %v22265_v5, %v11815_v42  ;;  %v24001_v42 = vld [vmem:[#allocation71_spill] sm:$0xff] }
 0x696   : > { %v12559_v2 = vadd.f32 %v12487_v62, %v12361_v39  ;;  %v12489_v34 = vmul.f32 %v12363_v57, %v23995_v44 }
 0x697   : > { %v12560_v25 = vadd.f32 %v12488_v16, %v12362_v27  ;;  %v12490_v11 = vmul.f32 %v12364_v9, %v23996_v23  ;;  %v12032_v4 = vpop.f32.mrb[56].mxu0  ;;  %v24003_v23 = vld [vmem:[#allocation73_spill] sm:$0xff] }
 0x698   : > { %v12631_v45 = vmax.f32 %v12559_v2, 0.0  ;;  %v12561_v53 = vadd.f32 %v12489_v34, %v12365_v28  ;;  %v12034_v32 = vpop.f32.mrb[57].mxu0  ;;  %v12369_v21 = vadd.f32 %v22267_v29, %v12032_v4  ;;  %v24002_v2 = vld [vmem:[#allocation72_spill] sm:$0xff] }
 0x699   : > { %v12632_v38 = vmax.f32 %v12560_v25, 0.0  ;;  %v12562_v52 = vadd.f32 %v12490_v11, %v12366_v0  ;;  %v11819_v30 = vpop.f32.mrb[56].mxu1  ;;  %v12036_v10 = vpop.f32.mrb[58].mxu0  ;;  %v12370_v33 = vadd.f32 %v22269_v55, %v12034_v32 }
 0x69a   : > { %12703 = vst [vmem:[%s22285_s11 + $0x80] sm:$0xff] %v12631_v45  ;;  %v12633_v19 = vmax.f32 %v12561_v53, 0.0  ;;  %v12367_v24 = vadd.f32 %v22262_v14, %v11819_v30  ;;  %v11821_v22 = vpop.f32.mrb[57].mxu1  ;;  %v12038_v58 = vpop.f32.mrb[59].mxu0  ;;  %v12373_v13 = vadd.f32 %v22267_v29, %v12036_v10  ;;  %v24004_v53 = vld [vmem:[#allocation74_spill] sm:$0xff] }
 0x69b   : > { %12704 = vst [vmem:[%s22285_s11 + $0x88] sm:$0xff] %v12632_v38  ;;  %v12634_v37 = vmax.f32 %v12562_v52, 0.0  ;;  %v12368_v17 = vadd.f32 %v22265_v5, %v11821_v22  ;;  %v11823_v36 = vpop.f32.mrb[58].mxu1  ;;  %v12374_v8 = vadd.f32 %v22269_v55, %v12038_v58 }
 0x69c   : > { %12705 = vst [vmem:[%s22285_s11 + $0x90] sm:$0xff] %v12633_v19  ;;  %v12491_v50 = vmul.f32 %v12367_v24, %v23997_v61  ;;  %v12371_v51 = vadd.f32 %v22262_v14, %v11823_v36  ;;  %v11825_v18 = vpop.f32.mrb[59].mxu1 }
 0x69d   : > { %12706 = vst [vmem:[%s22285_s11 + $0x98] sm:$0xff] %v12634_v37  ;;  %v12492_v1 = vmul.f32 %v12368_v17, %v23998_v48  ;;  %v12372_v60 = vadd.f32 %v22265_v5, %v11825_v18  ;;  %v24005_v18 = vld [vmem:[#allocation55_spill] sm:$0xff] }
 0x69e   : > { %v12563_v41 = vadd.f32 %v12491_v50, %v12369_v21  ;;  %v12493_v47 = vmul.f32 %v12371_v51, %v23999_v26 }
 0x69f   : > { %v12564_v40 = vadd.f32 %v12492_v1, %v12370_v33  ;;  %v12494_v7 = vmul.f32 %v12372_v60, %v24000_v31  ;;  %v12042_v15 = vpop.f32.mrb[60].mxu0  ;;  %v24007_v31 = vld [vmem:[#allocation42_spill] sm:$0xff] }
 0x6a0   : > { %v12635_v54 = vmax.f32 %v12563_v41, 0.0  ;;  %v12565_v12 = vadd.f32 %v12493_v47, %v12373_v13  ;;  %v12044_v35 = vpop.f32.mrb[61].mxu0  ;;  %v12377_v6 = vadd.f32 %v22267_v29, %v12042_v15  ;;  %v24006_v41 = vld [vmem:[#allocation59_spill] sm:$0xff] }
 0x6a1   : > { %v12636_v59 = vmax.f32 %v12564_v40, 0.0  ;;  %v12566_v3 = vadd.f32 %v12494_v7, %v12374_v8  ;;  %v11829_v43 = vpop.f32.mrb[60].mxu1  ;;  %v12046_v57 = vpop.f32.mrb[62].mxu0  ;;  %v12378_v34 = vadd.f32 %v22269_v55, %v12044_v35 }
 0x6a2   : > { %12707 = vst [vmem:[%s22285_s11 + $0xa0] sm:$0xff] %v12635_v54  ;;  %v12637_v63 = vmax.f32 %v12565_v12, 0.0  ;;  %v12375_v20 = vadd.f32 %v22262_v14, %v11829_v43  ;;  %v11831_v46 = vpop.f32.mrb[61].mxu1  ;;  %v12048_v9 = vpop.f32.mrb[63].mxu0  ;;  %v12381_v0 = vadd.f32 %v22267_v29, %v12046_v57  ;;  %v24008_v12 = vld [vmem:[#allocation57_spill] sm:$0xff] }
 0x6a3   : > { %12708 = vst [vmem:[%s22285_s11 + $0xa8] sm:$0xff] %v12636_v59  ;;  %v12638_v49 = vmax.f32 %v12566_v3, 0.0  ;;  %v12376_v62 = vadd.f32 %v22265_v5, %v11831_v46  ;;  %v11833_v39 = vpop.f32.mrb[62].mxu1  ;;  %v12382_v52 = vadd.f32 %v22269_v55, %v12048_v9 }
 0x6a4   : > { %12709 = vst [vmem:[%s22285_s11 + $0xb0] sm:$0xff] %v12637_v63  ;;  %v12495_v56 = vmul.f32 %v12375_v20, %v24001_v42  ;;  %v12379_v16 = vadd.f32 %v22262_v14, %v11833_v39  ;;  %v11835_v27 = vpop.f32.mrb[63].mxu1 }
 0x6a5   : > { %12710 = vst [vmem:[%s22285_s11 + $0xb8] sm:$0xff] %v12638_v49  ;;  %v12496_v44 = vmul.f32 %v12376_v62, %v24002_v2  ;;  %v12380_v28 = vadd.f32 %v22265_v5, %v11835_v27  ;;  %v24009_v27 = vld [vmem:[#allocation43_spill] sm:$0xff] }
 0x6a6   : > { %v12567_v25 = vadd.f32 %v12495_v56, %v12377_v6  ;;  %v12497_v11 = vmul.f32 %v12379_v16, %v24003_v23 }
 0x6a7   : > { %v12568_v45 = vadd.f32 %v12496_v44, %v12378_v34  ;;  %v12498_v38 = vmul.f32 %v12380_v28, %v24004_v53  ;;  %v12052_v32 = vpop.f32.mrb[64].mxu0  ;;  %v24011_v53 = vld [vmem:[#allocation61_spill] sm:$0xff] }
 0x6a8   : > { %v12639_v30 = vmax.f32 %v12567_v25, 0.0  ;;  %v12569_v4 = vadd.f32 %v12497_v11, %v12381_v0  ;;  %v12054_v10 = vpop.f32.mrb[65].mxu0  ;;  %v12385_v48 = vadd.f32 %v22267_v29, %v12052_v32  ;;  %v24010_v25 = vld [vmem:[#allocation62_spill] sm:$0xff] }
 0x6a9   : > { %v12640_v19 = vmax.f32 %v12568_v45, 0.0  ;;  %v12570_v24 = vadd.f32 %v12498_v38, %v12382_v52  ;;  %v11839_v22 = vpop.f32.mrb[64].mxu1  ;;  %v12056_v51 = vpop.f32.mrb[66].mxu0  ;;  %v12386_v47 = vadd.f32 %v22269_v55, %v12054_v10 }
 0x6aa   : > { %12711 = vst [vmem:[%s22285_s11 + $0xc0] sm:$0xff] %v12639_v30  ;;  %v12641_v37 = vmax.f32 %v12569_v4, 0.0  ;;  %v12383_v17 = vadd.f32 %v22262_v14, %v11839_v22  ;;  %v11841_v36 = vpop.f32.mrb[65].mxu1  ;;  %v12058_v60 = vpop.f32.mrb[67].mxu0  ;;  %v12389_v8 = vadd.f32 %v22267_v29, %v12056_v51  ;;  %v24012_v4 = vld [vmem:[#allocation51_spill] sm:$0xff] }
 0x6ab   : > { %12712 = vst [vmem:[%s22285_s11 + $0xc8] sm:$0xff] %v12640_v19  ;;  %v12642_v61 = vmax.f32 %v12570_v24, 0.0  ;;  %v12384_v50 = vadd.f32 %v22265_v5, %v11841_v36  ;;  %v11843_v21 = vpop.f32.mrb[66].mxu1  ;;  %v12390_v3 = vadd.f32 %v22269_v55, %v12058_v60 }
 0x6ac   : > { %12713 = vst [vmem:[%s22285_s11 + $0xd0] sm:$0xff] %v12641_v37  ;;  %v12499_v58 = vmul.f32 %v12383_v17, %v24005_v18  ;;  %v12387_v1 = vadd.f32 %v22262_v14, %v11843_v21  ;;  %v11845_v33 = vpop.f32.mrb[67].mxu1 }
 0x6ad   : > { %12714 = vst [vmem:[%s22285_s11 + $0xd8] sm:$0xff] %v12642_v61  ;;  %v12500_v26 = vmul.f32 %v12384_v50, %v24006_v41  ;;  %v12388_v13 = vadd.f32 %v22265_v5, %v11845_v33  ;;  %v24013_v33 = vld [vmem:[#allocation18_spill] sm:$0xff] }
 0x6ae   : > { %v12571_v40 = vadd.f32 %v12499_v58, %v12385_v48  ;;  %v12501_v7 = vmul.f32 %v12387_v1, %v24007_v31 }
 0x6af   : > { %v12572_v54 = vadd.f32 %v12500_v26, %v12386_v47  ;;  %v12502_v59 = vmul.f32 %v12388_v13, %v24008_v12  ;;  %v12062_v35 = vpop.f32.mrb[68].mxu0  ;;  %v24015_v12 = vld [vmem:[#allocation20_spill] sm:$0xff] }
 0x6b0   : > { %v12643_v43 = vmax.f32 %v12571_v40, 0.0  ;;  %v12573_v15 = vadd.f32 %v12501_v7, %v12389_v8  ;;  %v12064_v57 = vpop.f32.mrb[69].mxu0  ;;  %v12393_v2 = vadd.f32 %v22267_v29, %v12062_v35  ;;  %v24014_v40 = vld [vmem:[#allocation9_spill] sm:$0xff] }
 0x6b1   : > { %v12644_v63 = vmax.f32 %v12572_v54, 0.0  ;;  %v12574_v20 = vadd.f32 %v12502_v59, %v12390_v3  ;;  %v11849_v46 = vpop.f32.mrb[68].mxu1  ;;  %v12066_v16 = vpop.f32.mrb[70].mxu0  ;;  %v12394_v11 = vadd.f32 %v22269_v55, %v12064_v57 }
 0x6b2   : > { %12715 = vst [vmem:[%s22285_s11 + $0xe0] sm:$0xff] %v12643_v43  ;;  %v12645_v49 = vmax.f32 %v12573_v15, 0.0  ;;  %v12391_v62 = vadd.f32 %v22262_v14, %v11849_v46  ;;  %v11851_v39 = vpop.f32.mrb[69].mxu1  ;;  %v12068_v28 = vpop.f32.mrb[71].mxu0  ;;  %v12397_v52 = vadd.f32 %v22267_v29, %v12066_v16  ;;  %v24016_v15 = vld [vmem:[#allocation11_spill] sm:$0xff] }
 0x6b3   : > { %12716 = vst [vmem:[%s22285_s11 + $0xe8] sm:$0xff] %v12644_v63  ;;  %v12646_v42 = vmax.f32 %v12574_v20, 0.0  ;;  %v12392_v56 = vadd.f32 %v22265_v5, %v11851_v39  ;;  %v11853_v6 = vpop.f32.mrb[70].mxu1  ;;  %v12398_v24 = vadd.f32 %v22269_v55, %v12068_v28 }
 0x6b4   : > { %12717 = vst [vmem:[%s22285_s11 + $0xf0] sm:$0xff] %v12645_v49  ;;  %v12503_v9 = vmul.f32 %v12391_v62, %v24009_v27  ;;  %v12395_v44 = vadd.f32 %v22262_v14, %v11853_v6  ;;  %v11855_v34 = vpop.f32.mrb[71].mxu1 }
 0x6b5   : > { %12718 = vst [vmem:[%s22285_s11 + $0xf8] sm:$0xff] %v12646_v42  ;;  %v12504_v23 = vmul.f32 %v12392_v56, %v24010_v25  ;;  %v12396_v0 = vadd.f32 %v22265_v5, %v11855_v34  ;;  %v24017_v34 = vld [vmem:[#allocation12_spill] sm:$0xff] }
 0x6b6   : > { %v12575_v45 = vadd.f32 %v12503_v9, %v12393_v2  ;;  %v12505_v38 = vmul.f32 %v12395_v44, %v24011_v53 }
 0x6b7   : > { %v12576_v30 = vadd.f32 %v12504_v23, %v12394_v11  ;;  %v12506_v19 = vmul.f32 %v12396_v0, %v24012_v4  ;;  %v12072_v10 = vpop.f32.mrb[72].mxu0  ;;  %v24019_v4 = vld [vmem:[#allocation14_spill] sm:$0xff] }
 0x6b8   : > { %v12647_v22 = vmax.f32 %v12575_v45, 0.0  ;;  %v12577_v32 = vadd.f32 %v12505_v38, %v12397_v52  ;;  %v12074_v51 = vpop.f32.mrb[73].mxu0  ;;  %v12401_v41 = vadd.f32 %v22267_v29, %v12072_v10  ;;  %v24018_v45 = vld [vmem:[#allocation13_spill] sm:$0xff] }
 0x6b9   : > { %v12648_v37 = vmax.f32 %v12576_v30, 0.0  ;;  %v12578_v17 = vadd.f32 %v12506_v19, %v12398_v24  ;;  %v11859_v36 = vpop.f32.mrb[72].mxu1  ;;  %v12076_v1 = vpop.f32.mrb[74].mxu0  ;;  %v12402_v7 = vadd.f32 %v22269_v55, %v12074_v51 }
 0x6ba   : > { %12719 = vst [vmem:[%s22285_s11 + $0x100] sm:$0xff] %v12647_v22  ;;  %v12649_v61 = vmax.f32 %v12577_v32, 0.0  ;;  %v12399_v50 = vadd.f32 %v22262_v14, %v11859_v36  ;;  %v11861_v21 = vpop.f32.mrb[73].mxu1  ;;  %v12078_v13 = vpop.f32.mrb[75].mxu0  ;;  %v12405_v3 = vadd.f32 %v22267_v29, %v12076_v1  ;;  %v24020_v32 = vld [vmem:[#allocation15_spill] sm:$0xff] }
 0x6bb   : > { %12720 = vst [vmem:[%s22285_s11 + $0x108] sm:$0xff] %v12648_v37  ;;  %v12650_v18 = vmax.f32 %v12578_v17, 0.0  ;;  %v12400_v58 = vadd.f32 %v22265_v5, %v11861_v21  ;;  %v11863_v48 = vpop.f32.mrb[74].mxu1  ;;  %v12406_v20 = vadd.f32 %v22269_v55, %v12078_v13 }
 0x6bc   : > { %12721 = vst [vmem:[%s22285_s11 + $0x110] sm:$0xff] %v12649_v61  ;;  %v12507_v60 = vmul.f32 %v12399_v50, %v24013_v33  ;;  %v12403_v26 = vadd.f32 %v22262_v14, %v11863_v48  ;;  %v11865_v47 = vpop.f32.mrb[75].mxu1 }
 0x6bd   : > { %12722 = vst [vmem:[%s22285_s11 + $0x118] sm:$0xff] %v12650_v18  ;;  %v12508_v31 = vmul.f32 %v12400_v58, %v24014_v40  ;;  %v12404_v8 = vadd.f32 %v22265_v5, %v11865_v47  ;;  %v24021_v47 = vld [vmem:[#allocation17_spill] sm:$0xff] }
 0x6be   : > { %v12579_v54 = vadd.f32 %v12507_v60, %v12401_v41  ;;  %v12509_v59 = vmul.f32 %v12403_v26, %v24015_v12 }
 0x6bf   : > { %v12580_v43 = vadd.f32 %v12508_v31, %v12402_v7  ;;  %v12510_v63 = vmul.f32 %v12404_v8, %v24016_v15  ;;  %v12082_v57 = vpop.f32.mrb[76].mxu0  ;;  %v24023_v15 = vld [vmem:[#allocation33_spill] sm:$0xff] }
 0x6c0   : > { %v12651_v46 = vmax.f32 %v12579_v54, 0.0  ;;  %v12581_v35 = vadd.f32 %v12509_v59, %v12405_v3  ;;  %v12084_v16 = vpop.f32.mrb[77].mxu0  ;;  %v12409_v25 = vadd.f32 %v22267_v29, %v12082_v57  ;;  %v24022_v54 = vld [vmem:[#allocation26_spill] sm:$0xff] }
 0x6c1   : > { %v12652_v49 = vmax.f32 %v12580_v43, 0.0  ;;  %v12582_v62 = vadd.f32 %v12510_v63, %v12406_v20  ;;  %v11869_v39 = vpop.f32.mrb[76].mxu1  ;;  %v12086_v44 = vpop.f32.mrb[78].mxu0  ;;  %v12410_v38 = vadd.f32 %v22269_v55, %v12084_v16 }
 0x6c2   : > { %12723 = vst [vmem:[%s22285_s11 + $0x120] sm:$0xff] %v12651_v46  ;;  %v12653_v42 = vmax.f32 %v12581_v35, 0.0  ;;  %v12407_v56 = vadd.f32 %v22262_v14, %v11869_v39  ;;  %v11871_v6 = vpop.f32.mrb[77].mxu1  ;;  %v12088_v0 = vpop.f32.mrb[79].mxu0  ;;  %v12413_v24 = vadd.f32 %v22267_v29, %v12086_v44  ;;  %v24024_v35 = vld [vmem:[#allocation34_spill] sm:$0xff] }
 0x6c3   : > { %12724 = vst [vmem:[%s22285_s11 + $0x128] sm:$0xff] %v12652_v49  ;;  %v12654_v27 = vmax.f32 %v12582_v62, 0.0  ;;  %v12408_v9 = vadd.f32 %v22265_v5, %v11871_v6  ;;  %v11873_v2 = vpop.f32.mrb[78].mxu1  ;;  %v12414_v17 = vadd.f32 %v22269_v55, %v12088_v0 }
 0x6c4   : > { %12725 = vst [vmem:[%s22285_s11 + $0x130] sm:$0xff] %v12653_v42  ;;  %v12511_v28 = vmul.f32 %v12407_v56, %v24017_v34  ;;  %v12411_v23 = vadd.f32 %v22262_v14, %v11873_v2  ;;  %v11875_v11 = vpop.f32.mrb[79].mxu1 }
 0x6c5   : > { %12726 = vst [vmem:[%s22285_s11 + $0x138] sm:$0xff] %v12654_v27  ;;  %v12512_v53 = vmul.f32 %v12408_v9, %v24018_v45  ;;  %v12412_v52 = vadd.f32 %v22265_v5, %v11875_v11  ;;  %v24025_v11 = vld [vmem:[#allocation53_spill] sm:$0xff] }
 0x6c6   : > { %v12583_v30 = vadd.f32 %v12511_v28, %v12409_v25  ;;  %v12513_v19 = vmul.f32 %v12411_v23, %v24019_v4 }
 0x6c7   : > { %v12584_v22 = vadd.f32 %v12512_v53, %v12410_v38  ;;  %v12514_v37 = vmul.f32 %v12412_v52, %v24020_v32  ;;  %v12092_v51 = vpop.f32.mrb[80].mxu0  ;;  %v24027_v32 = vld [vmem:[#allocation75_spill] sm:$0xff] }
 0x6c8   : > { %v12655_v36 = vmax.f32 %v12583_v30, 0.0  ;;  %v12585_v10 = vadd.f32 %v12513_v19, %v12413_v24  ;;  %v12094_v1 = vpop.f32.mrb[81].mxu0  ;;  %v12417_v40 = vadd.f32 %v22267_v29, %v12092_v51  ;;  %v24026_v30 = vld [vmem:[#allocation37_spill] sm:$0xff] }
 0x6c9   : > { %v12656_v61 = vmax.f32 %v12584_v22, 0.0  ;;  %v12586_v50 = vadd.f32 %v12514_v37, %v12414_v17  ;;  %v11879_v21 = vpop.f32.mrb[80].mxu1  ;;  %v12096_v26 = vpop.f32.mrb[82].mxu0  ;;  %v12418_v59 = vadd.f32 %v22269_v55, %v12094_v1 }
 0x6ca   : > { %12727 = vst [vmem:[%s22285_s11 + $0x140] sm:$0xff] %v12655_v36  ;;  %v12657_v18 = vmax.f32 %v12585_v10, 0.0  ;;  %v12415_v58 = vadd.f32 %v22262_v14, %v11879_v21  ;;  %v11881_v48 = vpop.f32.mrb[81].mxu1  ;;  %v12098_v8 = vpop.f32.mrb[83].mxu0  ;;  %v12421_v20 = vadd.f32 %v22267_v29, %v12096_v26  ;;  %v24028_v10 = vld [vmem:[#allocation50_spill] sm:$0xff] }
 0x6cb   : > { %12728 = vst [vmem:[%s22285_s11 + $0x148] sm:$0xff] %v12656_v61  ;;  %v12658_v33 = vmax.f32 %v12586_v50, 0.0  ;;  %v12416_v60 = vadd.f32 %v22265_v5, %v11881_v48  ;;  %v11883_v41 = vpop.f32.mrb[82].mxu1  ;;  %v12422_v62 = vadd.f32 %v22269_v55, %v12098_v8 }
 0x6cc   : > { %12729 = vst [vmem:[%s22285_s11 + $0x150] sm:$0xff] %v12657_v18  ;;  %v12515_v13 = vmul.f32 %v12415_v58, %v24021_v47  ;;  %v12419_v31 = vadd.f32 %v22262_v14, %v11883_v41  ;;  %v11885_v7 = vpop.f32.mrb[83].mxu1 }
 0x6cd   : > { %12730 = vst [vmem:[%s22285_s11 + $0x158] sm:$0xff] %v12658_v33  ;;  %v12516_v12 = vmul.f32 %v12416_v60, %v24022_v54  ;;  %v12420_v3 = vadd.f32 %v22265_v5, %v11885_v7  ;;  %v24029_v7 = vld [vmem:[#allocation60_spill] sm:$0xff] }
 0x6ce   : > { %v12587_v43 = vadd.f32 %v12515_v13, %v12417_v40  ;;  %v12517_v63 = vmul.f32 %v12419_v31, %v24023_v15 }
 0x6cf   : > { %v12588_v46 = vadd.f32 %v12516_v12, %v12418_v59  ;;  %v12518_v49 = vmul.f32 %v12420_v3, %v24024_v35  ;;  %v12102_v16 = vpop.f32.mrb[84].mxu0  ;;  %v24031_v35 = vld [vmem:[#allocation63_spill] sm:$0xff] }
 0x6d0   : > { %v12659_v39 = vmax.f32 %v12587_v43, 0.0  ;;  %v12589_v57 = vadd.f32 %v12517_v63, %v12421_v20  ;;  %v12104_v44 = vpop.f32.mrb[85].mxu0  ;;  %v12425_v45 = vadd.f32 %v22267_v29, %v12102_v16  ;;  %v24030_v43 = vld [vmem:[#allocation5_spill] sm:$0xff] }
 0x6d1   : > { %v12660_v42 = vmax.f32 %v12588_v46, 0.0  ;;  %v12590_v56 = vadd.f32 %v12518_v49, %v12422_v62  ;;  %v11889_v6 = vpop.f32.mrb[84].mxu1  ;;  %v12106_v23 = vpop.f32.mrb[86].mxu0  ;;  %v12426_v19 = vadd.f32 %v22269_v55, %v12104_v44 }
 0x6d2   : > { %12731 = vst [vmem:[%s22285_s11 + $0x160] sm:$0xff] %v12659_v39  ;;  %v12661_v27 = vmax.f32 %v12589_v57, 0.0  ;;  %v12423_v9 = vadd.f32 %v22262_v14, %v11889_v6  ;;  %v11891_v2 = vpop.f32.mrb[85].mxu1  ;;  %v12108_v52 = vpop.f32.mrb[87].mxu0  ;;  %v12429_v17 = vadd.f32 %v22267_v29, %v12106_v23  ;;  %v24032_v57 = vld [vmem:[#allocation52_spill] sm:$0xff] }
 0x6d3   : > { %12732 = vst [vmem:[%s22285_s11 + $0x168] sm:$0xff] %v12660_v42  ;;  %v12662_v34 = vmax.f32 %v12590_v56, 0.0  ;;  %v12424_v28 = vadd.f32 %v22265_v5, %v11891_v2  ;;  %v11893_v25 = vpop.f32.mrb[86].mxu1  ;;  %v12430_v50 = vadd.f32 %v22269_v55, %v12108_v52 }
 0x6d4   : > { %12733 = vst [vmem:[%s22285_s11 + $0x170] sm:$0xff] %v12661_v27  ;;  %v12519_v0 = vmul.f32 %v12423_v9, %v24025_v11  ;;  %v12427_v53 = vadd.f32 %v22262_v14, %v11893_v25  ;;  %v11895_v38 = vpop.f32.mrb[87].mxu1 }
 0x6d5   : > { %12734 = vst [vmem:[%s22285_s11 + $0x178] sm:$0xff] %v12662_v34  ;;  %v12520_v4 = vmul.f32 %v12424_v28, %v24026_v30  ;;  %v12428_v24 = vadd.f32 %v22265_v5, %v11895_v38  ;;  %v24033_v38 = vld [vmem:[#allocation66_spill] sm:$0xff] }
 0x6d6   : > { %v12591_v22 = vadd.f32 %v12519_v0, %v12425_v45  ;;  %v12521_v37 = vmul.f32 %v12427_v53, %v24027_v32 }
 0x6d7   : > { %v12592_v36 = vadd.f32 %v12520_v4, %v12426_v19  ;;  %v12522_v61 = vmul.f32 %v12428_v24, %v24028_v10  ;;  %v12112_v1 = vpop.f32.mrb[88].mxu0  ;;  %v24035_v10 = vld [vmem:[#allocation27_spill] sm:$0xff] }
 0x6d8   : > { %v12663_v21 = vmax.f32 %v12591_v22, 0.0  ;;  %v12593_v51 = vadd.f32 %v12521_v37, %v12429_v17  ;;  %v12114_v26 = vpop.f32.mrb[89].mxu0  ;;  %v12433_v54 = vadd.f32 %v22267_v29, %v12112_v1  ;;  %v24034_v22 = vld [vmem:[#allocation64_spill] sm:$0xff] }
 0x6d9   : > { %v12664_v18 = vmax.f32 %v12592_v36, 0.0  ;;  %v12594_v58 = vadd.f32 %v12522_v61, %v12430_v50  ;;  %v11899_v48 = vpop.f32.mrb[88].mxu1  ;;  %v12116_v31 = vpop.f32.mrb[90].mxu0  ;;  %v12434_v63 = vadd.f32 %v22269_v55, %v12114_v26 }
 0x6da   : > { %12735 = vst [vmem:[%s22285_s11 + $0x180] sm:$0xff] %v12663_v21  ;;  %v12665_v33 = vmax.f32 %v12593_v51, 0.0  ;;  %v12431_v60 = vadd.f32 %v22262_v14, %v11899_v48  ;;  %v11901_v41 = vpop.f32.mrb[89].mxu1  ;;  %v12118_v3 = vpop.f32.mrb[91].mxu0  ;;  %v12437_v62 = vadd.f32 %v22267_v29, %v12116_v31  ;;  %v24036_v51 = vld [vmem:[#allocation54_spill] sm:$0xff] }
 0x6db   : > { %12736 = vst [vmem:[%s22285_s11 + $0x188] sm:$0xff] %v12664_v18  ;;  %v12666_v47 = vmax.f32 %v12594_v58, 0.0  ;;  %v12432_v13 = vadd.f32 %v22265_v5, %v11901_v41  ;;  %v11903_v40 = vpop.f32.mrb[90].mxu1  ;;  %v12438_v56 = vadd.f32 %v22269_v55, %v12118_v3 }
 0x6dc   : > { %12737 = vst [vmem:[%s22285_s11 + $0x190] sm:$0xff] %v12665_v33  ;;  %v12523_v8 = vmul.f32 %v12431_v60, %v24029_v7  ;;  %v12435_v12 = vadd.f32 %v22262_v14, %v11903_v40  ;;  %v11905_v59 = vpop.f32.mrb[91].mxu1 }
 0x6dd   : > { %12738 = vst [vmem:[%s22285_s11 + $0x198] sm:$0xff] %v12666_v47  ;;  %v12524_v15 = vmul.f32 %v12432_v13, %v24030_v43  ;;  %v12436_v20 = vadd.f32 %v22265_v5, %v11905_v59  ;;  %v24037_v59 = vld [vmem:[#allocation16_spill] sm:$0xff] }
 0x6de   : > { %v12595_v46 = vadd.f32 %v12523_v8, %v12433_v54  ;;  %v12525_v49 = vmul.f32 %v12435_v12, %v24031_v35 }
 0x6df   : > { %v12596_v39 = vadd.f32 %v12524_v15, %v12434_v63  ;;  %v12526_v42 = vmul.f32 %v12436_v20, %v24032_v57  ;;  %v12122_v44 = vpop.f32.mrb[92].mxu0  ;;  %v24039_v57 = vld [vmem:[#allocation67_spill] sm:$0xff] }
 0x6e0   : > { %v12667_v6 = vmax.f32 %v12595_v46, 0.0  ;;  %v12597_v16 = vadd.f32 %v12525_v49, %v12437_v62  ;;  %v12124_v23 = vpop.f32.mrb[93].mxu0  ;;  %v12441_v30 = vadd.f32 %v22267_v29, %v12122_v44  ;;  %v24038_v46 = vld [vmem:[#allocation56_spill] sm:$0xff] }
 0x6e1   : > { %v12668_v27 = vmax.f32 %v12596_v39, 0.0  ;;  %v12598_v9 = vadd.f32 %v12526_v42, %v12438_v56  ;;  %v11909_v2 = vpop.f32.mrb[92].mxu1  ;;  %v12126_v53 = vpop.f32.mrb[94].mxu0  ;;  %v12442_v37 = vadd.f32 %v22269_v55, %v12124_v23 }
 0x6e2   : > { %12739 = vst [vmem:[%s22285_s11 + $0x1a0] sm:$0xff] %v12667_v6  ;;  %v12669_v34 = vmax.f32 %v12597_v16, 0.0  ;;  %v12439_v28 = vadd.f32 %v22262_v14, %v11909_v2  ;;  %v11911_v25 = vpop.f32.mrb[93].mxu1  ;;  %v12128_v24 = vpop.f32.mrb[95].mxu0  ;;  %v12445_v50 = vadd.f32 %v22267_v29, %v12126_v53  ;;  %v24040_v16 = vld [vmem:[#allocation8_spill] sm:$0xff] }
 0x6e3   : > { %12740 = vst [vmem:[%s22285_s11 + $0x1a8] sm:$0xff] %v12668_v27  ;;  %v12670_v11 = vmax.f32 %v12598_v9, 0.0  ;;  %v12440_v0 = vadd.f32 %v22265_v5, %v11911_v25  ;;  %v11913_v45 = vpop.f32.mrb[94].mxu1  ;;  %v12446_v58 = vadd.f32 %v22269_v55, %v12128_v24 }
 0x6e4   : > { %12741 = vst [vmem:[%s22285_s11 + $0x1b0] sm:$0xff] %v12669_v34  ;;  %v12527_v52 = vmul.f32 %v12439_v28, %v24033_v38  ;;  %v12443_v4 = vadd.f32 %v22262_v14, %v11913_v45  ;;  %v11915_v19 = vpop.f32.mrb[95].mxu1 }
 0x6e5   : > { %12742 = vst [vmem:[%s22285_s11 + $0x1b8] sm:$0xff] %v12670_v11  ;;  %v12528_v32 = vmul.f32 %v12440_v0, %v24034_v22  ;;  %v12444_v17 = vadd.f32 %v22265_v5, %v11915_v19  ;;  %v24041_v19 = vld [vmem:[#allocation58_spill] sm:$0xff] }
 0x6e6   : > { %v12599_v36 = vadd.f32 %v12527_v52, %v12441_v30  ;;  %v12529_v61 = vmul.f32 %v12443_v4, %v24035_v10 }
 0x6e7   : > { %v12600_v21 = vadd.f32 %v12528_v32, %v12442_v37  ;;  %v12530_v18 = vmul.f32 %v12444_v17, %v24036_v51  ;;  %v12132_v26 = vpop.f32.mrb[96].mxu0  ;;  %v24043_v51 = vld [vmem:[#allocation70_spill] sm:$0xff] }
 0x6e8   : > { %v12671_v48 = vmax.f32 %v12599_v36, 0.0  ;;  %v12601_v1 = vadd.f32 %v12529_v61, %v12445_v50  ;;  %v12134_v31 = vpop.f32.mrb[97].mxu0  ;;  %v12449_v43 = vadd.f32 %v22267_v29, %v12132_v26  ;;  %v24042_v36 = vld [vmem:[#allocation69_spill] sm:$0xff] }
 0x6e9   : > { %v12672_v33 = vmax.f32 %v12600_v21, 0.0  ;;  %v12602_v60 = vadd.f32 %v12530_v18, %v12446_v58  ;;  %v11919_v41 = vpop.f32.mrb[96].mxu1  ;;  %v12136_v12 = vpop.f32.mrb[98].mxu0  ;;  %v12450_v49 = vadd.f32 %v22269_v55, %v12134_v31 }
 0x6ea   : > { %12743 = vst [vmem:[%s22285_s11 + $0x1c0] sm:$0xff] %v12671_v48  ;;  %v12673_v47 = vmax.f32 %v12601_v1, 0.0  ;;  %v12447_v13 = vadd.f32 %v22262_v14, %v11919_v41  ;;  %v11921_v40 = vpop.f32.mrb[97].mxu1  ;;  %v12138_v20 = vpop.f32.mrb[99].mxu0  ;;  %v12453_v56 = vadd.f32 %v22267_v29, %v12136_v12  ;;  %v24044_v1 = vld [vmem:[#allocation65_spill] sm:$0xff] }
 0x6eb   : > { %12744 = vst [vmem:[%s22285_s11 + $0x1c8] sm:$0xff] %v12672_v33  ;;  %v12674_v7 = vmax.f32 %v12602_v60, 0.0  ;;  %v12448_v8 = vadd.f32 %v22265_v5, %v11921_v40  ;;  %v11923_v54 = vpop.f32.mrb[98].mxu1  ;;  %v12454_v9 = vadd.f32 %v22269_v55, %v12138_v20 }
 0x6ec   : > { %12745 = vst [vmem:[%s22285_s11 + $0x1d0] sm:$0xff] %v12673_v47  ;;  %v12531_v3 = vmul.f32 %v12447_v13, %v24037_v59  ;;  %v12451_v15 = vadd.f32 %v22262_v14, %v11923_v54  ;;  %v11925_v63 = vpop.f32.mrb[99].mxu1 }
 0x6ed   : > { %12746 = vst [vmem:[%s22285_s11 + $0x1d8] sm:$0xff] %v12674_v7  ;;  %v12532_v35 = vmul.f32 %v12448_v8, %v24038_v46  ;;  %v12452_v62 = vadd.f32 %v22265_v5, %v11925_v63  ;;  %v24045_v63 = vld [vmem:[#allocation29_spill] sm:$0xff] }
 0x6ee   : > { %v12603_v39 = vadd.f32 %v12531_v3, %v12449_v43  ;;  %v12533_v42 = vmul.f32 %v12451_v15, %v24039_v57 }
 0x6ef   : > { %v12604_v6 = vadd.f32 %v12532_v35, %v12450_v49  ;;  %v12534_v27 = vmul.f32 %v12452_v62, %v24040_v16  ;;  %v12142_v23 = vpop.f32.mrb[100].mxu0  ;;  %v24047_v16 = vld [vmem:[#allocation76_spill] sm:$0xff] }
 0x6f0   : > { %v12675_v2 = vmax.f32 %v12603_v39, 0.0  ;;  %v12605_v44 = vadd.f32 %v12533_v42, %v12453_v56  ;;  %v12144_v53 = vpop.f32.mrb[101].mxu0  ;;  %v12457_v22 = vadd.f32 %v22267_v29, %v12142_v23  ;;  %v24046_v39 = vld [vmem:[#allocation68_spill] sm:$0xff] }
 0x6f1   : > { %v12676_v34 = vmax.f32 %v12604_v6, 0.0  ;;  %v12606_v28 = vadd.f32 %v12534_v27, %v12454_v9  ;;  %v11929_v25 = vpop.f32.mrb[100].mxu1  ;;  %v12146_v4 = vpop.f32.mrb[102].mxu0  ;;  %v12458_v61 = vadd.f32 %v22269_v55, %v12144_v53 }
 0x6f2   : > { %12747 = vst [vmem:[%s22285_s11 + $0x1e0] sm:$0xff] %v12675_v2  ;;  %v12677_v11 = vmax.f32 %v12605_v44, 0.0  ;;  %v12455_v0 = vadd.f32 %v22262_v14, %v11929_v25  ;;  %v11931_v45 = vpop.f32.mrb[101].mxu1  ;;  %v12148_v17 = vpop.f32.mrb[103].mxu0  ;;  %v12461_v58 = vadd.f32 %v22267_v29, %v12146_v4 }
 0x6f3   : > { %12748 = vst [vmem:[%s22285_s11 + $0x1e8] sm:$0xff] %v12676_v34  ;;  %v12678_v38 = vmax.f32 %v12606_v28, 0.0  ;;  %v12456_v52 = vadd.f32 %v22265_v5, %v11931_v45  ;;  %v11933_v30 = vpop.f32.mrb[102].mxu1  ;;  %v12462_v60 = vadd.f32 %v22269_v55, %v12148_v17 }
 0x6f4   : > { %12749 = vst [vmem:[%s22285_s11 + $0x1f0] sm:$0xff] %v12677_v11  ;;  %v12535_v24 = vmul.f32 %v12455_v0, %v24041_v19  ;;  %v12459_v32 = vadd.f32 %v22262_v14, %v11933_v30  ;;  %v11935_v37 = vpop.f32.mrb[103].mxu1 }
 0x6f5   : > { %12750 = vst [vmem:[%s22285_s11 + $0x1f8] sm:$0xff] %v12678_v38  ;;  %v12536_v10 = vmul.f32 %v12456_v52, %v24042_v36  ;;  %v12460_v50 = vadd.f32 %v22265_v5, %v11935_v37 }
 0x6f6   : > { %v12607_v21 = vadd.f32 %v12535_v24, %v12457_v22  ;;  %v12537_v18 = vmul.f32 %v12459_v32, %v24043_v51 }
 0x6f7   : > { %v12608_v48 = vadd.f32 %v12536_v10, %v12458_v61  ;;  %v12538_v33 = vmul.f32 %v12460_v50, %v24044_v1  ;;  %v12152_v31 = vpop.f32.mrb[104].mxu0 }
 0x6f8   : > { %v12679_v41 = vmax.f32 %v12607_v21, 0.0  ;;  %v12609_v26 = vadd.f32 %v12537_v18, %v12461_v58  ;;  %v12154_v12 = vpop.f32.mrb[105].mxu0  ;;  %v12465_v46 = vadd.f32 %v22267_v29, %v12152_v31 }
 0x6f9   : > { %v12680_v47 = vmax.f32 %v12608_v48, 0.0  ;;  %v12610_v13 = vadd.f32 %v12538_v33, %v12462_v60  ;;  %v11939_v40 = vpop.f32.mrb[104].mxu1  ;;  %v12156_v15 = vpop.f32.mrb[106].mxu0  ;;  %v12466_v42 = vadd.f32 %v22269_v55, %v12154_v12 }
 0x6fa   : > { %12751 = vst [vmem:[%s22285_s11 + $0x200] sm:$0xff] %v12679_v41  ;;  %v12681_v7 = vmax.f32 %v12609_v26, 0.0  ;;  %v12463_v8 = vadd.f32 %v22262_v14, %v11939_v40  ;;  %v11941_v54 = vpop.f32.mrb[105].mxu1  ;;  %v12158_v62 = vpop.f32.mrb[107].mxu0  ;;  %v12469_v9 = vadd.f32 %v22267_v29, %v12156_v15 }
 0x6fb   : > { %12752 = vst [vmem:[%s22285_s11 + $0x208] sm:$0xff] %v12680_v47  ;;  %v12682_v59 = vmax.f32 %v12610_v13, 0.0  ;;  %v12464_v3 = vadd.f32 %v22265_v5, %v11941_v54  ;;  %v11943_v43 = vpop.f32.mrb[106].mxu1  ;;  %v12470_v34 = vadd.f32 %v22269_v55, %v12158_v62 }
 0x6fc   : > { %12753 = vst [vmem:[%s22285_s11 + $0x210] sm:$0xff] %v12681_v7  ;;  %v12539_v20 = vmul.f32 %v12463_v8, %v24045_v63  ;;  %v12467_v35 = vadd.f32 %v22262_v14, %v11943_v43  ;;  %v11945_v49 = vpop.f32.mrb[107].mxu1  ;;  %v24048_v14 = vld [vmem:[#allocation77_spill] sm:$0xff] }
 0x6fd   : > { %12754 = vst [vmem:[%s22285_s11 + $0x218] sm:$0xff] %v12682_v59  ;;  %v12540_v57 = vmul.f32 %v12464_v3, %v24046_v39  ;;  %v12468_v56 = vadd.f32 %v22265_v5, %v11945_v49 }
 0x6fe   : > { %v12611_v6 = vadd.f32 %v12539_v20, %v12465_v46  ;;  %v12541_v27 = vmul.f32 %v12467_v35, %v24047_v16 }
 0x6ff   : > { %v12612_v2 = vadd.f32 %v12540_v57, %v12466_v42  ;;  %v12542_v44 = vmul.f32 %v12468_v56, %v24048_v14 }
 0x700   : > { %v12683_v28 = vmax.f32 %v12611_v6, 0.0  ;;  %v12613_v25 = vadd.f32 %v12541_v27, %v12469_v9 }
 0x701   : > { %v12684_v23 = vmax.f32 %v12612_v2, 0.0  ;;  %v12614_v11 = vadd.f32 %v12542_v44, %v12470_v34 }
 0x702   : > { %12755 = vst [vmem:[%s22285_s11 + $0x220] sm:$0xff] %v12683_v28  ;;  %v12685_v0 = vmax.f32 %v12613_v25, 0.0 }
 0x703   : > { %12756 = vst [vmem:[%s22285_s11 + $0x228] sm:$0xff] %v12684_v23  ;;  %v12686_v45 = vmax.f32 %v12614_v11, 0.0 }
 0x704   : > { %12757 = vst [vmem:[%s22285_s11 + $0x230] sm:$0xff] %v12685_v0 }
 0x705   : > { %12758 = vst [vmem:[%s22285_s11 + $0x238] sm:$0xff] %v12686_v45 }
 0x706 PF: > { %s16_s21 = sadd.s32 1, %s16118_s21  }
 0x707   : > { %p13_p4 = scmp.ge.s32.totalorder %s16_s21, 4  }
 0x709   :  { %15 = sbr.rel (!%p13_p4) target bundleno = 1 (0x1), region = 82 }

</bundles_post_ra>
